<compile_context>
chip_gen: v7x
topology: tpu7x:2x2x1
jax: 0.10.0
libtpu: 0.0.40
codegen_flags: <defaults>
</compile_context>

<pallas_src>
import functools

import jax
import jax.numpy as jnp
from jax import lax
from jax.experimental import pallas as pl
from jax.experimental.pallas import tpu as pltpu

BN_EPS = 1e-5          # gat_eps in the reference
GAT_HEADS = 8          # gat_heads
LEAKY_SLOPE = 0.01     # F.leaky_relu default negative_slope (reference uses F.leaky_relu)
EDGE_EPS = 1e-7
LANE = 128
MIN_EDGE_TILE = 256
MAX_EDGE_TILE = 4096


def _round_up(a, b):
    return ((a + b - 1) // b) * b


def _vmem_specs(n):
    return [pl.BlockSpec(memory_space=pltpu.MemorySpace.VMEM) for _ in range(n)]


def _physical_vmem_bytes():
    """Physical VMEM of the attached TPU; conservative (v7x, 64 MiB) default."""
    try:
        info = pltpu.get_tpu_info()
        phys = int(getattr(info, "vmem_capacity_bytes", 64 * 1024 * 1024))
    except Exception:
        phys = 64 * 1024 * 1024
    return min(max(phys, 32 * 1024 * 1024), 128 * 1024 * 1024)


def _pick_edge_tile(e, n_pad, hf, budget_bytes):
    """Largest edge tile whose double-buffered [te, n_pad] G streams plus the
    resident node-level buffers fit the per-generation VMEM budget."""
    fixed = (
        2 * 2 * n_pad * hf * 4        # up to two x inputs, double-buffered, f32
        + (1 << 20)                   # fused weights / biases (generous)
        + 2 * n_pad * hf * 4          # output block
        + 2 * n_pad * hf * 2          # hoisted per-node H scratch (bf16, <=2 inputs)
        + 2 * 2 * n_pad * LANE * 2    # hoisted attention-logit scratch (lane-padded)
        + n_pad * hf * 4              # f32 accumulator
    )
    per_edge = 2 * (2 * n_pad * 2 + 4)   # double-buffered Gsrc+Gdst bf16 rows + edge_attr
    te = (budget_bytes - fixed) // per_edge
    te = max(MIN_EDGE_TILE, min(int(te), MAX_EDGE_TILE))
    te = (te // MIN_EDGE_TILE) * MIN_EDGE_TILE
    e8 = _round_up(e, 8)
    return e8 if e8 <= te else te


# ---------------------------------------------------------------------------
# CustomGATConv, all heads fused, optional second input (shared weights) and
# optional fused BatchNorm+ReLU epilogue.
#
# Per head h (reference semantics, flow source->target):
#   H      = x @ W[h] + b[h]
#   score  = leaky_relu( x_i . a_dst[h] + x_j . a_src[h] )
#   msg    = score * x_j * 1/(edge_attr + 1e-7)^2
#   out    = scatter_add_{dst}(msg)
# concat=True -> heads concatenated on lanes; concat=False -> head mean.
# ---------------------------------------------------------------------------
def _gat_conv_kernel(*args, num_inputs, concat, bn_relu, n_true):
    idx = 0
    x_refs = args[idx:idx + num_inputs]; idx += num_inputs
    (wall_ref, ball_ref, wad_ref, was_ref,
     bad_ref, bas_ref, sexp_ref) = args[idx:idx + 7]; idx += 7
    if not concat:
        hmean_ref = args[idx]; idx += 1
    gsrc_ref, gdst_ref, ea_ref, out_ref = args[idx:idx + 4]; idx += 4
    h_sc, ad_sc, as_sc, acc_ref = args[idx:idx + 4]

    e_step = pl.program_id(0)

    # ---- grid-invariant node-level work: once, kept in VMEM scratch ----------
    @pl.when(e_step == 0)
    def _():
        acc_ref[...] = jnp.zeros_like(acc_ref)
        wall = wall_ref[...]                               # [Fin, heads*Fout] bf16
        wad, was = wad_ref[...], was_ref[...]              # [Fin, heads] bf16 (folded W.a)
        for k in range(num_inputs):                        # static: 1 or 2 inputs
            xb = x_refs[k][...].astype(jnp.bfloat16)
            h = jnp.dot(xb, wall, preferred_element_type=jnp.float32) + ball_ref[...]
            h_sc[k] = h.astype(jnp.bfloat16)
            ad_sc[k] = (jnp.dot(xb, wad, preferred_element_type=jnp.float32)
                        + bad_ref[...]).astype(jnp.bfloat16)
            as_sc[k] = (jnp.dot(xb, was, preferred_element_type=jnp.float32)
                        + bas_ref[...]).astype(jnp.bfloat16)

    # ---- per-edge-tile work ---------------------------------------------------
    gsrc = gsrc_ref[...]                                   # [tE, Npad] bf16 one-hot (source)
    gdst = gdst_ref[...]                                   # [tE, Npad] bf16 one-hot (target)
    inv_sq = 1.0 / (ea_ref[...] + EDGE_EPS) ** 2           # [tE, 1] f32

    for k in range(num_inputs):
        # Gather per-node logits to edges; score stays lane-dense [tE, heads].
        score = (jnp.dot(gdst, ad_sc[k], preferred_element_type=jnp.float32)
                 + jnp.dot(gsrc, as_sc[k], preferred_element_type=jnp.float32))
        score = jnp.where(score >= 0, score, LEAKY_SLOPE * score)      # leaky_relu
        score = (score * inv_sq).astype(jnp.bfloat16)      # narrow 8-lane scale
        # Expand per-head coeff over its Fout lanes with a tiny MXU matmul.
        coeff = jnp.dot(score, sexp_ref[...], preferred_element_type=jnp.float32)
        x_j = jnp.dot(gsrc, h_sc[k], preferred_element_type=jnp.float32)
        msg = (coeff * x_j).astype(jnp.bfloat16)           # [tE, heads*Fout]
        # Scatter-add to target nodes: contract the edge axis (Gdst^T @ msg)
        # without materializing a transposed copy of Gdst.
        # TODO(synk): verify in lowered MLIR that Mosaic does not insert a
        # per-step vxpose here; if it does, pre-transpose G on the host instead.
        acc_ref[...] += lax.dot_general(
            gdst, msg, dimension_numbers=(((0,), (0,)), ((), ())),
            preferred_element_type=jnp.float32)

    # ---- epilogue (last edge tile) --------------------------------------------
    @pl.when(e_step == pl.num_programs(0) - 1)
    def _():
        out = acc_ref[...]
        if not concat:
            # Head mean via MXU (avoids a [N,8,16] reshape relayout).
            out = jnp.dot(out, hmean_ref[...], preferred_element_type=jnp.float32)
        if bn_relu:
            # Fused BatchNorm1d (training-mode stats, gamma=1, beta=0) + ReLU.
            # Padded node rows are exactly zero, so sums normalized by the true
            # node count give exact batch statistics.
            inv_n = 1.0 / n_true
            mean = jnp.sum(out, axis=0, keepdims=True) * inv_n
            ex2 = jnp.sum(out * out, axis=0, keepdims=True) * inv_n
            var = jnp.maximum(ex2 - mean * mean, 0.0)
            out = jnp.maximum((out - mean) * lax.rsqrt(var + BN_EPS), 0.0)
        out_ref[...] = out.astype(out_ref.dtype)


def gat_conv(xs, conv_p, gsrc, gdst, edge_attr, *, concat, bn_relu, n_true,
             edge_tile, vmem_limit_bytes):
    """xs: single [Npad, Fin] array or a tuple (shared-weight sum, e.g. conv3)."""
    if not isinstance(xs, (tuple, list)):
        xs = (xs,)
    xs = tuple(xs)
    w, b, ai, aj = conv_p["w"], conv_p["b"], conv_p["ai"], conv_p["aj"]
    heads, fin, fout = w.shape
    hf = heads * fout
    n_pad = xs[0].shape[0]
    n_in = len(xs)
    out_dim = hf if concat else fout

    # Head-fused weights (bf16 for the MXU; accumulation stays f32 in-kernel).
    w_all = jnp.transpose(w, (1, 0, 2)).reshape(fin, hf)          # [Fin, heads*Fout]
    b_all = b.reshape(1, hf)
    ai_m = ai.reshape(heads, fout)
    aj_m = aj.reshape(heads, fout)
    w3 = w_all.reshape(fin, heads, fout)
    # Fold the attention projections into the weights (exact):
    #   logits_dst = H @ Adst = x @ (W.Adst) + b.Adst
    w_att_dst = jnp.einsum("fhk,hk->fh", w3, ai_m)                # [Fin, heads]
    w_att_src = jnp.einsum("fhk,hk->fh", w3, aj_m)
    b_att_dst = jnp.einsum("hk,hk->h", b.reshape(heads, fout), ai_m).reshape(1, heads)
    b_att_src = jnp.einsum("hk,hk->h", b.reshape(heads, fout), aj_m).reshape(1, heads)
    s_exp = jnp.repeat(jnp.eye(heads, dtype=jnp.float32), fout, axis=1)   # [heads, hf]

    node_args = xs + (w_all.astype(jnp.bfloat16), b_all,
                      w_att_dst.astype(jnp.bfloat16), w_att_src.astype(jnp.bfloat16),
                      b_att_dst, b_att_src, s_exp.astype(jnp.bfloat16))
    if not concat:
        hmean = jnp.tile(jnp.eye(fout, dtype=jnp.float32), (heads, 1)) / heads
        node_args = node_args + (hmean,)

    e_pad = gsrc.shape[0]
    te = edge_tile
    grid = (e_pad // te,)

    def _full(arr):
        return pl.BlockSpec(arr.shape, lambda i: (0,) * arr.ndim)

    in_specs = ([_full(a) for a in node_args]
                + [pl.BlockSpec((te, n_pad), lambda i: (i, 0)),    # Gsrc tile
                   pl.BlockSpec((te, n_pad), lambda i: (i, 0)),    # Gdst tile
                   pl.BlockSpec((te, 1), lambda i: (i, 0))])       # edge_attr tile

    kern = functools.partial(_gat_conv_kernel, num_inputs=n_in,
                             concat=concat, bn_relu=bn_relu, n_true=float(n_true))
    return pl.pallas_call(
        kern,
        out_shape=jax.ShapeDtypeStruct((n_pad, out_dim), jnp.float32),
        grid_spec=pltpu.PrefetchScalarGridSpec(
            num_scalar_prefetch=0,
            grid=grid,
            in_specs=in_specs,
            out_specs=pl.BlockSpec((n_pad, out_dim), lambda i: (0, 0)),
            scratch_shapes=[
                pltpu.VMEM((n_in, n_pad, hf), jnp.bfloat16),       # hoisted H
                pltpu.VMEM((n_in, n_pad, heads), jnp.bfloat16),    # hoisted dst logits
                pltpu.VMEM((n_in, n_pad, heads), jnp.bfloat16),    # hoisted src logits
                pltpu.VMEM((n_pad, hf), jnp.float32),              # scatter accumulator
            ]),
        compiler_params=pltpu.CompilerParams(
            dimension_semantics=("arbitrary",),
            vmem_limit_bytes=vmem_limit_bytes),
    )(*node_args, gsrc, gdst, edge_attr)


# ---------------------------------------------------------------------------
# MLP head: BN->ReLU->Linear (with residuals) x4 + predictor, fully in-kernel.
# ---------------------------------------------------------------------------
def _mlp_head_kernel(kf_ref, w1_ref, b1_ref, w2_ref, b2_ref, w3_ref, b3_ref,
                     w4_ref, b4_ref, wp_ref, bp_ref, out_ref):
    def bn(v):
        m = jnp.mean(v, axis=0, keepdims=True)
        var = jnp.mean((v - m) ** 2, axis=0, keepdims=True)
        return (v - m) * lax.rsqrt(var + BN_EPS)

    def lin(v, w_r, b_r):
        return jnp.dot(v, w_r[...], preferred_element_type=jnp.float32) + b_r[...]

    kf = kf_ref[...]                                              # [B, F]
    h1 = lin(jnp.maximum(bn(kf), 0.0), w1_ref, b1_ref)            # [B, 2F]
    h2 = lin(jnp.maximum(bn(h1), 0.0), w2_ref, b2_ref) + h1
    h3 = lin(jnp.maximum(bn(h2), 0.0), w3_ref, b3_ref) + h2
    h4 = lin(jnp.maximum(bn(h3), 0.0), w4_ref, b4_ref) + h3
    out_ref[...] = lin(h4, wp_ref, bp_ref)                        # [B, 1]


def mlp_head(kf, m):
    b = kf.shape[0]
    return pl.pallas_call(
        _mlp_head_kernel,
        out_shape=jax.ShapeDtypeStruct((b, 1), jnp.float32),
        in_specs=_vmem_specs(11),
        out_specs=pl.BlockSpec(memory_space=pltpu.MemorySpace.VMEM),
    )(kf, m["w1"], m["b1"], m["w2"], m["b2"], m["w3"], m["b3"],
      m["w4"], m["b4"], m["wp"], m["bp"])


# ---------------------------------------------------------------------------
# Parameter initialization (deterministic, xavier-uniform like the reference)
# ---------------------------------------------------------------------------
def _xavier(key, shape, fan_in, fan_out):
    bound = (6.0 / (fan_in + fan_out)) ** 0.5
    return jax.random.uniform(key, shape, jnp.float32, -bound, bound)


def init_conv_params(key, fin, fout, heads):
    kw, ka = jax.random.split(key)
    w = _xavier(kw, (heads, fin, fout), fin, fout)                # W^T per head
    att = _xavier(ka, (heads, 1, 2 * fout), 1, 2 * fout)          # [1, 2*Fout] per head
    return {"w": w,
            "b": jnp.zeros((heads, 1, fout), jnp.float32),
            "ai": att[:, :, :fout],       # destination (x_i) half
            "aj": att[:, :, fout:]}       # source (x_j) half


def init_params(key, f, heads):
    ks = jax.random.split(key, 13)
    params = {
        "conv1": init_conv_params(ks[0], f, f, heads),
        "conv2": init_conv_params(ks[1], f * heads, f, heads),
        "conv3": init_conv_params(ks[2], f * heads, f, heads),
        "conv4": init_conv_params(ks[3], f * heads, f, heads),
        "conv5": init_conv_params(ks[4], f * heads, f, heads),
        "conv6": init_conv_params(ks[5], f * heads, f, heads),
        "conv_f": init_conv_params(ks[6], f * heads, f, heads),
    }
    params["mlp"] = {
        "w1": _xavier(ks[7], (f, 2 * f), f, 2 * f),
        "b1": jnp.zeros((1, 2 * f), jnp.float32),
        "w2": _xavier(ks[8], (2 * f, 2 * f), 2 * f, 2 * f),
        "b2": jnp.zeros((1, 2 * f), jnp.float32),
        "w3": _xavier(ks[9], (2 * f, 2 * f), 2 * f, 2 * f),
        "b3": jnp.zeros((1, 2 * f), jnp.float32),
        "w4": _xavier(ks[10], (2 * f, 2 * f), 2 * f, 2 * f),
        "b4": jnp.zeros((1, 2 * f), jnp.float32),
        "wp": _xavier(ks[11], (2 * f, 1), 2 * f, 1),
        "bp": jnp.zeros((1, 1), jnp.float32),
    }
    # TODO(synk): self.element_embedding exists in __init__ but is never used in forward; omitted.
    return params


# ---------------------------------------------------------------------------
# Full GAT forward (same signature / data flow as the torch module)
# ---------------------------------------------------------------------------
def gat_forward(params, x, edge_index, edge_attr, batch, li_ni_indices,
                k_neighbors, u_nb, v_nb, num_nodes):
    del batch, k_neighbors, u_nb, v_nb   # only printed / never consumed in the reference math
    n, f = x.shape
    hf = f * GAT_HEADS

    # Pad the node axis to a multiple of 128 so the one-hot lane/contraction axis
    # fills full vregs; padded rows stay exact zeros through the pipeline.
    n_pad = _round_up(max(n, 8), LANE)
    if n_pad != n:
        x = jnp.pad(x, ((0, n_pad - n), (0, 0)))

    # Dense one-hot gather/scatter matrices in bf16 (0/1 exact); shared by all convs.
    # TODO(synk): for production-scale graphs replace the dense [E, N] one-hots
    # (re-streamed per layer) with a scalar-prefetch / pl.Element index-gather +
    # DMA-scatter design, or fuse the conv chain into one pallas_call that keeps
    # the G tiles resident across layers.
    gsrc = jax.nn.one_hot(edge_index[0], n_pad, dtype=jnp.bfloat16)   # [E, Npad] source gather
    gdst = jax.nn.one_hot(edge_index[1], n_pad, dtype=jnp.bfloat16)   # [E, Npad] target gather/scatter

    # Per-generation tile / VMEM sizing from physical VMEM
    # (128 MiB on v5e/v6e -> large edge tiles, 64 MiB per-core on v7x).
    phys = _physical_vmem_bytes()
    e = gsrc.shape[0]
    te = _pick_edge_tile(e, n_pad, hf, int(phys * 0.70))
    vmem_limit = int(phys * 0.85)
    e_pad = _round_up(e, te)
    if e_pad != e:
        pad = e_pad - e
        gsrc = jnp.pad(gsrc, ((0, pad), (0, 0)))                      # zero rows -> zero contribution
        gdst = jnp.pad(gdst, ((0, pad), (0, 0)))
        edge_attr = jnp.pad(edge_attr, ((0, pad), (0, 0)), constant_values=1.0)

    def conv(name, xs, concat=True, bn_relu=True):
        return gat_conv(xs, params[name], gsrc, gdst, edge_attr,
                        concat=concat, bn_relu=bn_relu, n_true=n,
                        edge_tile=te, vmem_limit_bytes=vmem_limit)

    x1 = conv("conv1", x)                       # conv + fused bn1 + relu
    x2 = conv("conv2", x1)                      # conv + fused bn2 + relu
    x3 = conv("conv3", (x2, x1))                # conv3(x2)+conv3(x1) in ONE kernel + bn3 + relu
    x4 = conv("conv4", x3)
    x5 = conv("conv5", x4)                      # feeds only the unused x6 -> DCE'd under jit
    x6 = conv("conv6", (x5, x4))                # unused in the reference forward -> DCE'd
    del x6
    x_f = conv("conv_f", x4, concat=False, bn_relu=False)   # [Npad, F], head mean

    batch_size = li_ni_indices.shape[0]                      # == batch.max() + 1
    nodes_per_graph = num_nodes // batch_size
    start_idx = jnp.arange(batch_size, dtype=jnp.int32) * nodes_per_graph
    adj = li_ni_indices + start_idx[:, None]                 # [B, 2]
    k_hop_features = (x_f[adj[:, 0]] + x_f[adj[:, 1]]) * 0.5  # [B, F]

    return mlp_head(k_hop_features, params["mlp"])           # [B, 1]


gat_forward_jit = jax.jit(gat_forward, static_argnames=("num_nodes",))


if __name__ == "__main__":
    F = 16           # num_node_features stand-in (heads*F = 128 = one full lane width)
    B = 4            # graphs in the batch
    NG = 16          # nodes per graph
    N = B * NG

    key = jax.random.PRNGKey(0)
    kparams, kx, kea = jax.random.split(key, 3)

    # Directed ring edges within each graph (both directions), like the PyG edge list.
    src, dst = [], []
    for g in range(B):
        off = g * NG
        for i in range(NG):
            src.append(off + i); dst.append(off + (i + 1) % NG)
            src.append(off + (i + 1) % NG); dst.append(off + i)
    edge_index = jnp.array([src, dst], dtype=jnp.int32)          # [2, E]
    E = edge_index.shape[1]

    x = jax.random.uniform(kx, (N, F), dtype=jnp.float32)                    # normalized node feats
    edge_attr = jax.random.uniform(kea, (E, 1), jnp.float32, 1.5, 3.0)       # positive distances
    batch = jnp.repeat(jnp.arange(B, dtype=jnp.int32), NG)                   # [N]
    li_ni_indices = jnp.array([[0, 1]] * B, dtype=jnp.int32)                 # local (li, ni) per graph
    k_neighbors = jnp.tile(jnp.arange(4, dtype=jnp.int32), (B, 1))           # unused downstream
    u_nb = jnp.tile(jnp.arange(3, dtype=jnp.int32), (B, 1))
    v_nb = jnp.tile(jnp.arange(3, dtype=jnp.int32), (B, 1))
    num_nodes = N

    params = init_params(kparams, F, GAT_HEADS)

    out = gat_forward_jit(params, x, edge_index, edge_attr, batch, li_ni_indices,
                          k_neighbors, u_nb, v_nb, num_nodes=num_nodes)
    jax.block_until_ready(out)
    assert out.shape == (B, 1) and out.dtype == jnp.float32
    print("KERNEL_OK")
</pallas_src>

<mosaic_0001>
module attributes {stable_mosaic.version = 11 : i64} {
  func.func @_gat_conv_kernel(%arg0: i32, %arg1: memref<128x16xf32, #tpu.memory_space<vmem>>, %arg2: memref<16x128xbf16, #tpu.memory_space<vmem>>, %arg3: memref<1x128xf32, #tpu.memory_space<vmem>>, %arg4: memref<16x8xbf16, #tpu.memory_space<vmem>>, %arg5: memref<16x8xbf16, #tpu.memory_space<vmem>>, %arg6: memref<1x8xf32, #tpu.memory_space<vmem>>, %arg7: memref<1x8xf32, #tpu.memory_space<vmem>>, %arg8: memref<8x128xbf16, #tpu.memory_space<vmem>>, %arg9: memref<128x128xbf16, #tpu.memory_space<vmem>>, %arg10: memref<128x128xbf16, #tpu.memory_space<vmem>>, %arg11: memref<128x1xf32, #tpu.memory_space<vmem>>, %arg12: memref<128x128xf32, #tpu.memory_space<vmem>>, %arg13: memref<1x128x128xbf16, #tpu.memory_space<vmem>>, %arg14: memref<1x128x8xbf16, #tpu.memory_space<vmem>>, %arg15: memref<1x128x8xbf16, #tpu.memory_space<vmem>>, %arg16: memref<128x128xf32, #tpu.memory_space<vmem>>) attributes {dimension_semantics = [#tpu.dimension_semantics<arbitrary>], iteration_bounds = array<i64: 1>, scalar_prefetch = 0 : i64, scratch_operands = 4 : i64, tpu.core_type = #tpu.core_type<tc>, window_params = [{pipeline_mode = #tpu.pipeline_mode<synchronous>, transform_indices = @transform_0, window_bounds = array<i64: 128, 16>}, {pipeline_mode = #tpu.pipeline_mode<synchronous>, transform_indices = @transform_1, window_bounds = array<i64: 16, 128>}, {pipeline_mode = #tpu.pipeline_mode<synchronous>, transform_indices = @transform_2, window_bounds = array<i64: 1, 128>}, {pipeline_mode = #tpu.pipeline_mode<synchronous>, transform_indices = @transform_3, window_bounds = array<i64: 16, 8>}, {pipeline_mode = #tpu.pipeline_mode<synchronous>, transform_indices = @transform_4, window_bounds = array<i64: 16, 8>}, {pipeline_mode = #tpu.pipeline_mode<synchronous>, transform_indices = @transform_5, window_bounds = array<i64: 1, 8>}, {pipeline_mode = #tpu.pipeline_mode<synchronous>, transform_indices = @transform_6, window_bounds = array<i64: 1, 8>}, {pipeline_mode = #tpu.pipeline_mode<synchronous>, transform_indices = @transform_7, window_bounds = array<i64: 8, 128>}, {transform_indices = @transform_8, window_bounds = array<i64: 128, 128>}, {transform_indices = @transform_9, window_bounds = array<i64: 128, 128>}, {transform_indices = @transform_10, window_bounds = array<i64: 128, 1>}, {pipeline_mode = #tpu.pipeline_mode<synchronous>, transform_indices = @transform_11, window_bounds = array<i64: 128, 128>}]} {
    %c0_i32 = arith.constant 0 : i32
    %0 = arith.cmpi eq, %arg0, %c0_i32 : i32
    %1 = arith.extui %0 : i1 to i32
    %c0_i32_0 = arith.constant 0 : i32
    %2 = arith.cmpi ne, %1, %c0_i32_0 : i32
    scf.if %2 {
      %cst_31 = arith.constant 0.000000e+00 : f32
      %40 = vector.broadcast %cst_31 : f32 to vector<128x128xf32>
      %c0_32 = arith.constant 0 : index
      %c0_33 = arith.constant 0 : index
      %41 = vector.load %arg16[%c0_32, %c0_33] : memref<128x128xf32, #tpu.memory_space<vmem>>, vector<128x128xf32>
      tpu.vector_store %arg16[%c0_32, %c0_33], %40 {strides = array<i32>} : memref<128x128xf32, #tpu.memory_space<vmem>>, vector<128x128xf32>,
      %c0_34 = arith.constant 0 : index
      %c0_35 = arith.constant 0 : index
      %42 = vector.load %arg2[%c0_34, %c0_35] : memref<16x128xbf16, #tpu.memory_space<vmem>>, vector<16x128xbf16>
      %c0_36 = arith.constant 0 : index
      %c0_37 = arith.constant 0 : index
      %43 = vector.load %arg4[%c0_36, %c0_37] : memref<16x8xbf16, #tpu.memory_space<vmem>>, vector<16x8xbf16>
      %c0_38 = arith.constant 0 : index
      %c0_39 = arith.constant 0 : index
      %44 = vector.load %arg5[%c0_38, %c0_39] : memref<16x8xbf16, #tpu.memory_space<vmem>>, vector<16x8xbf16>
      %c0_40 = arith.constant 0 : index
      %c0_41 = arith.constant 0 : index
      %45 = vector.load %arg1[%c0_40, %c0_41] : memref<128x16xf32, #tpu.memory_space<vmem>>, vector<128x16xf32>
      %46 = arith.truncf %45 : vector<128x16xf32> to vector<128x16xbf16>
      %cst_42 = arith.constant dense<0.000000e+00> : vector<128x128xf32>
      %47 = tpu.matmul %46, %42, %cst_42 {dimension_numbers = #tpu.dot_dimension_numbers<[1], [0], [0], [1], [0, 0, 1, 1], [], []>} : vector<128x16xbf16>, vector<16x128xbf16>, vector<128x128xf32> -> vector<128x128xf32>
      %c0_43 = arith.constant 0 : index
      %c0_44 = arith.constant 0 : index
      %48 = vector.load %arg3[%c0_43, %c0_44] : memref<1x128xf32, #tpu.memory_space<vmem>>, vector<1x128xf32>
      %49 = vector.broadcast %48 : vector<1x128xf32> to vector<128x128xf32>
      %50 = arith.addf %47, %49 : vector<128x128xf32>
      %51 = arith.truncf %50 : vector<128x128xf32> to vector<128x128xbf16>
      %c0_45 = arith.constant 0 : index
      %c0_46 = arith.constant 0 : index
      %c0_47 = arith.constant 0 : index
      %52 = vector.load %arg13[%c0_45, %c0_46, %c0_47] : memref<1x128x128xbf16, #tpu.memory_space<vmem>>, vector<1x128x128xbf16>
      %53 = vector.shape_cast %52 : vector<1x128x128xbf16> to vector<128x128xbf16>
      %54 = vector.shape_cast %51 : vector<128x128xbf16> to vector<1x128x128xbf16>
      tpu.vector_store %arg13[%c0_45, %c0_46, %c0_47], %54 {strides = array<i32>} : memref<1x128x128xbf16, #tpu.memory_space<vmem>>, vector<1x128x128xbf16>,
      %cst_48 = arith.constant dense<0.000000e+00> : vector<128x8xf32>
      %55 = tpu.matmul %46, %43, %cst_48 {dimension_numbers = #tpu.dot_dimension_numbers<[1], [0], [0], [1], [0, 0, 1, 1], [], []>} : vector<128x16xbf16>, vector<16x8xbf16>, vector<128x8xf32> -> vector<128x8xf32>
      %c0_49 = arith.constant 0 : index
      %c0_50 = arith.constant 0 : index
      %56 = vector.load %arg6[%c0_49, %c0_50] : memref<1x8xf32, #tpu.memory_space<vmem>>, vector<1x8xf32>
      %57 = vector.broadcast %56 : vector<1x8xf32> to vector<128x8xf32>
      %58 = arith.addf %55, %57 : vector<128x8xf32>
      %59 = arith.truncf %58 : vector<128x8xf32> to vector<128x8xbf16>
      %c0_51 = arith.constant 0 : index
      %c0_52 = arith.constant 0 : index
      %c0_53 = arith.constant 0 : index
      %60 = vector.load %arg14[%c0_51, %c0_52, %c0_53] : memref<1x128x8xbf16, #tpu.memory_space<vmem>>, vector<1x128x8xbf16>
      %61 = vector.shape_cast %60 : vector<1x128x8xbf16> to vector<128x8xbf16>
      %62 = vector.shape_cast %59 : vector<128x8xbf16> to vector<1x128x8xbf16>
      tpu.vector_store %arg14[%c0_51, %c0_52, %c0_53], %62 {strides = array<i32>} : memref<1x128x8xbf16, #tpu.memory_space<vmem>>, vector<1x128x8xbf16>,
      %cst_54 = arith.constant dense<0.000000e+00> : vector<128x8xf32>
      %63 = tpu.matmul %46, %44, %cst_54 {dimension_numbers = #tpu.dot_dimension_numbers<[1], [0], [0], [1], [0, 0, 1, 1], [], []>} : vector<128x16xbf16>, vector<16x8xbf16>, vector<128x8xf32> -> vector<128x8xf32>
      %c0_55 = arith.constant 0 : index
      %c0_56 = arith.constant 0 : index
      %64 = vector.load %arg7[%c0_55, %c0_56] : memref<1x8xf32, #tpu.memory_space<vmem>>, vector<1x8xf32>
      %65 = vector.broadcast %64 : vector<1x8xf32> to vector<128x8xf32>
      %66 = arith.addf %63, %65 : vector<128x8xf32>
      %67 = arith.truncf %66 : vector<128x8xf32> to vector<128x8xbf16>
      %c0_57 = arith.constant 0 : index
      %c0_58 = arith.constant 0 : index
      %c0_59 = arith.constant 0 : index
      %68 = vector.load %arg15[%c0_57, %c0_58, %c0_59] : memref<1x128x8xbf16, #tpu.memory_space<vmem>>, vector<1x128x8xbf16>
      %69 = vector.shape_cast %68 : vector<1x128x8xbf16> to vector<128x8xbf16>
      %70 = vector.shape_cast %67 : vector<128x8xbf16> to vector<1x128x8xbf16>
      tpu.vector_store %arg15[%c0_57, %c0_58, %c0_59], %70 {strides = array<i32>} : memref<1x128x8xbf16, #tpu.memory_space<vmem>>, vector<1x128x8xbf16>,
    } else {
    }
    %c0 = arith.constant 0 : index
    %c0_1 = arith.constant 0 : index
    %3 = vector.load %arg9[%c0, %c0_1] : memref<128x128xbf16, #tpu.memory_space<vmem>>, vector<128x128xbf16>
    %c0_2 = arith.constant 0 : index
    %c0_3 = arith.constant 0 : index
    %4 = vector.load %arg10[%c0_2, %c0_3] : memref<128x128xbf16, #tpu.memory_space<vmem>>, vector<128x128xbf16>
    %c0_4 = arith.constant 0 : index
    %c0_5 = arith.constant 0 : index
    %5 = vector.load %arg11[%c0_4, %c0_5] : memref<128x1xf32, #tpu.memory_space<vmem>>, vector<128x1xf32>
    %cst = arith.constant 1.000000e-07 : f32
    %6 = vector.broadcast %cst : f32 to vector<128x1xf32>
    %7 = arith.addf %5, %6 : vector<128x1xf32>
    %8 = arith.mulf %7, %7 : vector<128x1xf32>
    %cst_6 = arith.constant 1.000000e+00 : f32
    %9 = vector.broadcast %cst_6 : f32 to vector<128x1xf32>
    %10 = arith.divf %9, %8 : vector<128x1xf32>
    %c0_7 = arith.constant 0 : index
    %c0_8 = arith.constant 0 : index
    %c0_9 = arith.constant 0 : index
    %11 = vector.load %arg14[%c0_7, %c0_8, %c0_9] : memref<1x128x8xbf16, #tpu.memory_space<vmem>>, vector<1x128x8xbf16>
    %12 = vector.shape_cast %11 : vector<1x128x8xbf16> to vector<128x8xbf16>
    %cst_10 = arith.constant dense<0.000000e+00> : vector<128x8xf32>
    %13 = tpu.matmul %4, %12, %cst_10 {dimension_numbers = #tpu.dot_dimension_numbers<[1], [0], [0], [1], [0, 0, 1, 1], [], []>} : vector<128x128xbf16>, vector<128x8xbf16>, vector<128x8xf32> -> vector<128x8xf32>
    %c0_11 = arith.constant 0 : index
    %c0_12 = arith.constant 0 : index
    %c0_13 = arith.constant 0 : index
    %14 = vector.load %arg15[%c0_11, %c0_12, %c0_13] : memref<1x128x8xbf16, #tpu.memory_space<vmem>>, vector<1x128x8xbf16>
    %15 = vector.shape_cast %14 : vector<1x128x8xbf16> to vector<128x8xbf16>
    %cst_14 = arith.constant dense<0.000000e+00> : vector<128x8xf32>
    %16 = tpu.matmul %3, %15, %cst_14 {dimension_numbers = #tpu.dot_dimension_numbers<[1], [0], [0], [1], [0, 0, 1, 1], [], []>} : vector<128x128xbf16>, vector<128x8xbf16>, vector<128x8xf32> -> vector<128x8xf32>
    %17 = arith.addf %13, %16 : vector<128x8xf32>
    %cst_15 = arith.constant 0.000000e+00 : f32
    %18 = vector.broadcast %cst_15 : f32 to vector<128x8xf32>
    %19 = arith.cmpf oge, %17, %18 : vector<128x8xf32>
    %cst_16 = arith.constant 0.00999999977 : f32
    %20 = vector.broadcast %cst_16 : f32 to vector<128x8xf32>
    %21 = arith.mulf %20, %17 : vector<128x8xf32>
    %22 = arith.select %19, %17, %21 : vector<128x8xi1>, vector<128x8xf32>
    %23 = vector.broadcast %10 : vector<128x1xf32> to vector<128x8xf32>
    %24 = arith.mulf %22, %23 : vector<128x8xf32>
    %25 = arith.truncf %24 : vector<128x8xf32> to vector<128x8xbf16>
    %c0_17 = arith.constant 0 : index
    %c0_18 = arith.constant 0 : index
    %26 = vector.load %arg8[%c0_17, %c0_18] : memref<8x128xbf16, #tpu.memory_space<vmem>>, vector<8x128xbf16>
    %cst_19 = arith.constant dense<0.000000e+00> : vector<128x128xf32>
    %27 = tpu.matmul %25, %26, %cst_19 {dimension_numbers = #tpu.dot_dimension_numbers<[1], [0], [0], [1], [0, 0, 1, 1], [], []>} : vector<128x8xbf16>, vector<8x128xbf16>, vector<128x128xf32> -> vector<128x128xf32>
    %c0_20 = arith.constant 0 : index
    %c0_21 = arith.constant 0 : index
    %c0_22 = arith.constant 0 : index
    %28 = vector.load %arg13[%c0_20, %c0_21, %c0_22] : memref<1x128x128xbf16, #tpu.memory_space<vmem>>, vector<1x128x128xbf16>
    %29 = vector.shape_cast %28 : vector<1x128x128xbf16> to vector<128x128xbf16>
    %cst_23 = arith.constant dense<0.000000e+00> : vector<128x128xf32>
    %30 = tpu.matmul %3, %29, %cst_23 {dimension_numbers = #tpu.dot_dimension_numbers<[1], [0], [0], [1], [0, 0, 1, 1], [], []>} : vector<128x128xbf16>, vector<128x128xbf16>, vector<128x128xf32> -> vector<128x128xf32>
    %31 = arith.mulf %27, %30 : vector<128x128xf32>
    %32 = arith.truncf %31 : vector<128x128xf32> to vector<128x128xbf16>
    %c0_24 = arith.constant 0 : index
    %c0_25 = arith.constant 0 : index
    %33 = vector.load %arg16[%c0_24, %c0_25] : memref<128x128xf32, #tpu.memory_space<vmem>>, vector<128x128xf32>
    %cst_26 = arith.constant dense<0.000000e+00> : vector<128x128xf32>
    %34 = tpu.matmul %4, %32, %cst_26 {dimension_numbers = #tpu.dot_dimension_numbers<[0], [0], [1], [1], [0, 1, 1, 1], [], []>} : vector<128x128xbf16>, vector<128x128xbf16>, vector<128x128xf32> -> vector<128x128xf32>
    %35 = arith.addf %33, %34 : vector<128x128xf32>
    %c0_27 = arith.constant 0 : index
    %c0_28 = arith.constant 0 : index
    %36 = vector.load %arg16[%c0_27, %c0_28] : memref<128x128xf32, #tpu.memory_space<vmem>>, vector<128x128xf32>
    tpu.vector_store %arg16[%c0_27, %c0_28], %35 {strides = array<i32>} : memref<128x128xf32, #tpu.memory_space<vmem>>, vector<128x128xf32>,
    %c0_i32_29 = arith.constant 0 : i32
    %37 = arith.cmpi eq, %arg0, %c0_i32_29 : i32
    %38 = arith.extui %37 : i1 to i32
    %c0_i32_30 = arith.constant 0 : i32
    %39 = arith.cmpi ne, %38, %c0_i32_30 : i32
    scf.if %39 {
      %c0_31 = arith.constant 0 : index
      %c0_32 = arith.constant 0 : index
      %40 = vector.load %arg16[%c0_31, %c0_32] : memref<128x128xf32, #tpu.memory_space<vmem>>, vector<128x128xf32>
      %cst_33 = arith.constant dense<0.000000e+00> : vector<128xf32>
      %41 = vector.multi_reduction <add>, %40, %cst_33 [0] : vector<128x128xf32> to vector<128xf32>
      %42 = vector.shape_cast %41 : vector<128xf32> to vector<1x128xf32>
      %cst_34 = arith.constant 1.562500e-02 : f32
      %43 = vector.broadcast %cst_34 : f32 to vector<1x128xf32>
      %44 = arith.mulf %42, %43 : vector<1x128xf32>
      %45 = arith.mulf %40, %40 : vector<128x128xf32>
      %cst_35 = arith.constant dense<0.000000e+00> : vector<128xf32>
      %46 = vector.multi_reduction <add>, %45, %cst_35 [0] : vector<128x128xf32> to vector<128xf32>
      %47 = vector.shape_cast %46 : vector<128xf32> to vector<1x128xf32>
      %cst_36 = arith.constant 1.562500e-02 : f32
      %48 = vector.broadcast %cst_36 : f32 to vector<1x128xf32>
      %49 = arith.mulf %47, %48 : vector<1x128xf32>
      %50 = arith.mulf %44, %44 : vector<1x128xf32>
      %51 = arith.subf %49, %50 : vector<1x128xf32>
      %cst_37 = arith.constant 0.000000e+00 : f32
      %52 = vector.broadcast %cst_37 : f32 to vector<1x128xf32>
      %53 = arith.maximumf %51, %52 : vector<1x128xf32>
      %54 = vector.broadcast %44 : vector<1x128xf32> to vector<128x128xf32>
      %55 = arith.subf %40, %54 : vector<128x128xf32>
      %cst_38 = arith.constant 9.99999974E-6 : f32
      %56 = vector.broadcast %cst_38 : f32 to vector<1x128xf32>
      %57 = arith.addf %53, %56 : vector<1x128xf32>
      %58 = math.rsqrt %57 : vector<1x128xf32>
      %59 = vector.broadcast %58 : vector<1x128xf32> to vector<128x128xf32>
      %60 = arith.mulf %55, %59 : vector<128x128xf32>
      %cst_39 = arith.constant 0.000000e+00 : f32
      %61 = vector.broadcast %cst_39 : f32 to vector<128x128xf32>
      %62 = arith.maximumf %60, %61 : vector<128x128xf32>
      %c0_40 = arith.constant 0 : index
      %c0_41 = arith.constant 0 : index
      %63 = vector.load %arg12[%c0_40, %c0_41] : memref<128x128xf32, #tpu.memory_space<vmem>>, vector<128x128xf32>
      tpu.vector_store %arg12[%c0_40, %c0_41], %62 {strides = array<i32>} : memref<128x128xf32, #tpu.memory_space<vmem>>, vector<128x128xf32>,
    } else {
    }
    return
  }
  func.func @transform_0(%arg0: i32) -> (i32, i32) {
    %c0_i32 = arith.constant 0 : i32
    %c0_i32_0 = arith.constant 0 : i32
    %c0_i32_1 = arith.constant 0 : i32
    return %c0_i32, %c0_i32_0 : i32, i32
  }
  func.func @transform_1(%arg0: i32) -> (i32, i32) {
    %c0_i32 = arith.constant 0 : i32
    %c0_i32_0 = arith.constant 0 : i32
    %c0_i32_1 = arith.constant 0 : i32
    return %c0_i32, %c0_i32_0 : i32, i32
  }
  func.func @transform_2(%arg0: i32) -> (i32, i32) {
    %c0_i32 = arith.constant 0 : i32
    %c0_i32_0 = arith.constant 0 : i32
    %c0_i32_1 = arith.constant 0 : i32
    return %c0_i32, %c0_i32_0 : i32, i32
  }
  func.func @transform_3(%arg0: i32) -> (i32, i32) {
    %c0_i32 = arith.constant 0 : i32
    %c0_i32_0 = arith.constant 0 : i32
    %c0_i32_1 = arith.constant 0 : i32
    return %c0_i32, %c0_i32_0 : i32, i32
  }
  func.func @transform_4(%arg0: i32) -> (i32, i32) {
    %c0_i32 = arith.constant 0 : i32
    %c0_i32_0 = arith.constant 0 : i32
    %c0_i32_1 = arith.constant 0 : i32
    return %c0_i32, %c0_i32_0 : i32, i32
  }
  func.func @transform_5(%arg0: i32) -> (i32, i32) {
    %c0_i32 = arith.constant 0 : i32
    %c0_i32_0 = arith.constant 0 : i32
    %c0_i32_1 = arith.constant 0 : i32
    return %c0_i32, %c0_i32_0 : i32, i32
  }
  func.func @transform_6(%arg0: i32) -> (i32, i32) {
    %c0_i32 = arith.constant 0 : i32
    %c0_i32_0 = arith.constant 0 : i32
    %c0_i32_1 = arith.constant 0 : i32
    return %c0_i32, %c0_i32_0 : i32, i32
  }
  func.func @transform_7(%arg0: i32) -> (i32, i32) {
    %c0_i32 = arith.constant 0 : i32
    %c0_i32_0 = arith.constant 0 : i32
    %c0_i32_1 = arith.constant 0 : i32
    return %c0_i32, %c0_i32_0 : i32, i32
  }
  func.func @transform_8(%arg0: i32) -> (i32, i32) {
    %c0_i32 = arith.constant 0 : i32
    %c0_i32_0 = arith.constant 0 : i32
    return %arg0, %c0_i32 : i32, i32
  }
  func.func @transform_9(%arg0: i32) -> (i32, i32) {
    %c0_i32 = arith.constant 0 : i32
    %c0_i32_0 = arith.constant 0 : i32
    return %arg0, %c0_i32 : i32, i32
  }
  func.func @transform_10(%arg0: i32) -> (i32, i32) {
    %c0_i32 = arith.constant 0 : i32
    %c0_i32_0 = arith.constant 0 : i32
    return %arg0, %c0_i32 : i32, i32
  }
  func.func @transform_11(%arg0: i32) -> (i32, i32) {
    %c0_i32 = arith.constant 0 : i32
    %c0_i32_0 = arith.constant 0 : i32
    %c0_i32_1 = arith.constant 0 : i32
    return %c0_i32, %c0_i32_0 : i32, i32
  }
}

module attributes {stable_mosaic.version = 11 : i64} {
  func.func @_gat_conv_kernel(%arg0: i32, %arg1: memref<128x128xf32, #tpu.memory_space<vmem>>, %arg2: memref<128x128xbf16, #tpu.memory_space<vmem>>, %arg3: memref<1x128xf32, #tpu.memory_space<vmem>>, %arg4: memref<128x8xbf16, #tpu.memory_space<vmem>>, %arg5: memref<128x8xbf16, #tpu.memory_space<vmem>>, %arg6: memref<1x8xf32, #tpu.memory_space<vmem>>, %arg7: memref<1x8xf32, #tpu.memory_space<vmem>>, %arg8: memref<8x128xbf16, #tpu.memory_space<vmem>>, %arg9: memref<128x128xbf16, #tpu.memory_space<vmem>>, %arg10: memref<128x128xbf16, #tpu.memory_space<vmem>>, %arg11: memref<128x1xf32, #tpu.memory_space<vmem>>, %arg12: memref<128x128xf32, #tpu.memory_space<vmem>>, %arg13: memref<1x128x128xbf16, #tpu.memory_space<vmem>>, %arg14: memref<1x128x8xbf16, #tpu.memory_space<vmem>>, %arg15: memref<1x128x8xbf16, #tpu.memory_space<vmem>>, %arg16: memref<128x128xf32, #tpu.memory_space<vmem>>) attributes {dimension_semantics = [#tpu.dimension_semantics<arbitrary>], iteration_bounds = array<i64: 1>, scalar_prefetch = 0 : i64, scratch_operands = 4 : i64, tpu.core_type = #tpu.core_type<tc>, window_params = [{pipeline_mode = #tpu.pipeline_mode<synchronous>, transform_indices = @transform_0, window_bounds = array<i64: 128, 128>}, {pipeline_mode = #tpu.pipeline_mode<synchronous>, transform_indices = @transform_1, window_bounds = array<i64: 128, 128>}, {pipeline_mode = #tpu.pipeline_mode<synchronous>, transform_indices = @transform_2, window_bounds = array<i64: 1, 128>}, {pipeline_mode = #tpu.pipeline_mode<synchronous>, transform_indices = @transform_3, window_bounds = array<i64: 128, 8>}, {pipeline_mode = #tpu.pipeline_mode<synchronous>, transform_indices = @transform_4, window_bounds = array<i64: 128, 8>}, {pipeline_mode = #tpu.pipeline_mode<synchronous>, transform_indices = @transform_5, window_bounds = array<i64: 1, 8>}, {pipeline_mode = #tpu.pipeline_mode<synchronous>, transform_indices = @transform_6, window_bounds = array<i64: 1, 8>}, {pipeline_mode = #tpu.pipeline_mode<synchronous>, transform_indices = @transform_7, window_bounds = array<i64: 8, 128>}, {transform_indices = @transform_8, window_bounds = array<i64: 128, 128>}, {transform_indices = @transform_9, window_bounds = array<i64: 128, 128>}, {transform_indices = @transform_10, window_bounds = array<i64: 128, 1>}, {pipeline_mode = #tpu.pipeline_mode<synchronous>, transform_indices = @transform_11, window_bounds = array<i64: 128, 128>}]} {
    %c0_i32 = arith.constant 0 : i32
    %0 = arith.cmpi eq, %arg0, %c0_i32 : i32
    %1 = arith.extui %0 : i1 to i32
    %c0_i32_0 = arith.constant 0 : i32
    %2 = arith.cmpi ne, %1, %c0_i32_0 : i32
    scf.if %2 {
      %cst_31 = arith.constant 0.000000e+00 : f32
      %40 = vector.broadcast %cst_31 : f32 to vector<128x128xf32>
      %c0_32 = arith.constant 0 : index
      %c0_33 = arith.constant 0 : index
      %41 = vector.load %arg16[%c0_32, %c0_33] : memref<128x128xf32, #tpu.memory_space<vmem>>, vector<128x128xf32>
      tpu.vector_store %arg16[%c0_32, %c0_33], %40 {strides = array<i32>} : memref<128x128xf32, #tpu.memory_space<vmem>>, vector<128x128xf32>,
      %c0_34 = arith.constant 0 : index
      %c0_35 = arith.constant 0 : index
      %42 = vector.load %arg2[%c0_34, %c0_35] : memref<128x128xbf16, #tpu.memory_space<vmem>>, vector<128x128xbf16>
      %c0_36 = arith.constant 0 : index
      %c0_37 = arith.constant 0 : index
      %43 = vector.load %arg4[%c0_36, %c0_37] : memref<128x8xbf16, #tpu.memory_space<vmem>>, vector<128x8xbf16>
      %c0_38 = arith.constant 0 : index
      %c0_39 = arith.constant 0 : index
      %44 = vector.load %arg5[%c0_38, %c0_39] : memref<128x8xbf16, #tpu.memory_space<vmem>>, vector<128x8xbf16>
      %c0_40 = arith.constant 0 : index
      %c0_41 = arith.constant 0 : index
      %45 = vector.load %arg1[%c0_40, %c0_41] : memref<128x128xf32, #tpu.memory_space<vmem>>, vector<128x128xf32>
      %46 = arith.truncf %45 : vector<128x128xf32> to vector<128x128xbf16>
      %cst_42 = arith.constant dense<0.000000e+00> : vector<128x128xf32>
      %47 = tpu.matmul %46, %42, %cst_42 {dimension_numbers = #tpu.dot_dimension_numbers<[1], [0], [0], [1], [0, 0, 1, 1], [], []>} : vector<128x128xbf16>, vector<128x128xbf16>, vector<128x128xf32> -> vector<128x128xf32>
      %c0_43 = arith.constant 0 : index
      %c0_44 = arith.constant 0 : index
      %48 = vector.load %arg3[%c0_43, %c0_44] : memref<1x128xf32, #tpu.memory_space<vmem>>, vector<1x128xf32>
      %49 = vector.broadcast %48 : vector<1x128xf32> to vector<128x128xf32>
      %50 = arith.addf %47, %49 : vector<128x128xf32>
      %51 = arith.truncf %50 : vector<128x128xf32> to vector<128x128xbf16>
      %c0_45 = arith.constant 0 : index
      %c0_46 = arith.constant 0 : index
      %c0_47 = arith.constant 0 : index
      %52 = vector.load %arg13[%c0_45, %c0_46, %c0_47] : memref<1x128x128xbf16, #tpu.memory_space<vmem>>, vector<1x128x128xbf16>
      %53 = vector.shape_cast %52 : vector<1x128x128xbf16> to vector<128x128xbf16>
      %54 = vector.shape_cast %51 : vector<128x128xbf16> to vector<1x128x128xbf16>
      tpu.vector_store %arg13[%c0_45, %c0_46, %c0_47], %54 {strides = array<i32>} : memref<1x128x128xbf16, #tpu.memory_space<vmem>>, vector<1x128x128xbf16>,
      %cst_48 = arith.constant dense<0.000000e+00> : vector<128x8xf32>
      %55 = tpu.matmul %46, %43, %cst_48 {dimension_numbers = #tpu.dot_dimension_numbers<[1], [0], [0], [1], [0, 0, 1, 1], [], []>} : vector<128x128xbf16>, vector<128x8xbf16>, vector<128x8xf32> -> vector<128x8xf32>
      %c0_49 = arith.constant 0 : index
      %c0_50 = arith.constant 0 : index
      %56 = vector.load %arg6[%c0_49, %c0_50] : memref<1x8xf32, #tpu.memory_space<vmem>>, vector<1x8xf32>
      %57 = vector.broadcast %56 : vector<1x8xf32> to vector<128x8xf32>
      %58 = arith.addf %55, %57 : vector<128x8xf32>
      %59 = arith.truncf %58 : vector<128x8xf32> to vector<128x8xbf16>
      %c0_51 = arith.constant 0 : index
      %c0_52 = arith.constant 0 : index
      %c0_53 = arith.constant 0 : index
      %60 = vector.load %arg14[%c0_51, %c0_52, %c0_53] : memref<1x128x8xbf16, #tpu.memory_space<vmem>>, vector<1x128x8xbf16>
      %61 = vector.shape_cast %60 : vector<1x128x8xbf16> to vector<128x8xbf16>
      %62 = vector.shape_cast %59 : vector<128x8xbf16> to vector<1x128x8xbf16>
      tpu.vector_store %arg14[%c0_51, %c0_52, %c0_53], %62 {strides = array<i32>} : memref<1x128x8xbf16, #tpu.memory_space<vmem>>, vector<1x128x8xbf16>,
      %cst_54 = arith.constant dense<0.000000e+00> : vector<128x8xf32>
      %63 = tpu.matmul %46, %44, %cst_54 {dimension_numbers = #tpu.dot_dimension_numbers<[1], [0], [0], [1], [0, 0, 1, 1], [], []>} : vector<128x128xbf16>, vector<128x8xbf16>, vector<128x8xf32> -> vector<128x8xf32>
      %c0_55 = arith.constant 0 : index
      %c0_56 = arith.constant 0 : index
      %64 = vector.load %arg7[%c0_55, %c0_56] : memref<1x8xf32, #tpu.memory_space<vmem>>, vector<1x8xf32>
      %65 = vector.broadcast %64 : vector<1x8xf32> to vector<128x8xf32>
      %66 = arith.addf %63, %65 : vector<128x8xf32>
      %67 = arith.truncf %66 : vector<128x8xf32> to vector<128x8xbf16>
      %c0_57 = arith.constant 0 : index
      %c0_58 = arith.constant 0 : index
      %c0_59 = arith.constant 0 : index
      %68 = vector.load %arg15[%c0_57, %c0_58, %c0_59] : memref<1x128x8xbf16, #tpu.memory_space<vmem>>, vector<1x128x8xbf16>
      %69 = vector.shape_cast %68 : vector<1x128x8xbf16> to vector<128x8xbf16>
      %70 = vector.shape_cast %67 : vector<128x8xbf16> to vector<1x128x8xbf16>
      tpu.vector_store %arg15[%c0_57, %c0_58, %c0_59], %70 {strides = array<i32>} : memref<1x128x8xbf16, #tpu.memory_space<vmem>>, vector<1x128x8xbf16>,
    } else {
    }
    %c0 = arith.constant 0 : index
    %c0_1 = arith.constant 0 : index
    %3 = vector.load %arg9[%c0, %c0_1] : memref<128x128xbf16, #tpu.memory_space<vmem>>, vector<128x128xbf16>
    %c0_2 = arith.constant 0 : index
    %c0_3 = arith.constant 0 : index
    %4 = vector.load %arg10[%c0_2, %c0_3] : memref<128x128xbf16, #tpu.memory_space<vmem>>, vector<128x128xbf16>
    %c0_4 = arith.constant 0 : index
    %c0_5 = arith.constant 0 : index
    %5 = vector.load %arg11[%c0_4, %c0_5] : memref<128x1xf32, #tpu.memory_space<vmem>>, vector<128x1xf32>
    %cst = arith.constant 1.000000e-07 : f32
    %6 = vector.broadcast %cst : f32 to vector<128x1xf32>
    %7 = arith.addf %5, %6 : vector<128x1xf32>
    %8 = arith.mulf %7, %7 : vector<128x1xf32>
    %cst_6 = arith.constant 1.000000e+00 : f32
    %9 = vector.broadcast %cst_6 : f32 to vector<128x1xf32>
    %10 = arith.divf %9, %8 : vector<128x1xf32>
    %c0_7 = arith.constant 0 : index
    %c0_8 = arith.constant 0 : index
    %c0_9 = arith.constant 0 : index
    %11 = vector.load %arg14[%c0_7, %c0_8, %c0_9] : memref<1x128x8xbf16, #tpu.memory_space<vmem>>, vector<1x128x8xbf16>
    %12 = vector.shape_cast %11 : vector<1x128x8xbf16> to vector<128x8xbf16>
    %cst_10 = arith.constant dense<0.000000e+00> : vector<128x8xf32>
    %13 = tpu.matmul %4, %12, %cst_10 {dimension_numbers = #tpu.dot_dimension_numbers<[1], [0], [0], [1], [0, 0, 1, 1], [], []>} : vector<128x128xbf16>, vector<128x8xbf16>, vector<128x8xf32> -> vector<128x8xf32>
    %c0_11 = arith.constant 0 : index
    %c0_12 = arith.constant 0 : index
    %c0_13 = arith.constant 0 : index
    %14 = vector.load %arg15[%c0_11, %c0_12, %c0_13] : memref<1x128x8xbf16, #tpu.memory_space<vmem>>, vector<1x128x8xbf16>
    %15 = vector.shape_cast %14 : vector<1x128x8xbf16> to vector<128x8xbf16>
    %cst_14 = arith.constant dense<0.000000e+00> : vector<128x8xf32>
    %16 = tpu.matmul %3, %15, %cst_14 {dimension_numbers = #tpu.dot_dimension_numbers<[1], [0], [0], [1], [0, 0, 1, 1], [], []>} : vector<128x128xbf16>, vector<128x8xbf16>, vector<128x8xf32> -> vector<128x8xf32>
    %17 = arith.addf %13, %16 : vector<128x8xf32>
    %cst_15 = arith.constant 0.000000e+00 : f32
    %18 = vector.broadcast %cst_15 : f32 to vector<128x8xf32>
    %19 = arith.cmpf oge, %17, %18 : vector<128x8xf32>
    %cst_16 = arith.constant 0.00999999977 : f32
    %20 = vector.broadcast %cst_16 : f32 to vector<128x8xf32>
    %21 = arith.mulf %20, %17 : vector<128x8xf32>
    %22 = arith.select %19, %17, %21 : vector<128x8xi1>, vector<128x8xf32>
    %23 = vector.broadcast %10 : vector<128x1xf32> to vector<128x8xf32>
    %24 = arith.mulf %22, %23 : vector<128x8xf32>
    %25 = arith.truncf %24 : vector<128x8xf32> to vector<128x8xbf16>
    %c0_17 = arith.constant 0 : index
    %c0_18 = arith.constant 0 : index
    %26 = vector.load %arg8[%c0_17, %c0_18] : memref<8x128xbf16, #tpu.memory_space<vmem>>, vector<8x128xbf16>
    %cst_19 = arith.constant dense<0.000000e+00> : vector<128x128xf32>
    %27 = tpu.matmul %25, %26, %cst_19 {dimension_numbers = #tpu.dot_dimension_numbers<[1], [0], [0], [1], [0, 0, 1, 1], [], []>} : vector<128x8xbf16>, vector<8x128xbf16>, vector<128x128xf32> -> vector<128x128xf32>
    %c0_20 = arith.constant 0 : index
    %c0_21 = arith.constant 0 : index
    %c0_22 = arith.constant 0 : index
    %28 = vector.load %arg13[%c0_20, %c0_21, %c0_22] : memref<1x128x128xbf16, #tpu.memory_space<vmem>>, vector<1x128x128xbf16>
    %29 = vector.shape_cast %28 : vector<1x128x128xbf16> to vector<128x128xbf16>
    %cst_23 = arith.constant dense<0.000000e+00> : vector<128x128xf32>
    %30 = tpu.matmul %3, %29, %cst_23 {dimension_numbers = #tpu.dot_dimension_numbers<[1], [0], [0], [1], [0, 0, 1, 1], [], []>} : vector<128x128xbf16>, vector<128x128xbf16>, vector<128x128xf32> -> vector<128x128xf32>
    %31 = arith.mulf %27, %30 : vector<128x128xf32>
    %32 = arith.truncf %31 : vector<128x128xf32> to vector<128x128xbf16>
    %c0_24 = arith.constant 0 : index
    %c0_25 = arith.constant 0 : index
    %33 = vector.load %arg16[%c0_24, %c0_25] : memref<128x128xf32, #tpu.memory_space<vmem>>, vector<128x128xf32>
    %cst_26 = arith.constant dense<0.000000e+00> : vector<128x128xf32>
    %34 = tpu.matmul %4, %32, %cst_26 {dimension_numbers = #tpu.dot_dimension_numbers<[0], [0], [1], [1], [0, 1, 1, 1], [], []>} : vector<128x128xbf16>, vector<128x128xbf16>, vector<128x128xf32> -> vector<128x128xf32>
    %35 = arith.addf %33, %34 : vector<128x128xf32>
    %c0_27 = arith.constant 0 : index
    %c0_28 = arith.constant 0 : index
    %36 = vector.load %arg16[%c0_27, %c0_28] : memref<128x128xf32, #tpu.memory_space<vmem>>, vector<128x128xf32>
    tpu.vector_store %arg16[%c0_27, %c0_28], %35 {strides = array<i32>} : memref<128x128xf32, #tpu.memory_space<vmem>>, vector<128x128xf32>,
    %c0_i32_29 = arith.constant 0 : i32
    %37 = arith.cmpi eq, %arg0, %c0_i32_29 : i32
    %38 = arith.extui %37 : i1 to i32
    %c0_i32_30 = arith.constant 0 : i32
    %39 = arith.cmpi ne, %38, %c0_i32_30 : i32
    scf.if %39 {
      %c0_31 = arith.constant 0 : index
      %c0_32 = arith.constant 0 : index
      %40 = vector.load %arg16[%c0_31, %c0_32] : memref<128x128xf32, #tpu.memory_space<vmem>>, vector<128x128xf32>
      %cst_33 = arith.constant dense<0.000000e+00> : vector<128xf32>
      %41 = vector.multi_reduction <add>, %40, %cst_33 [0] : vector<128x128xf32> to vector<128xf32>
      %42 = vector.shape_cast %41 : vector<128xf32> to vector<1x128xf32>
      %cst_34 = arith.constant 1.562500e-02 : f32
      %43 = vector.broadcast %cst_34 : f32 to vector<1x128xf32>
      %44 = arith.mulf %42, %43 : vector<1x128xf32>
      %45 = arith.mulf %40, %40 : vector<128x128xf32>
      %cst_35 = arith.constant dense<0.000000e+00> : vector<128xf32>
      %46 = vector.multi_reduction <add>, %45, %cst_35 [0] : vector<128x128xf32> to vector<128xf32>
      %47 = vector.shape_cast %46 : vector<128xf32> to vector<1x128xf32>
      %cst_36 = arith.constant 1.562500e-02 : f32
      %48 = vector.broadcast %cst_36 : f32 to vector<1x128xf32>
      %49 = arith.mulf %47, %48 : vector<1x128xf32>
      %50 = arith.mulf %44, %44 : vector<1x128xf32>
      %51 = arith.subf %49, %50 : vector<1x128xf32>
      %cst_37 = arith.constant 0.000000e+00 : f32
      %52 = vector.broadcast %cst_37 : f32 to vector<1x128xf32>
      %53 = arith.maximumf %51, %52 : vector<1x128xf32>
      %54 = vector.broadcast %44 : vector<1x128xf32> to vector<128x128xf32>
      %55 = arith.subf %40, %54 : vector<128x128xf32>
      %cst_38 = arith.constant 9.99999974E-6 : f32
      %56 = vector.broadcast %cst_38 : f32 to vector<1x128xf32>
      %57 = arith.addf %53, %56 : vector<1x128xf32>
      %58 = math.rsqrt %57 : vector<1x128xf32>
      %59 = vector.broadcast %58 : vector<1x128xf32> to vector<128x128xf32>
      %60 = arith.mulf %55, %59 : vector<128x128xf32>
      %cst_39 = arith.constant 0.000000e+00 : f32
      %61 = vector.broadcast %cst_39 : f32 to vector<128x128xf32>
      %62 = arith.maximumf %60, %61 : vector<128x128xf32>
      %c0_40 = arith.constant 0 : index
      %c0_41 = arith.constant 0 : index
      %63 = vector.load %arg12[%c0_40, %c0_41] : memref<128x128xf32, #tpu.memory_space<vmem>>, vector<128x128xf32>
      tpu.vector_store %arg12[%c0_40, %c0_41], %62 {strides = array<i32>} : memref<128x128xf32, #tpu.memory_space<vmem>>, vector<128x128xf32>,
    } else {
    }
    return
  }
  func.func @transform_0(%arg0: i32) -> (i32, i32) {
    %c0_i32 = arith.constant 0 : i32
    %c0_i32_0 = arith.constant 0 : i32
    %c0_i32_1 = arith.constant 0 : i32
    return %c0_i32, %c0_i32_0 : i32, i32
  }
  func.func @transform_1(%arg0: i32) -> (i32, i32) {
    %c0_i32 = arith.constant 0 : i32
    %c0_i32_0 = arith.constant 0 : i32
    %c0_i32_1 = arith.constant 0 : i32
    return %c0_i32, %c0_i32_0 : i32, i32
  }
  func.func @transform_2(%arg0: i32) -> (i32, i32) {
    %c0_i32 = arith.constant 0 : i32
    %c0_i32_0 = arith.constant 0 : i32
    %c0_i32_1 = arith.constant 0 : i32
    return %c0_i32, %c0_i32_0 : i32, i32
  }
  func.func @transform_3(%arg0: i32) -> (i32, i32) {
    %c0_i32 = arith.constant 0 : i32
    %c0_i32_0 = arith.constant 0 : i32
    %c0_i32_1 = arith.constant 0 : i32
    return %c0_i32, %c0_i32_0 : i32, i32
  }
  func.func @transform_4(%arg0: i32) -> (i32, i32) {
    %c0_i32 = arith.constant 0 : i32
    %c0_i32_0 = arith.constant 0 : i32
    %c0_i32_1 = arith.constant 0 : i32
    return %c0_i32, %c0_i32_0 : i32, i32
  }
  func.func @transform_5(%arg0: i32) -> (i32, i32) {
    %c0_i32 = arith.constant 0 : i32
    %c0_i32_0 = arith.constant 0 : i32
    %c0_i32_1 = arith.constant 0 : i32
    return %c0_i32, %c0_i32_0 : i32, i32
  }
  func.func @transform_6(%arg0: i32) -> (i32, i32) {
    %c0_i32 = arith.constant 0 : i32
    %c0_i32_0 = arith.constant 0 : i32
    %c0_i32_1 = arith.constant 0 : i32
    return %c0_i32, %c0_i32_0 : i32, i32
  }
  func.func @transform_7(%arg0: i32) -> (i32, i32) {
    %c0_i32 = arith.constant 0 : i32
    %c0_i32_0 = arith.constant 0 : i32
    %c0_i32_1 = arith.constant 0 : i32
    return %c0_i32, %c0_i32_0 : i32, i32
  }
  func.func @transform_8(%arg0: i32) -> (i32, i32) {
    %c0_i32 = arith.constant 0 : i32
    %c0_i32_0 = arith.constant 0 : i32
    return %arg0, %c0_i32 : i32, i32
  }
  func.func @transform_9(%arg0: i32) -> (i32, i32) {
    %c0_i32 = arith.constant 0 : i32
    %c0_i32_0 = arith.constant 0 : i32
    return %arg0, %c0_i32 : i32, i32
  }
  func.func @transform_10(%arg0: i32) -> (i32, i32) {
    %c0_i32 = arith.constant 0 : i32
    %c0_i32_0 = arith.constant 0 : i32
    return %arg0, %c0_i32 : i32, i32
  }
  func.func @transform_11(%arg0: i32) -> (i32, i32) {
    %c0_i32 = arith.constant 0 : i32
    %c0_i32_0 = arith.constant 0 : i32
    %c0_i32_1 = arith.constant 0 : i32
    return %c0_i32, %c0_i32_0 : i32, i32
  }
}

module attributes {stable_mosaic.version = 11 : i64} {
  func.func @_gat_conv_kernel(%arg0: i32, %arg1: memref<128x128xf32, #tpu.memory_space<vmem>>, %arg2: memref<128x128xf32, #tpu.memory_space<vmem>>, %arg3: memref<128x128xbf16, #tpu.memory_space<vmem>>, %arg4: memref<1x128xf32, #tpu.memory_space<vmem>>, %arg5: memref<128x8xbf16, #tpu.memory_space<vmem>>, %arg6: memref<128x8xbf16, #tpu.memory_space<vmem>>, %arg7: memref<1x8xf32, #tpu.memory_space<vmem>>, %arg8: memref<1x8xf32, #tpu.memory_space<vmem>>, %arg9: memref<8x128xbf16, #tpu.memory_space<vmem>>, %arg10: memref<128x128xbf16, #tpu.memory_space<vmem>>, %arg11: memref<128x128xbf16, #tpu.memory_space<vmem>>, %arg12: memref<128x1xf32, #tpu.memory_space<vmem>>, %arg13: memref<128x128xf32, #tpu.memory_space<vmem>>, %arg14: memref<2x128x128xbf16, #tpu.memory_space<vmem>>, %arg15: memref<2x128x8xbf16, #tpu.memory_space<vmem>>, %arg16: memref<2x128x8xbf16, #tpu.memory_space<vmem>>, %arg17: memref<128x128xf32, #tpu.memory_space<vmem>>) attributes {dimension_semantics = [#tpu.dimension_semantics<arbitrary>], iteration_bounds = array<i64: 1>, scalar_prefetch = 0 : i64, scratch_operands = 4 : i64, tpu.core_type = #tpu.core_type<tc>, window_params = [{pipeline_mode = #tpu.pipeline_mode<synchronous>, transform_indices = @transform_0, window_bounds = array<i64: 128, 128>}, {pipeline_mode = #tpu.pipeline_mode<synchronous>, transform_indices = @transform_1, window_bounds = array<i64: 128, 128>}, {pipeline_mode = #tpu.pipeline_mode<synchronous>, transform_indices = @transform_2, window_bounds = array<i64: 128, 128>}, {pipeline_mode = #tpu.pipeline_mode<synchronous>, transform_indices = @transform_3, window_bounds = array<i64: 1, 128>}, {pipeline_mode = #tpu.pipeline_mode<synchronous>, transform_indices = @transform_4, window_bounds = array<i64: 128, 8>}, {pipeline_mode = #tpu.pipeline_mode<synchronous>, transform_indices = @transform_5, window_bounds = array<i64: 128, 8>}, {pipeline_mode = #tpu.pipeline_mode<synchronous>, transform_indices = @transform_6, window_bounds = array<i64: 1, 8>}, {pipeline_mode = #tpu.pipeline_mode<synchronous>, transform_indices = @transform_7, window_bounds = array<i64: 1, 8>}, {pipeline_mode = #tpu.pipeline_mode<synchronous>, transform_indices = @transform_8, window_bounds = array<i64: 8, 128>}, {transform_indices = @transform_9, window_bounds = array<i64: 128, 128>}, {transform_indices = @transform_10, window_bounds = array<i64: 128, 128>}, {transform_indices = @transform_11, window_bounds = array<i64: 128, 1>}, {pipeline_mode = #tpu.pipeline_mode<synchronous>, transform_indices = @transform_12, window_bounds = array<i64: 128, 128>}]} {
    %c0_i32 = arith.constant 0 : i32
    %0 = arith.cmpi eq, %arg0, %c0_i32 : i32
    %1 = arith.extui %0 : i1 to i32
    %c0_i32_0 = arith.constant 0 : i32
    %2 = arith.cmpi ne, %1, %c0_i32_0 : i32
    scf.if %2 {
      %cst_52 = arith.constant 0.000000e+00 : f32
      %66 = vector.broadcast %cst_52 : f32 to vector<128x128xf32>
      %c0_53 = arith.constant 0 : index
      %c0_54 = arith.constant 0 : index
      %67 = vector.load %arg17[%c0_53, %c0_54] : memref<128x128xf32, #tpu.memory_space<vmem>>, vector<128x128xf32>
      tpu.vector_store %arg17[%c0_53, %c0_54], %66 {strides = array<i32>} : memref<128x128xf32, #tpu.memory_space<vmem>>, vector<128x128xf32>,
      %c0_55 = arith.constant 0 : index
      %c0_56 = arith.constant 0 : index
      %68 = vector.load %arg3[%c0_55, %c0_56] : memref<128x128xbf16, #tpu.memory_space<vmem>>, vector<128x128xbf16>
      %c0_57 = arith.constant 0 : index
      %c0_58 = arith.constant 0 : index
      %69 = vector.load %arg5[%c0_57, %c0_58] : memref<128x8xbf16, #tpu.memory_space<vmem>>, vector<128x8xbf16>
      %c0_59 = arith.constant 0 : index
      %c0_60 = arith.constant 0 : index
      %70 = vector.load %arg6[%c0_59, %c0_60] : memref<128x8xbf16, #tpu.memory_space<vmem>>, vector<128x8xbf16>
      %c0_61 = arith.constant 0 : index
      %c0_62 = arith.constant 0 : index
      %71 = vector.load %arg1[%c0_61, %c0_62] : memref<128x128xf32, #tpu.memory_space<vmem>>, vector<128x128xf32>
      %72 = arith.truncf %71 : vector<128x128xf32> to vector<128x128xbf16>
      %cst_63 = arith.constant dense<0.000000e+00> : vector<128x128xf32>
      %73 = tpu.matmul %72, %68, %cst_63 {dimension_numbers = #tpu.dot_dimension_numbers<[1], [0], [0], [1], [0, 0, 1, 1], [], []>} : vector<128x128xbf16>, vector<128x128xbf16>, vector<128x128xf32> -> vector<128x128xf32>
      %c0_64 = arith.constant 0 : index
      %c0_65 = arith.constant 0 : index
      %74 = vector.load %arg4[%c0_64, %c0_65] : memref<1x128xf32, #tpu.memory_space<vmem>>, vector<1x128xf32>
      %75 = vector.broadcast %74 : vector<1x128xf32> to vector<128x128xf32>
      %76 = arith.addf %73, %75 : vector<128x128xf32>
      %77 = arith.truncf %76 : vector<128x128xf32> to vector<128x128xbf16>
      %c0_66 = arith.constant 0 : index
      %c0_67 = arith.constant 0 : index
      %c0_68 = arith.constant 0 : index
      %78 = vector.load %arg14[%c0_66, %c0_67, %c0_68] : memref<2x128x128xbf16, #tpu.memory_space<vmem>>, vector<1x128x128xbf16>
      %79 = vector.shape_cast %78 : vector<1x128x128xbf16> to vector<128x128xbf16>
      %80 = vector.shape_cast %77 : vector<128x128xbf16> to vector<1x128x128xbf16>
      tpu.vector_store %arg14[%c0_66, %c0_67, %c0_68], %80 {strides = array<i32>} : memref<2x128x128xbf16, #tpu.memory_space<vmem>>, vector<1x128x128xbf16>,
      %cst_69 = arith.constant dense<0.000000e+00> : vector<128x8xf32>
      %81 = tpu.matmul %72, %69, %cst_69 {dimension_numbers = #tpu.dot_dimension_numbers<[1], [0], [0], [1], [0, 0, 1, 1], [], []>} : vector<128x128xbf16>, vector<128x8xbf16>, vector<128x8xf32> -> vector<128x8xf32>
      %c0_70 = arith.constant 0 : index
      %c0_71 = arith.constant 0 : index
      %82 = vector.load %arg7[%c0_70, %c0_71] : memref<1x8xf32, #tpu.memory_space<vmem>>, vector<1x8xf32>
      %83 = vector.broadcast %82 : vector<1x8xf32> to vector<128x8xf32>
      %84 = arith.addf %81, %83 : vector<128x8xf32>
      %85 = arith.truncf %84 : vector<128x8xf32> to vector<128x8xbf16>
      %c0_72 = arith.constant 0 : index
      %c0_73 = arith.constant 0 : index
      %c0_74 = arith.constant 0 : index
      %86 = vector.load %arg15[%c0_72, %c0_73, %c0_74] : memref<2x128x8xbf16, #tpu.memory_space<vmem>>, vector<1x128x8xbf16>
      %87 = vector.shape_cast %86 : vector<1x128x8xbf16> to vector<128x8xbf16>
      %88 = vector.shape_cast %85 : vector<128x8xbf16> to vector<1x128x8xbf16>
      tpu.vector_store %arg15[%c0_72, %c0_73, %c0_74], %88 {strides = array<i32>} : memref<2x128x8xbf16, #tpu.memory_space<vmem>>, vector<1x128x8xbf16>,
      %cst_75 = arith.constant dense<0.000000e+00> : vector<128x8xf32>
      %89 = tpu.matmul %72, %70, %cst_75 {dimension_numbers = #tpu.dot_dimension_numbers<[1], [0], [0], [1], [0, 0, 1, 1], [], []>} : vector<128x128xbf16>, vector<128x8xbf16>, vector<128x8xf32> -> vector<128x8xf32>
      %c0_76 = arith.constant 0 : index
      %c0_77 = arith.constant 0 : index
      %90 = vector.load %arg8[%c0_76, %c0_77] : memref<1x8xf32, #tpu.memory_space<vmem>>, vector<1x8xf32>
      %91 = vector.broadcast %90 : vector<1x8xf32> to vector<128x8xf32>
      %92 = arith.addf %89, %91 : vector<128x8xf32>
      %93 = arith.truncf %92 : vector<128x8xf32> to vector<128x8xbf16>
      %c0_78 = arith.constant 0 : index
      %c0_79 = arith.constant 0 : index
      %c0_80 = arith.constant 0 : index
      %94 = vector.load %arg16[%c0_78, %c0_79, %c0_80] : memref<2x128x8xbf16, #tpu.memory_space<vmem>>, vector<1x128x8xbf16>
      %95 = vector.shape_cast %94 : vector<1x128x8xbf16> to vector<128x8xbf16>
      %96 = vector.shape_cast %93 : vector<128x8xbf16> to vector<1x128x8xbf16>
      tpu.vector_store %arg16[%c0_78, %c0_79, %c0_80], %96 {strides = array<i32>} : memref<2x128x8xbf16, #tpu.memory_space<vmem>>, vector<1x128x8xbf16>,
      %c0_81 = arith.constant 0 : index
      %c0_82 = arith.constant 0 : index
      %97 = vector.load %arg2[%c0_81, %c0_82] : memref<128x128xf32, #tpu.memory_space<vmem>>, vector<128x128xf32>
      %98 = arith.truncf %97 : vector<128x128xf32> to vector<128x128xbf16>
      %cst_83 = arith.constant dense<0.000000e+00> : vector<128x128xf32>
      %99 = tpu.matmul %98, %68, %cst_83 {dimension_numbers = #tpu.dot_dimension_numbers<[1], [0], [0], [1], [0, 0, 1, 1], [], []>} : vector<128x128xbf16>, vector<128x128xbf16>, vector<128x128xf32> -> vector<128x128xf32>
      %c0_84 = arith.constant 0 : index
      %c0_85 = arith.constant 0 : index
      %100 = vector.load %arg4[%c0_84, %c0_85] : memref<1x128xf32, #tpu.memory_space<vmem>>, vector<1x128xf32>
      %101 = vector.broadcast %100 : vector<1x128xf32> to vector<128x128xf32>
      %102 = arith.addf %99, %101 : vector<128x128xf32>
      %103 = arith.truncf %102 : vector<128x128xf32> to vector<128x128xbf16>
      %c1_86 = arith.constant 1 : index
      %c0_87 = arith.constant 0 : index
      %c0_88 = arith.constant 0 : index
      %104 = vector.load %arg14[%c1_86, %c0_87, %c0_88] : memref<2x128x128xbf16, #tpu.memory_space<vmem>>, vector<1x128x128xbf16>
      %105 = vector.shape_cast %104 : vector<1x128x128xbf16> to vector<128x128xbf16>
      %106 = vector.shape_cast %103 : vector<128x128xbf16> to vector<1x128x128xbf16>
      tpu.vector_store %arg14[%c1_86, %c0_87, %c0_88], %106 {strides = array<i32>} : memref<2x128x128xbf16, #tpu.memory_space<vmem>>, vector<1x128x128xbf16>,
      %cst_89 = arith.constant dense<0.000000e+00> : vector<128x8xf32>
      %107 = tpu.matmul %98, %69, %cst_89 {dimension_numbers = #tpu.dot_dimension_numbers<[1], [0], [0], [1], [0, 0, 1, 1], [], []>} : vector<128x128xbf16>, vector<128x8xbf16>, vector<128x8xf32> -> vector<128x8xf32>
      %c0_90 = arith.constant 0 : index
      %c0_91 = arith.constant 0 : index
      %108 = vector.load %arg7[%c0_90, %c0_91] : memref<1x8xf32, #tpu.memory_space<vmem>>, vector<1x8xf32>
      %109 = vector.broadcast %108 : vector<1x8xf32> to vector<128x8xf32>
      %110 = arith.addf %107, %109 : vector<128x8xf32>
      %111 = arith.truncf %110 : vector<128x8xf32> to vector<128x8xbf16>
      %c1_92 = arith.constant 1 : index
      %c0_93 = arith.constant 0 : index
      %c0_94 = arith.constant 0 : index
      %112 = vector.load %arg15[%c1_92, %c0_93, %c0_94] : memref<2x128x8xbf16, #tpu.memory_space<vmem>>, vector<1x128x8xbf16>
      %113 = vector.shape_cast %112 : vector<1x128x8xbf16> to vector<128x8xbf16>
      %114 = vector.shape_cast %111 : vector<128x8xbf16> to vector<1x128x8xbf16>
      tpu.vector_store %arg15[%c1_92, %c0_93, %c0_94], %114 {strides = array<i32>} : memref<2x128x8xbf16, #tpu.memory_space<vmem>>, vector<1x128x8xbf16>,
      %cst_95 = arith.constant dense<0.000000e+00> : vector<128x8xf32>
      %115 = tpu.matmul %98, %70, %cst_95 {dimension_numbers = #tpu.dot_dimension_numbers<[1], [0], [0], [1], [0, 0, 1, 1], [], []>} : vector<128x128xbf16>, vector<128x8xbf16>, vector<128x8xf32> -> vector<128x8xf32>
      %c0_96 = arith.constant 0 : index
      %c0_97 = arith.constant 0 : index
      %116 = vector.load %arg8[%c0_96, %c0_97] : memref<1x8xf32, #tpu.memory_space<vmem>>, vector<1x8xf32>
      %117 = vector.broadcast %116 : vector<1x8xf32> to vector<128x8xf32>
      %118 = arith.addf %115, %117 : vector<128x8xf32>
      %119 = arith.truncf %118 : vector<128x8xf32> to vector<128x8xbf16>
      %c1_98 = arith.constant 1 : index
      %c0_99 = arith.constant 0 : index
      %c0_100 = arith.constant 0 : index
      %120 = vector.load %arg16[%c1_98, %c0_99, %c0_100] : memref<2x128x8xbf16, #tpu.memory_space<vmem>>, vector<1x128x8xbf16>
      %121 = vector.shape_cast %120 : vector<1x128x8xbf16> to vector<128x8xbf16>
      %122 = vector.shape_cast %119 : vector<128x8xbf16> to vector<1x128x8xbf16>
      tpu.vector_store %arg16[%c1_98, %c0_99, %c0_100], %122 {strides = array<i32>} : memref<2x128x8xbf16, #tpu.memory_space<vmem>>, vector<1x128x8xbf16>,
    } else {
    }
    %c0 = arith.constant 0 : index
    %c0_1 = arith.constant 0 : index
    %3 = vector.load %arg10[%c0, %c0_1] : memref<128x128xbf16, #tpu.memory_space<vmem>>, vector<128x128xbf16>
    %c0_2 = arith.constant 0 : index
    %c0_3 = arith.constant 0 : index
    %4 = vector.load %arg11[%c0_2, %c0_3] : memref<128x128xbf16, #tpu.memory_space<vmem>>, vector<128x128xbf16>
    %c0_4 = arith.constant 0 : index
    %c0_5 = arith.constant 0 : index
    %5 = vector.load %arg12[%c0_4, %c0_5] : memref<128x1xf32, #tpu.memory_space<vmem>>, vector<128x1xf32>
    %cst = arith.constant 1.000000e-07 : f32
    %6 = vector.broadcast %cst : f32 to vector<128x1xf32>
    %7 = arith.addf %5, %6 : vector<128x1xf32>
    %8 = arith.mulf %7, %7 : vector<128x1xf32>
    %cst_6 = arith.constant 1.000000e+00 : f32
    %9 = vector.broadcast %cst_6 : f32 to vector<128x1xf32>
    %10 = arith.divf %9, %8 : vector<128x1xf32>
    %c0_7 = arith.constant 0 : index
    %c0_8 = arith.constant 0 : index
    %c0_9 = arith.constant 0 : index
    %11 = vector.load %arg15[%c0_7, %c0_8, %c0_9] : memref<2x128x8xbf16, #tpu.memory_space<vmem>>, vector<1x128x8xbf16>
    %12 = vector.shape_cast %11 : vector<1x128x8xbf16> to vector<128x8xbf16>
    %cst_10 = arith.constant dense<0.000000e+00> : vector<128x8xf32>
    %13 = tpu.matmul %4, %12, %cst_10 {dimension_numbers = #tpu.dot_dimension_numbers<[1], [0], [0], [1], [0, 0, 1, 1], [], []>} : vector<128x128xbf16>, vector<128x8xbf16>, vector<128x8xf32> -> vector<128x8xf32>
    %c0_11 = arith.constant 0 : index
    %c0_12 = arith.constant 0 : index
    %c0_13 = arith.constant 0 : index
    %14 = vector.load %arg16[%c0_11, %c0_12, %c0_13] : memref<2x128x8xbf16, #tpu.memory_space<vmem>>, vector<1x128x8xbf16>
    %15 = vector.shape_cast %14 : vector<1x128x8xbf16> to vector<128x8xbf16>
    %cst_14 = arith.constant dense<0.000000e+00> : vector<128x8xf32>
    %16 = tpu.matmul %3, %15, %cst_14 {dimension_numbers = #tpu.dot_dimension_numbers<[1], [0], [0], [1], [0, 0, 1, 1], [], []>} : vector<128x128xbf16>, vector<128x8xbf16>, vector<128x8xf32> -> vector<128x8xf32>
    %17 = arith.addf %13, %16 : vector<128x8xf32>
    %cst_15 = arith.constant 0.000000e+00 : f32
    %18 = vector.broadcast %cst_15 : f32 to vector<128x8xf32>
    %19 = arith.cmpf oge, %17, %18 : vector<128x8xf32>
    %cst_16 = arith.constant 0.00999999977 : f32
    %20 = vector.broadcast %cst_16 : f32 to vector<128x8xf32>
    %21 = arith.mulf %20, %17 : vector<128x8xf32>
    %22 = arith.select %19, %17, %21 : vector<128x8xi1>, vector<128x8xf32>
    %23 = vector.broadcast %10 : vector<128x1xf32> to vector<128x8xf32>
    %24 = arith.mulf %22, %23 : vector<128x8xf32>
    %25 = arith.truncf %24 : vector<128x8xf32> to vector<128x8xbf16>
    %c0_17 = arith.constant 0 : index
    %c0_18 = arith.constant 0 : index
    %26 = vector.load %arg9[%c0_17, %c0_18] : memref<8x128xbf16, #tpu.memory_space<vmem>>, vector<8x128xbf16>
    %cst_19 = arith.constant dense<0.000000e+00> : vector<128x128xf32>
    %27 = tpu.matmul %25, %26, %cst_19 {dimension_numbers = #tpu.dot_dimension_numbers<[1], [0], [0], [1], [0, 0, 1, 1], [], []>} : vector<128x8xbf16>, vector<8x128xbf16>, vector<128x128xf32> -> vector<128x128xf32>
    %c0_20 = arith.constant 0 : index
    %c0_21 = arith.constant 0 : index
    %c0_22 = arith.constant 0 : index
    %28 = vector.load %arg14[%c0_20, %c0_21, %c0_22] : memref<2x128x128xbf16, #tpu.memory_space<vmem>>, vector<1x128x128xbf16>
    %29 = vector.shape_cast %28 : vector<1x128x128xbf16> to vector<128x128xbf16>
    %cst_23 = arith.constant dense<0.000000e+00> : vector<128x128xf32>
    %30 = tpu.matmul %3, %29, %cst_23 {dimension_numbers = #tpu.dot_dimension_numbers<[1], [0], [0], [1], [0, 0, 1, 1], [], []>} : vector<128x128xbf16>, vector<128x128xbf16>, vector<128x128xf32> -> vector<128x128xf32>
    %31 = arith.mulf %27, %30 : vector<128x128xf32>
    %32 = arith.truncf %31 : vector<128x128xf32> to vector<128x128xbf16>
    %c0_24 = arith.constant 0 : index
    %c0_25 = arith.constant 0 : index
    %33 = vector.load %arg17[%c0_24, %c0_25] : memref<128x128xf32, #tpu.memory_space<vmem>>, vector<128x128xf32>
    %cst_26 = arith.constant dense<0.000000e+00> : vector<128x128xf32>
    %34 = tpu.matmul %4, %32, %cst_26 {dimension_numbers = #tpu.dot_dimension_numbers<[0], [0], [1], [1], [0, 1, 1, 1], [], []>} : vector<128x128xbf16>, vector<128x128xbf16>, vector<128x128xf32> -> vector<128x128xf32>
    %35 = arith.addf %33, %34 : vector<128x128xf32>
    %c0_27 = arith.constant 0 : index
    %c0_28 = arith.constant 0 : index
    %36 = vector.load %arg17[%c0_27, %c0_28] : memref<128x128xf32, #tpu.memory_space<vmem>>, vector<128x128xf32>
    tpu.vector_store %arg17[%c0_27, %c0_28], %35 {strides = array<i32>} : memref<128x128xf32, #tpu.memory_space<vmem>>, vector<128x128xf32>,
    %c1 = arith.constant 1 : index
    %c0_29 = arith.constant 0 : index
    %c0_30 = arith.constant 0 : index
    %37 = vector.load %arg15[%c1, %c0_29, %c0_30] : memref<2x128x8xbf16, #tpu.memory_space<vmem>>, vector<1x128x8xbf16>
    %38 = vector.shape_cast %37 : vector<1x128x8xbf16> to vector<128x8xbf16>
    %cst_31 = arith.constant dense<0.000000e+00> : vector<128x8xf32>
    %39 = tpu.matmul %4, %38, %cst_31 {dimension_numbers = #tpu.dot_dimension_numbers<[1], [0], [0], [1], [0, 0, 1, 1], [], []>} : vector<128x128xbf16>, vector<128x8xbf16>, vector<128x8xf32> -> vector<128x8xf32>
    %c1_32 = arith.constant 1 : index
    %c0_33 = arith.constant 0 : index
    %c0_34 = arith.constant 0 : index
    %40 = vector.load %arg16[%c1_32, %c0_33, %c0_34] : memref<2x128x8xbf16, #tpu.memory_space<vmem>>, vector<1x128x8xbf16>
    %41 = vector.shape_cast %40 : vector<1x128x8xbf16> to vector<128x8xbf16>
    %cst_35 = arith.constant dense<0.000000e+00> : vector<128x8xf32>
    %42 = tpu.matmul %3, %41, %cst_35 {dimension_numbers = #tpu.dot_dimension_numbers<[1], [0], [0], [1], [0, 0, 1, 1], [], []>} : vector<128x128xbf16>, vector<128x8xbf16>, vector<128x8xf32> -> vector<128x8xf32>
    %43 = arith.addf %39, %42 : vector<128x8xf32>
    %cst_36 = arith.constant 0.000000e+00 : f32
    %44 = vector.broadcast %cst_36 : f32 to vector<128x8xf32>
    %45 = arith.cmpf oge, %43, %44 : vector<128x8xf32>
    %cst_37 = arith.constant 0.00999999977 : f32
    %46 = vector.broadcast %cst_37 : f32 to vector<128x8xf32>
    %47 = arith.mulf %46, %43 : vector<128x8xf32>
    %48 = arith.select %45, %43, %47 : vector<128x8xi1>, vector<128x8xf32>
    %49 = vector.broadcast %10 : vector<128x1xf32> to vector<128x8xf32>
    %50 = arith.mulf %48, %49 : vector<128x8xf32>
    %51 = arith.truncf %50 : vector<128x8xf32> to vector<128x8xbf16>
    %c0_38 = arith.constant 0 : index
    %c0_39 = arith.constant 0 : index
    %52 = vector.load %arg9[%c0_38, %c0_39] : memref<8x128xbf16, #tpu.memory_space<vmem>>, vector<8x128xbf16>
    %cst_40 = arith.constant dense<0.000000e+00> : vector<128x128xf32>
    %53 = tpu.matmul %51, %52, %cst_40 {dimension_numbers = #tpu.dot_dimension_numbers<[1], [0], [0], [1], [0, 0, 1, 1], [], []>} : vector<128x8xbf16>, vector<8x128xbf16>, vector<128x128xf32> -> vector<128x128xf32>
    %c1_41 = arith.constant 1 : index
    %c0_42 = arith.constant 0 : index
    %c0_43 = arith.constant 0 : index
    %54 = vector.load %arg14[%c1_41, %c0_42, %c0_43] : memref<2x128x128xbf16, #tpu.memory_space<vmem>>, vector<1x128x128xbf16>
    %55 = vector.shape_cast %54 : vector<1x128x128xbf16> to vector<128x128xbf16>
    %cst_44 = arith.constant dense<0.000000e+00> : vector<128x128xf32>
    %56 = tpu.matmul %3, %55, %cst_44 {dimension_numbers = #tpu.dot_dimension_numbers<[1], [0], [0], [1], [0, 0, 1, 1], [], []>} : vector<128x128xbf16>, vector<128x128xbf16>, vector<128x128xf32> -> vector<128x128xf32>
    %57 = arith.mulf %53, %56 : vector<128x128xf32>
    %58 = arith.truncf %57 : vector<128x128xf32> to vector<128x128xbf16>
    %c0_45 = arith.constant 0 : index
    %c0_46 = arith.constant 0 : index
    %59 = vector.load %arg17[%c0_45, %c0_46] : memref<128x128xf32, #tpu.memory_space<vmem>>, vector<128x128xf32>
    %cst_47 = arith.constant dense<0.000000e+00> : vector<128x128xf32>
    %60 = tpu.matmul %4, %58, %cst_47 {dimension_numbers = #tpu.dot_dimension_numbers<[0], [0], [1], [1], [0, 1, 1, 1], [], []>} : vector<128x128xbf16>, vector<128x128xbf16>, vector<128x128xf32> -> vector<128x128xf32>
    %61 = arith.addf %59, %60 : vector<128x128xf32>
    %c0_48 = arith.constant 0 : index
    %c0_49 = arith.constant 0 : index
    %62 = vector.load %arg17[%c0_48, %c0_49] : memref<128x128xf32, #tpu.memory_space<vmem>>, vector<128x128xf32>
    tpu.vector_store %arg17[%c0_48, %c0_49], %61 {strides = array<i32>} : memref<128x128xf32, #tpu.memory_space<vmem>>, vector<128x128xf32>,
    %c0_i32_50 = arith.constant 0 : i32
    %63 = arith.cmpi eq, %arg0, %c0_i32_50 : i32
    %64 = arith.extui %63 : i1 to i32
    %c0_i32_51 = arith.constant 0 : i32
    %65 = arith.cmpi ne, %64, %c0_i32_51 : i32
    scf.if %65 {
      %c0_52 = arith.constant 0 : index
      %c0_53 = arith.constant 0 : index
      %66 = vector.load %arg17[%c0_52, %c0_53] : memref<128x128xf32, #tpu.memory_space<vmem>>, vector<128x128xf32>
      %cst_54 = arith.constant dense<0.000000e+00> : vector<128xf32>
      %67 = vector.multi_reduction <add>, %66, %cst_54 [0] : vector<128x128xf32> to vector<128xf32>
      %68 = vector.shape_cast %67 : vector<128xf32> to vector<1x128xf32>
      %cst_55 = arith.constant 1.562500e-02 : f32
      %69 = vector.broadcast %cst_55 : f32 to vector<1x128xf32>
      %70 = arith.mulf %68, %69 : vector<1x128xf32>
      %71 = arith.mulf %66, %66 : vector<128x128xf32>
      %cst_56 = arith.constant dense<0.000000e+00> : vector<128xf32>
      %72 = vector.multi_reduction <add>, %71, %cst_56 [0] : vector<128x128xf32> to vector<128xf32>
      %73 = vector.shape_cast %72 : vector<128xf32> to vector<1x128xf32>
      %cst_57 = arith.constant 1.562500e-02 : f32
      %74 = vector.broadcast %cst_57 : f32 to vector<1x128xf32>
      %75 = arith.mulf %73, %74 : vector<1x128xf32>
      %76 = arith.mulf %70, %70 : vector<1x128xf32>
      %77 = arith.subf %75, %76 : vector<1x128xf32>
      %cst_58 = arith.constant 0.000000e+00 : f32
      %78 = vector.broadcast %cst_58 : f32 to vector<1x128xf32>
      %79 = arith.maximumf %77, %78 : vector<1x128xf32>
      %80 = vector.broadcast %70 : vector<1x128xf32> to vector<128x128xf32>
      %81 = arith.subf %66, %80 : vector<128x128xf32>
      %cst_59 = arith.constant 9.99999974E-6 : f32
      %82 = vector.broadcast %cst_59 : f32 to vector<1x128xf32>
      %83 = arith.addf %79, %82 : vector<1x128xf32>
      %84 = math.rsqrt %83 : vector<1x128xf32>
      %85 = vector.broadcast %84 : vector<1x128xf32> to vector<128x128xf32>
      %86 = arith.mulf %81, %85 : vector<128x128xf32>
      %cst_60 = arith.constant 0.000000e+00 : f32
      %87 = vector.broadcast %cst_60 : f32 to vector<128x128xf32>
      %88 = arith.maximumf %86, %87 : vector<128x128xf32>
      %c0_61 = arith.constant 0 : index
      %c0_62 = arith.constant 0 : index
      %89 = vector.load %arg13[%c0_61, %c0_62] : memref<128x128xf32, #tpu.memory_space<vmem>>, vector<128x128xf32>
      tpu.vector_store %arg13[%c0_61, %c0_62], %88 {strides = array<i32>} : memref<128x128xf32, #tpu.memory_space<vmem>>, vector<128x128xf32>,
    } else {
    }
    return
  }
  func.func @transform_0(%arg0: i32) -> (i32, i32) {
    %c0_i32 = arith.constant 0 : i32
    %c0_i32_0 = arith.constant 0 : i32
    %c0_i32_1 = arith.constant 0 : i32
    return %c0_i32, %c0_i32_0 : i32, i32
  }
  func.func @transform_1(%arg0: i32) -> (i32, i32) {
    %c0_i32 = arith.constant 0 : i32
    %c0_i32_0 = arith.constant 0 : i32
    %c0_i32_1 = arith.constant 0 : i32
    return %c0_i32, %c0_i32_0 : i32, i32
  }
  func.func @transform_2(%arg0: i32) -> (i32, i32) {
    %c0_i32 = arith.constant 0 : i32
    %c0_i32_0 = arith.constant 0 : i32
    %c0_i32_1 = arith.constant 0 : i32
    return %c0_i32, %c0_i32_0 : i32, i32
  }
  func.func @transform_3(%arg0: i32) -> (i32, i32) {
    %c0_i32 = arith.constant 0 : i32
    %c0_i32_0 = arith.constant 0 : i32
    %c0_i32_1 = arith.constant 0 : i32
    return %c0_i32, %c0_i32_0 : i32, i32
  }
  func.func @transform_4(%arg0: i32) -> (i32, i32) {
    %c0_i32 = arith.constant 0 : i32
    %c0_i32_0 = arith.constant 0 : i32
    %c0_i32_1 = arith.constant 0 : i32
    return %c0_i32, %c0_i32_0 : i32, i32
  }
  func.func @transform_5(%arg0: i32) -> (i32, i32) {
    %c0_i32 = arith.constant 0 : i32
    %c0_i32_0 = arith.constant 0 : i32
    %c0_i32_1 = arith.constant 0 : i32
    return %c0_i32, %c0_i32_0 : i32, i32
  }
  func.func @transform_6(%arg0: i32) -> (i32, i32) {
    %c0_i32 = arith.constant 0 : i32
    %c0_i32_0 = arith.constant 0 : i32
    %c0_i32_1 = arith.constant 0 : i32
    return %c0_i32, %c0_i32_0 : i32, i32
  }
  func.func @transform_7(%arg0: i32) -> (i32, i32) {
    %c0_i32 = arith.constant 0 : i32
    %c0_i32_0 = arith.constant 0 : i32
    %c0_i32_1 = arith.constant 0 : i32
    return %c0_i32, %c0_i32_0 : i32, i32
  }
  func.func @transform_8(%arg0: i32) -> (i32, i32) {
    %c0_i32 = arith.constant 0 : i32
    %c0_i32_0 = arith.constant 0 : i32
    %c0_i32_1 = arith.constant 0 : i32
    return %c0_i32, %c0_i32_0 : i32, i32
  }
  func.func @transform_9(%arg0: i32) -> (i32, i32) {
    %c0_i32 = arith.constant 0 : i32
    %c0_i32_0 = arith.constant 0 : i32
    return %arg0, %c0_i32 : i32, i32
  }
  func.func @transform_10(%arg0: i32) -> (i32, i32) {
    %c0_i32 = arith.constant 0 : i32
    %c0_i32_0 = arith.constant 0 : i32
    return %arg0, %c0_i32 : i32, i32
  }
  func.func @transform_11(%arg0: i32) -> (i32, i32) {
    %c0_i32 = arith.constant 0 : i32
    %c0_i32_0 = arith.constant 0 : i32
    return %arg0, %c0_i32 : i32, i32
  }
  func.func @transform_12(%arg0: i32) -> (i32, i32) {
    %c0_i32 = arith.constant 0 : i32
    %c0_i32_0 = arith.constant 0 : i32
    %c0_i32_1 = arith.constant 0 : i32
    return %c0_i32, %c0_i32_0 : i32, i32
  }
}

module attributes {stable_mosaic.version = 11 : i64} {
  func.func @_gat_conv_kernel(%arg0: i32, %arg1: memref<128x128xf32, #tpu.memory_space<vmem>>, %arg2: memref<128x128xbf16, #tpu.memory_space<vmem>>, %arg3: memref<1x128xf32, #tpu.memory_space<vmem>>, %arg4: memref<128x8xbf16, #tpu.memory_space<vmem>>, %arg5: memref<128x8xbf16, #tpu.memory_space<vmem>>, %arg6: memref<1x8xf32, #tpu.memory_space<vmem>>, %arg7: memref<1x8xf32, #tpu.memory_space<vmem>>, %arg8: memref<8x128xbf16, #tpu.memory_space<vmem>>, %arg9: memref<128x16xf32, #tpu.memory_space<vmem>>, %arg10: memref<128x128xbf16, #tpu.memory_space<vmem>>, %arg11: memref<128x128xbf16, #tpu.memory_space<vmem>>, %arg12: memref<128x1xf32, #tpu.memory_space<vmem>>, %arg13: memref<128x16xf32, #tpu.memory_space<vmem>>, %arg14: memref<1x128x128xbf16, #tpu.memory_space<vmem>>, %arg15: memref<1x128x8xbf16, #tpu.memory_space<vmem>>, %arg16: memref<1x128x8xbf16, #tpu.memory_space<vmem>>, %arg17: memref<128x128xf32, #tpu.memory_space<vmem>>) attributes {dimension_semantics = [#tpu.dimension_semantics<arbitrary>], iteration_bounds = array<i64: 1>, scalar_prefetch = 0 : i64, scratch_operands = 4 : i64, tpu.core_type = #tpu.core_type<tc>, window_params = [{pipeline_mode = #tpu.pipeline_mode<synchronous>, transform_indices = @transform_0, window_bounds = array<i64: 128, 128>}, {pipeline_mode = #tpu.pipeline_mode<synchronous>, transform_indices = @transform_1, window_bounds = array<i64: 128, 128>}, {pipeline_mode = #tpu.pipeline_mode<synchronous>, transform_indices = @transform_2, window_bounds = array<i64: 1, 128>}, {pipeline_mode = #tpu.pipeline_mode<synchronous>, transform_indices = @transform_3, window_bounds = array<i64: 128, 8>}, {pipeline_mode = #tpu.pipeline_mode<synchronous>, transform_indices = @transform_4, window_bounds = array<i64: 128, 8>}, {pipeline_mode = #tpu.pipeline_mode<synchronous>, transform_indices = @transform_5, window_bounds = array<i64: 1, 8>}, {pipeline_mode = #tpu.pipeline_mode<synchronous>, transform_indices = @transform_6, window_bounds = array<i64: 1, 8>}, {pipeline_mode = #tpu.pipeline_mode<synchronous>, transform_indices = @transform_7, window_bounds = array<i64: 8, 128>}, {pipeline_mode = #tpu.pipeline_mode<synchronous>, transform_indices = @transform_8, window_bounds = array<i64: 128, 16>}, {transform_indices = @transform_9, window_bounds = array<i64: 128, 128>}, {transform_indices = @transform_10, window_bounds = array<i64: 128, 128>}, {transform_indices = @transform_11, window_bounds = array<i64: 128, 1>}, {pipeline_mode = #tpu.pipeline_mode<synchronous>, transform_indices = @transform_12, window_bounds = array<i64: 128, 16>}]} {
    %c0_i32 = arith.constant 0 : i32
    %0 = arith.cmpi eq, %arg0, %c0_i32 : i32
    %1 = arith.extui %0 : i1 to i32
    %c0_i32_0 = arith.constant 0 : i32
    %2 = arith.cmpi ne, %1, %c0_i32_0 : i32
    scf.if %2 {
      %cst_31 = arith.constant 0.000000e+00 : f32
      %40 = vector.broadcast %cst_31 : f32 to vector<128x128xf32>
      %c0_32 = arith.constant 0 : index
      %c0_33 = arith.constant 0 : index
      %41 = vector.load %arg17[%c0_32, %c0_33] : memref<128x128xf32, #tpu.memory_space<vmem>>, vector<128x128xf32>
      tpu.vector_store %arg17[%c0_32, %c0_33], %40 {strides = array<i32>} : memref<128x128xf32, #tpu.memory_space<vmem>>, vector<128x128xf32>,
      %c0_34 = arith.constant 0 : index
      %c0_35 = arith.constant 0 : index
      %42 = vector.load %arg2[%c0_34, %c0_35] : memref<128x128xbf16, #tpu.memory_space<vmem>>, vector<128x128xbf16>
      %c0_36 = arith.constant 0 : index
      %c0_37 = arith.constant 0 : index
      %43 = vector.load %arg4[%c0_36, %c0_37] : memref<128x8xbf16, #tpu.memory_space<vmem>>, vector<128x8xbf16>
      %c0_38 = arith.constant 0 : index
      %c0_39 = arith.constant 0 : index
      %44 = vector.load %arg5[%c0_38, %c0_39] : memref<128x8xbf16, #tpu.memory_space<vmem>>, vector<128x8xbf16>
      %c0_40 = arith.constant 0 : index
      %c0_41 = arith.constant 0 : index
      %45 = vector.load %arg1[%c0_40, %c0_41] : memref<128x128xf32, #tpu.memory_space<vmem>>, vector<128x128xf32>
      %46 = arith.truncf %45 : vector<128x128xf32> to vector<128x128xbf16>
      %cst_42 = arith.constant dense<0.000000e+00> : vector<128x128xf32>
      %47 = tpu.matmul %46, %42, %cst_42 {dimension_numbers = #tpu.dot_dimension_numbers<[1], [0], [0], [1], [0, 0, 1, 1], [], []>} : vector<128x128xbf16>, vector<128x128xbf16>, vector<128x128xf32> -> vector<128x128xf32>
      %c0_43 = arith.constant 0 : index
      %c0_44 = arith.constant 0 : index
      %48 = vector.load %arg3[%c0_43, %c0_44] : memref<1x128xf32, #tpu.memory_space<vmem>>, vector<1x128xf32>
      %49 = vector.broadcast %48 : vector<1x128xf32> to vector<128x128xf32>
      %50 = arith.addf %47, %49 : vector<128x128xf32>
      %51 = arith.truncf %50 : vector<128x128xf32> to vector<128x128xbf16>
      %c0_45 = arith.constant 0 : index
      %c0_46 = arith.constant 0 : index
      %c0_47 = arith.constant 0 : index
      %52 = vector.load %arg14[%c0_45, %c0_46, %c0_47] : memref<1x128x128xbf16, #tpu.memory_space<vmem>>, vector<1x128x128xbf16>
      %53 = vector.shape_cast %52 : vector<1x128x128xbf16> to vector<128x128xbf16>
      %54 = vector.shape_cast %51 : vector<128x128xbf16> to vector<1x128x128xbf16>
      tpu.vector_store %arg14[%c0_45, %c0_46, %c0_47], %54 {strides = array<i32>} : memref<1x128x128xbf16, #tpu.memory_space<vmem>>, vector<1x128x128xbf16>,
      %cst_48 = arith.constant dense<0.000000e+00> : vector<128x8xf32>
      %55 = tpu.matmul %46, %43, %cst_48 {dimension_numbers = #tpu.dot_dimension_numbers<[1], [0], [0], [1], [0, 0, 1, 1], [], []>} : vector<128x128xbf16>, vector<128x8xbf16>, vector<128x8xf32> -> vector<128x8xf32>
      %c0_49 = arith.constant 0 : index
      %c0_50 = arith.constant 0 : index
      %56 = vector.load %arg6[%c0_49, %c0_50] : memref<1x8xf32, #tpu.memory_space<vmem>>, vector<1x8xf32>
      %57 = vector.broadcast %56 : vector<1x8xf32> to vector<128x8xf32>
      %58 = arith.addf %55, %57 : vector<128x8xf32>
      %59 = arith.truncf %58 : vector<128x8xf32> to vector<128x8xbf16>
      %c0_51 = arith.constant 0 : index
      %c0_52 = arith.constant 0 : index
      %c0_53 = arith.constant 0 : index
      %60 = vector.load %arg15[%c0_51, %c0_52, %c0_53] : memref<1x128x8xbf16, #tpu.memory_space<vmem>>, vector<1x128x8xbf16>
      %61 = vector.shape_cast %60 : vector<1x128x8xbf16> to vector<128x8xbf16>
      %62 = vector.shape_cast %59 : vector<128x8xbf16> to vector<1x128x8xbf16>
      tpu.vector_store %arg15[%c0_51, %c0_52, %c0_53], %62 {strides = array<i32>} : memref<1x128x8xbf16, #tpu.memory_space<vmem>>, vector<1x128x8xbf16>,
      %cst_54 = arith.constant dense<0.000000e+00> : vector<128x8xf32>
      %63 = tpu.matmul %46, %44, %cst_54 {dimension_numbers = #tpu.dot_dimension_numbers<[1], [0], [0], [1], [0, 0, 1, 1], [], []>} : vector<128x128xbf16>, vector<128x8xbf16>, vector<128x8xf32> -> vector<128x8xf32>
      %c0_55 = arith.constant 0 : index
      %c0_56 = arith.constant 0 : index
      %64 = vector.load %arg7[%c0_55, %c0_56] : memref<1x8xf32, #tpu.memory_space<vmem>>, vector<1x8xf32>
      %65 = vector.broadcast %64 : vector<1x8xf32> to vector<128x8xf32>
      %66 = arith.addf %63, %65 : vector<128x8xf32>
      %67 = arith.truncf %66 : vector<128x8xf32> to vector<128x8xbf16>
      %c0_57 = arith.constant 0 : index
      %c0_58 = arith.constant 0 : index
      %c0_59 = arith.constant 0 : index
      %68 = vector.load %arg16[%c0_57, %c0_58, %c0_59] : memref<1x128x8xbf16, #tpu.memory_space<vmem>>, vector<1x128x8xbf16>
      %69 = vector.shape_cast %68 : vector<1x128x8xbf16> to vector<128x8xbf16>
      %70 = vector.shape_cast %67 : vector<128x8xbf16> to vector<1x128x8xbf16>
      tpu.vector_store %arg16[%c0_57, %c0_58, %c0_59], %70 {strides = array<i32>} : memref<1x128x8xbf16, #tpu.memory_space<vmem>>, vector<1x128x8xbf16>,
    } else {
    }
    %c0 = arith.constant 0 : index
    %c0_1 = arith.constant 0 : index
    %3 = vector.load %arg10[%c0, %c0_1] : memref<128x128xbf16, #tpu.memory_space<vmem>>, vector<128x128xbf16>
    %c0_2 = arith.constant 0 : index
    %c0_3 = arith.constant 0 : index
    %4 = vector.load %arg11[%c0_2, %c0_3] : memref<128x128xbf16, #tpu.memory_space<vmem>>, vector<128x128xbf16>
    %c0_4 = arith.constant 0 : index
    %c0_5 = arith.constant 0 : index
    %5 = vector.load %arg12[%c0_4, %c0_5] : memref<128x1xf32, #tpu.memory_space<vmem>>, vector<128x1xf32>
    %cst = arith.constant 1.000000e-07 : f32
    %6 = vector.broadcast %cst : f32 to vector<128x1xf32>
    %7 = arith.addf %5, %6 : vector<128x1xf32>
    %8 = arith.mulf %7, %7 : vector<128x1xf32>
    %cst_6 = arith.constant 1.000000e+00 : f32
    %9 = vector.broadcast %cst_6 : f32 to vector<128x1xf32>
    %10 = arith.divf %9, %8 : vector<128x1xf32>
    %c0_7 = arith.constant 0 : index
    %c0_8 = arith.constant 0 : index
    %c0_9 = arith.constant 0 : index
    %11 = vector.load %arg15[%c0_7, %c0_8, %c0_9] : memref<1x128x8xbf16, #tpu.memory_space<vmem>>, vector<1x128x8xbf16>
    %12 = vector.shape_cast %11 : vector<1x128x8xbf16> to vector<128x8xbf16>
    %cst_10 = arith.constant dense<0.000000e+00> : vector<128x8xf32>
    %13 = tpu.matmul %4, %12, %cst_10 {dimension_numbers = #tpu.dot_dimension_numbers<[1], [0], [0], [1], [0, 0, 1, 1], [], []>} : vector<128x128xbf16>, vector<128x8xbf16>, vector<128x8xf32> -> vector<128x8xf32>
    %c0_11 = arith.constant 0 : index
    %c0_12 = arith.constant 0 : index
    %c0_13 = arith.constant 0 : index
    %14 = vector.load %arg16[%c0_11, %c0_12, %c0_13] : memref<1x128x8xbf16, #tpu.memory_space<vmem>>, vector<1x128x8xbf16>
    %15 = vector.shape_cast %14 : vector<1x128x8xbf16> to vector<128x8xbf16>
    %cst_14 = arith.constant dense<0.000000e+00> : vector<128x8xf32>
    %16 = tpu.matmul %3, %15, %cst_14 {dimension_numbers = #tpu.dot_dimension_numbers<[1], [0], [0], [1], [0, 0, 1, 1], [], []>} : vector<128x128xbf16>, vector<128x8xbf16>, vector<128x8xf32> -> vector<128x8xf32>
    %17 = arith.addf %13, %16 : vector<128x8xf32>
    %cst_15 = arith.constant 0.000000e+00 : f32
    %18 = vector.broadcast %cst_15 : f32 to vector<128x8xf32>
    %19 = arith.cmpf oge, %17, %18 : vector<128x8xf32>
    %cst_16 = arith.constant 0.00999999977 : f32
    %20 = vector.broadcast %cst_16 : f32 to vector<128x8xf32>
    %21 = arith.mulf %20, %17 : vector<128x8xf32>
    %22 = arith.select %19, %17, %21 : vector<128x8xi1>, vector<128x8xf32>
    %23 = vector.broadcast %10 : vector<128x1xf32> to vector<128x8xf32>
    %24 = arith.mulf %22, %23 : vector<128x8xf32>
    %25 = arith.truncf %24 : vector<128x8xf32> to vector<128x8xbf16>
    %c0_17 = arith.constant 0 : index
    %c0_18 = arith.constant 0 : index
    %26 = vector.load %arg8[%c0_17, %c0_18] : memref<8x128xbf16, #tpu.memory_space<vmem>>, vector<8x128xbf16>
    %cst_19 = arith.constant dense<0.000000e+00> : vector<128x128xf32>
    %27 = tpu.matmul %25, %26, %cst_19 {dimension_numbers = #tpu.dot_dimension_numbers<[1], [0], [0], [1], [0, 0, 1, 1], [], []>} : vector<128x8xbf16>, vector<8x128xbf16>, vector<128x128xf32> -> vector<128x128xf32>
    %c0_20 = arith.constant 0 : index
    %c0_21 = arith.constant 0 : index
    %c0_22 = arith.constant 0 : index
    %28 = vector.load %arg14[%c0_20, %c0_21, %c0_22] : memref<1x128x128xbf16, #tpu.memory_space<vmem>>, vector<1x128x128xbf16>
    %29 = vector.shape_cast %28 : vector<1x128x128xbf16> to vector<128x128xbf16>
    %cst_23 = arith.constant dense<0.000000e+00> : vector<128x128xf32>
    %30 = tpu.matmul %3, %29, %cst_23 {dimension_numbers = #tpu.dot_dimension_numbers<[1], [0], [0], [1], [0, 0, 1, 1], [], []>} : vector<128x128xbf16>, vector<128x128xbf16>, vector<128x128xf32> -> vector<128x128xf32>
    %31 = arith.mulf %27, %30 : vector<128x128xf32>
    %32 = arith.truncf %31 : vector<128x128xf32> to vector<128x128xbf16>
    %c0_24 = arith.constant 0 : index
    %c0_25 = arith.constant 0 : index
    %33 = vector.load %arg17[%c0_24, %c0_25] : memref<128x128xf32, #tpu.memory_space<vmem>>, vector<128x128xf32>
    %cst_26 = arith.constant dense<0.000000e+00> : vector<128x128xf32>
    %34 = tpu.matmul %4, %32, %cst_26 {dimension_numbers = #tpu.dot_dimension_numbers<[0], [0], [1], [1], [0, 1, 1, 1], [], []>} : vector<128x128xbf16>, vector<128x128xbf16>, vector<128x128xf32> -> vector<128x128xf32>
    %35 = arith.addf %33, %34 : vector<128x128xf32>
    %c0_27 = arith.constant 0 : index
    %c0_28 = arith.constant 0 : index
    %36 = vector.load %arg17[%c0_27, %c0_28] : memref<128x128xf32, #tpu.memory_space<vmem>>, vector<128x128xf32>
    tpu.vector_store %arg17[%c0_27, %c0_28], %35 {strides = array<i32>} : memref<128x128xf32, #tpu.memory_space<vmem>>, vector<128x128xf32>,
    %c0_i32_29 = arith.constant 0 : i32
    %37 = arith.cmpi eq, %arg0, %c0_i32_29 : i32
    %38 = arith.extui %37 : i1 to i32
    %c0_i32_30 = arith.constant 0 : i32
    %39 = arith.cmpi ne, %38, %c0_i32_30 : i32
    scf.if %39 {
      %c0_31 = arith.constant 0 : index
      %c0_32 = arith.constant 0 : index
      %40 = vector.load %arg17[%c0_31, %c0_32] : memref<128x128xf32, #tpu.memory_space<vmem>>, vector<128x128xf32>
      %c0_33 = arith.constant 0 : index
      %c0_34 = arith.constant 0 : index
      %41 = vector.load %arg9[%c0_33, %c0_34] : memref<128x16xf32, #tpu.memory_space<vmem>>, vector<128x16xf32>
      %cst_35 = arith.constant dense<0.000000e+00> : vector<128x16xf32>
      %42 = tpu.matmul %40, %41, %cst_35 {dimension_numbers = #tpu.dot_dimension_numbers<[1], [0], [0], [1], [0, 0, 1, 1], [], []>} : vector<128x128xf32>, vector<128x16xf32>, vector<128x16xf32> -> vector<128x16xf32>
      %c0_36 = arith.constant 0 : index
      %c0_37 = arith.constant 0 : index
      %43 = vector.load %arg13[%c0_36, %c0_37] : memref<128x16xf32, #tpu.memory_space<vmem>>, vector<128x16xf32>
      tpu.vector_store %arg13[%c0_36, %c0_37], %42 {strides = array<i32>} : memref<128x16xf32, #tpu.memory_space<vmem>>, vector<128x16xf32>,
    } else {
    }
    return
  }
  func.func @transform_0(%arg0: i32) -> (i32, i32) {
    %c0_i32 = arith.constant 0 : i32
    %c0_i32_0 = arith.constant 0 : i32
    %c0_i32_1 = arith.constant 0 : i32
    return %c0_i32, %c0_i32_0 : i32, i32
  }
  func.func @transform_1(%arg0: i32) -> (i32, i32) {
    %c0_i32 = arith.constant 0 : i32
    %c0_i32_0 = arith.constant 0 : i32
    %c0_i32_1 = arith.constant 0 : i32
    return %c0_i32, %c0_i32_0 : i32, i32
  }
  func.func @transform_2(%arg0: i32) -> (i32, i32) {
    %c0_i32 = arith.constant 0 : i32
    %c0_i32_0 = arith.constant 0 : i32
    %c0_i32_1 = arith.constant 0 : i32
    return %c0_i32, %c0_i32_0 : i32, i32
  }
  func.func @transform_3(%arg0: i32) -> (i32, i32) {
    %c0_i32 = arith.constant 0 : i32
    %c0_i32_0 = arith.constant 0 : i32
    %c0_i32_1 = arith.constant 0 : i32
    return %c0_i32, %c0_i32_0 : i32, i32
  }
  func.func @transform_4(%arg0: i32) -> (i32, i32) {
    %c0_i32 = arith.constant 0 : i32
    %c0_i32_0 = arith.constant 0 : i32
    %c0_i32_1 = arith.constant 0 : i32
    return %c0_i32, %c0_i32_0 : i32, i32
  }
  func.func @transform_5(%arg0: i32) -> (i32, i32) {
    %c0_i32 = arith.constant 0 : i32
    %c0_i32_0 = arith.constant 0 : i32
    %c0_i32_1 = arith.constant 0 : i32
    return %c0_i32, %c0_i32_0 : i32, i32
  }
  func.func @transform_6(%arg0: i32) -> (i32, i32) {
    %c0_i32 = arith.constant 0 : i32
    %c0_i32_0 = arith.constant 0 : i32
    %c0_i32_1 = arith.constant 0 : i32
    return %c0_i32, %c0_i32_0 : i32, i32
  }
  func.func @transform_7(%arg0: i32) -> (i32, i32) {
    %c0_i32 = arith.constant 0 : i32
    %c0_i32_0 = arith.constant 0 : i32
    %c0_i32_1 = arith.constant 0 : i32
    return %c0_i32, %c0_i32_0 : i32, i32
  }
  func.func @transform_8(%arg0: i32) -> (i32, i32) {
    %c0_i32 = arith.constant 0 : i32
    %c0_i32_0 = arith.constant 0 : i32
    %c0_i32_1 = arith.constant 0 : i32
    return %c0_i32, %c0_i32_0 : i32, i32
  }
  func.func @transform_9(%arg0: i32) -> (i32, i32) {
    %c0_i32 = arith.constant 0 : i32
    %c0_i32_0 = arith.constant 0 : i32
    return %arg0, %c0_i32 : i32, i32
  }
  func.func @transform_10(%arg0: i32) -> (i32, i32) {
    %c0_i32 = arith.constant 0 : i32
    %c0_i32_0 = arith.constant 0 : i32
    return %arg0, %c0_i32 : i32, i32
  }
  func.func @transform_11(%arg0: i32) -> (i32, i32) {
    %c0_i32 = arith.constant 0 : i32
    %c0_i32_0 = arith.constant 0 : i32
    return %arg0, %c0_i32 : i32, i32
  }
  func.func @transform_12(%arg0: i32) -> (i32, i32) {
    %c0_i32 = arith.constant 0 : i32
    %c0_i32_0 = arith.constant 0 : i32
    %c0_i32_1 = arith.constant 0 : i32
    return %c0_i32, %c0_i32_0 : i32, i32
  }
}

module attributes {stable_mosaic.version = 11 : i64} {
  func.func @_mlp_head_kernel(%arg0: memref<4x16xf32, #tpu.memory_space<vmem>>, %arg1: memref<16x32xf32, #tpu.memory_space<vmem>>, %arg2: memref<1x32xf32, #tpu.memory_space<vmem>>, %arg3: memref<32x32xf32, #tpu.memory_space<vmem>>, %arg4: memref<1x32xf32, #tpu.memory_space<vmem>>, %arg5: memref<32x32xf32, #tpu.memory_space<vmem>>, %arg6: memref<1x32xf32, #tpu.memory_space<vmem>>, %arg7: memref<32x32xf32, #tpu.memory_space<vmem>>, %arg8: memref<1x32xf32, #tpu.memory_space<vmem>>, %arg9: memref<32x1xf32, #tpu.memory_space<vmem>>, %arg10: memref<1x1xf32, #tpu.memory_space<vmem>>, %arg11: memref<4x1xf32, #tpu.memory_space<vmem>>) attributes {dimension_semantics = [], scalar_prefetch = 0 : i64, scratch_operands = 0 : i64, tpu.core_type = #tpu.core_type<tc>} {
    %c0 = arith.constant 0 : index
    %c0_0 = arith.constant 0 : index
    %0 = vector.load %arg0[%c0, %c0_0] : memref<4x16xf32, #tpu.memory_space<vmem>>, vector<4x16xf32>
    %cst = arith.constant dense<0.000000e+00> : vector<16xf32>
    %1 = vector.multi_reduction <add>, %0, %cst [0] : vector<4x16xf32> to vector<16xf32>
    %2 = vector.shape_cast %1 : vector<16xf32> to vector<1x16xf32>
    %cst_1 = arith.constant 4.000000e+00 : f32
    %3 = vector.broadcast %cst_1 : f32 to vector<1x16xf32>
    %4 = arith.divf %2, %3 : vector<1x16xf32>
    %5 = vector.broadcast %4 : vector<1x16xf32> to vector<4x16xf32>
    %6 = arith.subf %0, %5 : vector<4x16xf32>
    %7 = arith.mulf %6, %6 : vector<4x16xf32>
    %cst_2 = arith.constant dense<0.000000e+00> : vector<16xf32>
    %8 = vector.multi_reduction <add>, %7, %cst_2 [0] : vector<4x16xf32> to vector<16xf32>
    %9 = vector.shape_cast %8 : vector<16xf32> to vector<1x16xf32>
    %cst_3 = arith.constant 4.000000e+00 : f32
    %10 = vector.broadcast %cst_3 : f32 to vector<1x16xf32>
    %11 = arith.divf %9, %10 : vector<1x16xf32>
    %12 = vector.broadcast %4 : vector<1x16xf32> to vector<4x16xf32>
    %13 = arith.subf %0, %12 : vector<4x16xf32>
    %cst_4 = arith.constant 9.99999974E-6 : f32
    %14 = vector.broadcast %cst_4 : f32 to vector<1x16xf32>
    %15 = arith.addf %11, %14 : vector<1x16xf32>
    %16 = math.rsqrt %15 : vector<1x16xf32>
    %17 = vector.broadcast %16 : vector<1x16xf32> to vector<4x16xf32>
    %18 = arith.mulf %13, %17 : vector<4x16xf32>
    %cst_5 = arith.constant 0.000000e+00 : f32
    %19 = vector.broadcast %cst_5 : f32 to vector<4x16xf32>
    %20 = arith.maximumf %18, %19 : vector<4x16xf32>
    %c0_6 = arith.constant 0 : index
    %c0_7 = arith.constant 0 : index
    %21 = vector.load %arg1[%c0_6, %c0_7] : memref<16x32xf32, #tpu.memory_space<vmem>>, vector<16x32xf32>
    %cst_8 = arith.constant dense<0.000000e+00> : vector<4x32xf32>
    %22 = tpu.matmul %20, %21, %cst_8 {dimension_numbers = #tpu.dot_dimension_numbers<[1], [0], [0], [1], [0, 0, 1, 1], [], []>} : vector<4x16xf32>, vector<16x32xf32>, vector<4x32xf32> -> vector<4x32xf32>
    %c0_9 = arith.constant 0 : index
    %c0_10 = arith.constant 0 : index
    %23 = vector.load %arg2[%c0_9, %c0_10] : memref<1x32xf32, #tpu.memory_space<vmem>>, vector<1x32xf32>
    %24 = vector.broadcast %23 : vector<1x32xf32> to vector<4x32xf32>
    %25 = arith.addf %22, %24 : vector<4x32xf32>
    %cst_11 = arith.constant dense<0.000000e+00> : vector<32xf32>
    %26 = vector.multi_reduction <add>, %25, %cst_11 [0] : vector<4x32xf32> to vector<32xf32>
    %27 = vector.shape_cast %26 : vector<32xf32> to vector<1x32xf32>
    %cst_12 = arith.constant 4.000000e+00 : f32
    %28 = vector.broadcast %cst_12 : f32 to vector<1x32xf32>
    %29 = arith.divf %27, %28 : vector<1x32xf32>
    %30 = vector.broadcast %29 : vector<1x32xf32> to vector<4x32xf32>
    %31 = arith.subf %25, %30 : vector<4x32xf32>
    %32 = arith.mulf %31, %31 : vector<4x32xf32>
    %cst_13 = arith.constant dense<0.000000e+00> : vector<32xf32>
    %33 = vector.multi_reduction <add>, %32, %cst_13 [0] : vector<4x32xf32> to vector<32xf32>
    %34 = vector.shape_cast %33 : vector<32xf32> to vector<1x32xf32>
    %cst_14 = arith.constant 4.000000e+00 : f32
    %35 = vector.broadcast %cst_14 : f32 to vector<1x32xf32>
    %36 = arith.divf %34, %35 : vector<1x32xf32>
    %37 = vector.broadcast %29 : vector<1x32xf32> to vector<4x32xf32>
    %38 = arith.subf %25, %37 : vector<4x32xf32>
    %cst_15 = arith.constant 9.99999974E-6 : f32
    %39 = vector.broadcast %cst_15 : f32 to vector<1x32xf32>
    %40 = arith.addf %36, %39 : vector<1x32xf32>
    %41 = math.rsqrt %40 : vector<1x32xf32>
    %42 = vector.broadcast %41 : vector<1x32xf32> to vector<4x32xf32>
    %43 = arith.mulf %38, %42 : vector<4x32xf32>
    %cst_16 = arith.constant 0.000000e+00 : f32
    %44 = vector.broadcast %cst_16 : f32 to vector<4x32xf32>
    %45 = arith.maximumf %43, %44 : vector<4x32xf32>
    %c0_17 = arith.constant 0 : index
    %c0_18 = arith.constant 0 : index
    %46 = vector.load %arg3[%c0_17, %c0_18] : memref<32x32xf32, #tpu.memory_space<vmem>>, vector<32x32xf32>
    %cst_19 = arith.constant dense<0.000000e+00> : vector<4x32xf32>
    %47 = tpu.matmul %45, %46, %cst_19 {dimension_numbers = #tpu.dot_dimension_numbers<[1], [0], [0], [1], [0, 0, 1, 1], [], []>} : vector<4x32xf32>, vector<32x32xf32>, vector<4x32xf32> -> vector<4x32xf32>
    %c0_20 = arith.constant 0 : index
    %c0_21 = arith.constant 0 : index
    %48 = vector.load %arg4[%c0_20, %c0_21] : memref<1x32xf32, #tpu.memory_space<vmem>>, vector<1x32xf32>
    %49 = vector.broadcast %48 : vector<1x32xf32> to vector<4x32xf32>
    %50 = arith.addf %47, %49 : vector<4x32xf32>
    %51 = arith.addf %50, %25 : vector<4x32xf32>
    %cst_22 = arith.constant dense<0.000000e+00> : vector<32xf32>
    %52 = vector.multi_reduction <add>, %51, %cst_22 [0] : vector<4x32xf32> to vector<32xf32>
    %53 = vector.shape_cast %52 : vector<32xf32> to vector<1x32xf32>
    %cst_23 = arith.constant 4.000000e+00 : f32
    %54 = vector.broadcast %cst_23 : f32 to vector<1x32xf32>
    %55 = arith.divf %53, %54 : vector<1x32xf32>
    %56 = vector.broadcast %55 : vector<1x32xf32> to vector<4x32xf32>
    %57 = arith.subf %51, %56 : vector<4x32xf32>
    %58 = arith.mulf %57, %57 : vector<4x32xf32>
    %cst_24 = arith.constant dense<0.000000e+00> : vector<32xf32>
    %59 = vector.multi_reduction <add>, %58, %cst_24 [0] : vector<4x32xf32> to vector<32xf32>
    %60 = vector.shape_cast %59 : vector<32xf32> to vector<1x32xf32>
    %cst_25 = arith.constant 4.000000e+00 : f32
    %61 = vector.broadcast %cst_25 : f32 to vector<1x32xf32>
    %62 = arith.divf %60, %61 : vector<1x32xf32>
    %63 = vector.broadcast %55 : vector<1x32xf32> to vector<4x32xf32>
    %64 = arith.subf %51, %63 : vector<4x32xf32>
    %cst_26 = arith.constant 9.99999974E-6 : f32
    %65 = vector.broadcast %cst_26 : f32 to vector<1x32xf32>
    %66 = arith.addf %62, %65 : vector<1x32xf32>
    %67 = math.rsqrt %66 : vector<1x32xf32>
    %68 = vector.broadcast %67 : vector<1x32xf32> to vector<4x32xf32>
    %69 = arith.mulf %64, %68 : vector<4x32xf32>
    %cst_27 = arith.constant 0.000000e+00 : f32
    %70 = vector.broadcast %cst_27 : f32 to vector<4x32xf32>
    %71 = arith.maximumf %69, %70 : vector<4x32xf32>
    %c0_28 = arith.constant 0 : index
    %c0_29 = arith.constant 0 : index
    %72 = vector.load %arg5[%c0_28, %c0_29] : memref<32x32xf32, #tpu.memory_space<vmem>>, vector<32x32xf32>
    %cst_30 = arith.constant dense<0.000000e+00> : vector<4x32xf32>
    %73 = tpu.matmul %71, %72, %cst_30 {dimension_numbers = #tpu.dot_dimension_numbers<[1], [0], [0], [1], [0, 0, 1, 1], [], []>} : vector<4x32xf32>, vector<32x32xf32>, vector<4x32xf32> -> vector<4x32xf32>
    %c0_31 = arith.constant 0 : index
    %c0_32 = arith.constant 0 : index
    %74 = vector.load %arg6[%c0_31, %c0_32] : memref<1x32xf32, #tpu.memory_space<vmem>>, vector<1x32xf32>
    %75 = vector.broadcast %74 : vector<1x32xf32> to vector<4x32xf32>
    %76 = arith.addf %73, %75 : vector<4x32xf32>
    %77 = arith.addf %76, %51 : vector<4x32xf32>
    %cst_33 = arith.constant dense<0.000000e+00> : vector<32xf32>
    %78 = vector.multi_reduction <add>, %77, %cst_33 [0] : vector<4x32xf32> to vector<32xf32>
    %79 = vector.shape_cast %78 : vector<32xf32> to vector<1x32xf32>
    %cst_34 = arith.constant 4.000000e+00 : f32
    %80 = vector.broadcast %cst_34 : f32 to vector<1x32xf32>
    %81 = arith.divf %79, %80 : vector<1x32xf32>
    %82 = vector.broadcast %81 : vector<1x32xf32> to vector<4x32xf32>
    %83 = arith.subf %77, %82 : vector<4x32xf32>
    %84 = arith.mulf %83, %83 : vector<4x32xf32>
    %cst_35 = arith.constant dense<0.000000e+00> : vector<32xf32>
    %85 = vector.multi_reduction <add>, %84, %cst_35 [0] : vector<4x32xf32> to vector<32xf32>
    %86 = vector.shape_cast %85 : vector<32xf32> to vector<1x32xf32>
    %cst_36 = arith.constant 4.000000e+00 : f32
    %87 = vector.broadcast %cst_36 : f32 to vector<1x32xf32>
    %88 = arith.divf %86, %87 : vector<1x32xf32>
    %89 = vector.broadcast %81 : vector<1x32xf32> to vector<4x32xf32>
    %90 = arith.subf %77, %89 : vector<4x32xf32>
    %cst_37 = arith.constant 9.99999974E-6 : f32
    %91 = vector.broadcast %cst_37 : f32 to vector<1x32xf32>
    %92 = arith.addf %88, %91 : vector<1x32xf32>
    %93 = math.rsqrt %92 : vector<1x32xf32>
    %94 = vector.broadcast %93 : vector<1x32xf32> to vector<4x32xf32>
    %95 = arith.mulf %90, %94 : vector<4x32xf32>
    %cst_38 = arith.constant 0.000000e+00 : f32
    %96 = vector.broadcast %cst_38 : f32 to vector<4x32xf32>
    %97 = arith.maximumf %95, %96 : vector<4x32xf32>
    %c0_39 = arith.constant 0 : index
    %c0_40 = arith.constant 0 : index
    %98 = vector.load %arg7[%c0_39, %c0_40] : memref<32x32xf32, #tpu.memory_space<vmem>>, vector<32x32xf32>
    %cst_41 = arith.constant dense<0.000000e+00> : vector<4x32xf32>
    %99 = tpu.matmul %97, %98, %cst_41 {dimension_numbers = #tpu.dot_dimension_numbers<[1], [0], [0], [1], [0, 0, 1, 1], [], []>} : vector<4x32xf32>, vector<32x32xf32>, vector<4x32xf32> -> vector<4x32xf32>
    %c0_42 = arith.constant 0 : index
    %c0_43 = arith.constant 0 : index
    %100 = vector.load %arg8[%c0_42, %c0_43] : memref<1x32xf32, #tpu.memory_space<vmem>>, vector<1x32xf32>
    %101 = vector.broadcast %100 : vector<1x32xf32> to vector<4x32xf32>
    %102 = arith.addf %99, %101 : vector<4x32xf32>
    %103 = arith.addf %102, %77 : vector<4x32xf32>
    %c0_44 = arith.constant 0 : index
    %c0_45 = arith.constant 0 : index
    %104 = vector.load %arg9[%c0_44, %c0_45] : memref<32x1xf32, #tpu.memory_space<vmem>>, vector<32x1xf32>
    %cst_46 = arith.constant dense<0.000000e+00> : vector<4x1xf32>
    %105 = tpu.matmul %103, %104, %cst_46 {dimension_numbers = #tpu.dot_dimension_numbers<[1], [0], [0], [1], [0, 0, 1, 1], [], []>} : vector<4x32xf32>, vector<32x1xf32>, vector<4x1xf32> -> vector<4x1xf32>
    %c0_47 = arith.constant 0 : index
    %c0_48 = arith.constant 0 : index
    %106 = vector.load %arg10[%c0_47, %c0_48] : memref<1x1xf32, #tpu.memory_space<vmem>>, vector<1x1xf32>
    %107 = vector.broadcast %106 : vector<1x1xf32> to vector<4x1xf32>
    %108 = arith.addf %105, %107 : vector<4x1xf32>
    %c0_49 = arith.constant 0 : index
    %c0_50 = arith.constant 0 : index
    %109 = vector.load %arg11[%c0_49, %c0_50] : memref<4x1xf32, #tpu.memory_space<vmem>>, vector<4x1xf32>
    tpu.vector_store %arg11[%c0_49, %c0_50], %108 {strides = array<i32>} : memref<4x1xf32, #tpu.memory_space<vmem>>, vector<4x1xf32>,
    return
  }
}

</mosaic_0001>

<bundles_post_ra>
// kernel: gat_forward.6
= control target key start
LH: loop header
LB: loop body
LE: loop exit
PB: predicated region body
PF: predicated region fallthrough
CT: control target
= control target key end

     0   :  { %vm102_vm0 = vcmask 130048   ;;  %vm1089_vm1 = vcmask 1043456   ;;  %vm358_vm2 = vcmask 64512   ;;  %v2059_v48 = vmov 0   ;;  %s2589_s1 = inlined_call_operand.vmem [shape: bf16[16,128], index: 1, kind: input, shape index: {}]   ;;  %s2590_s0 = inlined_call_operand.vmem [shape: f32[128,16], index: 0, kind: input, shape index: {}]   ;;  %s2591_s4 = inlined_call_operand.vmem [shape: bf16[16,8], index: 4, kind: input, shape index: {}]   ;;  %s2592_s3 = inlined_call_operand.vmem [shape: bf16[16,8], index: 3, kind: input, shape index: {}]   ;;  %s2593_s7 = inlined_call_operand.vmem [shape: bf16[8,128], index: 7, kind: input, shape index: {}]   ;;  %s2594_s8 = inlined_call_operand.vmem [shape: bf16[128,128], index: 8, kind: input, shape index: {}]   ;;  %s2595_s9 = inlined_call_operand.vmem [shape: bf16[128,128], index: 9, kind: input, shape index: {}]   ;;  %s2596_s2 = inlined_call_operand.vmem [shape: f32[1,128], index: 2, kind: input, shape index: {}]   ;;  %s2597_s5 = inlined_call_operand.vmem [shape: f32[1,8], index: 5, kind: input, shape index: {}]   ;;  %s2598_s10 = inlined_call_operand.vmem [shape: f32[128,1], index: 10, kind: input, shape index: {}]   ;;  %s2599_s6 = inlined_call_operand.vmem [shape: f32[1,8], index: 6, kind: input, shape index: {}]   ;;  %s2600_s11 = inlined_call_operand.vmem [shape: f32[128,128], index: 11, kind: output, shape index: {}]  }
   0x1   :  { %v2006_v0 = vld [vmem:[%s2589_s1] sm:$0xff]   ;;  %v66_v2 = vld [vmem:[%s2590_s0 + $0x8] sm:$0xff]  ;;  %v67_v3 = vld [vmem:[%s2590_s0 + $0x10] sm:$0xff]  ;;  %2004 = vset.pattern.permute.xlu0 %v2059_v48  ;;  %2005 = vset.pattern.permute.xlu1 %v2059_v48 }
   0x2   :  { %v65_v1 = vld [vmem:[%s2590_s0] sm:$0xff]  ;;  %1786 = vmatprep.subr.bf16.mxu0 %v2006_v0  ;;  %v68_v5 = vld [vmem:[%s2590_s0 + $0x18] sm:$0xff]  ;;  %v70_v9 = vld [vmem:[%s2590_s0 + $0x28] sm:$0xff] }
   0x3   :  { %v81_v4 = vpack.c.bf16 %v66_v2, %v65_v1  ;;  %1787 = vmatpush3.bf16.msra.mxu0 %v2006_v0  ;;  %v82_v6 = vpack.c.bf16 %v68_v5, %v67_v3  ;;  %v2007_v7 = vld [vmem:[%s2591_s4] sm:$0xff]   ;;  %v71_v11 = vld [vmem:[%s2590_s0 + $0x30] sm:$0xff]  ;;  %v72_v12 = vld [vmem:[%s2590_s0 + $0x38] sm:$0xff] }
   0x4   :  { %v69_v8 = vld [vmem:[%s2590_s0 + $0x20] sm:$0xff]  ;;  %1822 = vmatprep.subr.bf16.mxu0 %v2007_v7  ;;  %v74_v14 = vld [vmem:[%s2590_s0 + $0x48] sm:$0xff]  ;;  %v84_v16 = vpack.c.bf16 %v72_v12, %v71_v11  ;;  %v75_v18 = vld [vmem:[%s2590_s0 + $0x50] sm:$0xff] }
   0x5   :  { %1788 = vmatprep.mubr.msk.bf16.mxu0 %vm102_vm0, %v81_v4  ;;  %v83_v10 = vpack.c.bf16 %v70_v9, %v69_v8  ;;  %1806 = vmatprep.mubr.msk.bf16.mxu1 %vm102_vm0, %v81_v4  ;;  %v73_v13 = vld [vmem:[%s2590_s0 + $0x40] sm:$0xff]  ;;  %v76_v19 = vld [vmem:[%s2590_s0 + $0x58] sm:$0xff]  ;;  %v78_v21 = vld [vmem:[%s2590_s0 + $0x68] sm:$0xff] }
   0x6   :  { %1789 = vmatmul.mubr.msk.bf16.vlgmr.msra.gmra.mrb[0].mxu0 %vm102_vm0, %v82_v6  ;;  %v2008_v15 = vld [vmem:[%s2592_s3] sm:$0xff]   ;;  %v85_v17 = vpack.c.bf16 %v74_v14, %v73_v13  ;;  %v86_v22 = vpack.c.bf16 %v76_v19, %v75_v18  ;;  %v79_v24 = vld [vmem:[%s2590_s0 + $0x70] sm:$0xff]  ;;  %v80_v25 = vld [vmem:[%s2590_s0 + $0x78] sm:$0xff] }
   0x7   :  { %1823 = vmatpush3.bf16.msra.mxu0 %v2007_v7  ;;  %1792 = vmatprep.mubr.msk.bf16.mxu0 %vm102_vm0, %v83_v10  ;;  %v77_v20 = vld [vmem:[%s2590_s0 + $0x60] sm:$0xff]  ;;  %v88_v26 = vpack.c.bf16 %v80_v25, %v79_v24  ;;  %v527_v50 = vld [vmem:[%s2598_s10 + $0x10] sm:$0xff]  ;;  %v526_v51 = vld [vmem:[%s2598_s10 + $0x8] sm:$0xff] }
   0x8   :  { %1804 = vmatprep.subr.bf16.mxu1 %v2008_v15  ;;  %v87_v23 = vpack.c.bf16 %v78_v21, %v77_v20  ;;  %v1063_v27 = vld [vmem:[%s2593_s7] sm:$0xf]  ;;  %v543_v57 = vadd.f32 1e-07, %v527_v50  ;;  %v542_v62 = vadd.f32 1e-07, %v526_v51 }
   0x9   :  { %1805 = vmatpush3.bf16.msra.mxu1 %v2008_v15  ;;  %2002 = vmatprep.subr.msk.bf16.mxu0 %vm1089_vm1, %v1063_v27  ;;  %v1091_v28 = vsel %vm1089_vm1, %v1063_v27, 0  ;;  %v2207_v29 = vld [vmem:[%s2594_s8] sm:$0xff]   ;;  %v528_v63 = vld [vmem:[%s2598_s10 + $0x18] sm:$0xff]  ;;  %v530_v5 = vld [vmem:[%s2598_s10 + $0x28] sm:$0xff] }
   0xa   :  { %v2213_v30 = vld [vmem:[%s2596_s2] ss:$0 sm:$0xff]  ;;  %v558_v9 = vmul.f32 %v542_v62, %v542_v62  ;;  %v532_v11 = vld [vmem:[%s2598_s10 + $0x38] sm:$0xff]  ;;  %v535_v50 = vld [vmem:[%s2598_s10 + $0x50] sm:$0xff] }
   0xb   :  { %v2226_v41 = vld [vmem:[%s2597_s5] ss:$0 sm:$0xff]  ;;  %v548_v21 = vadd.f32 1e-07, %v532_v11 }
   0xc   :  { %1807 = vmatmul.mubr.msk.bf16.vlgmr.msra.gmra.mrb[0].mxu1 %vm102_vm0, %v82_v6  ;;  %v525_v49 = vld [vmem:[%s2598_s10] sm:$0xff] }
   0xd   :  { %1810 = vmatprep.mubr.msk.bf16.mxu1 %vm102_vm0, %v83_v10  ;;  %v541_v56 = vadd.f32 1e-07, %v525_v49  ;;  %v529_v0 = vld [vmem:[%s2598_s10 + $0x20] sm:$0xff] }
   0xe   :  { %1793 = vmatmul.mubr.msk.bf16.gmra.mrb[4].mxu0 %vm102_vm0, %v84_v16  ;;  %v545_v14 = vadd.f32 1e-07, %v529_v0 }
   0xf   :  { %1796 = vmatprep.mubr.msk.bf16.mxu0 %vm102_vm0, %v85_v17  ;;  %v557_v3 = vmul.f32 %v541_v56, %v541_v56 }
  0x10   :  { %v561_v20 = vmul.f32 %v545_v14, %v545_v14 }
  0x11   :  { %2025 = vrcp.f32 %v557_v3  ;;  %v538_v3 = vld [vmem:[%s2598_s10 + $0x68] sm:$0xff] }
  0x14   :  { %1811 = vmatmul.mubr.msk.bf16.gmra.mrb[4].mxu1 %vm102_vm0, %v84_v16 }
  0x15   :  { %1814 = vmatprep.mubr.msk.bf16.mxu1 %vm102_vm0, %v85_v17 }
  0x16   :  { %1797 = vmatmul.mubr.msk.bf16.gmra.mrb[8].mxu0 %vm102_vm0, %v86_v22 }
  0x17   :  { %1800 = vmatprep.mubr.msk.bf16.mxu0 %vm102_vm0, %v87_v23 }
  0x1c   :  { %1815 = vmatmul.mubr.msk.bf16.gmra.mrb[8].mxu1 %vm102_vm0, %v86_v22 }
  0x1d   :  { %1818 = vmatprep.mubr.msk.bf16.mxu1 %vm102_vm0, %v87_v23 }
  0x1e   :  { %1801 = vmatmul.mubr.msk.bf16.gmra.mrb[12].mxu0 %vm102_vm0, %v88_v26 }
  0x1f   :  { %1824 = vmatprep.mubr.msk.bf16.mxu0 %vm102_vm0, %v81_v4  ;;  %v559_v4 = vmul.f32 %v543_v57, %v543_v57 }
  0x21   :  { %2027 = vrcp.f32 %v559_v4 }
  0x22   :  { %2029 = vrcp.f32 %v558_v9 }
  0x24   :  { %1819 = vmatmul.mubr.msk.bf16.gmra.mrb[12].mxu1 %vm102_vm0, %v88_v26 }
  0x25   :  { %1856 = vmatprep.mubr.bf16.mxu1 %v2207_v29 }
  0x26   :  { %1825 = vmatmul.mubr.msk.bf16.vlgmr.msra.gmra.mrb[16].mxu0 %vm102_vm0, %v82_v6  ;;  %v531_v6 = vld [vmem:[%s2598_s10 + $0x30] sm:$0xff] }
  0x27   :  { %1828 = vmatprep.mubr.msk.bf16.mxu0 %vm102_vm0, %v83_v10  ;;  %1905 = vmatpush3.bf16.msra.mxu0 %v1091_v28  ;;  %v544_v10 = vadd.f32 1e-07, %v528_v63 }
  0x29   :  { %v560_v15 = vmul.f32 %v544_v10, %v544_v10 }
  0x2b   :  { %2031 = vrcp.f32 %v560_v15 }
  0x2c   :  { %2033 = vrcp.f32 %v561_v20  ;;  %v554_v20 = vadd.f32 1e-07, %v538_v3 }
  0x2e   :  { %1829 = vmatmul.mubr.msk.bf16.gmra.mrb[20].mxu0 %vm102_vm0, %v84_v16  ;;  %v546_v16 = vadd.f32 1e-07, %v530_v5 }
  0x2f   :  { %1832 = vmatprep.mubr.msk.bf16.mxu0 %vm102_vm0, %v85_v17  ;;  %v547_v17 = vadd.f32 1e-07, %v531_v6 }
  0x30   :  { %v562_v27 = vmul.f32 %v546_v16, %v546_v16 }
  0x32   :  { %2035 = vrcp.f32 %v562_v27 }
  0x36   :  { %1833 = vmatmul.mubr.msk.bf16.gmra.mrb[24].mxu0 %vm102_vm0, %v86_v22  ;;  %v533_v22 = vld [vmem:[%s2598_s10 + $0x40] sm:$0xff] }
  0x37   :  { %1836 = vmatprep.mubr.msk.bf16.mxu0 %vm102_vm0, %v87_v23 }
  0x3e   :  { %1837 = vmatmul.mubr.msk.bf16.gmra.mrb[28].mxu0 %vm102_vm0, %v88_v26 }
  0xd9   :  { %v1790_v31 = vpop.f32.mrb[0].mxu0 }
  0xda   :  { %v170_v32 = vadd.f32 %v1790_v31, %v2213_v30  ;;  %v161_v33 = vpop.f32.mrb[1].mxu0 }
  0xdb   :  { %v1791_v34 = vpop.f32.mrb[2].mxu0  ;;  %v162_v37 = vadd.f32 %v2213_v30, %v161_v33 }
  0xdc   :  { %v173_v35 = vadd.f32 %v1791_v34, %v2213_v30  ;;  %v164_v36 = vpop.f32.mrb[3].mxu0  ;;  %v534_v34 = vld [vmem:[%s2598_s10 + $0x48] sm:$0xff] }
  0xdd   :  { %v165_v38 = vadd.f32 %v2213_v30, %v164_v36  ;;  %v550_v49 = vadd.f32 1e-07, %v534_v34 }
  0xde   :  { %v2219_v39 = vpack.c.bf16 %v173_v35, %v170_v32 }
  0xdf   :  { %v2221_v40 = vpack.c.bf16 %v165_v38, %v162_v37  ;;  %v1808_v43 = vpop.f32.mrb[0].mxu1 }
  0xe0   :  { %v296_v46 = vadd.f32 %v1808_v43, %v2226_v41  ;;  %v287_v47 = vpop.f32.mrb[1].mxu1  ;;  %v549_v43 = vadd.f32 1e-07, %v533_v22 }
  0xe1   :  { %v1794_v42 = vpop.f32.mrb[4].mxu0  ;;  %1922 = vmatprep.subr.bf16.mxu0 %v2221_v40  ;;  %v288_v54 = vadd.f32 %v2226_v41, %v287_v47  ;;  %v1809_v55 = vpop.f32.mrb[2].mxu1 }
  0xe2   :  { %v186_v44 = vadd.f32 %v1794_v42, %v2213_v30  ;;  %v177_v45 = vpop.f32.mrb[5].mxu0  ;;  %v299_v60 = vadd.f32 %v1809_v55, %v2226_v41  ;;  %v290_v61 = vpop.f32.mrb[3].mxu1  ;;  %v563_v42 = vmul.f32 %v547_v17, %v547_v17 }
  0xe3   :  { %v178_v52 = vadd.f32 %v2213_v30, %v177_v45  ;;  %v1795_v53 = vpop.f32.mrb[6].mxu0  ;;  %v291_v2 = vadd.f32 %v2226_v41, %v290_v61  ;;  %v2026_v55 = vpop.eup %2025 }
  0xe4   :  { %v189_v58 = vadd.f32 %v1795_v53, %v2213_v30  ;;  %v180_v59 = vpop.f32.mrb[7].mxu0  ;;  %v351_v8 = vpack.c.bf16 %v299_v60, %v296_v46  ;;  %v564_v46 = vmul.f32 %v548_v21, %v548_v21  ;;  %v536_v53 = vld [vmem:[%s2598_s10 + $0x58] sm:$0xff]  ;;  %2037 = vrcp.f32 %v563_v42  ;;  %v2028_v60 = vpop.eup %2027  ;;  %961 = vperm.xlu0 %2004, %v2026_v55  }
  0xe5   :  { %v181_v1 = vadd.f32 %v2213_v30, %v180_v59  ;;  %v350_v13 = vpack.c.bf16 %v291_v2, %v288_v54  ;;  %v565_v54 = vmul.f32 %v549_v43, %v549_v43  ;;  %v537_v59 = vld [vmem:[%s2598_s10 + $0x60] sm:$0xff]  ;;  %v552_v2 = vadd.f32 1e-07, %v536_v53  ;;  %v2030_v4 = vpop.eup %2029  ;;  %971 = vperm.xlu1 %2005, %v2028_v60  }
  0xe6   :  { %v2258_v7 = vpack.c.bf16 %v189_v58, %v186_v44  ;;  %360 = vst.msk [vmem:[#allocation3 + $0x8] sm:$0xff] %vm358_vm2, %v351_v8  ;;  %2039 = vrcp.f32 %v564_v46  ;;  %v551_v58 = vadd.f32 1e-07, %v535_v50  ;;  %v2032_v10 = vpop.eup %2031  ;;  %v553_v16 = vadd.f32 1e-07, %v537_v59 }
  0xe7   :  { %v2263_v12 = vpack.c.bf16 %v181_v1, %v178_v52  ;;  %359 = vst.msk [vmem:[#allocation3] sm:$0xff] %vm358_vm2, %v350_v13  ;;  %v1812_v19 = vpop.f32.mrb[4].mxu1  ;;  %v566_v1 = vmul.f32 %v550_v49, %v550_v49  ;;  %2041 = vrcp.f32 %v565_v54  ;;  %v570_v43 = vmul.f32 %v554_v20, %v554_v20 }
  0xe8   :  { %v312_v25 = vadd.f32 %v1812_v19, %v2226_v41  ;;  %v303_v26 = vpop.f32.mrb[5].mxu1  ;;  %v567_v19 = vmul.f32 %v551_v58, %v551_v58  ;;  %966 = vperm.xlu0 %2004, %v2030_v4  }
  0xe9   :  { %v1798_v18 = vpop.f32.mrb[8].mxu0  ;;  %v304_v32 = vadd.f32 %v2226_v41, %v303_v26  ;;  %v1813_v33 = vpop.f32.mrb[6].mxu1  ;;  %2043 = vrcp.f32 %v566_v1  ;;  %976 = vperm.xlu1 %2005, %v2032_v10  }
  0xea   :  { %v202_v23 = vadd.f32 %v1798_v18, %v2213_v30  ;;  %v193_v24 = vpop.f32.mrb[9].mxu0  ;;  %v315_v37 = vadd.f32 %v1813_v33, %v2226_v41  ;;  %v306_v38 = vpop.f32.mrb[7].mxu1  ;;  %v2321_v33 = vld [vmem:[%s2599_s6] ss:$0 sm:$0xff]  ;;  %2045 = vrcp.f32 %v567_v19 }
  0xeb   :  { %v194_v28 = vadd.f32 %v2213_v30, %v193_v24  ;;  %v1799_v31 = vpop.f32.mrb[10].mxu0  ;;  %v307_v45 = vadd.f32 %v2226_v41, %v306_v38  ;;  %v539_v24 = vld [vmem:[%s2598_s10 + $0x70] sm:$0xff] }
  0xec   :  { %v205_v35 = vadd.f32 %v1799_v31, %v2213_v30  ;;  %v196_v36 = vpop.f32.mrb[11].mxu0  ;;  %v353_v48 = vpack.c.bf16 %v315_v37, %v312_v25  ;;  %v2034_v25 = vpop.eup %2033  ;;  %v569_v31 = vmul.f32 %v553_v16, %v553_v16 }
  0xed   :  { %v197_v44 = vadd.f32 %v2213_v30, %v196_v36  ;;  %v352_v52 = vpack.c.bf16 %v307_v45, %v304_v32  ;;  %981 = vperm.xlu0 %2004, %v2034_v25  }
  0xee   :  { %v2281_v47 = vpack.c.bf16 %v205_v35, %v202_v23  ;;  %362 = vst.msk [vmem:[#allocation3 + $0x18] sm:$0xff] %vm358_vm2, %v353_v48  ;;  %v568_v23 = vmul.f32 %v552_v2, %v552_v2  ;;  %v555_v35 = vadd.f32 1e-07, %v539_v24 }
  0xef   :  { %v2286_v51 = vpack.c.bf16 %v197_v44, %v194_v28  ;;  %361 = vst.msk [vmem:[#allocation3 + $0x10] sm:$0xff] %vm358_vm2, %v352_v52  ;;  %v1816_v57 = vpop.f32.mrb[8].mxu1  ;;  %v2036_v28 = vpop.eup %2035 }
  0xf0   :  { %v328_v63 = vadd.f32 %v1816_v57, %v2226_v41  ;;  %v319_v0 = vpop.f32.mrb[9].mxu1  ;;  %v2038_v36 = vpop.eup %2037  ;;  %2047 = vrcp.f32 %v568_v23  ;;  %986 = vperm.xlu1 %2005, %v2036_v28   ;;  %v571_v59 = vmul.f32 %v555_v35, %v555_v35 }
  0xf1   :  { %v1802_v56 = vpop.f32.mrb[12].mxu0  ;;  %v320_v8 = vadd.f32 %v2226_v41, %v319_v0  ;;  %v1817_v9 = vpop.f32.mrb[10].mxu1  ;;  %2049 = vrcp.f32 %v569_v31  ;;  %991 = vperm.xlu0 %2004, %v2038_v36  }
  0xf2   :  { %v218_v61 = vadd.f32 %v1802_v56, %v2213_v30  ;;  %v209_v62 = vpop.f32.mrb[13].mxu0  ;;  %v331_v14 = vadd.f32 %v1817_v9, %v2226_v41  ;;  %v322_v15 = vpop.f32.mrb[11].mxu1  ;;  %2051 = vrcp.f32 %v570_v43 }
  0xf3   :  { %v210_v5 = vadd.f32 %v2213_v30, %v209_v62  ;;  %v1803_v6 = vpop.f32.mrb[14].mxu0  ;;  %v323_v18 = vadd.f32 %v2226_v41, %v322_v15  ;;  %v2040_v45 = vpop.eup %2039  ;;  %2053 = vrcp.f32 %v571_v59  ;;  %v606_v59 = vld [vmem:[#allocation3 + $0x8] sm:$0xff] }
  0xf4   :  { %v221_v11 = vadd.f32 %v1803_v6, %v2213_v30  ;;  %v212_v13 = vpop.f32.mrb[15].mxu0  ;;  %v355_v22 = vpack.c.bf16 %v331_v14, %v328_v63  ;;  %v2042_v60 = vpop.eup %2041  ;;  %996 = vperm.xlu1 %2005, %v2040_v45  }
  0xf5   :  { %v213_v17 = vadd.f32 %v2213_v30, %v212_v13  ;;  %v354_v27 = vpack.c.bf16 %v323_v18, %v320_v8  ;;  %v540_v30 = vld [vmem:[%s2598_s10 + $0x78] sm:$0xff]  ;;  %v2044_v2 = vpop.eup %2043  ;;  %1001 = vperm.xlu0 %2004, %v2042_v60   ;;  %v2017_v60 = vld [vmem:[%s2595_s9] sm:$0xff]  }
  0xf6   :  { %v2307_v21 = vpack.c.bf16 %v221_v11, %v218_v61  ;;  %364 = vst.msk [vmem:[#allocation3 + $0x28] sm:$0xff] %vm358_vm2, %v355_v22  ;;  %v556_v44 = vadd.f32 1e-07, %v540_v30  ;;  %v2046_v4 = vpop.eup %2045 }
  0xf7   :  { %v2312_v26 = vpack.c.bf16 %v213_v17, %v210_v5  ;;  %363 = vst.msk [vmem:[#allocation3 + $0x20] sm:$0xff] %vm358_vm2, %v354_v27  ;;  %v1820_v34 = vpop.f32.mrb[12].mxu1 }
  0xf8   :  { %v344_v38 = vadd.f32 %v1820_v34, %v2226_v41  ;;  %v335_v42 = vpop.f32.mrb[13].mxu1  ;;  %v572_v63 = vmul.f32 %v556_v44, %v556_v44  ;;  %1006 = vperm.xlu1 %2005, %v2044_v2   ;;  %v2019_v2 = vld [vmem:[%s2595_s9 + $0x10] sm:$0xff]  }
  0xf9   :  { %v1826_v32 = vpop.f32.mrb[16].mxu0  ;;  %v336_v48 = vadd.f32 %v2226_v41, %v335_v42  ;;  %v1821_v49 = vpop.f32.mrb[14].mxu1  ;;  %1011 = vperm.xlu0 %2004, %v2046_v4   ;;  %v2395_v4 = vld [vmem:[%s2594_s8 + $0x30] sm:$0xff]  }
  0xfa   :  { %v414_v37 = vpop.f32.mrb[17].mxu0  ;;  %v423_v50 = vadd.f32 %v1826_v32, %v2321_v33  ;;  %v347_v54 = vadd.f32 %v1821_v49, %v2226_v41  ;;  %v338_v55 = vpop.f32.mrb[15].mxu1  ;;  %2055 = vrcp.f32 %v572_v63  ;;  %v2377_v63 = vld [vmem:[%s2594_s8 + $0x20] sm:$0xff]  }
  0xfb   :  { %v1827_v46 = vpop.f32.mrb[18].mxu0  ;;  %v415_v56 = vadd.f32 %v2321_v33, %v414_v37  ;;  %v339_v58 = vadd.f32 %v2226_v41, %v338_v55  ;;  %v2048_v6 = vpop.eup %2047 }
  0xfc   :  { %v426_v52 = vadd.f32 %v1827_v46, %v2321_v33  ;;  %v417_v53 = vpop.f32.mrb[19].mxu0  ;;  %v357_v62 = vpack.c.bf16 %v347_v54, %v344_v38  ;;  %v2050_v14 = vpop.eup %2049  ;;  %1016 = vperm.xlu1 %2005, %v2048_v6  }
  0xfd   :  { %v418_v57 = vadd.f32 %v2321_v33, %v417_v53  ;;  %v356_v1 = vpack.c.bf16 %v339_v58, %v336_v48  ;;  %v2052_v17 = vpop.eup %2051  ;;  %1021 = vperm.xlu0 %2004, %v2050_v14   ;;  %v2362_v58 = vld [vmem:[%s2594_s8 + $0x10] sm:$0xff]   ;;  %v610_v6 = vld [vmem:[#allocation3 + $0x28] sm:$0xff] }
  0xfe   :  { %v478_v61 = vpack.c.bf16 %v426_v52, %v423_v50  ;;  %366 = vst.msk [vmem:[#allocation3 + $0x38] sm:$0xff] %vm358_vm2, %v357_v62  ;;  %v2054_v23 = vpop.eup %2053  ;;  %v2372_v62 = vld [vmem:[%s2594_s8 + $0x18] sm:$0xff]   ;;  %v2023_v14 = vld [vmem:[%s2595_s9 + $0x30] sm:$0xff]  }
  0xff   :  { %v477_v0 = vpack.c.bf16 %v418_v57, %v415_v56  ;;  %365 = vst.msk [vmem:[#allocation3 + $0x30] sm:$0xff] %vm358_vm2, %v356_v1  ;;  %v605_v57 = vld [vmem:[#allocation3] sm:$0xff]  ;;  %v608_v1 = vld [vmem:[#allocation3 + $0x18] sm:$0xff] }
 0x100   :  { %486 = vst.msk [vmem:[#allocation4 + $0x8] sm:$0xff] %vm358_vm2, %v478_v61  ;;  %1026 = vperm.xlu1 %2005, %v2052_v17   ;;  %v607_v61 = vld [vmem:[#allocation3 + $0x10] sm:$0xff] }
 0x101   :  { %485 = vst.msk [vmem:[#allocation4] sm:$0xff] %vm358_vm2, %v477_v0  ;;  %v1830_v3 = vpop.f32.mrb[20].mxu0  ;;  %1031 = vperm.xlu0 %2004, %v2054_v23   ;;  %v2018_v0 = vld [vmem:[%s2595_s9 + $0x8] sm:$0xff]  }
 0x102   :  { %v430_v41 = vpop.f32.mrb[21].mxu0  ;;  %v439_v8 = vadd.f32 %v1830_v3, %v2321_v33  ;;  %v609_v3 = vld [vmem:[#allocation3 + $0x20] sm:$0xff] }
 0x103   :  { %v1831_v5 = vpop.f32.mrb[22].mxu0  ;;  %v431_v11 = vadd.f32 %v2321_v33, %v430_v41  ;;  %v2390_v41 = vld [vmem:[%s2594_s8 + $0x28] sm:$0xff]  }
 0x104   :  { %v442_v9 = vadd.f32 %v1831_v5, %v2321_v33  ;;  %v433_v10 = vpop.f32.mrb[23].mxu0  ;;  %v2056_v25 = vpop.eup %2055  ;;  %v2020_v5 = vld [vmem:[%s2595_s9 + $0x18] sm:$0xff]  }
 0x105   :  { %v434_v13 = vadd.f32 %v2321_v33, %v433_v10  ;;  %1036 = vperm.xlu1 %2005, %v2056_v25   ;;  %v2408_v10 = vld [vmem:[%s2594_s8 + $0x38] sm:$0xff]  }
 0x106   :  { %v480_v15 = vpack.c.bf16 %v442_v9, %v439_v8  ;;  %v2021_v8 = vld [vmem:[%s2595_s9 + $0x20] sm:$0xff]   ;;  %v611_v9 = vld [vmem:[#allocation3 + $0x30] sm:$0xff] }
 0x107   :  { %v479_v16 = vpack.c.bf16 %v434_v13, %v431_v11  ;;  %v614_v22 = vld [vmem:[#allocation4 + $0x8] sm:$0xff]  ;;  %v612_v13 = vld [vmem:[#allocation3 + $0x38] sm:$0xff] }
 0x108   :  { %488 = vst.msk [vmem:[#allocation4 + $0x18] sm:$0xff] %vm358_vm2, %v480_v15  ;;  %v613_v18 = vld [vmem:[#allocation4] sm:$0xff]  ;;  %v2022_v11 = vld [vmem:[%s2595_s9 + $0x28] sm:$0xff]   ;;  %v2024_v15 = vld [vmem:[%s2595_s9 + $0x38] sm:$0xff]  }
 0x109   :  { %487 = vst.msk [vmem:[#allocation4 + $0x10] sm:$0xff] %vm358_vm2, %v479_v16  ;;  %v1834_v19 = vpop.f32.mrb[24].mxu0  ;;  %1840 = vmatprep.subr.bf16.mxu1 %v613_v18 }
 0x10a   :  { %v446_v20 = vpop.f32.mrb[25].mxu0  ;;  %1841 = vmatpush3.bf16.msra.mxu1 %v613_v18  ;;  %v455_v27 = vadd.f32 %v1834_v19, %v2321_v33 }
 0x10b   :  { %v1835_v24 = vpop.f32.mrb[26].mxu0  ;;  %1842 = vmatprep.subr.bf16.mxu1 %v614_v22  ;;  %v447_v31 = vadd.f32 %v2321_v33, %v446_v20 }
 0x10c   :  { %v458_v30 = vadd.f32 %v1835_v24, %v2321_v33  ;;  %v449_v28 = vpop.f32.mrb[27].mxu0 }
 0x10d   :  { %v450_v32 = vadd.f32 %v2321_v33, %v449_v28 }
 0x10e   :  { %v482_v34 = vpack.c.bf16 %v458_v30, %v455_v27  ;;  %1843 = vmatpush3.bf16.msra.mxu1 %v614_v22 }
 0x10f   :  { %v481_v35 = vpack.c.bf16 %v450_v32, %v447_v31  ;;  %v616_v42 = vld [vmem:[#allocation4 + $0x18] sm:$0xff] }
 0x110   :  { %490 = vst.msk [vmem:[#allocation4 + $0x28] sm:$0xff] %vm358_vm2, %v482_v34  ;;  %v615_v36 = vld [vmem:[#allocation4 + $0x10] sm:$0xff] }
 0x111   :  { %489 = vst.msk [vmem:[#allocation4 + $0x20] sm:$0xff] %vm358_vm2, %v481_v35  ;;  %v1838_v37 = vpop.f32.mrb[28].mxu0  ;;  %1844 = vmatprep.subr.bf16.mxu1 %v615_v36 }
 0x112   :  { %v462_v38 = vpop.f32.mrb[29].mxu0  ;;  %1845 = vmatpush3.bf16.msra.mxu1 %v615_v36  ;;  %v471_v44 = vadd.f32 %v1838_v37, %v2321_v33 }
 0x113   :  { %v1839_v43 = vpop.f32.mrb[30].mxu0  ;;  %1846 = vmatprep.subr.bf16.mxu1 %v616_v42  ;;  %v463_v48 = vadd.f32 %v2321_v33, %v462_v38 }
 0x114   :  { %v474_v45 = vadd.f32 %v1839_v43, %v2321_v33  ;;  %v465_v46 = vpop.f32.mrb[31].mxu0 }
 0x115   :  { %v466_v49 = vadd.f32 %v2321_v33, %v465_v46  ;;  %v2357_v33 = vld [vmem:[%s2594_s8 + $0x8] sm:$0xff]  }
 0x116   :  { %v484_v50 = vpack.c.bf16 %v474_v45, %v471_v44  ;;  %1847 = vmatpush3.bf16.msra.mxu1 %v616_v42 }
 0x117   :  { %v483_v52 = vpack.c.bf16 %v466_v49, %v463_v48  ;;  %v618_v54 = vld [vmem:[#allocation4 + $0x28] sm:$0xff] }
 0x118   :  { %492 = vst.msk [vmem:[#allocation4 + $0x38] sm:$0xff] %vm358_vm2, %v484_v50  ;;  %v617_v53 = vld [vmem:[#allocation4 + $0x20] sm:$0xff] }
 0x119   :  { %491 = vst.msk [vmem:[#allocation4 + $0x30] sm:$0xff] %vm358_vm2, %v483_v52  ;;  %1848 = vmatprep.subr.bf16.mxu1 %v617_v53 }
 0x11a   :  { %1849 = vmatpush3.bf16.msra.mxu1 %v617_v53 }
 0x11b   :  { %1850 = vmatprep.subr.bf16.mxu1 %v618_v54 }
 0x11e   :  { %1851 = vmatpush3.bf16.msra.mxu1 %v618_v54 }
 0x11f   :  { %v620_v56 = vld [vmem:[#allocation4 + $0x38] sm:$0xff]  ;;  %1335 = vxpose.xlu0.c.b16.start [1/8] %v2017_v60, 128 }
 0x120   :  { %v619_v55 = vld [vmem:[#allocation4 + $0x30] sm:$0xff] }
 0x121   :  { %1852 = vmatprep.subr.bf16.mxu1 %v619_v55 }
 0x122   :  { %1853 = vmatpush3.bf16.msra.mxu1 %v619_v55 }
 0x123   :  { %1854 = vmatprep.subr.bf16.mxu1 %v620_v56  ;;  %1336 = vxpose.xlu0.c.b16.cont [2/8] %v2018_v0, 128 }
 0x126   :  { %1855 = vmatpush3.bf16.msra.mxu1 %v620_v56 }
 0x127   :  { %1872 = vmatprep.subr.bf16.mxu1 %v605_v57  ;;  %1337 = vxpose.xlu0.c.b16.cont [3/8] %v2019_v2, 128 }
 0x129   :  { %1857 = vmatmul.mubr.bf16.vlgmr.msra.gmra.mrb[16].mxu1 %v2357_v33 }
 0x12a   :  { %1873 = vmatpush3.bf16.msra.mxu1 %v605_v57  ;;  %1860 = vmatprep.mubr.bf16.mxu1 %v2362_v58 }
 0x12b   :  { %1874 = vmatprep.subr.bf16.mxu1 %v606_v59  ;;  %1338 = vxpose.xlu0.c.b16.cont [4/8] %v2020_v5, 128 }
 0x12e   :  { %1875 = vmatpush3.bf16.msra.mxu1 %v606_v59 }
 0x12f   :  { %1876 = vmatprep.subr.bf16.mxu1 %v607_v61  ;;  %1339 = vxpose.xlu0.c.b16.cont [5/8] %v2021_v8, 128 }
 0x131   :  { %1861 = vmatmul.mubr.bf16.gmra.mrb[20].mxu1 %v2372_v62 }
 0x132   :  { %1877 = vmatpush3.bf16.msra.mxu1 %v607_v61  ;;  %1864 = vmatprep.mubr.bf16.mxu1 %v2377_v63 }
 0x133   :  { %1878 = vmatprep.subr.bf16.mxu1 %v608_v1  ;;  %1340 = vxpose.xlu0.c.b16.cont [6/8] %v2022_v11, 128 }
 0x136   :  { %1879 = vmatpush3.bf16.msra.mxu1 %v608_v1 }
 0x137   :  { %1880 = vmatprep.subr.bf16.mxu1 %v609_v3  ;;  %1341 = vxpose.xlu0.c.b16.cont [7/8] %v2023_v14, 128 }
 0x139   :  { %1865 = vmatmul.mubr.bf16.gmra.mrb[24].mxu1 %v2390_v41 }
 0x13a   :  { %1881 = vmatpush3.bf16.msra.mxu1 %v609_v3  ;;  %1868 = vmatprep.mubr.bf16.mxu1 %v2395_v4 }
 0x13b   :  { %1882 = vmatprep.subr.bf16.mxu1 %v610_v6  ;;  %1342 = vxpose.xlu0.c.b16.end [8/8] %v2024_v15, 128 }
 0x13e   :  { %1883 = vmatpush3.bf16.msra.mxu1 %v610_v6 }
 0x13f   :  { %1884 = vmatprep.subr.bf16.mxu1 %v611_v9 }
 0x141   :  { %1869 = vmatmul.mubr.bf16.gmra.mrb[28].mxu1 %v2408_v10 }
 0x142   :  { %1885 = vmatpush3.bf16.msra.mxu1 %v611_v9  ;;  %1888 = vmatprep.mubr.bf16.mxu1 %v2017_v60 }
 0x143   :  { %1886 = vmatprep.subr.bf16.mxu1 %v612_v13 }
 0x146   :  { %1887 = vmatpush3.bf16.msra.mxu1 %v612_v13 }
 0x149   :  { %1889 = vmatmul.mubr.bf16.vlgmr.msra.gmra.mrb[16].mxu1 %v2018_v0 }
 0x14a   :  { %1892 = vmatprep.mubr.bf16.mxu1 %v2019_v2 }
 0x151   :  { %1893 = vmatmul.mubr.bf16.gmra.mrb[20].mxu1 %v2020_v5 }
 0x152   :  { %1896 = vmatprep.mubr.bf16.mxu1 %v2021_v8 }
 0x159   :  { %1897 = vmatmul.mubr.bf16.gmra.mrb[24].mxu1 %v2022_v11 }
 0x15a   :  { %1900 = vmatprep.mubr.bf16.mxu1 %v2023_v14 }
 0x161   :  { %1901 = vmatmul.mubr.bf16.gmra.mrb[28].mxu1 %v2024_v15 }
 0x163   :  { %v962_v16 = vpop.permute.xlu0 %961 }
 0x164   :  { %v972_v17 = vpop.permute.xlu1 %971 }
 0x167   :  { %v967_v18 = vpop.permute.xlu0 %966 }
 0x168   :  { %v977_v19 = vpop.permute.xlu1 %976 }
 0x16c   :  { %v982_v20 = vpop.permute.xlu0 %981 }
 0x16f   :  { %v987_v22 = vpop.permute.xlu1 %986 }
 0x170   :  { %v992_v34 = vpop.permute.xlu0 %991 }
 0x173   :  { %v997_v37 = vpop.permute.xlu1 %996 }
 0x174   :  { %v1002_v54 = vpop.permute.xlu0 %1001 }
 0x177   :  { %v1007_v57 = vpop.permute.xlu1 %1006 }
 0x178   :  { %v1012_v11 = vpop.permute.xlu0 %1011 }
 0x17b   :  { %v1017_v15 = vpop.permute.xlu1 %1016 }
 0x21c   :  { %v1890_v23 = vpop.f32.mrb[16].mxu1 }
 0x21d   :  { %vm913_vm3 = vcmp.ge.f32.partialorder %v1890_v23, 0.0  ;;  %v929_v24 = vmul.f32 0.01, %v1890_v23  ;;  %v848_v25 = vpop.f32.mrb[17].mxu1 }
 0x21e   :  { %vm911_vm4 = vcmp.ge.f32.partialorder %v848_v25, 0.0  ;;  %v927_v27 = vmul.f32 0.01, %v848_v25  ;;  %v1891_v30 = vpop.f32.mrb[18].mxu1 }
 0x21f   :  { %v945_v28 = vsel %vm913_vm3, %v1890_v23, %v929_v24  ;;  %vm914_vm5 = vcmp.ge.f32.partialorder %v1891_v30, 0.0  ;;  %v930_v31 = vmul.f32 0.01, %v1891_v30  ;;  %v851_v32 = vpop.f32.mrb[19].mxu1 }
 0x220   :  { %v943_v35 = vsel %vm911_vm4, %v848_v25, %v927_v27  ;;  %vm912_vm6 = vcmp.ge.f32.partialorder %v851_v32, 0.0  ;;  %v928_v36 = vmul.f32 0.01, %v851_v32  ;;  %v1041_v42 = vmul.f32 %v972_v17, %v945_v28 }
 0x221   :  { %v946_v38 = vsel %vm914_vm5, %v1891_v30, %v930_v31  ;;  %v1039_v45 = vmul.f32 %v962_v16, %v943_v35  ;;  %v1022_v31 = vpop.permute.xlu0 %1021 }
 0x222   :  { %v1042_v43 = vmul.f32 %v977_v19, %v946_v38  ;;  %v944_v44 = vsel %vm912_vm6, %v851_v32, %v928_v36  ;;  %v1027_v32 = vpop.permute.xlu1 %1026 }
 0x223   :  { %v1040_v46 = vmul.f32 %v967_v18, %v944_v44 }
 0x224   :  { %v1056_v48 = vpack.c.bf16 %v1042_v43, %v1041_v42  ;;  %v1894_v49 = vpop.f32.mrb[20].mxu1 }
 0x225   :  { %v1055_v50 = vpack.c.bf16 %v1040_v46, %v1039_v45  ;;  %vm917_vm7 = vcmp.ge.f32.partialorder %v1894_v49, 0.0  ;;  %v933_v52 = vmul.f32 0.01, %v1894_v49  ;;  %v864_v53 = vpop.f32.mrb[21].mxu1 }
 0x226   :  { %vm915_vm8 = vcmp.ge.f32.partialorder %v864_v53, 0.0  ;;  %v931_v55 = vmul.f32 0.01, %v864_v53  ;;  %v1895_v56 = vpop.f32.mrb[22].mxu1 }
 0x227   :  { %v949_v59 = vsel %vm917_vm7, %v1894_v49, %v933_v52  ;;  %vm918_vm9 = vcmp.ge.f32.partialorder %v1895_v56, 0.0  ;;  %v934_v60 = vmul.f32 0.01, %v1895_v56  ;;  %v867_v61 = vpop.f32.mrb[23].mxu1  ;;  %1906 = vmatprep.mubr.msk.bf16.mxu0 %vm358_vm2, %v1055_v50  ;;  %v1032_v52 = vpop.permute.xlu0 %1031 }
 0x228   :  { %v947_v0 = vsel %vm915_vm8, %v864_v53, %v931_v55  ;;  %vm916_vm10 = vcmp.ge.f32.partialorder %v867_v61, 0.0  ;;  %v932_v1 = vmul.f32 0.01, %v867_v61  ;;  %1907 = vmatmul.mubr.msk.bf16.vlgmr.msra.gmra.mrb[32].mxu0 %vm358_vm2, %v1056_v48  ;;  %v1045_v3 = vmul.f32 %v992_v34, %v949_v59  ;;  %v1037_v53 = vpop.permute.xlu1 %1036 }
 0x229   :  { %v950_v2 = vsel %vm918_vm9, %v1895_v56, %v934_v60  ;;  %1923 = vmatpush3.bf16.msra.mxu0 %v2221_v40  ;;  %v1043_v8 = vmul.f32 %v982_v20, %v947_v0 }
 0x22a   :  { %v1046_v5 = vmul.f32 %v997_v37, %v950_v2  ;;  %v948_v6 = vsel %vm916_vm10, %v867_v61, %v932_v1  ;;  %1924 = vmatprep.subr.bf16.mxu0 %v2219_v39 }
 0x22b   :  { %v1044_v9 = vmul.f32 %v987_v22, %v948_v6 }
 0x22c   :  { %v1058_v13 = vpack.c.bf16 %v1046_v5, %v1045_v3  ;;  %v1898_v14 = vpop.f32.mrb[24].mxu1 }
 0x22d   :  { %v1057_v16 = vpack.c.bf16 %v1044_v9, %v1043_v8  ;;  %vm921_vm11 = vcmp.ge.f32.partialorder %v1898_v14, 0.0  ;;  %v937_v17 = vmul.f32 0.01, %v1898_v14  ;;  %1925 = vmatpush3.bf16.msra.mxu0 %v2219_v39  ;;  %v880_v18 = vpop.f32.mrb[25].mxu1 }
 0x22e   :  { %vm919_vm12 = vcmp.ge.f32.partialorder %v880_v18, 0.0  ;;  %v935_v19 = vmul.f32 0.01, %v880_v18  ;;  %1926 = vmatprep.subr.bf16.mxu0 %v2263_v12  ;;  %v1899_v40 = vpop.f32.mrb[26].mxu1 }
 0x22f   :  { %v953_v23 = vsel %vm921_vm11, %v1898_v14, %v937_v17  ;;  %vm922_vm13 = vcmp.ge.f32.partialorder %v1899_v40, 0.0  ;;  %v938_v24 = vmul.f32 0.01, %v1899_v40  ;;  %v883_v20 = vpop.f32.mrb[27].mxu1  ;;  %1910 = vmatprep.mubr.msk.bf16.mxu0 %vm358_vm2, %v1057_v16 }
 0x230   :  { %v951_v22 = vsel %vm919_vm12, %v880_v18, %v935_v19  ;;  %vm920_vm14 = vcmp.ge.f32.partialorder %v883_v20, 0.0  ;;  %v936_v25 = vmul.f32 0.01, %v883_v20  ;;  %1911 = vmatmul.mubr.msk.bf16.gmra.mrb[36].mxu0 %vm358_vm2, %v1058_v13  ;;  %v1049_v39 = vmul.f32 %v1012_v11, %v953_v23 }
 0x231   :  { %v954_v27 = vsel %vm922_vm13, %v1899_v40, %v938_v24  ;;  %1927 = vmatpush3.bf16.msra.mxu0 %v2263_v12  ;;  %v1047_v34 = vmul.f32 %v1002_v54, %v951_v22 }
 0x232   :  { %v1050_v30 = vmul.f32 %v1017_v15, %v954_v27  ;;  %v952_v28 = vsel %vm920_vm14, %v883_v20, %v936_v25  ;;  %1928 = vmatprep.subr.bf16.mxu0 %v2258_v7 }
 0x233   :  { %v1048_v35 = vmul.f32 %v1007_v57, %v952_v28 }
 0x234   :  { %v1060_v36 = vpack.c.bf16 %v1050_v30, %v1049_v39  ;;  %v1902_v37 = vpop.f32.mrb[28].mxu1 }
 0x235   :  { %v1059_v38 = vpack.c.bf16 %v1048_v35, %v1047_v34  ;;  %vm925_vm15 = vcmp.ge.f32.partialorder %v1902_v37, 0.0  ;;  %v941_v42 = vmul.f32 0.01, %v1902_v37  ;;  %1929 = vmatpush3.bf16.msra.mxu0 %v2258_v7  ;;  %v896_v43 = vpop.f32.mrb[29].mxu1 }
 0x236   :  { %vm923_vm0 = vcmp.ge.f32.partialorder %v896_v43, 0.0  ;;  %v939_v44 = vmul.f32 0.01, %v896_v43  ;;  %1930 = vmatprep.subr.bf16.mxu0 %v2286_v51  ;;  %v1903_v12 = vpop.f32.mrb[30].mxu1 }
 0x237   :  { %v957_v45 = vsel %vm925_vm15, %v1902_v37, %v941_v42  ;;  %vm926_vm1 = vcmp.ge.f32.partialorder %v1903_v12, 0.0  ;;  %v942_v46 = vmul.f32 0.01, %v1903_v12  ;;  %v899_v48 = vpop.f32.mrb[31].mxu1  ;;  %1914 = vmatprep.mubr.msk.bf16.mxu0 %vm358_vm2, %v1059_v38 }
 0x238   :  { %v955_v49 = vsel %vm923_vm0, %v896_v43, %v939_v44  ;;  %vm924_vm3 = vcmp.ge.f32.partialorder %v899_v48, 0.0  ;;  %v940_v50 = vmul.f32 0.01, %v899_v48  ;;  %1915 = vmatmul.mubr.msk.bf16.gmra.mrb[40].mxu0 %vm358_vm2, %v1060_v36  ;;  %v1053_v54 = vmul.f32 %v1032_v52, %v957_v45 }
 0x239   :  { %v958_v7 = vsel %vm926_vm1, %v1903_v12, %v942_v46  ;;  %1931 = vmatpush3.bf16.msra.mxu0 %v2286_v51  ;;  %v1051_v57 = vmul.f32 %v1022_v31, %v955_v49 }
 0x23a   :  { %v1054_v55 = vmul.f32 %v1037_v53, %v958_v7  ;;  %v956_v56 = vsel %vm924_vm3, %v899_v48, %v940_v50  ;;  %1932 = vmatprep.subr.bf16.mxu0 %v2281_v47 }
 0x23b   :  { %v1052_v59 = vmul.f32 %v1027_v32, %v956_v56 }
 0x23c   :  { %v1062_v60 = vpack.c.bf16 %v1054_v55, %v1053_v54 }
 0x23d   :  { %v1061_v61 = vpack.c.bf16 %v1052_v59, %v1051_v57  ;;  %1933 = vmatpush3.bf16.msra.mxu0 %v2281_v47  ;;  %v1343_v47 = vpop.trf.xlu0 }
 0x23e   :  { %1934 = vmatprep.subr.bf16.mxu0 %v2312_v26  ;;  %1970 = vmatprep.mubr.bf16.mxu1 %v1343_v47 }
 0x23f   :  { %1918 = vmatprep.mubr.msk.bf16.mxu0 %vm358_vm2, %v1061_v61 }
 0x240   :  { %1919 = vmatmul.mubr.msk.bf16.gmra.mrb[44].mxu0 %vm358_vm2, %v1062_v60 }
 0x241   :  { %1935 = vmatpush3.bf16.msra.mxu0 %v2312_v26  ;;  %1938 = vmatprep.mubr.bf16.mxu0 %v2207_v29  ;;  %v1344_v12 = vpop.trf.xlu0 }
 0x242   :  { %1936 = vmatprep.subr.bf16.mxu0 %v2307_v21 }
 0x245   :  { %1937 = vmatpush3.bf16.msra.mxu0 %v2307_v21  ;;  %v1345_v55 = vpop.trf.xlu0 }
 0x248   :  { %1939 = vmatmul.mubr.bf16.vlgmr.msra.gmra.mrb[48].mxu0 %v2357_v33 }
 0x249   :  { %1942 = vmatprep.mubr.bf16.mxu0 %v2362_v58  ;;  %v1346_v56 = vpop.trf.xlu0 }
 0x24d   :  { %v1347_v57 = vpop.trf.xlu0 }
 0x250   :  { %1943 = vmatmul.mubr.bf16.gmra.mrb[52].mxu0 %v2372_v62 }
 0x251   :  { %1946 = vmatprep.mubr.bf16.mxu0 %v2377_v63  ;;  %v1348_v59 = vpop.trf.xlu0 }
 0x255   :  { %v1349_v60 = vpop.trf.xlu0 }
 0x258   :  { %1947 = vmatmul.mubr.bf16.gmra.mrb[56].mxu0 %v2390_v41 }
 0x259   :  { %1950 = vmatprep.mubr.bf16.mxu0 %v2395_v4  ;;  %v1350_v61 = vpop.trf.xlu0 }
 0x260   :  { %1951 = vmatmul.mubr.bf16.gmra.mrb[60].mxu0 %v2408_v10 }
 0x2fb   :  { %v1908_v29 = vpop.f32.mrb[32].mxu0 }
 0x2fc   :  { %v1127_v51 = vpop.f32.mrb[33].mxu0 }
 0x2fd   :  { %v1909_v26 = vpop.f32.mrb[34].mxu0 }
 0x2fe   :  { %v1130_v21 = vpop.f32.mrb[35].mxu0 }
 0x303   :  { %v1912_v0 = vpop.f32.mrb[36].mxu0 }
 0x304   :  { %v1143_v33 = vpop.f32.mrb[37].mxu0 }
 0x305   :  { %v1913_v1 = vpop.f32.mrb[38].mxu0 }
 0x306   :  { %v1146_v58 = vpop.f32.mrb[39].mxu0 }
 0x30b   :  { %v1916_v2 = vpop.f32.mrb[40].mxu0 }
 0x30c   :  { %v1159_v62 = vpop.f32.mrb[41].mxu0 }
 0x30d   :  { %v1917_v3 = vpop.f32.mrb[42].mxu0 }
 0x30e   :  { %v1162_v63 = vpop.f32.mrb[43].mxu0 }
 0x313   :  { %v1920_v5 = vpop.f32.mrb[44].mxu0 }
 0x314   :  { %v1175_v41 = vpop.f32.mrb[45].mxu0 }
 0x315   :  { %v1921_v6 = vpop.f32.mrb[46].mxu0 }
 0x316   :  { %v1178_v4 = vpop.f32.mrb[47].mxu0 }
 0x31b   :  { %v1940_v8 = vpop.f32.mrb[48].mxu0 }
 0x31c   :  { %v1297_v10 = vmul.f32 %v1940_v8, %v1908_v29  ;;  %v1232_v9 = vpop.f32.mrb[49].mxu0 }
 0x31d   :  { %v1295_v11 = vmul.f32 %v1232_v9, %v1127_v51  ;;  %v1941_v13 = vpop.f32.mrb[50].mxu0 }
 0x31e   :  { %v1298_v14 = vmul.f32 %v1941_v13, %v1909_v26  ;;  %v1235_v15 = vpop.f32.mrb[51].mxu0 }
 0x31f   :  { %v1296_v16 = vmul.f32 %v1235_v15, %v1130_v21 }
 0x320   :  { %v1312_v17 = vpack.c.bf16 %v1298_v14, %v1297_v10 }
 0x321   :  { %v1311_v18 = vpack.c.bf16 %v1296_v16, %v1295_v11 }
 0x323   :  { %v1944_v19 = vpop.f32.mrb[52].mxu0  ;;  %1954 = vmatprep.subr.bf16.mxu1 %v1311_v18 }
 0x324   :  { %v1301_v40 = vmul.f32 %v1944_v19, %v1912_v0  ;;  %v1248_v23 = vpop.f32.mrb[53].mxu0  ;;  %1955 = vmatpush3.bf16.msra.mxu1 %v1311_v18 }
 0x325   :  { %v1299_v24 = vmul.f32 %v1248_v23, %v1143_v33  ;;  %v1945_v20 = vpop.f32.mrb[54].mxu0  ;;  %1956 = vmatprep.subr.bf16.mxu1 %v1312_v17 }
 0x326   :  { %v1302_v22 = vmul.f32 %v1945_v20, %v1913_v1  ;;  %v1251_v25 = vpop.f32.mrb[55].mxu0 }
 0x327   :  { %v1300_v27 = vmul.f32 %v1251_v25, %v1146_v58 }
 0x328   :  { %v1314_v39 = vpack.c.bf16 %v1302_v22, %v1301_v40  ;;  %1957 = vmatpush3.bf16.msra.mxu1 %v1312_v17 }
 0x329   :  { %v1313_v30 = vpack.c.bf16 %v1300_v27, %v1299_v24 }
 0x32b   :  { %v1948_v28 = vpop.f32.mrb[56].mxu0  ;;  %1958 = vmatprep.subr.bf16.mxu1 %v1313_v30 }
 0x32c   :  { %v1305_v31 = vmul.f32 %v1948_v28, %v1916_v2  ;;  %v1264_v32 = vpop.f32.mrb[57].mxu0  ;;  %1959 = vmatpush3.bf16.msra.mxu1 %v1313_v30 }
 0x32d   :  { %v1303_v34 = vmul.f32 %v1264_v32, %v1159_v62  ;;  %v1949_v35 = vpop.f32.mrb[58].mxu0  ;;  %1960 = vmatprep.subr.bf16.mxu1 %v1314_v39 }
 0x32e   :  { %v1306_v36 = vmul.f32 %v1949_v35, %v1917_v3  ;;  %v1267_v37 = vpop.f32.mrb[59].mxu0 }
 0x32f   :  { %v1304_v38 = vmul.f32 %v1267_v37, %v1162_v63 }
 0x330   :  { %v1316_v42 = vpack.c.bf16 %v1306_v36, %v1305_v31  ;;  %1961 = vmatpush3.bf16.msra.mxu1 %v1314_v39 }
 0x331   :  { %v1315_v43 = vpack.c.bf16 %v1304_v38, %v1303_v34 }
 0x333   :  { %v1952_v44 = vpop.f32.mrb[60].mxu0  ;;  %1962 = vmatprep.subr.bf16.mxu1 %v1315_v43 }
 0x334   :  { %v1309_v45 = vmul.f32 %v1952_v44, %v1920_v5  ;;  %v1280_v46 = vpop.f32.mrb[61].mxu0  ;;  %1963 = vmatpush3.bf16.msra.mxu1 %v1315_v43 }
 0x335   :  { %v1307_v48 = vmul.f32 %v1280_v46, %v1175_v41  ;;  %v1953_v49 = vpop.f32.mrb[62].mxu0  ;;  %1964 = vmatprep.subr.bf16.mxu1 %v1316_v42 }
 0x336   :  { %v1310_v50 = vmul.f32 %v1953_v49, %v1921_v6  ;;  %v1283_v52 = vpop.f32.mrb[63].mxu0 }
 0x337   :  { %v1308_v53 = vmul.f32 %v1283_v52, %v1178_v4 }
 0x338   :  { %v1318_v7 = vpack.c.bf16 %v1310_v50, %v1309_v45  ;;  %1965 = vmatpush3.bf16.msra.mxu1 %v1316_v42 }
 0x339   :  { %v1317_v54 = vpack.c.bf16 %v1308_v53, %v1307_v48 }
 0x33b   :  { %1966 = vmatprep.subr.bf16.mxu1 %v1317_v54 }
 0x33c   :  { %1967 = vmatpush3.bf16.msra.mxu1 %v1317_v54 }
 0x33d   :  { %1968 = vmatprep.subr.bf16.mxu1 %v1318_v7 }
 0x340   :  { %1969 = vmatpush3.bf16.msra.mxu1 %v1318_v7 }
 0x343   :  { %1971 = vmatmul.mubr.bf16.vlgmr.msra.gmra.mrb[32].mxu1 %v1344_v12 }
 0x344   :  { %1974 = vmatprep.mubr.bf16.mxu1 %v1345_v55 }
 0x34b   :  { %1975 = vmatmul.mubr.bf16.gmra.mrb[36].mxu1 %v1346_v56 }
 0x34c   :  { %1978 = vmatprep.mubr.bf16.mxu1 %v1347_v57 }
 0x353   :  { %1979 = vmatmul.mubr.bf16.gmra.mrb[40].mxu1 %v1348_v59 }
 0x354   :  { %1982 = vmatprep.mubr.bf16.mxu1 %v1349_v60 }
 0x35b   :  { %1983 = vmatmul.mubr.bf16.gmra.mrb[44].mxu1 %v1350_v61 }
 0x416   :  { %v2451_v47 = vpop.f32.mrb[32].mxu1 }
 0x417   :  { %v2453_v29 = vpop.f32.mrb[33].mxu1  ;;  %v1523_v1 = vmul.f32 %v2451_v47, %v2451_v47 }
 0x418   :  { %v2455_v51 = vpop.f32.mrb[34].mxu1  ;;  %v1521_v21 = vmul.f32 %v2453_v29, %v2453_v29 }
 0x419   :  { %v2457_v26 = vpop.f32.mrb[35].mxu1  ;;  %v1524_v62 = vmul.f32 %v2455_v51, %v2455_v51 }
 0x41a   :  { %v1499_v0 = vadd.f32 %v2457_v26, %v2453_v29  ;;  %v1522_v33 = vmul.f32 %v2457_v26, %v2457_v26 }
 0x41c   :  { %v1500_v58 = vadd.f32 %v2451_v47, %v1499_v0  ;;  %v1537_v2 = vadd.f32 %v1522_v33, %v1521_v21 }
 0x41e   :  { %v1538_v3 = vadd.f32 %v1537_v2, %v1523_v1  ;;  %v2470_v63 = vpop.f32.mrb[36].mxu1  ;;  %v1501_v5 = vadd.f32 %v2455_v51, %v1500_v58 }
 0x41f   :  { %v2473_v41 = vpop.f32.mrb[37].mxu1  ;;  %v1527_v15 = vmul.f32 %v2470_v63, %v2470_v63 }
 0x420   :  { %v1502_v6 = vadd.f32 %v1501_v5, %v2473_v41  ;;  %v1525_v4 = vmul.f32 %v2473_v41, %v2473_v41  ;;  %v1539_v8 = vadd.f32 %v1538_v3, %v1524_v62  ;;  %v2478_v10 = vpop.f32.mrb[38].mxu1 }
 0x421   :  { %v2480_v9 = vpop.f32.mrb[39].mxu1  ;;  %v1528_v18 = vmul.f32 %v2478_v10, %v2478_v10 }
 0x422   :  { %v1540_v11 = vadd.f32 %v1539_v8, %v1525_v4  ;;  %v1503_v13 = vadd.f32 %v1502_v6, %v2480_v9  ;;  %v1526_v14 = vmul.f32 %v2480_v9, %v2480_v9 }
 0x424   :  { %v1504_v16 = vadd.f32 %v2470_v63, %v1503_v13  ;;  %v1541_v17 = vadd.f32 %v1540_v11, %v1526_v14 }
 0x426   :  { %v1542_v19 = vadd.f32 %v1541_v17, %v1527_v15  ;;  %v2490_v40 = vpop.f32.mrb[40].mxu1  ;;  %v1505_v23 = vadd.f32 %v2478_v10, %v1504_v16 }
 0x427   :  { %v2493_v24 = vpop.f32.mrb[41].mxu1  ;;  %v1531_v32 = vmul.f32 %v2490_v40, %v2490_v40 }
 0x428   :  { %v1506_v20 = vadd.f32 %v1505_v23, %v2493_v24  ;;  %v1529_v22 = vmul.f32 %v2493_v24, %v2493_v24  ;;  %v1543_v25 = vadd.f32 %v1542_v19, %v1528_v18  ;;  %v2498_v27 = vpop.f32.mrb[42].mxu1 }
 0x429   :  { %v2500_v39 = vpop.f32.mrb[43].mxu1  ;;  %v1532_v36 = vmul.f32 %v2498_v27, %v2498_v27 }
 0x42a   :  { %v1544_v30 = vadd.f32 %v1543_v25, %v1529_v22  ;;  %v1507_v28 = vadd.f32 %v1506_v20, %v2500_v39  ;;  %v1530_v31 = vmul.f32 %v2500_v39, %v2500_v39 }
 0x42c   :  { %v1508_v34 = vadd.f32 %v2490_v40, %v1507_v28  ;;  %v1545_v35 = vadd.f32 %v1544_v30, %v1530_v31 }
 0x42e   :  { %v1546_v37 = vadd.f32 %v1545_v35, %v1531_v32  ;;  %v2510_v38 = vpop.f32.mrb[44].mxu1  ;;  %v1509_v42 = vadd.f32 %v2498_v27, %v1508_v34 }
 0x42f   :  { %v2513_v43 = vpop.f32.mrb[45].mxu1  ;;  %v1535_v53 = vmul.f32 %v2510_v38, %v2510_v38 }
 0x430   :  { %v1510_v44 = vadd.f32 %v1509_v42, %v2513_v43  ;;  %v1533_v12 = vmul.f32 %v2513_v43, %v2513_v43  ;;  %v1547_v45 = vadd.f32 %v1546_v37, %v1532_v36  ;;  %v2518_v46 = vpop.f32.mrb[46].mxu1 }
 0x431   :  { %v1436_v48 = vpop.f32.mrb[47].mxu1  ;;  %v1536_v55 = vmul.f32 %v2518_v46, %v2518_v46 }
 0x432   :  { %v1548_v49 = vadd.f32 %v1547_v45, %v1533_v12  ;;  %v1511_v50 = vadd.f32 %v1510_v44, %v1436_v48  ;;  %v1534_v52 = vmul.f32 %v1436_v48, %v1436_v48 }
 0x434   :  { %v1512_v7 = vadd.f32 %v2510_v38, %v1511_v50  ;;  %v1549_v54 = vadd.f32 %v1548_v49, %v1534_v52 }
 0x436   :  { %v1513_v56 = vadd.f32 %v2518_v46, %v1512_v7  ;;  %v1550_v57 = vadd.f32 %v1549_v54, %v1535_v53 }
 0x438   :  { %v1514_v59 = vrot.slane %v1513_v56, 4  ;;  %v1551_v60 = vadd.f32 %v1550_v57, %v1536_v55 }
 0x43a   :  { %v1515_v61 = vadd.f32 %v1514_v59, %v1513_v56  ;;  %v1552_v21 = vrot.slane %v1551_v60, 4 }
 0x43c   :  { %v1516_v0 = vrot.slane %v1515_v61, 2  ;;  %v1553_v33 = vadd.f32 %v1552_v21, %v1551_v60 }
 0x43e   :  { %v1517_v1 = vadd.f32 %v1516_v0, %v1515_v61  ;;  %v1554_v58 = vrot.slane %v1553_v33, 2 }
 0x440   :  { %v1518_v2 = vrot.slane %v1517_v1, 1  ;;  %v1555_v62 = vadd.f32 %v1554_v58, %v1553_v33 }
 0x442   :  { %v1519_v3 = vadd.f32 %v1518_v2, %v1517_v1  ;;  %v1556_v5 = vrot.slane %v1555_v62, 1 }
 0x444   :  { %v1520_v6 = vmul.f32 0.015625, %v1519_v3  ;;  %v1557_v4 = vadd.f32 %v1556_v5, %v1555_v62 }
 0x446   :  { %v1558_v8 = vmul.f32 0.015625, %v1557_v4  ;;  %v1559_v11 = vmul.f32 %v1520_v6, %v1520_v6  ;;  %v1562_v13 = vsub.f32 %v2453_v29, %v1520_v6  ;;  %v1563_v14 = vsub.f32 %v2457_v26, %v1520_v6 }
 0x447   :  { %v1564_v15 = vsub.f32 %v2451_v47, %v1520_v6  ;;  %v1565_v16 = vsub.f32 %v2455_v51, %v1520_v6  ;;  %v1566_v17 = vsub.f32 %v2473_v41, %v1520_v6  ;;  %v1567_v18 = vsub.f32 %v2480_v9, %v1520_v6 }
 0x448   :  { %v1560_v19 = vsub.f32 %v1558_v8, %v1559_v11  ;;  %v1568_v23 = vsub.f32 %v2470_v63, %v1520_v6  ;;  %v1569_v20 = vsub.f32 %v2478_v10, %v1520_v6  ;;  %v1570_v22 = vsub.f32 %v2493_v24, %v1520_v6 }
 0x449   :  { %v1571_v25 = vsub.f32 %v2500_v39, %v1520_v6  ;;  %v1572_v29 = vsub.f32 %v2490_v40, %v1520_v6  ;;  %v1573_v26 = vsub.f32 %v2498_v27, %v1520_v6  ;;  %v1574_v47 = vsub.f32 %v2513_v43, %v1520_v6 }
 0x44a   :  { %v1561_v51 = vmax.f32 %v1560_v19, 0.0  ;;  %v1575_v30 = vsub.f32 %v1436_v48, %v1520_v6  ;;  %v1576_v41 = vsub.f32 %v2510_v38, %v1520_v6  ;;  %v1577_v9 = vsub.f32 %v2518_v46, %v1520_v6 }
 0x44c   :  { %v1578_v28 = vadd.f32 1e-05, %v1561_v51 }
 0x44e   :  { %2057 = vrsqrt.f32 %v1578_v28 }
 0x458   :  { %v2058_v63 = vpop.eup %2057 }
 0x459   :  { %v1580_v10 = vmul.f32 %v2058_v63, %v1562_v13  ;;  %v1581_v31 = vmul.f32 %v2058_v63, %v1563_v14  ;;  %v1582_v24 = vmul.f32 %v2058_v63, %v1564_v15  ;;  %v1583_v32 = vmul.f32 %v2058_v63, %v1565_v16 }
 0x45a   :  { %v1584_v39 = vmul.f32 %v2058_v63, %v1566_v17  ;;  %v1585_v34 = vmul.f32 %v2058_v63, %v1567_v18  ;;  %v1586_v40 = vmul.f32 %v2058_v63, %v1568_v23  ;;  %v1587_v35 = vmul.f32 %v2058_v63, %v1569_v20 }
 0x45b   :  { %v1588_v27 = vmul.f32 %v2058_v63, %v1570_v22  ;;  %v1589_v36 = vmul.f32 %v2058_v63, %v1571_v25  ;;  %v1590_v37 = vmul.f32 %v2058_v63, %v1572_v29  ;;  %v1591_v42 = vmul.f32 %v2058_v63, %v1573_v26 }
 0x45c   :  { %v1592_v43 = vmul.f32 %v2058_v63, %v1574_v47  ;;  %v1593_v44 = vmul.f32 %v2058_v63, %v1575_v30  ;;  %v1594_v38 = vmul.f32 %v2058_v63, %v1576_v41  ;;  %v1595_v12 = vmul.f32 %v2058_v63, %v1577_v9 }
 0x45d   :  { %v1596_v45 = vmax.f32 %v1580_v10, 0.0  ;;  %v1597_v46 = vmax.f32 %v1581_v31, 0.0  ;;  %v1598_v48 = vmax.f32 %v1582_v24, 0.0  ;;  %v1599_v49 = vmax.f32 %v1583_v32, 0.0 }
 0x45e   :  { %v1600_v50 = vmax.f32 %v1584_v39, 0.0  ;;  %v1601_v52 = vmax.f32 %v1585_v34, 0.0  ;;  %v1602_v53 = vmax.f32 %v1586_v40, 0.0  ;;  %v1603_v7 = vmax.f32 %v1587_v35, 0.0 }
 0x45f   :  { %v1604_v54 = vmax.f32 %v1588_v27, 0.0  ;;  %v1605_v55 = vmax.f32 %v1589_v36, 0.0  ;;  %v1606_v56 = vmax.f32 %v1590_v37, 0.0  ;;  %v1607_v57 = vmax.f32 %v1591_v42, 0.0  ;;  %1612 = vst [vmem:[%s2600_s11] sm:$0xff] %v1596_v45  ;;  %1613 = vst [vmem:[%s2600_s11 + $0x8] sm:$0xff] %v1597_v46 }
 0x460   :  { %1614 = vst [vmem:[%s2600_s11 + $0x10] sm:$0xff] %v1598_v48  ;;  %1615 = vst [vmem:[%s2600_s11 + $0x18] sm:$0xff] %v1599_v49  ;;  %v1608_v59 = vmax.f32 %v1592_v43, 0.0  ;;  %v1609_v60 = vmax.f32 %v1593_v44, 0.0  ;;  %v1610_v61 = vmax.f32 %v1594_v38, 0.0  ;;  %v1611_v21 = vmax.f32 %v1595_v12, 0.0 }
 0x461   :  { %1616 = vst [vmem:[%s2600_s11 + $0x20] sm:$0xff] %v1600_v50  ;;  %1617 = vst [vmem:[%s2600_s11 + $0x28] sm:$0xff] %v1601_v52 }
 0x462   :  { %1618 = vst [vmem:[%s2600_s11 + $0x30] sm:$0xff] %v1602_v53  ;;  %1619 = vst [vmem:[%s2600_s11 + $0x38] sm:$0xff] %v1603_v7 }
 0x463   :  { %1620 = vst [vmem:[%s2600_s11 + $0x40] sm:$0xff] %v1604_v54  ;;  %1621 = vst [vmem:[%s2600_s11 + $0x48] sm:$0xff] %v1605_v55 }
 0x464   :  { %1622 = vst [vmem:[%s2600_s11 + $0x50] sm:$0xff] %v1606_v56  ;;  %1623 = vst [vmem:[%s2600_s11 + $0x58] sm:$0xff] %v1607_v57 }
 0x465   :  { %1624 = vst [vmem:[%s2600_s11 + $0x60] sm:$0xff] %v1608_v59  ;;  %1625 = vst [vmem:[%s2600_s11 + $0x68] sm:$0xff] %v1609_v60 }
 0x466   :  { %1626 = vst [vmem:[%s2600_s11 + $0x70] sm:$0xff] %v1610_v61  ;;  %1627 = vst [vmem:[%s2600_s11 + $0x78] sm:$0xff] %v1611_v21 }

// kernel: gat_forward.7
= control target key start
LH: loop header
LB: loop body
LE: loop exit
PB: predicated region body
PF: predicated region fallthrough
CT: control target
= control target key end

     0   :  { %vm1232_vm0 = vcmask 1043456   ;;  %vm459_vm1 = vcmask 64512   ;;  %s2867_s1 = inlined_call_operand.vmem [shape: bf16[128,128], index: 1, kind: input, shape index: {}]   ;;  %s2868_s0 = inlined_call_operand.vmem [shape: f32[128,128], index: 0, kind: input, shape index: {}]   ;;  %s2869_s4 = inlined_call_operand.vmem [shape: bf16[128,8], index: 4, kind: input, shape index: {}]   ;;  %s2870_s3 = inlined_call_operand.vmem [shape: bf16[128,8], index: 3, kind: input, shape index: {}]   ;;  %s2871_s7 = inlined_call_operand.vmem [shape: bf16[8,128], index: 7, kind: input, shape index: {}]   ;;  %s2872_s8 = inlined_call_operand.vmem [shape: bf16[128,128], index: 8, kind: input, shape index: {}]   ;;  %s2873_s9 = inlined_call_operand.vmem [shape: bf16[128,128], index: 9, kind: input, shape index: {}]   ;;  %s2874_s2 = inlined_call_operand.vmem [shape: f32[1,128], index: 2, kind: input, shape index: {}]   ;;  %s2875_s10 = inlined_call_operand.vmem [shape: f32[128,1], index: 10, kind: input, shape index: {}]   ;;  %s2876_s5 = inlined_call_operand.vmem [shape: f32[1,8], index: 5, kind: input, shape index: {}]   ;;  %s2877_s6 = inlined_call_operand.vmem [shape: f32[1,8], index: 6, kind: input, shape index: {}]   ;;  %s2878_s11 = inlined_call_operand.vmem [shape: f32[128,128], index: 11, kind: output, shape index: {}]  }
   0x1   :  { %v2209_v0 = vld [vmem:[%s2867_s1] sm:$0xff]   ;;  %v2210_v1 = vld [vmem:[%s2867_s1 + $0x8] sm:$0xff]   ;;  %v2211_v2 = vld [vmem:[%s2867_s1 + $0x10] sm:$0xff]  }
   0x2   :  { %1947 = vmatprep.subr.bf16.mxu0 %v2209_v0  ;;  %v2212_v3 = vld [vmem:[%s2867_s1 + $0x18] sm:$0xff]   ;;  %v107_v4 = vld [vmem:[%s2868_s0] sm:$0xff]  ;;  %v108_v5 = vld [vmem:[%s2868_s0 + $0x8] sm:$0xff] }
   0x3   :  { %1948 = vmatpush3.bf16.msra.mxu0 %v2209_v0  ;;  %v2362_v6 = vpack.c.bf16 %v108_v5, %v107_v4  ;;  %v2213_v7 = vld [vmem:[%s2867_s1 + $0x20] sm:$0xff]   ;;  %v2214_v8 = vld [vmem:[%s2867_s1 + $0x28] sm:$0xff]   ;;  %v2215_v9 = vld [vmem:[%s2867_s1 + $0x30] sm:$0xff]  }
   0x4   :  { %1949 = vmatprep.subr.bf16.mxu0 %v2210_v1  ;;  %v2225_v10 = vld [vmem:[%s2870_s3] sm:$0xff]   ;;  %v2226_v11 = vld [vmem:[%s2870_s3 + $0x8] sm:$0xff]   ;;  %v2216_v12 = vld [vmem:[%s2867_s1 + $0x38] sm:$0xff]  }
   0x5   :  { %1963 = vmatprep.mubr.bf16.mxu0 %v2362_v6  ;;  %1995 = vmatprep.mubr.bf16.mxu1 %v2362_v6  ;;  %v109_v13 = vld [vmem:[%s2868_s0 + $0x10] sm:$0xff]  ;;  %v110_v14 = vld [vmem:[%s2868_s0 + $0x18] sm:$0xff]  ;;  %v2217_v15 = vld [vmem:[%s2869_s4] sm:$0xff]  }
   0x6   :  { %1979 = vmatprep.subr.bf16.mxu1 %v2225_v10  ;;  %v2227_v16 = vld [vmem:[%s2870_s3 + $0x10] sm:$0xff]   ;;  %v111_v17 = vld [vmem:[%s2868_s0 + $0x20] sm:$0xff]  ;;  %v112_v18 = vld [vmem:[%s2868_s0 + $0x28] sm:$0xff]  ;;  %v2402_v19 = vpack.c.bf16 %v110_v14, %v109_v13 }
   0x7   :  { %1950 = vmatpush3.bf16.msra.mxu0 %v2210_v1  ;;  %1980 = vmatpush3.bf16.msra.mxu1 %v2225_v10  ;;  %v2228_v20 = vld [vmem:[%s2870_s3 + $0x18] sm:$0xff]   ;;  %v2407_v21 = vpack.c.bf16 %v112_v18, %v111_v17  ;;  %v2218_v22 = vld [vmem:[%s2869_s4 + $0x8] sm:$0xff]   ;;  %v2229_v23 = vld [vmem:[%s2870_s3 + $0x20] sm:$0xff]   ;;  %v2283_v1 = vmov 0  }
   0x8   :  { %1951 = vmatprep.subr.bf16.mxu0 %v2211_v2  ;;  %1981 = vmatprep.subr.bf16.mxu1 %v2226_v11  ;;  %v113_v24 = vld [vmem:[%s2868_s0 + $0x30] sm:$0xff]  ;;  %v114_v25 = vld [vmem:[%s2868_s0 + $0x38] sm:$0xff]  ;;  %v115_v27 = vld [vmem:[%s2868_s0 + $0x40] sm:$0xff] }
   0x9   :  { %v2219_v26 = vld [vmem:[%s2869_s4 + $0x10] sm:$0xff]   ;;  %v116_v28 = vld [vmem:[%s2868_s0 + $0x48] sm:$0xff]  ;;  %v126_v29 = vpack.c.bf16 %v114_v25, %v113_v24  ;;  %v2220_v32 = vld [vmem:[%s2869_s4 + $0x18] sm:$0xff]   ;;  %2207 = vset.pattern.permute.xlu0 %v2283_v1  ;;  %2208 = vset.pattern.permute.xlu1 %v2283_v1 }
   0xa   :  { %v2230_v30 = vld [vmem:[%s2870_s3 + $0x28] sm:$0xff]   ;;  %v127_v31 = vpack.c.bf16 %v116_v28, %v115_v27  ;;  %v2231_v33 = vld [vmem:[%s2870_s3 + $0x30] sm:$0xff]   ;;  %v118_v35 = vld [vmem:[%s2868_s0 + $0x58] sm:$0xff] }
   0xb   :  { %1952 = vmatpush3.bf16.msra.mxu0 %v2211_v2  ;;  %1982 = vmatpush3.bf16.msra.mxu1 %v2226_v11  ;;  %v117_v34 = vld [vmem:[%s2868_s0 + $0x50] sm:$0xff]  ;;  %v2221_v36 = vld [vmem:[%s2869_s4 + $0x20] sm:$0xff]   ;;  %v120_v38 = vld [vmem:[%s2868_s0 + $0x68] sm:$0xff] }
   0xc   :  { %1953 = vmatprep.subr.bf16.mxu0 %v2212_v3  ;;  %1983 = vmatprep.subr.bf16.mxu1 %v2227_v16  ;;  %v119_v37 = vld [vmem:[%s2868_s0 + $0x60] sm:$0xff]  ;;  %v128_v39 = vpack.c.bf16 %v118_v35, %v117_v34  ;;  %v2232_v40 = vld [vmem:[%s2870_s3 + $0x38] sm:$0xff]   ;;  %v2222_v42 = vld [vmem:[%s2869_s4 + $0x28] sm:$0xff]  }
   0xd   :  { %v129_v41 = vpack.c.bf16 %v120_v38, %v119_v37  ;;  %v121_v43 = vld [vmem:[%s2868_s0 + $0x70] sm:$0xff]  ;;  %v122_v44 = vld [vmem:[%s2868_s0 + $0x78] sm:$0xff]  ;;  %v1206_v48 = vld [vmem:[%s2871_s7] sm:$0xf] }
   0xe   :  { %v2223_v45 = vld [vmem:[%s2869_s4 + $0x30] sm:$0xff]   ;;  %v130_v46 = vpack.c.bf16 %v122_v44, %v121_v43  ;;  %v2224_v47 = vld [vmem:[%s2869_s4 + $0x38] sm:$0xff]   ;;  %v1234_v49 = vsel %vm1232_vm0, %v1206_v48, 0  ;;  %v2485_v50 = vld [vmem:[%s2872_s8] sm:$0xff]  }
   0xf   :  { %1954 = vmatpush3.bf16.msra.mxu0 %v2212_v3  ;;  %1984 = vmatpush3.bf16.msra.mxu1 %v2227_v16  ;;  %v2491_v51 = vld [vmem:[%s2874_s2] ss:$0 sm:$0xff]  ;;  %v670_v3 = vld [vmem:[%s2875_s10 + $0x10] sm:$0xff]  ;;  %v669_v4 = vld [vmem:[%s2875_s10 + $0x8] sm:$0xff] }
  0x10   :  { %1955 = vmatprep.subr.bf16.mxu0 %v2213_v7  ;;  %1985 = vmatprep.subr.bf16.mxu1 %v2228_v20  ;;  %v668_v2 = vld [vmem:[%s2875_s10] sm:$0xff]  ;;  %v674_v24 = vld [vmem:[%s2875_s10 + $0x30] sm:$0xff]  ;;  %v677_v35 = vld [vmem:[%s2875_s10 + $0x48] sm:$0xff] }
  0x11   :  { %v672_v14 = vld [vmem:[%s2875_s10 + $0x20] sm:$0xff]  ;;  %v693_v44 = vadd.f32 1e-07, %v677_v35 }
  0x12   :  { %v688_v18 = vadd.f32 1e-07, %v672_v14 }
  0x13   :  { %1956 = vmatpush3.bf16.msra.mxu0 %v2213_v7  ;;  %1986 = vmatpush3.bf16.msra.mxu1 %v2228_v20  ;;  %v684_v7 = vadd.f32 1e-07, %v668_v2 }
  0x14   :  { %1957 = vmatprep.subr.bf16.mxu0 %v2214_v8  ;;  %1987 = vmatprep.subr.bf16.mxu1 %v2229_v23  ;;  %v704_v28 = vmul.f32 %v688_v18, %v688_v18 }
  0x15   :  { %v700_v16 = vmul.f32 %v684_v7, %v684_v7 }
  0x17   :  { %1958 = vmatpush3.bf16.msra.mxu0 %v2214_v8  ;;  %1988 = vmatpush3.bf16.msra.mxu1 %v2229_v23  ;;  %v686_v8 = vadd.f32 1e-07, %v670_v3  ;;  %2249 = vrcp.f32 %v700_v16 }
  0x18   :  { %1959 = vmatprep.subr.bf16.mxu0 %v2215_v9  ;;  %1989 = vmatprep.subr.bf16.mxu1 %v2230_v30 }
  0x19   :  { %v702_v17 = vmul.f32 %v686_v8, %v686_v8 }
  0x1b   :  { %1960 = vmatpush3.bf16.msra.mxu0 %v2215_v9  ;;  %1990 = vmatpush3.bf16.msra.mxu1 %v2230_v30  ;;  %v671_v9 = vld [vmem:[%s2875_s10 + $0x18] sm:$0xff]  ;;  %2251 = vrcp.f32 %v702_v17  ;;  %v676_v30 = vld [vmem:[%s2875_s10 + $0x40] sm:$0xff] }
  0x1c   :  { %1961 = vmatprep.subr.bf16.mxu0 %v2216_v12  ;;  %1991 = vmatprep.subr.bf16.mxu1 %v2231_v33  ;;  %v687_v13 = vadd.f32 1e-07, %v671_v9 }
  0x1f   :  { %1962 = vmatpush3.bf16.msra.mxu0 %v2216_v12  ;;  %1992 = vmatpush3.bf16.msra.mxu1 %v2231_v33  ;;  %v685_v12 = vadd.f32 1e-07, %v669_v4 }
  0x20   :  { %2011 = vmatprep.subr.bf16.mxu0 %v2217_v15  ;;  %1993 = vmatprep.subr.bf16.mxu1 %v2232_v40 }
  0x22   :  { %1964 = vmatmul.mubr.bf16.vlgmr.msra.gmra.mrb[0].mxu0 %v2402_v19 }
  0x23   :  { %2012 = vmatpush3.bf16.msra.mxu0 %v2217_v15  ;;  %1967 = vmatprep.mubr.bf16.mxu0 %v2407_v21 }
  0x24   :  { %2013 = vmatprep.subr.bf16.mxu0 %v2218_v22  ;;  %1994 = vmatpush3.bf16.msra.mxu1 %v2232_v40  ;;  %v692_v40 = vadd.f32 1e-07, %v676_v30 }
  0x27   :  { %2014 = vmatpush3.bf16.msra.mxu0 %v2218_v22  ;;  %1996 = vmatmul.mubr.bf16.vlgmr.msra.gmra.mrb[0].mxu1 %v2402_v19  ;;  %v703_v22 = vmul.f32 %v687_v13, %v687_v13 }
  0x28   :  { %2015 = vmatprep.subr.bf16.mxu0 %v2219_v26  ;;  %1999 = vmatprep.mubr.bf16.mxu1 %v2407_v21 }
  0x2a   :  { %1968 = vmatmul.mubr.bf16.gmra.mrb[4].mxu0 %v126_v29 }
  0x2b   :  { %2016 = vmatpush3.bf16.msra.mxu0 %v2219_v26  ;;  %1971 = vmatprep.mubr.bf16.mxu0 %v127_v31  ;;  %v675_v26 = vld [vmem:[%s2875_s10 + $0x38] sm:$0xff] }
  0x2c   :  { %2017 = vmatprep.subr.bf16.mxu0 %v2220_v32  ;;  %v691_v34 = vadd.f32 1e-07, %v675_v26 }
  0x2f   :  { %2018 = vmatpush3.bf16.msra.mxu0 %v2220_v32  ;;  %2000 = vmatmul.mubr.bf16.gmra.mrb[4].mxu1 %v126_v29 }
  0x30   :  { %2019 = vmatprep.subr.bf16.mxu0 %v2221_v36  ;;  %2003 = vmatprep.mubr.bf16.mxu1 %v127_v31 }
  0x32   :  { %1972 = vmatmul.mubr.bf16.gmra.mrb[8].mxu0 %v128_v39 }
  0x33   :  { %2020 = vmatpush3.bf16.msra.mxu0 %v2221_v36  ;;  %1975 = vmatprep.mubr.bf16.mxu0 %v129_v41 }
  0x34   :  { %2021 = vmatprep.subr.bf16.mxu0 %v2222_v42 }
  0x37   :  { %2022 = vmatpush3.bf16.msra.mxu0 %v2222_v42  ;;  %2004 = vmatmul.mubr.bf16.gmra.mrb[8].mxu1 %v128_v39  ;;  %v2547_v42 = vld [vmem:[%s2876_s5] ss:$0 sm:$0xff] }
  0x38   :  { %2023 = vmatprep.subr.bf16.mxu0 %v2223_v45  ;;  %2007 = vmatprep.mubr.bf16.mxu1 %v129_v41 }
  0x3a   :  { %1976 = vmatmul.mubr.bf16.gmra.mrb[12].mxu0 %v130_v46 }
  0x3b   :  { %2024 = vmatpush3.bf16.msra.mxu0 %v2223_v45  ;;  %2027 = vmatprep.mubr.bf16.mxu0 %v2362_v6  ;;  %v678_v45 = vld [vmem:[%s2875_s10 + $0x50] sm:$0xff] }
  0x3c   :  { %2025 = vmatprep.subr.bf16.mxu0 %v2224_v47 }
  0x3f   :  { %2026 = vmatpush3.bf16.msra.mxu0 %v2224_v47  ;;  %2008 = vmatmul.mubr.bf16.gmra.mrb[12].mxu1 %v130_v46  ;;  %v707_v47 = vmul.f32 %v691_v34, %v691_v34  ;;  %v2589_v34 = vld [vmem:[%s2877_s6] ss:$0 sm:$0xff] }
  0x40   :  { %2205 = vmatprep.subr.msk.bf16.mxu0 %vm1232_vm0, %v1206_v48  ;;  %2059 = vmatprep.mubr.bf16.mxu1 %v2485_v50 }
  0x42   :  { %2028 = vmatmul.mubr.bf16.vlgmr.msra.gmra.mrb[16].mxu0 %v2402_v19  ;;  %v673_v19 = vld [vmem:[%s2875_s10 + $0x28] sm:$0xff] }
  0x43   :  { %2031 = vmatprep.mubr.bf16.mxu0 %v2407_v21  ;;  %2108 = vmatpush3.bf16.msra.mxu0 %v1234_v49  ;;  %v701_v21 = vmul.f32 %v685_v12, %v685_v12  ;;  %v689_v23 = vadd.f32 1e-07, %v673_v19 }
  0x45   :  { %2253 = vrcp.f32 %v701_v21  ;;  %v705_v33 = vmul.f32 %v689_v23, %v689_v23  ;;  %v682_v21 = vld [vmem:[%s2875_s10 + $0x70] sm:$0xff] }
  0x46   :  { %2255 = vrcp.f32 %v703_v22 }
  0x47   :  { %2257 = vrcp.f32 %v704_v28  ;;  %v683_v28 = vld [vmem:[%s2875_s10 + $0x78] sm:$0xff] }
  0x48   :  { %2259 = vrcp.f32 %v705_v33 }
  0x4a   :  { %2032 = vmatmul.mubr.bf16.gmra.mrb[20].mxu0 %v126_v29  ;;  %v690_v29 = vadd.f32 1e-07, %v674_v24 }
  0x4b   :  { %2035 = vmatprep.mubr.bf16.mxu0 %v127_v31 }
  0x4c   :  { %v706_v43 = vmul.f32 %v690_v29, %v690_v29 }
  0x4e   :  { %2261 = vrcp.f32 %v706_v43  ;;  %v699_v43 = vadd.f32 1e-07, %v683_v28 }
  0x4f   :  { %2263 = vrcp.f32 %v707_v47 }
  0x52   :  { %2036 = vmatmul.mubr.bf16.gmra.mrb[24].mxu0 %v128_v39 }
  0x53   :  { %2039 = vmatprep.mubr.bf16.mxu0 %v129_v41 }
  0x5a   :  { %2040 = vmatmul.mubr.bf16.gmra.mrb[28].mxu0 %v130_v46 }
  0xf5   :  { %v1965_v52 = vpop.f32.mrb[0].mxu0 }
  0xf6   :  { %v229_v53 = vadd.f32 %v1965_v52, %v2491_v51  ;;  %v220_v54 = vpop.f32.mrb[1].mxu0  ;;  %v679_v52 = vld [vmem:[%s2875_s10 + $0x58] sm:$0xff] }
  0xf7   :  { %v1966_v55 = vpop.f32.mrb[2].mxu0  ;;  %v221_v58 = vadd.f32 %v2491_v51, %v220_v54 }
  0xf8   :  { %v232_v56 = vadd.f32 %v1966_v55, %v2491_v51  ;;  %v223_v57 = vpop.f32.mrb[3].mxu0  ;;  %v694_v55 = vadd.f32 1e-07, %v678_v45 }
  0xf9   :  { %v224_v59 = vadd.f32 %v2491_v51, %v223_v57 }
  0xfa   :  { %v2497_v60 = vpack.c.bf16 %v232_v56, %v229_v53  ;;  %v1997_v49 = vpop.f32.mrb[0].mxu1  ;;  %v2250_v56 = vpop.eup %2249  ;;  %v710_v16 = vmul.f32 %v694_v55, %v694_v55 }
  0xfb   :  { %v2499_v61 = vpack.c.bf16 %v224_v59, %v221_v58  ;;  %v397_v53 = vadd.f32 %v1997_v49, %v2547_v42  ;;  %v388_v54 = vpop.f32.mrb[1].mxu1  ;;  %1104 = vperm.xlu0 %2207, %v2250_v56  }
  0xfc   :  { %v389_v58 = vadd.f32 %v2547_v42, %v388_v54  ;;  %v1998_v59 = vpop.f32.mrb[2].mxu1 }
  0xfd   :  { %v1969_v62 = vpop.f32.mrb[4].mxu0  ;;  %2125 = vmatprep.subr.bf16.mxu0 %v2499_v61  ;;  %v400_v3 = vadd.f32 %v1998_v59, %v2547_v42  ;;  %v391_v4 = vpop.f32.mrb[3].mxu1 }
  0xfe   :  { %v245_v63 = vadd.f32 %v1969_v62, %v2491_v51  ;;  %v236_v0 = vpop.f32.mrb[5].mxu0  ;;  %v708_v62 = vmul.f32 %v692_v40, %v692_v40 }
  0xff   :  { %v237_v5 = vadd.f32 %v2491_v51, %v236_v0  ;;  %v1970_v6 = vpop.f32.mrb[6].mxu0  ;;  %v2252_v0 = vpop.eup %2251 }
 0x100   :  { %v248_v10 = vadd.f32 %v1970_v6, %v2491_v51  ;;  %v239_v11 = vpop.f32.mrb[7].mxu0  ;;  %v680_v6 = vld [vmem:[%s2875_s10 + $0x60] sm:$0xff]  ;;  %v2254_v7 = vpop.eup %2253  ;;  %1114 = vperm.xlu1 %2208, %v2252_v0   ;;  %2265 = vrcp.f32 %v708_v62 }
 0x101   :  { %v240_v15 = vadd.f32 %v2491_v51, %v239_v11  ;;  %v681_v11 = vld [vmem:[%s2875_s10 + $0x68] sm:$0xff]  ;;  %v2256_v12 = vpop.eup %2255  ;;  %v696_v19 = vadd.f32 1e-07, %v680_v6  ;;  %1109 = vperm.xlu0 %2207, %v2254_v7  }
 0x102   :  { %v2524_v20 = vpack.c.bf16 %v248_v10, %v245_v63  ;;  %v709_v63 = vmul.f32 %v693_v44, %v693_v44  ;;  %v392_v10 = vadd.f32 %v2547_v42, %v391_v4  ;;  %v697_v24 = vadd.f32 1e-07, %v681_v11  ;;  %v2258_v26 = vpop.eup %2257 }
 0x103   :  { %v2529_v25 = vpack.c.bf16 %v240_v15, %v237_v5  ;;  %v695_v5 = vadd.f32 1e-07, %v679_v52  ;;  %v452_v15 = vpack.c.bf16 %v400_v3, %v397_v53  ;;  %v2260_v29 = vpop.eup %2259 }
 0x104   :  { %v451_v18 = vpack.c.bf16 %v392_v10, %v389_v58  ;;  %2267 = vrcp.f32 %v709_v63  ;;  %1119 = vperm.xlu1 %2208, %v2256_v12   ;;  %v2262_v44 = vpop.eup %2261  ;;  %v715_v63 = vmul.f32 %v699_v43, %v699_v43 }
 0x105   :  { %v1973_v27 = vpop.f32.mrb[8].mxu0  ;;  %461 = vst.msk [vmem:[#allocation3 + $0x8] sm:$0xff] %vm459_vm1, %v452_v15  ;;  %v711_v23 = vmul.f32 %v695_v5, %v695_v5  ;;  %2269 = vrcp.f32 %v710_v16  ;;  %1124 = vperm.xlu0 %2207, %v2258_v26   ;;  %v2264_v49 = vpop.eup %2263 }
 0x106   :  { %v261_v31 = vadd.f32 %v1973_v27, %v2491_v51  ;;  %v252_v32 = vpop.f32.mrb[9].mxu0  ;;  %460 = vst.msk [vmem:[#allocation3] sm:$0xff] %vm459_vm1, %v451_v18 }
 0x107   :  { %v253_v36 = vadd.f32 %v2491_v51, %v252_v32  ;;  %v1974_v37 = vpop.f32.mrb[10].mxu0  ;;  %v698_v32 = vadd.f32 1e-07, %v682_v21  ;;  %2271 = vrcp.f32 %v711_v23 }
 0x108   :  { %v264_v38 = vadd.f32 %v1974_v37, %v2491_v51  ;;  %v255_v39 = vpop.f32.mrb[11].mxu0  ;;  %v712_v37 = vmul.f32 %v696_v19, %v696_v19  ;;  %1129 = vperm.xlu1 %2208, %v2260_v29  }
 0x109   :  { %v256_v41 = vadd.f32 %v2491_v51, %v255_v39  ;;  %v714_v56 = vmul.f32 %v698_v32, %v698_v32  ;;  %1134 = vperm.xlu0 %2207, %v2262_v44  }
 0x10a   :  { %v2552_v46 = vpack.c.bf16 %v264_v38, %v261_v31  ;;  %2273 = vrcp.f32 %v712_v37  ;;  %v2266_v0 = vpop.eup %2265 }
 0x10b   :  { %v2554_v48 = vpack.c.bf16 %v256_v41, %v253_v36  ;;  %v713_v41 = vmul.f32 %v697_v24, %v697_v24 }
 0x10c   :  { %1139 = vperm.xlu1 %2208, %v2264_v49  }
 0x10d   :  { %v1977_v57 = vpop.f32.mrb[12].mxu0  ;;  %2275 = vrcp.f32 %v713_v41  ;;  %1144 = vperm.xlu0 %2207, %v2266_v0  }
 0x10e   :  { %v277_v1 = vadd.f32 %v1977_v57, %v2491_v51  ;;  %v268_v2 = vpop.f32.mrb[13].mxu0  ;;  %v2268_v3 = vpop.eup %2267  ;;  %2277 = vrcp.f32 %v714_v56 }
 0x10f   :  { %v269_v8 = vadd.f32 %v2491_v51, %v268_v2  ;;  %v1978_v9 = vpop.f32.mrb[14].mxu0  ;;  %2279 = vrcp.f32 %v715_v63  ;;  %v2270_v12 = vpop.eup %2269 }
 0x110   :  { %v280_v13 = vadd.f32 %v1978_v9, %v2491_v51  ;;  %v271_v14 = vpop.f32.mrb[15].mxu0  ;;  %1149 = vperm.xlu1 %2208, %v2268_v3  }
 0x111   :  { %v272_v17 = vadd.f32 %v2491_v51, %v271_v14  ;;  %v2001_v51 = vpop.f32.mrb[4].mxu1  ;;  %v2272_v15 = vpop.eup %2271  ;;  %1154 = vperm.xlu0 %2207, %v2270_v12  }
 0x112   :  { %v2576_v22 = vpack.c.bf16 %v280_v13, %v277_v1  ;;  %v413_v30 = vadd.f32 %v2001_v51, %v2547_v42  ;;  %v404_v31 = vpop.f32.mrb[5].mxu1 }
 0x113   :  { %v2579_v27 = vpack.c.bf16 %v272_v17, %v269_v8  ;;  %v405_v35 = vadd.f32 %v2547_v42, %v404_v31  ;;  %v2002_v36 = vpop.f32.mrb[6].mxu1 }
 0x114   :  { %v416_v39 = vadd.f32 %v2002_v36, %v2547_v42  ;;  %v407_v40 = vpop.f32.mrb[7].mxu1  ;;  %v2274_v51 = vpop.eup %2273  ;;  %1159 = vperm.xlu1 %2208, %v2272_v15   ;;  %v749_v15 = vld [vmem:[#allocation3 + $0x8] sm:$0xff] }
 0x115   :  { %v2029_v33 = vpop.f32.mrb[16].mxu0  ;;  %v408_v47 = vadd.f32 %v2547_v42, %v407_v40  ;;  %v2005_v2 = vpop.f32.mrb[8].mxu1  ;;  %1164 = vperm.xlu0 %2207, %v2274_v51   ;;  %v2668_v51 = vld [vmem:[%s2872_s8 + $0x28] sm:$0xff]  }
 0x116   :  { %v557_v38 = vpop.f32.mrb[17].mxu0  ;;  %v566_v52 = vadd.f32 %v2029_v33, %v2589_v34  ;;  %v454_v55 = vpack.c.bf16 %v416_v39, %v413_v30  ;;  %v429_v4 = vadd.f32 %v2005_v2, %v2547_v42  ;;  %v420_v5 = vpop.f32.mrb[9].mxu1 }
 0x117   :  { %v2030_v45 = vpop.f32.mrb[18].mxu0  ;;  %v558_v57 = vadd.f32 %v2589_v34, %v557_v38  ;;  %v453_v59 = vpack.c.bf16 %v408_v47, %v405_v35  ;;  %v421_v7 = vadd.f32 %v2547_v42, %v420_v5  ;;  %v2006_v8 = vpop.f32.mrb[10].mxu1 }
 0x118   :  { %v569_v53 = vadd.f32 %v2030_v45, %v2589_v34  ;;  %v560_v54 = vpop.f32.mrb[19].mxu0  ;;  %463 = vst.msk [vmem:[#allocation3 + $0x18] sm:$0xff] %vm459_vm1, %v454_v55  ;;  %v432_v10 = vadd.f32 %v2006_v8, %v2547_v42  ;;  %v423_v11 = vpop.f32.mrb[11].mxu1 }
 0x119   :  { %v561_v58 = vadd.f32 %v2589_v34, %v560_v54  ;;  %462 = vst.msk [vmem:[#allocation3 + $0x10] sm:$0xff] %vm459_vm1, %v453_v59  ;;  %v424_v14 = vadd.f32 %v2547_v42, %v423_v11  ;;  %v2009_v29 = vpop.f32.mrb[12].mxu1  ;;  %v2276_v30 = vpop.eup %2275 }
 0x11a   :  { %v621_v62 = vpack.c.bf16 %v569_v53, %v566_v52  ;;  %v456_v19 = vpack.c.bf16 %v432_v10, %v429_v4  ;;  %v445_v32 = vadd.f32 %v2009_v29, %v2547_v42  ;;  %v436_v33 = vpop.f32.mrb[13].mxu1  ;;  %v2278_v43 = vpop.eup %2277  ;;  %1169 = vperm.xlu1 %2208, %v2276_v30   ;;  %v2244_v29 = vld [vmem:[%s2873_s9 + $0x18] sm:$0xff]  }
 0x11b   :  { %v620_v1 = vpack.c.bf16 %v561_v58, %v558_v57  ;;  %v455_v24 = vpack.c.bf16 %v424_v14, %v421_v7  ;;  %v437_v36 = vadd.f32 %v2547_v42, %v436_v33  ;;  %v2010_v37 = vpop.f32.mrb[14].mxu1  ;;  %v2280_v47 = vpop.eup %2279  ;;  %1174 = vperm.xlu0 %2207, %v2278_v43   ;;  %v2640_v14 = vld [vmem:[%s2872_s8 + $0x10] sm:$0xff]   ;;  %v2686_v33 = vld [vmem:[%s2872_s8 + $0x38] sm:$0xff]  }
 0x11c   :  { %629 = vst.msk [vmem:[#allocation4 + $0x8] sm:$0xff] %vm459_vm1, %v621_v62  ;;  %465 = vst.msk [vmem:[#allocation3 + $0x28] sm:$0xff] %vm459_vm1, %v456_v19  ;;  %v448_v40 = vadd.f32 %v2010_v37, %v2547_v42  ;;  %v439_v41 = vpop.f32.mrb[15].mxu1  ;;  %v2655_v19 = vld [vmem:[%s2872_s8 + $0x20] sm:$0xff]   ;;  %v2247_v37 = vld [vmem:[%s2873_s9 + $0x30] sm:$0xff]  }
 0x11d   :  { %628 = vst.msk [vmem:[#allocation4] sm:$0xff] %vm459_vm1, %v620_v1  ;;  %v2033_v6 = vpop.f32.mrb[20].mxu0  ;;  %464 = vst.msk [vmem:[#allocation3 + $0x20] sm:$0xff] %vm459_vm1, %v455_v24  ;;  %v440_v45 = vadd.f32 %v2547_v42, %v439_v41  ;;  %v2243_v24 = vld [vmem:[%s2873_s9 + $0x10] sm:$0xff]  }
 0x11e   :  { %v573_v9 = vpop.f32.mrb[21].mxu0  ;;  %v582_v16 = vadd.f32 %v2033_v6, %v2589_v34  ;;  %v458_v54 = vpack.c.bf16 %v448_v40, %v445_v32  ;;  %1179 = vperm.xlu1 %2208, %v2280_v47  }
 0x11f   :  { %v2034_v13 = vpop.f32.mrb[22].mxu0  ;;  %v574_v21 = vadd.f32 %v2589_v34, %v573_v9  ;;  %v457_v57 = vpack.c.bf16 %v440_v45, %v437_v36 }
 0x120   :  { %v585_v17 = vadd.f32 %v2034_v13, %v2589_v34  ;;  %v576_v18 = vpop.f32.mrb[23].mxu0  ;;  %467 = vst.msk [vmem:[#allocation3 + $0x38] sm:$0xff] %vm459_vm1, %v458_v54  ;;  %v748_v13 = vld [vmem:[#allocation3] sm:$0xff] }
 0x121   :  { %v577_v23 = vadd.f32 %v2589_v34, %v576_v18  ;;  %466 = vst.msk [vmem:[#allocation3 + $0x30] sm:$0xff] %vm459_vm1, %v457_v57  ;;  %v2650_v18 = vld [vmem:[%s2872_s8 + $0x18] sm:$0xff]  }
 0x122   :  { %v623_v26 = vpack.c.bf16 %v585_v17, %v582_v16  ;;  %v2241_v16 = vld [vmem:[%s2873_s9] sm:$0xff]   ;;  %v750_v17 = vld [vmem:[#allocation3 + $0x10] sm:$0xff] }
 0x123   :  { %v622_v28 = vpack.c.bf16 %v577_v23, %v574_v21  ;;  %v757_v39 = vld [vmem:[#allocation4 + $0x8] sm:$0xff]  ;;  %v751_v23 = vld [vmem:[#allocation3 + $0x18] sm:$0xff] }
 0x124   :  { %631 = vst.msk [vmem:[#allocation4 + $0x18] sm:$0xff] %vm459_vm1, %v623_v26  ;;  %v756_v31 = vld [vmem:[#allocation4] sm:$0xff]  ;;  %v2242_v21 = vld [vmem:[%s2873_s9 + $0x8] sm:$0xff]  }
 0x125   :  { %630 = vst.msk [vmem:[#allocation4 + $0x10] sm:$0xff] %vm459_vm1, %v622_v28  ;;  %v2037_v35 = vpop.f32.mrb[24].mxu0  ;;  %2043 = vmatprep.subr.bf16.mxu1 %v756_v31  ;;  %v752_v26 = vld [vmem:[#allocation3 + $0x20] sm:$0xff]  ;;  %v2673_v28 = vld [vmem:[%s2872_s8 + $0x30] sm:$0xff]   ;;  %v753_v30 = vld [vmem:[#allocation3 + $0x28] sm:$0xff] }
 0x126   :  { %v589_v38 = vpop.f32.mrb[25].mxu0  ;;  %2044 = vmatpush3.bf16.msra.mxu1 %v756_v31  ;;  %v598_v49 = vadd.f32 %v2037_v35, %v2589_v34  ;;  %v2245_v31 = vld [vmem:[%s2873_s9 + $0x20] sm:$0xff]   ;;  %v2246_v35 = vld [vmem:[%s2873_s9 + $0x28] sm:$0xff]  }
 0x127   :  { %v2038_v44 = vpop.f32.mrb[26].mxu0  ;;  %2045 = vmatprep.subr.bf16.mxu1 %v757_v39  ;;  %v590_v55 = vadd.f32 %v2589_v34, %v589_v38  ;;  %v755_v36 = vld [vmem:[#allocation3 + $0x38] sm:$0xff] }
 0x128   :  { %v601_v52 = vadd.f32 %v2038_v44, %v2589_v34  ;;  %v592_v53 = vpop.f32.mrb[27].mxu0  ;;  %v754_v32 = vld [vmem:[#allocation3 + $0x30] sm:$0xff]  ;;  %v2248_v38 = vld [vmem:[%s2873_s9 + $0x38] sm:$0xff]  }
 0x129   :  { %v593_v56 = vadd.f32 %v2589_v34, %v592_v53 }
 0x12a   :  { %v625_v58 = vpack.c.bf16 %v601_v52, %v598_v49  ;;  %2046 = vmatpush3.bf16.msra.mxu1 %v757_v39 }
 0x12b   :  { %v624_v59 = vpack.c.bf16 %v593_v56, %v590_v55  ;;  %v759_v0 = vld [vmem:[#allocation4 + $0x18] sm:$0xff] }
 0x12c   :  { %633 = vst.msk [vmem:[#allocation4 + $0x28] sm:$0xff] %vm459_vm1, %v625_v58  ;;  %v758_v42 = vld [vmem:[#allocation4 + $0x10] sm:$0xff] }
 0x12d   :  { %632 = vst.msk [vmem:[#allocation4 + $0x20] sm:$0xff] %vm459_vm1, %v624_v59  ;;  %v2041_v62 = vpop.f32.mrb[28].mxu0  ;;  %2047 = vmatprep.subr.bf16.mxu1 %v758_v42 }
 0x12e   :  { %v605_v63 = vpop.f32.mrb[29].mxu0  ;;  %2048 = vmatpush3.bf16.msra.mxu1 %v758_v42  ;;  %v614_v2 = vadd.f32 %v2041_v62, %v2589_v34 }
 0x12f   :  { %v2042_v1 = vpop.f32.mrb[30].mxu0  ;;  %2049 = vmatprep.subr.bf16.mxu1 %v759_v0  ;;  %v606_v5 = vadd.f32 %v2589_v34, %v605_v63 }
 0x130   :  { %v617_v3 = vadd.f32 %v2042_v1, %v2589_v34  ;;  %v608_v4 = vpop.f32.mrb[31].mxu0 }
 0x131   :  { %v609_v6 = vadd.f32 %v2589_v34, %v608_v4  ;;  %v2635_v34 = vld [vmem:[%s2872_s8 + $0x8] sm:$0xff]  }
 0x132   :  { %v627_v7 = vpack.c.bf16 %v617_v3, %v614_v2  ;;  %2050 = vmatpush3.bf16.msra.mxu1 %v759_v0 }
 0x133   :  { %v626_v8 = vpack.c.bf16 %v609_v6, %v606_v5  ;;  %v761_v10 = vld [vmem:[#allocation4 + $0x28] sm:$0xff] }
 0x134   :  { %635 = vst.msk [vmem:[#allocation4 + $0x38] sm:$0xff] %vm459_vm1, %v627_v7  ;;  %v760_v9 = vld [vmem:[#allocation4 + $0x20] sm:$0xff] }
 0x135   :  { %634 = vst.msk [vmem:[#allocation4 + $0x30] sm:$0xff] %vm459_vm1, %v626_v8  ;;  %2051 = vmatprep.subr.bf16.mxu1 %v760_v9 }
 0x136   :  { %2052 = vmatpush3.bf16.msra.mxu1 %v760_v9 }
 0x137   :  { %2053 = vmatprep.subr.bf16.mxu1 %v761_v10 }
 0x139   :  { %1478 = vxpose.xlu0.c.b16.start [1/8] %v2241_v16, 128 }
 0x13a   :  { %2054 = vmatpush3.bf16.msra.mxu1 %v761_v10 }
 0x13b   :  { %v763_v12 = vld [vmem:[#allocation4 + $0x38] sm:$0xff] }
 0x13c   :  { %v762_v11 = vld [vmem:[#allocation4 + $0x30] sm:$0xff] }
 0x13d   :  { %2055 = vmatprep.subr.bf16.mxu1 %v762_v11  ;;  %1479 = vxpose.xlu0.c.b16.cont [2/8] %v2242_v21, 128 }
 0x13e   :  { %2056 = vmatpush3.bf16.msra.mxu1 %v762_v11 }
 0x13f   :  { %2057 = vmatprep.subr.bf16.mxu1 %v763_v12 }
 0x141   :  { %1480 = vxpose.xlu0.c.b16.cont [3/8] %v2243_v24, 128 }
 0x142   :  { %2058 = vmatpush3.bf16.msra.mxu1 %v763_v12 }
 0x143   :  { %2075 = vmatprep.subr.bf16.mxu1 %v748_v13 }
 0x145   :  { %2060 = vmatmul.mubr.bf16.vlgmr.msra.gmra.mrb[16].mxu1 %v2635_v34  ;;  %1481 = vxpose.xlu0.c.b16.cont [4/8] %v2244_v29, 128 }
 0x146   :  { %2076 = vmatpush3.bf16.msra.mxu1 %v748_v13  ;;  %2063 = vmatprep.mubr.bf16.mxu1 %v2640_v14 }
 0x147   :  { %2077 = vmatprep.subr.bf16.mxu1 %v749_v15 }
 0x149   :  { %1482 = vxpose.xlu0.c.b16.cont [5/8] %v2245_v31, 128 }
 0x14a   :  { %2078 = vmatpush3.bf16.msra.mxu1 %v749_v15 }
 0x14b   :  { %2079 = vmatprep.subr.bf16.mxu1 %v750_v17 }
 0x14d   :  { %2064 = vmatmul.mubr.bf16.gmra.mrb[20].mxu1 %v2650_v18  ;;  %1483 = vxpose.xlu0.c.b16.cont [6/8] %v2246_v35, 128 }
 0x14e   :  { %2080 = vmatpush3.bf16.msra.mxu1 %v750_v17  ;;  %2067 = vmatprep.mubr.bf16.mxu1 %v2655_v19 }
 0x14f   :  { %2081 = vmatprep.subr.bf16.mxu1 %v751_v23 }
 0x151   :  { %1484 = vxpose.xlu0.c.b16.cont [7/8] %v2247_v37, 128 }
 0x152   :  { %2082 = vmatpush3.bf16.msra.mxu1 %v751_v23 }
 0x153   :  { %2083 = vmatprep.subr.bf16.mxu1 %v752_v26 }
 0x155   :  { %2068 = vmatmul.mubr.bf16.gmra.mrb[24].mxu1 %v2668_v51  ;;  %1485 = vxpose.xlu0.c.b16.end [8/8] %v2248_v38, 128 }
 0x156   :  { %2084 = vmatpush3.bf16.msra.mxu1 %v752_v26  ;;  %2071 = vmatprep.mubr.bf16.mxu1 %v2673_v28 }
 0x157   :  { %2085 = vmatprep.subr.bf16.mxu1 %v753_v30 }
 0x15a   :  { %2086 = vmatpush3.bf16.msra.mxu1 %v753_v30 }
 0x15b   :  { %2087 = vmatprep.subr.bf16.mxu1 %v754_v32 }
 0x15d   :  { %2072 = vmatmul.mubr.bf16.gmra.mrb[28].mxu1 %v2686_v33 }
 0x15e   :  { %2088 = vmatpush3.bf16.msra.mxu1 %v754_v32  ;;  %2091 = vmatprep.mubr.bf16.mxu1 %v2241_v16 }
 0x15f   :  { %2089 = vmatprep.subr.bf16.mxu1 %v755_v36 }
 0x162   :  { %2090 = vmatpush3.bf16.msra.mxu1 %v755_v36 }
 0x165   :  { %2092 = vmatmul.mubr.bf16.vlgmr.msra.gmra.mrb[16].mxu1 %v2242_v21 }
 0x166   :  { %2095 = vmatprep.mubr.bf16.mxu1 %v2243_v24 }
 0x16d   :  { %2096 = vmatmul.mubr.bf16.gmra.mrb[20].mxu1 %v2244_v29 }
 0x16e   :  { %2099 = vmatprep.mubr.bf16.mxu1 %v2245_v31 }
 0x175   :  { %2100 = vmatmul.mubr.bf16.gmra.mrb[24].mxu1 %v2246_v35 }
 0x176   :  { %2103 = vmatprep.mubr.bf16.mxu1 %v2247_v37 }
 0x17a   :  { %v1105_v39 = vpop.permute.xlu0 %1104 }
 0x17d   :  { %2104 = vmatmul.mubr.bf16.gmra.mrb[28].mxu1 %v2248_v38 }
 0x17f   :  { %v1115_v40 = vpop.permute.xlu1 %1114 }
 0x180   :  { %v1110_v41 = vpop.permute.xlu0 %1109 }
 0x183   :  { %v1120_v43 = vpop.permute.xlu1 %1119 }
 0x184   :  { %v1125_v44 = vpop.permute.xlu0 %1124 }
 0x187   :  { %v1130_v45 = vpop.permute.xlu1 %1129 }
 0x188   :  { %v1135_v58 = vpop.permute.xlu0 %1134 }
 0x18b   :  { %v1140_v62 = vpop.permute.xlu1 %1139 }
 0x18c   :  { %v1145_v10 = vpop.permute.xlu0 %1144 }
 0x18f   :  { %v1150_v13 = vpop.permute.xlu1 %1149 }
 0x190   :  { %v1155_v35 = vpop.permute.xlu0 %1154 }
 0x193   :  { %v1160_v38 = vpop.permute.xlu1 %1159 }
 0x238   :  { %v2093_v47 = vpop.f32.mrb[16].mxu1 }
 0x239   :  { %vm1056_vm2 = vcmp.ge.f32.partialorder %v2093_v47, 0.0  ;;  %v1072_v49 = vmul.f32 0.01, %v2093_v47  ;;  %v991_v52 = vpop.f32.mrb[17].mxu1 }
 0x23a   :  { %vm1054_vm3 = vcmp.ge.f32.partialorder %v991_v52, 0.0  ;;  %v1070_v53 = vmul.f32 0.01, %v991_v52  ;;  %v2094_v54 = vpop.f32.mrb[18].mxu1 }
 0x23b   :  { %v1088_v55 = vsel %vm1056_vm2, %v2093_v47, %v1072_v49  ;;  %vm1057_vm4 = vcmp.ge.f32.partialorder %v2094_v54, 0.0  ;;  %v1073_v56 = vmul.f32 0.01, %v2094_v54  ;;  %v994_v57 = vpop.f32.mrb[19].mxu1 }
 0x23c   :  { %v1086_v59 = vsel %vm1054_vm3, %v991_v52, %v1070_v53  ;;  %vm1055_vm5 = vcmp.ge.f32.partialorder %v994_v57, 0.0  ;;  %v1071_v42 = vmul.f32 0.01, %v994_v57  ;;  %v1184_v0 = vmul.f32 %v1115_v40, %v1088_v55 }
 0x23d   :  { %v1089_v63 = vsel %vm1057_vm4, %v2094_v54, %v1073_v56  ;;  %v1182_v3 = vmul.f32 %v1105_v39, %v1086_v59  ;;  %v1165_v56 = vpop.permute.xlu0 %1164 }
 0x23e   :  { %v1185_v1 = vmul.f32 %v1120_v43, %v1089_v63  ;;  %v1087_v2 = vsel %vm1055_vm5, %v994_v57, %v1071_v42  ;;  %v1170_v57 = vpop.permute.xlu1 %1169 }
 0x23f   :  { %v1183_v4 = vmul.f32 %v1110_v41, %v1087_v2 }
 0x240   :  { %v1199_v5 = vpack.c.bf16 %v1185_v1, %v1184_v0  ;;  %v2097_v6 = vpop.f32.mrb[20].mxu1 }
 0x241   :  { %v1198_v7 = vpack.c.bf16 %v1183_v4, %v1182_v3  ;;  %vm1060_vm6 = vcmp.ge.f32.partialorder %v2097_v6, 0.0  ;;  %v1076_v8 = vmul.f32 0.01, %v2097_v6  ;;  %v1007_v9 = vpop.f32.mrb[21].mxu1 }
 0x242   :  { %vm1058_vm7 = vcmp.ge.f32.partialorder %v1007_v9, 0.0  ;;  %v1074_v11 = vmul.f32 0.01, %v1007_v9  ;;  %v2098_v12 = vpop.f32.mrb[22].mxu1 }
 0x243   :  { %v1092_v15 = vsel %vm1060_vm6, %v2097_v6, %v1076_v8  ;;  %vm1061_vm8 = vcmp.ge.f32.partialorder %v2098_v12, 0.0  ;;  %v1077_v16 = vmul.f32 0.01, %v2098_v12  ;;  %v1010_v17 = vpop.f32.mrb[23].mxu1  ;;  %2109 = vmatprep.mubr.msk.bf16.mxu0 %vm459_vm1, %v1198_v7  ;;  %v1175_v8 = vpop.permute.xlu0 %1174 }
 0x244   :  { %v1090_v21 = vsel %vm1058_vm7, %v1007_v9, %v1074_v11  ;;  %vm1059_vm9 = vcmp.ge.f32.partialorder %v1010_v17, 0.0  ;;  %v1075_v23 = vmul.f32 0.01, %v1010_v17  ;;  %2110 = vmatmul.mubr.msk.bf16.vlgmr.msra.gmra.mrb[32].mxu0 %vm459_vm1, %v1199_v5  ;;  %v1188_v26 = vmul.f32 %v1135_v58, %v1092_v15  ;;  %v1180_v9 = vpop.permute.xlu1 %1179 }
 0x245   :  { %v1093_v24 = vsel %vm1061_vm8, %v2098_v12, %v1077_v16  ;;  %2126 = vmatpush3.bf16.msra.mxu0 %v2499_v61  ;;  %v1186_v31 = vmul.f32 %v1125_v44, %v1090_v21 }
 0x246   :  { %v1189_v29 = vmul.f32 %v1140_v62, %v1093_v24  ;;  %v1091_v30 = vsel %vm1059_vm9, %v1010_v17, %v1075_v23  ;;  %2127 = vmatprep.subr.bf16.mxu0 %v2497_v60 }
 0x247   :  { %v1187_v32 = vmul.f32 %v1130_v45, %v1091_v30 }
 0x248   :  { %v1201_v36 = vpack.c.bf16 %v1189_v29, %v1188_v26  ;;  %v2101_v37 = vpop.f32.mrb[24].mxu1 }
 0x249   :  { %v1200_v39 = vpack.c.bf16 %v1187_v32, %v1186_v31  ;;  %vm1064_vm10 = vcmp.ge.f32.partialorder %v2101_v37, 0.0  ;;  %v1080_v40 = vmul.f32 0.01, %v2101_v37  ;;  %2128 = vmatpush3.bf16.msra.mxu0 %v2497_v60  ;;  %v1023_v41 = vpop.f32.mrb[25].mxu1 }
 0x24a   :  { %vm1062_vm11 = vcmp.ge.f32.partialorder %v1023_v41, 0.0  ;;  %v1078_v43 = vmul.f32 0.01, %v1023_v41  ;;  %2129 = vmatprep.subr.bf16.mxu0 %v2529_v25  ;;  %v2102_v61 = vpop.f32.mrb[26].mxu1 }
 0x24b   :  { %v1096_v47 = vsel %vm1064_vm10, %v2101_v37, %v1080_v40  ;;  %vm1065_vm12 = vcmp.ge.f32.partialorder %v2102_v61, 0.0  ;;  %v1081_v49 = vmul.f32 0.01, %v2102_v61  ;;  %v1026_v44 = vpop.f32.mrb[27].mxu1  ;;  %2113 = vmatprep.mubr.msk.bf16.mxu0 %vm459_vm1, %v1200_v39 }
 0x24c   :  { %v1094_v45 = vsel %vm1062_vm11, %v1023_v41, %v1078_v43  ;;  %vm1063_vm13 = vcmp.ge.f32.partialorder %v1026_v44, 0.0  ;;  %v1079_v52 = vmul.f32 0.01, %v1026_v44  ;;  %2114 = vmatmul.mubr.msk.bf16.gmra.mrb[36].mxu0 %vm459_vm1, %v1201_v36  ;;  %v1192_v60 = vmul.f32 %v1155_v35, %v1096_v47 }
 0x24d   :  { %v1097_v53 = vsel %vm1065_vm12, %v2102_v61, %v1081_v49  ;;  %2130 = vmatpush3.bf16.msra.mxu0 %v2529_v25  ;;  %v1190_v58 = vmul.f32 %v1145_v10, %v1094_v45 }
 0x24e   :  { %v1193_v54 = vmul.f32 %v1160_v38, %v1097_v53  ;;  %v1095_v55 = vsel %vm1063_vm13, %v1026_v44, %v1079_v52  ;;  %2131 = vmatprep.subr.bf16.mxu0 %v2524_v20 }
 0x24f   :  { %v1191_v59 = vmul.f32 %v1150_v13, %v1095_v55 }
 0x250   :  { %v1203_v42 = vpack.c.bf16 %v1193_v54, %v1192_v60  ;;  %v2105_v62 = vpop.f32.mrb[28].mxu1 }
 0x251   :  { %v1202_v63 = vpack.c.bf16 %v1191_v59, %v1190_v58  ;;  %vm1068_vm14 = vcmp.ge.f32.partialorder %v2105_v62, 0.0  ;;  %v1084_v0 = vmul.f32 0.01, %v2105_v62  ;;  %2132 = vmatpush3.bf16.msra.mxu0 %v2524_v20  ;;  %v1039_v1 = vpop.f32.mrb[29].mxu1 }
 0x252   :  { %vm1066_vm15 = vcmp.ge.f32.partialorder %v1039_v1, 0.0  ;;  %v1082_v2 = vmul.f32 0.01, %v1039_v1  ;;  %2133 = vmatprep.subr.bf16.mxu0 %v2554_v48  ;;  %v2106_v25 = vpop.f32.mrb[30].mxu1 }
 0x253   :  { %v1100_v3 = vsel %vm1068_vm14, %v2105_v62, %v1084_v0  ;;  %vm1069_vm0 = vcmp.ge.f32.partialorder %v2106_v25, 0.0  ;;  %v1085_v4 = vmul.f32 0.01, %v2106_v25  ;;  %v1042_v5 = vpop.f32.mrb[31].mxu1  ;;  %2117 = vmatprep.mubr.msk.bf16.mxu0 %vm459_vm1, %v1202_v63 }
 0x254   :  { %v1098_v6 = vsel %vm1066_vm15, %v1039_v1, %v1082_v2  ;;  %vm1067_vm2 = vcmp.ge.f32.partialorder %v1042_v5, 0.0  ;;  %v1083_v7 = vmul.f32 0.01, %v1042_v5  ;;  %2118 = vmatmul.mubr.msk.bf16.gmra.mrb[40].mxu0 %vm459_vm1, %v1203_v42  ;;  %v1196_v10 = vmul.f32 %v1175_v8, %v1100_v3 }
 0x255   :  { %v1101_v20 = vsel %vm1069_vm0, %v2106_v25, %v1085_v4  ;;  %2134 = vmatpush3.bf16.msra.mxu0 %v2554_v48  ;;  %v1194_v13 = vmul.f32 %v1165_v56, %v1098_v6 }
 0x256   :  { %v1197_v11 = vmul.f32 %v1180_v9, %v1101_v20  ;;  %v1099_v12 = vsel %vm1067_vm2, %v1042_v5, %v1083_v7  ;;  %2135 = vmatprep.subr.bf16.mxu0 %v2552_v46 }
 0x257   :  { %v1195_v15 = vmul.f32 %v1170_v57, %v1099_v12 }
 0x258   :  { %v1205_v16 = vpack.c.bf16 %v1197_v11, %v1196_v10 }
 0x259   :  { %v1204_v17 = vpack.c.bf16 %v1195_v15, %v1194_v13  ;;  %2136 = vmatpush3.bf16.msra.mxu0 %v2552_v46  ;;  %v1486_v46 = vpop.trf.xlu0 }
 0x25a   :  { %2137 = vmatprep.subr.bf16.mxu0 %v2579_v27  ;;  %2173 = vmatprep.mubr.bf16.mxu1 %v1486_v46 }
 0x25b   :  { %2121 = vmatprep.mubr.msk.bf16.mxu0 %vm459_vm1, %v1204_v17 }
 0x25c   :  { %2122 = vmatmul.mubr.msk.bf16.gmra.mrb[44].mxu0 %vm459_vm1, %v1205_v16 }
 0x25d   :  { %2138 = vmatpush3.bf16.msra.mxu0 %v2579_v27  ;;  %2141 = vmatprep.mubr.bf16.mxu0 %v2485_v50  ;;  %v1487_v25 = vpop.trf.xlu0 }
 0x25e   :  { %2139 = vmatprep.subr.bf16.mxu0 %v2576_v22 }
 0x261   :  { %2140 = vmatpush3.bf16.msra.mxu0 %v2576_v22  ;;  %v1488_v11 = vpop.trf.xlu0 }
 0x264   :  { %2142 = vmatmul.mubr.bf16.vlgmr.msra.gmra.mrb[48].mxu0 %v2635_v34 }
 0x265   :  { %2145 = vmatprep.mubr.bf16.mxu0 %v2640_v14  ;;  %v1489_v12 = vpop.trf.xlu0 }
 0x269   :  { %v1490_v13 = vpop.trf.xlu0 }
 0x26c   :  { %2146 = vmatmul.mubr.bf16.gmra.mrb[52].mxu0 %v2650_v18 }
 0x26d   :  { %2149 = vmatprep.mubr.bf16.mxu0 %v2655_v19  ;;  %v1491_v15 = vpop.trf.xlu0 }
 0x271   :  { %v1492_v16 = vpop.trf.xlu0 }
 0x274   :  { %2150 = vmatmul.mubr.bf16.gmra.mrb[56].mxu0 %v2668_v51 }
 0x275   :  { %2153 = vmatprep.mubr.bf16.mxu0 %v2673_v28  ;;  %v1493_v17 = vpop.trf.xlu0 }
 0x27c   :  { %2154 = vmatmul.mubr.bf16.gmra.mrb[60].mxu0 %v2686_v33 }
 0x317   :  { %v2111_v50 = vpop.f32.mrb[32].mxu0 }
 0x318   :  { %v1270_v48 = vpop.f32.mrb[33].mxu0 }
 0x319   :  { %v2112_v27 = vpop.f32.mrb[34].mxu0 }
 0x31a   :  { %v1273_v22 = vpop.f32.mrb[35].mxu0 }
 0x31f   :  { %v2115_v21 = vpop.f32.mrb[36].mxu0 }
 0x320   :  { %v1286_v34 = vpop.f32.mrb[37].mxu0 }
 0x321   :  { %v2116_v23 = vpop.f32.mrb[38].mxu0 }
 0x322   :  { %v1289_v14 = vpop.f32.mrb[39].mxu0 }
 0x327   :  { %v2119_v24 = vpop.f32.mrb[40].mxu0 }
 0x328   :  { %v1302_v18 = vpop.f32.mrb[41].mxu0 }
 0x329   :  { %v2120_v26 = vpop.f32.mrb[42].mxu0 }
 0x32a   :  { %v1305_v19 = vpop.f32.mrb[43].mxu0 }
 0x32f   :  { %v2123_v29 = vpop.f32.mrb[44].mxu0 }
 0x330   :  { %v1318_v51 = vpop.f32.mrb[45].mxu0 }
 0x331   :  { %v2124_v30 = vpop.f32.mrb[46].mxu0 }
 0x332   :  { %v1321_v28 = vpop.f32.mrb[47].mxu0 }
 0x337   :  { %v2143_v31 = vpop.f32.mrb[48].mxu0 }
 0x338   :  { %v1440_v33 = vmul.f32 %v2143_v31, %v2111_v50  ;;  %v1375_v32 = vpop.f32.mrb[49].mxu0 }
 0x339   :  { %v1438_v35 = vmul.f32 %v1375_v32, %v1270_v48  ;;  %v2144_v36 = vpop.f32.mrb[50].mxu0 }
 0x33a   :  { %v1441_v37 = vmul.f32 %v2144_v36, %v2112_v27  ;;  %v1378_v38 = vpop.f32.mrb[51].mxu0 }
 0x33b   :  { %v1439_v39 = vmul.f32 %v1378_v38, %v1273_v22 }
 0x33c   :  { %v1455_v40 = vpack.c.bf16 %v1441_v37, %v1440_v33 }
 0x33d   :  { %v1454_v41 = vpack.c.bf16 %v1439_v39, %v1438_v35 }
 0x33f   :  { %v2147_v43 = vpop.f32.mrb[52].mxu0  ;;  %2157 = vmatprep.subr.bf16.mxu1 %v1454_v41 }
 0x340   :  { %v1444_v61 = vmul.f32 %v2147_v43, %v2115_v21  ;;  %v1391_v47 = vpop.f32.mrb[53].mxu0  ;;  %2158 = vmatpush3.bf16.msra.mxu1 %v1454_v41 }
 0x341   :  { %v1442_v49 = vmul.f32 %v1391_v47, %v1286_v34  ;;  %v2148_v44 = vpop.f32.mrb[54].mxu0  ;;  %2159 = vmatprep.subr.bf16.mxu1 %v1455_v40 }
 0x342   :  { %v1445_v45 = vmul.f32 %v2148_v44, %v2116_v23  ;;  %v1394_v52 = vpop.f32.mrb[55].mxu0 }
 0x343   :  { %v1443_v53 = vmul.f32 %v1394_v52, %v1289_v14 }
 0x344   :  { %v1457_v60 = vpack.c.bf16 %v1445_v45, %v1444_v61  ;;  %2160 = vmatpush3.bf16.msra.mxu1 %v1455_v40 }
 0x345   :  { %v1456_v54 = vpack.c.bf16 %v1443_v53, %v1442_v49 }
 0x347   :  { %v2151_v55 = vpop.f32.mrb[56].mxu0  ;;  %2161 = vmatprep.subr.bf16.mxu1 %v1456_v54 }
 0x348   :  { %v1448_v56 = vmul.f32 %v2151_v55, %v2119_v24  ;;  %v1407_v57 = vpop.f32.mrb[57].mxu0  ;;  %2162 = vmatpush3.bf16.msra.mxu1 %v1456_v54 }
 0x349   :  { %v1446_v58 = vmul.f32 %v1407_v57, %v1302_v18  ;;  %v2152_v59 = vpop.f32.mrb[58].mxu0  ;;  %2163 = vmatprep.subr.bf16.mxu1 %v1457_v60 }
 0x34a   :  { %v1449_v42 = vmul.f32 %v2152_v59, %v2120_v26  ;;  %v1410_v62 = vpop.f32.mrb[59].mxu0 }
 0x34b   :  { %v1447_v63 = vmul.f32 %v1410_v62, %v1305_v19 }
 0x34c   :  { %v1459_v0 = vpack.c.bf16 %v1449_v42, %v1448_v56  ;;  %2164 = vmatpush3.bf16.msra.mxu1 %v1457_v60 }
 0x34d   :  { %v1458_v1 = vpack.c.bf16 %v1447_v63, %v1446_v58 }
 0x34f   :  { %v2155_v2 = vpop.f32.mrb[60].mxu0  ;;  %2165 = vmatprep.subr.bf16.mxu1 %v1458_v1 }
 0x350   :  { %v1452_v3 = vmul.f32 %v2155_v2, %v2123_v29  ;;  %v1423_v4 = vpop.f32.mrb[61].mxu0  ;;  %2166 = vmatpush3.bf16.msra.mxu1 %v1458_v1 }
 0x351   :  { %v1450_v5 = vmul.f32 %v1423_v4, %v1318_v51  ;;  %v2156_v6 = vpop.f32.mrb[62].mxu0  ;;  %2167 = vmatprep.subr.bf16.mxu1 %v1459_v0 }
 0x352   :  { %v1453_v7 = vmul.f32 %v2156_v6, %v2124_v30  ;;  %v1426_v8 = vpop.f32.mrb[63].mxu0 }
 0x353   :  { %v1451_v9 = vmul.f32 %v1426_v8, %v1321_v28 }
 0x354   :  { %v1461_v20 = vpack.c.bf16 %v1453_v7, %v1452_v3  ;;  %2168 = vmatpush3.bf16.msra.mxu1 %v1459_v0 }
 0x355   :  { %v1460_v10 = vpack.c.bf16 %v1451_v9, %v1450_v5 }
 0x357   :  { %2169 = vmatprep.subr.bf16.mxu1 %v1460_v10 }
 0x358   :  { %2170 = vmatpush3.bf16.msra.mxu1 %v1460_v10 }
 0x359   :  { %2171 = vmatprep.subr.bf16.mxu1 %v1461_v20 }
 0x35c   :  { %2172 = vmatpush3.bf16.msra.mxu1 %v1461_v20 }
 0x35f   :  { %2174 = vmatmul.mubr.bf16.vlgmr.msra.gmra.mrb[32].mxu1 %v1487_v25 }
 0x360   :  { %2177 = vmatprep.mubr.bf16.mxu1 %v1488_v11 }
 0x367   :  { %2178 = vmatmul.mubr.bf16.gmra.mrb[36].mxu1 %v1489_v12 }
 0x368   :  { %2181 = vmatprep.mubr.bf16.mxu1 %v1490_v13 }
 0x36f   :  { %2182 = vmatmul.mubr.bf16.gmra.mrb[40].mxu1 %v1491_v15 }
 0x370   :  { %2185 = vmatprep.mubr.bf16.mxu1 %v1492_v16 }
 0x377   :  { %2186 = vmatmul.mubr.bf16.gmra.mrb[44].mxu1 %v1493_v17 }
 0x432   :  { %v2729_v46 = vpop.f32.mrb[32].mxu1 }
 0x433   :  { %v2731_v50 = vpop.f32.mrb[33].mxu1  ;;  %v1666_v23 = vmul.f32 %v2729_v46, %v2729_v46 }
 0x434   :  { %v2733_v48 = vpop.f32.mrb[34].mxu1  ;;  %v1664_v22 = vmul.f32 %v2731_v50, %v2731_v50 }
 0x435   :  { %v2735_v27 = vpop.f32.mrb[35].mxu1  ;;  %v1667_v18 = vmul.f32 %v2733_v48, %v2733_v48 }
 0x436   :  { %v1642_v21 = vadd.f32 %v2735_v27, %v2731_v50  ;;  %v1665_v34 = vmul.f32 %v2735_v27, %v2735_v27 }
 0x438   :  { %v1643_v14 = vadd.f32 %v2729_v46, %v1642_v21  ;;  %v1680_v24 = vadd.f32 %v1665_v34, %v1664_v22 }
 0x43a   :  { %v1681_v26 = vadd.f32 %v1680_v24, %v1666_v23  ;;  %v2748_v19 = vpop.f32.mrb[36].mxu1  ;;  %v1644_v29 = vadd.f32 %v2733_v48, %v1643_v14 }
 0x43b   :  { %v2751_v51 = vpop.f32.mrb[37].mxu1  ;;  %v1670_v38 = vmul.f32 %v2748_v19, %v2748_v19 }
 0x43c   :  { %v1645_v30 = vadd.f32 %v1644_v29, %v2751_v51  ;;  %v1668_v28 = vmul.f32 %v2751_v51, %v2751_v51  ;;  %v1682_v31 = vadd.f32 %v1681_v26, %v1667_v18  ;;  %v2756_v33 = vpop.f32.mrb[38].mxu1 }
 0x43d   :  { %v2758_v32 = vpop.f32.mrb[39].mxu1  ;;  %v1671_v41 = vmul.f32 %v2756_v33, %v2756_v33 }
 0x43e   :  { %v1683_v35 = vadd.f32 %v1682_v31, %v1668_v28  ;;  %v1646_v36 = vadd.f32 %v1645_v30, %v2758_v32  ;;  %v1669_v37 = vmul.f32 %v2758_v32, %v2758_v32 }
 0x440   :  { %v1647_v39 = vadd.f32 %v2748_v19, %v1646_v36  ;;  %v1684_v40 = vadd.f32 %v1683_v35, %v1669_v37 }
 0x442   :  { %v1685_v43 = vadd.f32 %v1684_v40, %v1670_v38  ;;  %v2768_v61 = vpop.f32.mrb[40].mxu1  ;;  %v1648_v47 = vadd.f32 %v2756_v33, %v1647_v39 }
 0x443   :  { %v2771_v49 = vpop.f32.mrb[41].mxu1  ;;  %v1674_v57 = vmul.f32 %v2768_v61, %v2768_v61 }
 0x444   :  { %v1649_v44 = vadd.f32 %v1648_v47, %v2771_v49  ;;  %v1672_v45 = vmul.f32 %v2771_v49, %v2771_v49  ;;  %v1686_v52 = vadd.f32 %v1685_v43, %v1671_v41  ;;  %v2776_v53 = vpop.f32.mrb[42].mxu1 }
 0x445   :  { %v2778_v60 = vpop.f32.mrb[43].mxu1  ;;  %v1675_v42 = vmul.f32 %v2776_v53, %v2776_v53 }
 0x446   :  { %v1687_v54 = vadd.f32 %v1686_v52, %v1672_v45  ;;  %v1650_v55 = vadd.f32 %v1649_v44, %v2778_v60  ;;  %v1673_v56 = vmul.f32 %v2778_v60, %v2778_v60 }
 0x448   :  { %v1651_v58 = vadd.f32 %v2768_v61, %v1650_v55  ;;  %v1688_v59 = vadd.f32 %v1687_v54, %v1673_v56 }
 0x44a   :  { %v1689_v62 = vadd.f32 %v1688_v59, %v1674_v57  ;;  %v2788_v63 = vpop.f32.mrb[44].mxu1  ;;  %v1652_v0 = vadd.f32 %v2776_v53, %v1651_v58 }
 0x44b   :  { %v2791_v1 = vpop.f32.mrb[45].mxu1  ;;  %v1678_v9 = vmul.f32 %v2788_v63, %v2788_v63 }
 0x44c   :  { %v1653_v2 = vadd.f32 %v1652_v0, %v2791_v1  ;;  %v1676_v25 = vmul.f32 %v2791_v1, %v2791_v1  ;;  %v1690_v3 = vadd.f32 %v1689_v62, %v1675_v42  ;;  %v2796_v4 = vpop.f32.mrb[46].mxu1 }
 0x44d   :  { %v1579_v5 = vpop.f32.mrb[47].mxu1  ;;  %v1679_v11 = vmul.f32 %v2796_v4, %v2796_v4 }
 0x44e   :  { %v1691_v6 = vadd.f32 %v1690_v3, %v1676_v25  ;;  %v1654_v7 = vadd.f32 %v1653_v2, %v1579_v5  ;;  %v1677_v8 = vmul.f32 %v1579_v5, %v1579_v5 }
 0x450   :  { %v1655_v20 = vadd.f32 %v2788_v63, %v1654_v7  ;;  %v1692_v10 = vadd.f32 %v1691_v6, %v1677_v8 }
 0x452   :  { %v1656_v12 = vadd.f32 %v2796_v4, %v1655_v20  ;;  %v1693_v13 = vadd.f32 %v1692_v10, %v1678_v9 }
 0x454   :  { %v1657_v15 = vrot.slane %v1656_v12, 4  ;;  %v1694_v16 = vadd.f32 %v1693_v13, %v1679_v11 }
 0x456   :  { %v1658_v17 = vadd.f32 %v1657_v15, %v1656_v12  ;;  %v1695_v22 = vrot.slane %v1694_v16, 4 }
 0x458   :  { %v1659_v21 = vrot.slane %v1658_v17, 2  ;;  %v1696_v34 = vadd.f32 %v1695_v22, %v1694_v16 }
 0x45a   :  { %v1660_v23 = vadd.f32 %v1659_v21, %v1658_v17  ;;  %v1697_v14 = vrot.slane %v1696_v34, 2 }
 0x45c   :  { %v1661_v24 = vrot.slane %v1660_v23, 1  ;;  %v1698_v18 = vadd.f32 %v1697_v14, %v1696_v34 }
 0x45e   :  { %v1662_v26 = vadd.f32 %v1661_v24, %v1660_v23  ;;  %v1699_v29 = vrot.slane %v1698_v18, 1 }
 0x460   :  { %v1663_v30 = vmul.f32 0.015625, %v1662_v26  ;;  %v1700_v28 = vadd.f32 %v1699_v29, %v1698_v18 }
 0x462   :  { %v1701_v31 = vmul.f32 0.015625, %v1700_v28  ;;  %v1702_v35 = vmul.f32 %v1663_v30, %v1663_v30  ;;  %v1705_v36 = vsub.f32 %v2731_v50, %v1663_v30  ;;  %v1706_v37 = vsub.f32 %v2735_v27, %v1663_v30 }
 0x463   :  { %v1707_v38 = vsub.f32 %v2729_v46, %v1663_v30  ;;  %v1708_v39 = vsub.f32 %v2733_v48, %v1663_v30  ;;  %v1709_v40 = vsub.f32 %v2751_v51, %v1663_v30  ;;  %v1710_v41 = vsub.f32 %v2758_v32, %v1663_v30 }
 0x464   :  { %v1703_v43 = vsub.f32 %v1701_v31, %v1702_v35  ;;  %v1711_v47 = vsub.f32 %v2748_v19, %v1663_v30  ;;  %v1712_v44 = vsub.f32 %v2756_v33, %v1663_v30  ;;  %v1713_v45 = vsub.f32 %v2771_v49, %v1663_v30 }
 0x465   :  { %v1714_v52 = vsub.f32 %v2778_v60, %v1663_v30  ;;  %v1715_v50 = vsub.f32 %v2768_v61, %v1663_v30  ;;  %v1716_v27 = vsub.f32 %v2776_v53, %v1663_v30  ;;  %v1717_v46 = vsub.f32 %v2791_v1, %v1663_v30 }
 0x466   :  { %v1704_v48 = vmax.f32 %v1703_v43, 0.0  ;;  %v1718_v54 = vsub.f32 %v1579_v5, %v1663_v30  ;;  %v1719_v51 = vsub.f32 %v2788_v63, %v1663_v30  ;;  %v1720_v32 = vsub.f32 %v2796_v4, %v1663_v30 }
 0x468   :  { %v1721_v55 = vadd.f32 1e-05, %v1704_v48 }
 0x46a   :  { %2281 = vrsqrt.f32 %v1721_v55 }
 0x474   :  { %v2282_v19 = vpop.eup %2281 }
 0x475   :  { %v1723_v33 = vmul.f32 %v2282_v19, %v1705_v36  ;;  %v1724_v56 = vmul.f32 %v2282_v19, %v1706_v37  ;;  %v1725_v49 = vmul.f32 %v2282_v19, %v1707_v38  ;;  %v1726_v57 = vmul.f32 %v2282_v19, %v1708_v39 }
 0x476   :  { %v1727_v60 = vmul.f32 %v2282_v19, %v1709_v40  ;;  %v1728_v58 = vmul.f32 %v2282_v19, %v1710_v41  ;;  %v1729_v61 = vmul.f32 %v2282_v19, %v1711_v47  ;;  %v1730_v59 = vmul.f32 %v2282_v19, %v1712_v44 }
 0x477   :  { %v1731_v53 = vmul.f32 %v2282_v19, %v1713_v45  ;;  %v1732_v42 = vmul.f32 %v2282_v19, %v1714_v52  ;;  %v1733_v62 = vmul.f32 %v2282_v19, %v1715_v50  ;;  %v1734_v0 = vmul.f32 %v2282_v19, %v1716_v27 }
 0x478   :  { %v1735_v1 = vmul.f32 %v2282_v19, %v1717_v46  ;;  %v1736_v2 = vmul.f32 %v2282_v19, %v1718_v54  ;;  %v1737_v63 = vmul.f32 %v2282_v19, %v1719_v51  ;;  %v1738_v25 = vmul.f32 %v2282_v19, %v1720_v32 }
 0x479   :  { %v1739_v3 = vmax.f32 %v1723_v33, 0.0  ;;  %v1740_v4 = vmax.f32 %v1724_v56, 0.0  ;;  %v1741_v5 = vmax.f32 %v1725_v49, 0.0  ;;  %v1742_v6 = vmax.f32 %v1726_v57, 0.0 }
 0x47a   :  { %v1743_v7 = vmax.f32 %v1727_v60, 0.0  ;;  %v1744_v8 = vmax.f32 %v1728_v58, 0.0  ;;  %v1745_v9 = vmax.f32 %v1729_v61, 0.0  ;;  %v1746_v20 = vmax.f32 %v1730_v59, 0.0 }
 0x47b   :  { %v1747_v10 = vmax.f32 %v1731_v53, 0.0  ;;  %v1748_v11 = vmax.f32 %v1732_v42, 0.0  ;;  %v1749_v12 = vmax.f32 %v1733_v62, 0.0  ;;  %v1750_v13 = vmax.f32 %v1734_v0, 0.0  ;;  %1755 = vst [vmem:[%s2878_s11] sm:$0xff] %v1739_v3  ;;  %1756 = vst [vmem:[%s2878_s11 + $0x8] sm:$0xff] %v1740_v4 }
 0x47c   :  { %1757 = vst [vmem:[%s2878_s11 + $0x10] sm:$0xff] %v1741_v5  ;;  %1758 = vst [vmem:[%s2878_s11 + $0x18] sm:$0xff] %v1742_v6  ;;  %v1751_v15 = vmax.f32 %v1735_v1, 0.0  ;;  %v1752_v16 = vmax.f32 %v1736_v2, 0.0  ;;  %v1753_v17 = vmax.f32 %v1737_v63, 0.0  ;;  %v1754_v22 = vmax.f32 %v1738_v25, 0.0 }
 0x47d   :  { %1759 = vst [vmem:[%s2878_s11 + $0x20] sm:$0xff] %v1743_v7  ;;  %1760 = vst [vmem:[%s2878_s11 + $0x28] sm:$0xff] %v1744_v8 }
 0x47e   :  { %1761 = vst [vmem:[%s2878_s11 + $0x30] sm:$0xff] %v1745_v9  ;;  %1762 = vst [vmem:[%s2878_s11 + $0x38] sm:$0xff] %v1746_v20 }
 0x47f   :  { %1763 = vst [vmem:[%s2878_s11 + $0x40] sm:$0xff] %v1747_v10  ;;  %1764 = vst [vmem:[%s2878_s11 + $0x48] sm:$0xff] %v1748_v11 }
 0x480   :  { %1765 = vst [vmem:[%s2878_s11 + $0x50] sm:$0xff] %v1749_v12  ;;  %1766 = vst [vmem:[%s2878_s11 + $0x58] sm:$0xff] %v1750_v13 }
 0x481   :  { %1767 = vst [vmem:[%s2878_s11 + $0x60] sm:$0xff] %v1751_v15  ;;  %1768 = vst [vmem:[%s2878_s11 + $0x68] sm:$0xff] %v1752_v16 }
 0x482   :  { %1769 = vst [vmem:[%s2878_s11 + $0x70] sm:$0xff] %v1753_v17  ;;  %1770 = vst [vmem:[%s2878_s11 + $0x78] sm:$0xff] %v1754_v22 }

// kernel: gat_forward.10
= control target key start
LH: loop header
LB: loop body
LE: loop exit
PB: predicated region body
PF: predicated region fallthrough
CT: control target
= control target key end

     0   :  { %vm1235_vm0 = vcmask 1043456   ;;  %vm462_vm1 = vcmask 64512   ;;  %s3074_s1 = inlined_call_operand.vmem [shape: bf16[128,128], index: 1, kind: input, shape index: {}]   ;;  %s3075_s0 = inlined_call_operand.vmem [shape: f32[128,128], index: 0, kind: input, shape index: {}]   ;;  %s3076_s4 = inlined_call_operand.vmem [shape: bf16[128,8], index: 4, kind: input, shape index: {}]   ;;  %s3077_s3 = inlined_call_operand.vmem [shape: bf16[128,8], index: 3, kind: input, shape index: {}]   ;;  %s3078_s7 = inlined_call_operand.vmem [shape: bf16[8,128], index: 7, kind: input, shape index: {}]   ;;  %s3079_s9 = inlined_call_operand.vmem [shape: bf16[128,128], index: 9, kind: input, shape index: {}]   ;;  %s3080_s10 = inlined_call_operand.vmem [shape: bf16[128,128], index: 10, kind: input, shape index: {}]   ;;  %s3081_s2 = inlined_call_operand.vmem [shape: f32[1,128], index: 2, kind: input, shape index: {}]   ;;  %s3082_s11 = inlined_call_operand.vmem [shape: f32[128,1], index: 11, kind: input, shape index: {}]   ;;  %s3083_s5 = inlined_call_operand.vmem [shape: f32[1,8], index: 5, kind: input, shape index: {}]   ;;  %s3084_s6 = inlined_call_operand.vmem [shape: f32[1,8], index: 6, kind: input, shape index: {}]   ;;  %s3085_s8 = inlined_call_operand.vmem [shape: f32[128,16], index: 8, kind: input, shape index: {}]   ;;  %s3086_s12 = inlined_call_operand.vmem [shape: f32[128,16], index: 12, kind: output, shape index: {}]  }
   0x1   :  { %v2397_v0 = vld [vmem:[%s3074_s1] sm:$0xff]   ;;  %v2398_v1 = vld [vmem:[%s3074_s1 + $0x8] sm:$0xff]   ;;  %v2399_v2 = vld [vmem:[%s3074_s1 + $0x10] sm:$0xff]  }
   0x2   :  { %2031 = vmatprep.subr.bf16.mxu0 %v2397_v0  ;;  %v2400_v3 = vld [vmem:[%s3074_s1 + $0x18] sm:$0xff]   ;;  %v110_v4 = vld [vmem:[%s3075_s0] sm:$0xff]  ;;  %v111_v5 = vld [vmem:[%s3075_s0 + $0x8] sm:$0xff] }
   0x3   :  { %2032 = vmatpush3.bf16.msra.mxu0 %v2397_v0  ;;  %v2553_v6 = vpack.c.bf16 %v111_v5, %v110_v4  ;;  %v2401_v7 = vld [vmem:[%s3074_s1 + $0x20] sm:$0xff]   ;;  %v2402_v8 = vld [vmem:[%s3074_s1 + $0x28] sm:$0xff]   ;;  %v2403_v9 = vld [vmem:[%s3074_s1 + $0x30] sm:$0xff]  }
   0x4   :  { %2033 = vmatprep.subr.bf16.mxu0 %v2398_v1  ;;  %v2413_v10 = vld [vmem:[%s3077_s3] sm:$0xff]   ;;  %v2414_v11 = vld [vmem:[%s3077_s3 + $0x8] sm:$0xff]   ;;  %v2404_v12 = vld [vmem:[%s3074_s1 + $0x38] sm:$0xff]  }
   0x5   :  { %2047 = vmatprep.mubr.bf16.mxu0 %v2553_v6  ;;  %2079 = vmatprep.mubr.bf16.mxu1 %v2553_v6  ;;  %v112_v13 = vld [vmem:[%s3075_s0 + $0x10] sm:$0xff]  ;;  %v113_v14 = vld [vmem:[%s3075_s0 + $0x18] sm:$0xff]  ;;  %v2405_v15 = vld [vmem:[%s3076_s4] sm:$0xff]  }
   0x6   :  { %2063 = vmatprep.subr.bf16.mxu1 %v2413_v10  ;;  %v2415_v16 = vld [vmem:[%s3077_s3 + $0x10] sm:$0xff]   ;;  %v114_v17 = vld [vmem:[%s3075_s0 + $0x20] sm:$0xff]  ;;  %v115_v18 = vld [vmem:[%s3075_s0 + $0x28] sm:$0xff]  ;;  %v2593_v19 = vpack.c.bf16 %v113_v14, %v112_v13 }
   0x7   :  { %2034 = vmatpush3.bf16.msra.mxu0 %v2398_v1  ;;  %2064 = vmatpush3.bf16.msra.mxu1 %v2413_v10  ;;  %v2416_v20 = vld [vmem:[%s3077_s3 + $0x18] sm:$0xff]   ;;  %v2598_v21 = vpack.c.bf16 %v115_v18, %v114_v17  ;;  %v2406_v22 = vld [vmem:[%s3076_s4 + $0x8] sm:$0xff]   ;;  %v2417_v23 = vld [vmem:[%s3077_s3 + $0x20] sm:$0xff]   ;;  %v2469_v1 = vmov 0  }
   0x8   :  { %2035 = vmatprep.subr.bf16.mxu0 %v2399_v2  ;;  %2065 = vmatprep.subr.bf16.mxu1 %v2414_v11  ;;  %v116_v24 = vld [vmem:[%s3075_s0 + $0x30] sm:$0xff]  ;;  %v117_v25 = vld [vmem:[%s3075_s0 + $0x38] sm:$0xff]  ;;  %v118_v27 = vld [vmem:[%s3075_s0 + $0x40] sm:$0xff] }
   0x9   :  { %v2407_v26 = vld [vmem:[%s3076_s4 + $0x10] sm:$0xff]   ;;  %v119_v28 = vld [vmem:[%s3075_s0 + $0x48] sm:$0xff]  ;;  %v129_v29 = vpack.c.bf16 %v117_v25, %v116_v24  ;;  %v2408_v32 = vld [vmem:[%s3076_s4 + $0x18] sm:$0xff]   ;;  %2395 = vset.pattern.permute.xlu0 %v2469_v1  ;;  %2396 = vset.pattern.permute.xlu1 %v2469_v1 }
   0xa   :  { %v2418_v30 = vld [vmem:[%s3077_s3 + $0x28] sm:$0xff]   ;;  %v130_v31 = vpack.c.bf16 %v119_v28, %v118_v27  ;;  %v2419_v33 = vld [vmem:[%s3077_s3 + $0x30] sm:$0xff]   ;;  %v121_v35 = vld [vmem:[%s3075_s0 + $0x58] sm:$0xff] }
   0xb   :  { %2036 = vmatpush3.bf16.msra.mxu0 %v2399_v2  ;;  %2066 = vmatpush3.bf16.msra.mxu1 %v2414_v11  ;;  %v120_v34 = vld [vmem:[%s3075_s0 + $0x50] sm:$0xff]  ;;  %v2409_v36 = vld [vmem:[%s3076_s4 + $0x20] sm:$0xff]   ;;  %v123_v38 = vld [vmem:[%s3075_s0 + $0x68] sm:$0xff] }
   0xc   :  { %2037 = vmatprep.subr.bf16.mxu0 %v2400_v3  ;;  %2067 = vmatprep.subr.bf16.mxu1 %v2415_v16  ;;  %v122_v37 = vld [vmem:[%s3075_s0 + $0x60] sm:$0xff]  ;;  %v131_v39 = vpack.c.bf16 %v121_v35, %v120_v34  ;;  %v2420_v40 = vld [vmem:[%s3077_s3 + $0x38] sm:$0xff]   ;;  %v2410_v42 = vld [vmem:[%s3076_s4 + $0x28] sm:$0xff]  }
   0xd   :  { %v132_v41 = vpack.c.bf16 %v123_v38, %v122_v37  ;;  %v124_v43 = vld [vmem:[%s3075_s0 + $0x70] sm:$0xff]  ;;  %v125_v44 = vld [vmem:[%s3075_s0 + $0x78] sm:$0xff]  ;;  %v1209_v48 = vld [vmem:[%s3078_s7] sm:$0xf] }
   0xe   :  { %v2411_v45 = vld [vmem:[%s3076_s4 + $0x30] sm:$0xff]   ;;  %v133_v46 = vpack.c.bf16 %v125_v44, %v124_v43  ;;  %v2412_v47 = vld [vmem:[%s3076_s4 + $0x38] sm:$0xff]   ;;  %v1237_v49 = vsel %vm1235_vm0, %v1209_v48, 0  ;;  %v2676_v50 = vld [vmem:[%s3079_s9] sm:$0xff]  }
   0xf   :  { %2038 = vmatpush3.bf16.msra.mxu0 %v2400_v3  ;;  %2068 = vmatpush3.bf16.msra.mxu1 %v2415_v16  ;;  %v2682_v51 = vld [vmem:[%s3081_s2] ss:$0 sm:$0xff]  ;;  %v673_v3 = vld [vmem:[%s3082_s11 + $0x10] sm:$0xff]  ;;  %v672_v4 = vld [vmem:[%s3082_s11 + $0x8] sm:$0xff] }
  0x10   :  { %2039 = vmatprep.subr.bf16.mxu0 %v2401_v7  ;;  %2069 = vmatprep.subr.bf16.mxu1 %v2416_v20  ;;  %v671_v2 = vld [vmem:[%s3082_s11] sm:$0xff]  ;;  %v677_v24 = vld [vmem:[%s3082_s11 + $0x30] sm:$0xff]  ;;  %v680_v35 = vld [vmem:[%s3082_s11 + $0x48] sm:$0xff] }
  0x11   :  { %v675_v14 = vld [vmem:[%s3082_s11 + $0x20] sm:$0xff]  ;;  %v696_v44 = vadd.f32 1e-07, %v680_v35 }
  0x12   :  { %v691_v18 = vadd.f32 1e-07, %v675_v14 }
  0x13   :  { %2040 = vmatpush3.bf16.msra.mxu0 %v2401_v7  ;;  %2070 = vmatpush3.bf16.msra.mxu1 %v2416_v20  ;;  %v687_v7 = vadd.f32 1e-07, %v671_v2 }
  0x14   :  { %2041 = vmatprep.subr.bf16.mxu0 %v2402_v8  ;;  %2071 = vmatprep.subr.bf16.mxu1 %v2417_v23  ;;  %v707_v28 = vmul.f32 %v691_v18, %v691_v18 }
  0x15   :  { %v703_v16 = vmul.f32 %v687_v7, %v687_v7 }
  0x17   :  { %2042 = vmatpush3.bf16.msra.mxu0 %v2402_v8  ;;  %2072 = vmatpush3.bf16.msra.mxu1 %v2417_v23  ;;  %v689_v8 = vadd.f32 1e-07, %v673_v3  ;;  %2437 = vrcp.f32 %v703_v16 }
  0x18   :  { %2043 = vmatprep.subr.bf16.mxu0 %v2403_v9  ;;  %2073 = vmatprep.subr.bf16.mxu1 %v2418_v30 }
  0x19   :  { %v705_v17 = vmul.f32 %v689_v8, %v689_v8 }
  0x1b   :  { %2044 = vmatpush3.bf16.msra.mxu0 %v2403_v9  ;;  %2074 = vmatpush3.bf16.msra.mxu1 %v2418_v30  ;;  %v674_v9 = vld [vmem:[%s3082_s11 + $0x18] sm:$0xff]  ;;  %2439 = vrcp.f32 %v705_v17  ;;  %v679_v30 = vld [vmem:[%s3082_s11 + $0x40] sm:$0xff] }
  0x1c   :  { %2045 = vmatprep.subr.bf16.mxu0 %v2404_v12  ;;  %2075 = vmatprep.subr.bf16.mxu1 %v2419_v33  ;;  %v690_v13 = vadd.f32 1e-07, %v674_v9 }
  0x1f   :  { %2046 = vmatpush3.bf16.msra.mxu0 %v2404_v12  ;;  %2076 = vmatpush3.bf16.msra.mxu1 %v2419_v33  ;;  %v688_v12 = vadd.f32 1e-07, %v672_v4 }
  0x20   :  { %2095 = vmatprep.subr.bf16.mxu0 %v2405_v15  ;;  %2077 = vmatprep.subr.bf16.mxu1 %v2420_v40 }
  0x22   :  { %2048 = vmatmul.mubr.bf16.vlgmr.msra.gmra.mrb[0].mxu0 %v2593_v19 }
  0x23   :  { %2096 = vmatpush3.bf16.msra.mxu0 %v2405_v15  ;;  %2051 = vmatprep.mubr.bf16.mxu0 %v2598_v21 }
  0x24   :  { %2097 = vmatprep.subr.bf16.mxu0 %v2406_v22  ;;  %2078 = vmatpush3.bf16.msra.mxu1 %v2420_v40  ;;  %v695_v40 = vadd.f32 1e-07, %v679_v30 }
  0x27   :  { %2098 = vmatpush3.bf16.msra.mxu0 %v2406_v22  ;;  %2080 = vmatmul.mubr.bf16.vlgmr.msra.gmra.mrb[0].mxu1 %v2593_v19  ;;  %v706_v22 = vmul.f32 %v690_v13, %v690_v13 }
  0x28   :  { %2099 = vmatprep.subr.bf16.mxu0 %v2407_v26  ;;  %2083 = vmatprep.mubr.bf16.mxu1 %v2598_v21 }
  0x2a   :  { %2052 = vmatmul.mubr.bf16.gmra.mrb[4].mxu0 %v129_v29 }
  0x2b   :  { %2100 = vmatpush3.bf16.msra.mxu0 %v2407_v26  ;;  %2055 = vmatprep.mubr.bf16.mxu0 %v130_v31  ;;  %v678_v26 = vld [vmem:[%s3082_s11 + $0x38] sm:$0xff] }
  0x2c   :  { %2101 = vmatprep.subr.bf16.mxu0 %v2408_v32  ;;  %v694_v34 = vadd.f32 1e-07, %v678_v26 }
  0x2f   :  { %2102 = vmatpush3.bf16.msra.mxu0 %v2408_v32  ;;  %2084 = vmatmul.mubr.bf16.gmra.mrb[4].mxu1 %v129_v29 }
  0x30   :  { %2103 = vmatprep.subr.bf16.mxu0 %v2409_v36  ;;  %2087 = vmatprep.mubr.bf16.mxu1 %v130_v31 }
  0x32   :  { %2056 = vmatmul.mubr.bf16.gmra.mrb[8].mxu0 %v131_v39 }
  0x33   :  { %2104 = vmatpush3.bf16.msra.mxu0 %v2409_v36  ;;  %2059 = vmatprep.mubr.bf16.mxu0 %v132_v41 }
  0x34   :  { %2105 = vmatprep.subr.bf16.mxu0 %v2410_v42 }
  0x37   :  { %2106 = vmatpush3.bf16.msra.mxu0 %v2410_v42  ;;  %2088 = vmatmul.mubr.bf16.gmra.mrb[8].mxu1 %v131_v39  ;;  %v2738_v42 = vld [vmem:[%s3083_s5] ss:$0 sm:$0xff] }
  0x38   :  { %2107 = vmatprep.subr.bf16.mxu0 %v2411_v45  ;;  %2091 = vmatprep.mubr.bf16.mxu1 %v132_v41 }
  0x3a   :  { %2060 = vmatmul.mubr.bf16.gmra.mrb[12].mxu0 %v133_v46 }
  0x3b   :  { %2108 = vmatpush3.bf16.msra.mxu0 %v2411_v45  ;;  %2111 = vmatprep.mubr.bf16.mxu0 %v2553_v6  ;;  %v681_v45 = vld [vmem:[%s3082_s11 + $0x50] sm:$0xff] }
  0x3c   :  { %2109 = vmatprep.subr.bf16.mxu0 %v2412_v47 }
  0x3f   :  { %2110 = vmatpush3.bf16.msra.mxu0 %v2412_v47  ;;  %2092 = vmatmul.mubr.bf16.gmra.mrb[12].mxu1 %v133_v46  ;;  %v710_v47 = vmul.f32 %v694_v34, %v694_v34  ;;  %v2780_v34 = vld [vmem:[%s3084_s6] ss:$0 sm:$0xff] }
  0x40   :  { %2393 = vmatprep.subr.msk.bf16.mxu0 %vm1235_vm0, %v1209_v48  ;;  %2143 = vmatprep.mubr.bf16.mxu1 %v2676_v50 }
  0x42   :  { %2112 = vmatmul.mubr.bf16.vlgmr.msra.gmra.mrb[16].mxu0 %v2593_v19  ;;  %v676_v19 = vld [vmem:[%s3082_s11 + $0x28] sm:$0xff] }
  0x43   :  { %2115 = vmatprep.mubr.bf16.mxu0 %v2598_v21  ;;  %2192 = vmatpush3.bf16.msra.mxu0 %v1237_v49  ;;  %v704_v21 = vmul.f32 %v688_v12, %v688_v12  ;;  %v692_v23 = vadd.f32 1e-07, %v676_v19 }
  0x45   :  { %2441 = vrcp.f32 %v704_v21  ;;  %v708_v33 = vmul.f32 %v692_v23, %v692_v23  ;;  %v685_v21 = vld [vmem:[%s3082_s11 + $0x70] sm:$0xff] }
  0x46   :  { %2443 = vrcp.f32 %v706_v22 }
  0x47   :  { %2445 = vrcp.f32 %v707_v28  ;;  %v686_v28 = vld [vmem:[%s3082_s11 + $0x78] sm:$0xff] }
  0x48   :  { %2447 = vrcp.f32 %v708_v33 }
  0x4a   :  { %2116 = vmatmul.mubr.bf16.gmra.mrb[20].mxu0 %v129_v29  ;;  %v693_v29 = vadd.f32 1e-07, %v677_v24 }
  0x4b   :  { %2119 = vmatprep.mubr.bf16.mxu0 %v130_v31 }
  0x4c   :  { %v709_v43 = vmul.f32 %v693_v29, %v693_v29 }
  0x4e   :  { %2449 = vrcp.f32 %v709_v43  ;;  %v702_v43 = vadd.f32 1e-07, %v686_v28 }
  0x4f   :  { %2451 = vrcp.f32 %v710_v47 }
  0x52   :  { %2120 = vmatmul.mubr.bf16.gmra.mrb[24].mxu0 %v131_v39 }
  0x53   :  { %2123 = vmatprep.mubr.bf16.mxu0 %v132_v41 }
  0x5a   :  { %2124 = vmatmul.mubr.bf16.gmra.mrb[28].mxu0 %v133_v46 }
  0xf5   :  { %v2049_v52 = vpop.f32.mrb[0].mxu0 }
  0xf6   :  { %v232_v53 = vadd.f32 %v2049_v52, %v2682_v51  ;;  %v223_v54 = vpop.f32.mrb[1].mxu0  ;;  %v682_v52 = vld [vmem:[%s3082_s11 + $0x58] sm:$0xff] }
  0xf7   :  { %v2050_v55 = vpop.f32.mrb[2].mxu0  ;;  %v224_v58 = vadd.f32 %v2682_v51, %v223_v54 }
  0xf8   :  { %v235_v56 = vadd.f32 %v2050_v55, %v2682_v51  ;;  %v226_v57 = vpop.f32.mrb[3].mxu0  ;;  %v697_v55 = vadd.f32 1e-07, %v681_v45 }
  0xf9   :  { %v227_v59 = vadd.f32 %v2682_v51, %v226_v57 }
  0xfa   :  { %v2688_v60 = vpack.c.bf16 %v235_v56, %v232_v53  ;;  %v2081_v49 = vpop.f32.mrb[0].mxu1  ;;  %v2438_v56 = vpop.eup %2437  ;;  %v713_v16 = vmul.f32 %v697_v55, %v697_v55 }
  0xfb   :  { %v2690_v61 = vpack.c.bf16 %v227_v59, %v224_v58  ;;  %v400_v53 = vadd.f32 %v2081_v49, %v2738_v42  ;;  %v391_v54 = vpop.f32.mrb[1].mxu1  ;;  %1107 = vperm.xlu0 %2395, %v2438_v56  }
  0xfc   :  { %v392_v58 = vadd.f32 %v2738_v42, %v391_v54  ;;  %v2082_v59 = vpop.f32.mrb[2].mxu1 }
  0xfd   :  { %v2053_v62 = vpop.f32.mrb[4].mxu0  ;;  %2209 = vmatprep.subr.bf16.mxu0 %v2690_v61  ;;  %v403_v3 = vadd.f32 %v2082_v59, %v2738_v42  ;;  %v394_v4 = vpop.f32.mrb[3].mxu1 }
  0xfe   :  { %v248_v63 = vadd.f32 %v2053_v62, %v2682_v51  ;;  %v239_v0 = vpop.f32.mrb[5].mxu0  ;;  %v711_v62 = vmul.f32 %v695_v40, %v695_v40 }
  0xff   :  { %v240_v5 = vadd.f32 %v2682_v51, %v239_v0  ;;  %v2054_v6 = vpop.f32.mrb[6].mxu0  ;;  %v2440_v0 = vpop.eup %2439 }
 0x100   :  { %v251_v10 = vadd.f32 %v2054_v6, %v2682_v51  ;;  %v242_v11 = vpop.f32.mrb[7].mxu0  ;;  %v683_v6 = vld [vmem:[%s3082_s11 + $0x60] sm:$0xff]  ;;  %v2442_v7 = vpop.eup %2441  ;;  %1117 = vperm.xlu1 %2396, %v2440_v0   ;;  %2453 = vrcp.f32 %v711_v62 }
 0x101   :  { %v243_v15 = vadd.f32 %v2682_v51, %v242_v11  ;;  %v684_v11 = vld [vmem:[%s3082_s11 + $0x68] sm:$0xff]  ;;  %v2444_v12 = vpop.eup %2443  ;;  %v699_v19 = vadd.f32 1e-07, %v683_v6  ;;  %1112 = vperm.xlu0 %2395, %v2442_v7  }
 0x102   :  { %v2715_v20 = vpack.c.bf16 %v251_v10, %v248_v63  ;;  %v712_v63 = vmul.f32 %v696_v44, %v696_v44  ;;  %v395_v10 = vadd.f32 %v2738_v42, %v394_v4  ;;  %v700_v24 = vadd.f32 1e-07, %v684_v11  ;;  %v2446_v26 = vpop.eup %2445 }
 0x103   :  { %v2720_v25 = vpack.c.bf16 %v243_v15, %v240_v5  ;;  %v698_v5 = vadd.f32 1e-07, %v682_v52  ;;  %v455_v15 = vpack.c.bf16 %v403_v3, %v400_v53  ;;  %v2448_v29 = vpop.eup %2447 }
 0x104   :  { %v454_v18 = vpack.c.bf16 %v395_v10, %v392_v58  ;;  %2455 = vrcp.f32 %v712_v63  ;;  %1122 = vperm.xlu1 %2396, %v2444_v12   ;;  %v2450_v44 = vpop.eup %2449  ;;  %v718_v63 = vmul.f32 %v702_v43, %v702_v43 }
 0x105   :  { %v2057_v27 = vpop.f32.mrb[8].mxu0  ;;  %464 = vst.msk [vmem:[#allocation3 + $0x8] sm:$0xff] %vm462_vm1, %v455_v15  ;;  %v714_v23 = vmul.f32 %v698_v5, %v698_v5  ;;  %2457 = vrcp.f32 %v713_v16  ;;  %1127 = vperm.xlu0 %2395, %v2446_v26   ;;  %v2452_v49 = vpop.eup %2451 }
 0x106   :  { %v264_v31 = vadd.f32 %v2057_v27, %v2682_v51  ;;  %v255_v32 = vpop.f32.mrb[9].mxu0  ;;  %463 = vst.msk [vmem:[#allocation3] sm:$0xff] %vm462_vm1, %v454_v18 }
 0x107   :  { %v256_v36 = vadd.f32 %v2682_v51, %v255_v32  ;;  %v2058_v37 = vpop.f32.mrb[10].mxu0  ;;  %v701_v32 = vadd.f32 1e-07, %v685_v21  ;;  %2459 = vrcp.f32 %v714_v23 }
 0x108   :  { %v267_v38 = vadd.f32 %v2058_v37, %v2682_v51  ;;  %v258_v39 = vpop.f32.mrb[11].mxu0  ;;  %v715_v37 = vmul.f32 %v699_v19, %v699_v19  ;;  %1132 = vperm.xlu1 %2396, %v2448_v29  }
 0x109   :  { %v259_v41 = vadd.f32 %v2682_v51, %v258_v39  ;;  %v717_v56 = vmul.f32 %v701_v32, %v701_v32  ;;  %1137 = vperm.xlu0 %2395, %v2450_v44  }
 0x10a   :  { %v2743_v46 = vpack.c.bf16 %v267_v38, %v264_v31  ;;  %2461 = vrcp.f32 %v715_v37  ;;  %v2454_v0 = vpop.eup %2453 }
 0x10b   :  { %v2745_v48 = vpack.c.bf16 %v259_v41, %v256_v36  ;;  %v716_v41 = vmul.f32 %v700_v24, %v700_v24 }
 0x10c   :  { %1142 = vperm.xlu1 %2396, %v2452_v49  }
 0x10d   :  { %v2061_v57 = vpop.f32.mrb[12].mxu0  ;;  %2463 = vrcp.f32 %v716_v41  ;;  %1147 = vperm.xlu0 %2395, %v2454_v0  }
 0x10e   :  { %v280_v1 = vadd.f32 %v2061_v57, %v2682_v51  ;;  %v271_v2 = vpop.f32.mrb[13].mxu0  ;;  %v2456_v3 = vpop.eup %2455  ;;  %2465 = vrcp.f32 %v717_v56 }
 0x10f   :  { %v272_v8 = vadd.f32 %v2682_v51, %v271_v2  ;;  %v2062_v9 = vpop.f32.mrb[14].mxu0  ;;  %2467 = vrcp.f32 %v718_v63  ;;  %v2458_v12 = vpop.eup %2457 }
 0x110   :  { %v283_v13 = vadd.f32 %v2062_v9, %v2682_v51  ;;  %v274_v14 = vpop.f32.mrb[15].mxu0  ;;  %1152 = vperm.xlu1 %2396, %v2456_v3  }
 0x111   :  { %v275_v17 = vadd.f32 %v2682_v51, %v274_v14  ;;  %v2085_v51 = vpop.f32.mrb[4].mxu1  ;;  %v2460_v15 = vpop.eup %2459  ;;  %1157 = vperm.xlu0 %2395, %v2458_v12  }
 0x112   :  { %v2767_v22 = vpack.c.bf16 %v283_v13, %v280_v1  ;;  %v416_v30 = vadd.f32 %v2085_v51, %v2738_v42  ;;  %v407_v31 = vpop.f32.mrb[5].mxu1 }
 0x113   :  { %v2770_v27 = vpack.c.bf16 %v275_v17, %v272_v8  ;;  %v408_v35 = vadd.f32 %v2738_v42, %v407_v31  ;;  %v2086_v36 = vpop.f32.mrb[6].mxu1 }
 0x114   :  { %v419_v39 = vadd.f32 %v2086_v36, %v2738_v42  ;;  %v410_v40 = vpop.f32.mrb[7].mxu1  ;;  %v2462_v51 = vpop.eup %2461  ;;  %1162 = vperm.xlu1 %2396, %v2460_v15   ;;  %v752_v15 = vld [vmem:[#allocation3 + $0x8] sm:$0xff] }
 0x115   :  { %v2113_v33 = vpop.f32.mrb[16].mxu0  ;;  %v411_v47 = vadd.f32 %v2738_v42, %v410_v40  ;;  %v2089_v2 = vpop.f32.mrb[8].mxu1  ;;  %1167 = vperm.xlu0 %2395, %v2462_v51   ;;  %v2859_v51 = vld [vmem:[%s3079_s9 + $0x28] sm:$0xff]  }
 0x116   :  { %v560_v38 = vpop.f32.mrb[17].mxu0  ;;  %v569_v52 = vadd.f32 %v2113_v33, %v2780_v34  ;;  %v457_v55 = vpack.c.bf16 %v419_v39, %v416_v30  ;;  %v432_v4 = vadd.f32 %v2089_v2, %v2738_v42  ;;  %v423_v5 = vpop.f32.mrb[9].mxu1 }
 0x117   :  { %v2114_v45 = vpop.f32.mrb[18].mxu0  ;;  %v561_v57 = vadd.f32 %v2780_v34, %v560_v38  ;;  %v456_v59 = vpack.c.bf16 %v411_v47, %v408_v35  ;;  %v424_v7 = vadd.f32 %v2738_v42, %v423_v5  ;;  %v2090_v8 = vpop.f32.mrb[10].mxu1 }
 0x118   :  { %v572_v53 = vadd.f32 %v2114_v45, %v2780_v34  ;;  %v563_v54 = vpop.f32.mrb[19].mxu0  ;;  %466 = vst.msk [vmem:[#allocation3 + $0x18] sm:$0xff] %vm462_vm1, %v457_v55  ;;  %v435_v10 = vadd.f32 %v2090_v8, %v2738_v42  ;;  %v426_v11 = vpop.f32.mrb[11].mxu1 }
 0x119   :  { %v564_v58 = vadd.f32 %v2780_v34, %v563_v54  ;;  %465 = vst.msk [vmem:[#allocation3 + $0x10] sm:$0xff] %vm462_vm1, %v456_v59  ;;  %v427_v14 = vadd.f32 %v2738_v42, %v426_v11  ;;  %v2093_v29 = vpop.f32.mrb[12].mxu1  ;;  %v2464_v30 = vpop.eup %2463 }
 0x11a   :  { %v624_v62 = vpack.c.bf16 %v572_v53, %v569_v52  ;;  %v459_v19 = vpack.c.bf16 %v435_v10, %v432_v4  ;;  %v448_v32 = vadd.f32 %v2093_v29, %v2738_v42  ;;  %v439_v33 = vpop.f32.mrb[13].mxu1  ;;  %v2466_v43 = vpop.eup %2465  ;;  %1172 = vperm.xlu1 %2396, %v2464_v30   ;;  %v2432_v29 = vld [vmem:[%s3080_s10 + $0x18] sm:$0xff]  }
 0x11b   :  { %v623_v1 = vpack.c.bf16 %v564_v58, %v561_v57  ;;  %v458_v24 = vpack.c.bf16 %v427_v14, %v424_v7  ;;  %v440_v36 = vadd.f32 %v2738_v42, %v439_v33  ;;  %v2094_v37 = vpop.f32.mrb[14].mxu1  ;;  %v2468_v47 = vpop.eup %2467  ;;  %1177 = vperm.xlu0 %2395, %v2466_v43   ;;  %v2831_v14 = vld [vmem:[%s3079_s9 + $0x10] sm:$0xff]   ;;  %v2877_v33 = vld [vmem:[%s3079_s9 + $0x38] sm:$0xff]  }
 0x11c   :  { %632 = vst.msk [vmem:[#allocation4 + $0x8] sm:$0xff] %vm462_vm1, %v624_v62  ;;  %468 = vst.msk [vmem:[#allocation3 + $0x28] sm:$0xff] %vm462_vm1, %v459_v19  ;;  %v451_v40 = vadd.f32 %v2094_v37, %v2738_v42  ;;  %v442_v41 = vpop.f32.mrb[15].mxu1  ;;  %v2846_v19 = vld [vmem:[%s3079_s9 + $0x20] sm:$0xff]   ;;  %v2435_v37 = vld [vmem:[%s3080_s10 + $0x30] sm:$0xff]  }
 0x11d   :  { %631 = vst.msk [vmem:[#allocation4] sm:$0xff] %vm462_vm1, %v623_v1  ;;  %v2117_v6 = vpop.f32.mrb[20].mxu0  ;;  %467 = vst.msk [vmem:[#allocation3 + $0x20] sm:$0xff] %vm462_vm1, %v458_v24  ;;  %v443_v45 = vadd.f32 %v2738_v42, %v442_v41  ;;  %v2431_v24 = vld [vmem:[%s3080_s10 + $0x10] sm:$0xff]  }
 0x11e   :  { %v576_v9 = vpop.f32.mrb[21].mxu0  ;;  %v585_v16 = vadd.f32 %v2117_v6, %v2780_v34  ;;  %v461_v54 = vpack.c.bf16 %v451_v40, %v448_v32  ;;  %1182 = vperm.xlu1 %2396, %v2468_v47  }
 0x11f   :  { %v2118_v13 = vpop.f32.mrb[22].mxu0  ;;  %v577_v21 = vadd.f32 %v2780_v34, %v576_v9  ;;  %v460_v57 = vpack.c.bf16 %v443_v45, %v440_v36 }
 0x120   :  { %v588_v17 = vadd.f32 %v2118_v13, %v2780_v34  ;;  %v579_v18 = vpop.f32.mrb[23].mxu0  ;;  %470 = vst.msk [vmem:[#allocation3 + $0x38] sm:$0xff] %vm462_vm1, %v461_v54  ;;  %v751_v13 = vld [vmem:[#allocation3] sm:$0xff] }
 0x121   :  { %v580_v23 = vadd.f32 %v2780_v34, %v579_v18  ;;  %469 = vst.msk [vmem:[#allocation3 + $0x30] sm:$0xff] %vm462_vm1, %v460_v57  ;;  %v2841_v18 = vld [vmem:[%s3079_s9 + $0x18] sm:$0xff]  }
 0x122   :  { %v626_v26 = vpack.c.bf16 %v588_v17, %v585_v16  ;;  %v2429_v16 = vld [vmem:[%s3080_s10] sm:$0xff]   ;;  %v753_v17 = vld [vmem:[#allocation3 + $0x10] sm:$0xff] }
 0x123   :  { %v625_v28 = vpack.c.bf16 %v580_v23, %v577_v21  ;;  %v760_v39 = vld [vmem:[#allocation4 + $0x8] sm:$0xff]  ;;  %v754_v23 = vld [vmem:[#allocation3 + $0x18] sm:$0xff] }
 0x124   :  { %634 = vst.msk [vmem:[#allocation4 + $0x18] sm:$0xff] %vm462_vm1, %v626_v26  ;;  %v759_v31 = vld [vmem:[#allocation4] sm:$0xff]  ;;  %v2430_v21 = vld [vmem:[%s3080_s10 + $0x8] sm:$0xff]  }
 0x125   :  { %633 = vst.msk [vmem:[#allocation4 + $0x10] sm:$0xff] %vm462_vm1, %v625_v28  ;;  %v2121_v35 = vpop.f32.mrb[24].mxu0  ;;  %2127 = vmatprep.subr.bf16.mxu1 %v759_v31  ;;  %v755_v26 = vld [vmem:[#allocation3 + $0x20] sm:$0xff]  ;;  %v2864_v28 = vld [vmem:[%s3079_s9 + $0x30] sm:$0xff]   ;;  %v756_v30 = vld [vmem:[#allocation3 + $0x28] sm:$0xff] }
 0x126   :  { %v592_v38 = vpop.f32.mrb[25].mxu0  ;;  %2128 = vmatpush3.bf16.msra.mxu1 %v759_v31  ;;  %v601_v49 = vadd.f32 %v2121_v35, %v2780_v34  ;;  %v2433_v31 = vld [vmem:[%s3080_s10 + $0x20] sm:$0xff]   ;;  %v2434_v35 = vld [vmem:[%s3080_s10 + $0x28] sm:$0xff]  }
 0x127   :  { %v2122_v44 = vpop.f32.mrb[26].mxu0  ;;  %2129 = vmatprep.subr.bf16.mxu1 %v760_v39  ;;  %v593_v55 = vadd.f32 %v2780_v34, %v592_v38  ;;  %v758_v36 = vld [vmem:[#allocation3 + $0x38] sm:$0xff] }
 0x128   :  { %v604_v52 = vadd.f32 %v2122_v44, %v2780_v34  ;;  %v595_v53 = vpop.f32.mrb[27].mxu0  ;;  %v757_v32 = vld [vmem:[#allocation3 + $0x30] sm:$0xff]  ;;  %v2436_v38 = vld [vmem:[%s3080_s10 + $0x38] sm:$0xff]  }
 0x129   :  { %v596_v56 = vadd.f32 %v2780_v34, %v595_v53 }
 0x12a   :  { %v628_v58 = vpack.c.bf16 %v604_v52, %v601_v49  ;;  %2130 = vmatpush3.bf16.msra.mxu1 %v760_v39 }
 0x12b   :  { %v627_v59 = vpack.c.bf16 %v596_v56, %v593_v55  ;;  %v762_v0 = vld [vmem:[#allocation4 + $0x18] sm:$0xff] }
 0x12c   :  { %636 = vst.msk [vmem:[#allocation4 + $0x28] sm:$0xff] %vm462_vm1, %v628_v58  ;;  %v761_v42 = vld [vmem:[#allocation4 + $0x10] sm:$0xff] }
 0x12d   :  { %635 = vst.msk [vmem:[#allocation4 + $0x20] sm:$0xff] %vm462_vm1, %v627_v59  ;;  %v2125_v62 = vpop.f32.mrb[28].mxu0  ;;  %2131 = vmatprep.subr.bf16.mxu1 %v761_v42 }
 0x12e   :  { %v608_v63 = vpop.f32.mrb[29].mxu0  ;;  %2132 = vmatpush3.bf16.msra.mxu1 %v761_v42  ;;  %v617_v2 = vadd.f32 %v2125_v62, %v2780_v34 }
 0x12f   :  { %v2126_v1 = vpop.f32.mrb[30].mxu0  ;;  %2133 = vmatprep.subr.bf16.mxu1 %v762_v0  ;;  %v609_v5 = vadd.f32 %v2780_v34, %v608_v63 }
 0x130   :  { %v620_v3 = vadd.f32 %v2126_v1, %v2780_v34  ;;  %v611_v4 = vpop.f32.mrb[31].mxu0 }
 0x131   :  { %v612_v6 = vadd.f32 %v2780_v34, %v611_v4  ;;  %v2826_v34 = vld [vmem:[%s3079_s9 + $0x8] sm:$0xff]  }
 0x132   :  { %v630_v7 = vpack.c.bf16 %v620_v3, %v617_v2  ;;  %2134 = vmatpush3.bf16.msra.mxu1 %v762_v0 }
 0x133   :  { %v629_v8 = vpack.c.bf16 %v612_v6, %v609_v5  ;;  %v764_v10 = vld [vmem:[#allocation4 + $0x28] sm:$0xff] }
 0x134   :  { %638 = vst.msk [vmem:[#allocation4 + $0x38] sm:$0xff] %vm462_vm1, %v630_v7  ;;  %v763_v9 = vld [vmem:[#allocation4 + $0x20] sm:$0xff] }
 0x135   :  { %637 = vst.msk [vmem:[#allocation4 + $0x30] sm:$0xff] %vm462_vm1, %v629_v8  ;;  %2135 = vmatprep.subr.bf16.mxu1 %v763_v9 }
 0x136   :  { %2136 = vmatpush3.bf16.msra.mxu1 %v763_v9 }
 0x137   :  { %2137 = vmatprep.subr.bf16.mxu1 %v764_v10 }
 0x139   :  { %1481 = vxpose.xlu0.c.b16.start [1/8] %v2429_v16, 128 }
 0x13a   :  { %2138 = vmatpush3.bf16.msra.mxu1 %v764_v10 }
 0x13b   :  { %v766_v12 = vld [vmem:[#allocation4 + $0x38] sm:$0xff] }
 0x13c   :  { %v765_v11 = vld [vmem:[#allocation4 + $0x30] sm:$0xff] }
 0x13d   :  { %2139 = vmatprep.subr.bf16.mxu1 %v765_v11  ;;  %1482 = vxpose.xlu0.c.b16.cont [2/8] %v2430_v21, 128 }
 0x13e   :  { %2140 = vmatpush3.bf16.msra.mxu1 %v765_v11 }
 0x13f   :  { %2141 = vmatprep.subr.bf16.mxu1 %v766_v12 }
 0x141   :  { %1483 = vxpose.xlu0.c.b16.cont [3/8] %v2431_v24, 128 }
 0x142   :  { %2142 = vmatpush3.bf16.msra.mxu1 %v766_v12 }
 0x143   :  { %2159 = vmatprep.subr.bf16.mxu1 %v751_v13 }
 0x145   :  { %2144 = vmatmul.mubr.bf16.vlgmr.msra.gmra.mrb[16].mxu1 %v2826_v34  ;;  %1484 = vxpose.xlu0.c.b16.cont [4/8] %v2432_v29, 128 }
 0x146   :  { %2160 = vmatpush3.bf16.msra.mxu1 %v751_v13  ;;  %2147 = vmatprep.mubr.bf16.mxu1 %v2831_v14 }
 0x147   :  { %2161 = vmatprep.subr.bf16.mxu1 %v752_v15 }
 0x149   :  { %1485 = vxpose.xlu0.c.b16.cont [5/8] %v2433_v31, 128 }
 0x14a   :  { %2162 = vmatpush3.bf16.msra.mxu1 %v752_v15 }
 0x14b   :  { %2163 = vmatprep.subr.bf16.mxu1 %v753_v17 }
 0x14d   :  { %2148 = vmatmul.mubr.bf16.gmra.mrb[20].mxu1 %v2841_v18  ;;  %1486 = vxpose.xlu0.c.b16.cont [6/8] %v2434_v35, 128 }
 0x14e   :  { %2164 = vmatpush3.bf16.msra.mxu1 %v753_v17  ;;  %2151 = vmatprep.mubr.bf16.mxu1 %v2846_v19 }
 0x14f   :  { %2165 = vmatprep.subr.bf16.mxu1 %v754_v23 }
 0x151   :  { %1487 = vxpose.xlu0.c.b16.cont [7/8] %v2435_v37, 128 }
 0x152   :  { %2166 = vmatpush3.bf16.msra.mxu1 %v754_v23 }
 0x153   :  { %2167 = vmatprep.subr.bf16.mxu1 %v755_v26 }
 0x155   :  { %2152 = vmatmul.mubr.bf16.gmra.mrb[24].mxu1 %v2859_v51  ;;  %1488 = vxpose.xlu0.c.b16.end [8/8] %v2436_v38, 128 }
 0x156   :  { %2168 = vmatpush3.bf16.msra.mxu1 %v755_v26  ;;  %2155 = vmatprep.mubr.bf16.mxu1 %v2864_v28 }
 0x157   :  { %2169 = vmatprep.subr.bf16.mxu1 %v756_v30 }
 0x15a   :  { %2170 = vmatpush3.bf16.msra.mxu1 %v756_v30 }
 0x15b   :  { %2171 = vmatprep.subr.bf16.mxu1 %v757_v32 }
 0x15d   :  { %2156 = vmatmul.mubr.bf16.gmra.mrb[28].mxu1 %v2877_v33 }
 0x15e   :  { %2172 = vmatpush3.bf16.msra.mxu1 %v757_v32  ;;  %2175 = vmatprep.mubr.bf16.mxu1 %v2429_v16 }
 0x15f   :  { %2173 = vmatprep.subr.bf16.mxu1 %v758_v36 }
 0x162   :  { %2174 = vmatpush3.bf16.msra.mxu1 %v758_v36 }
 0x165   :  { %2176 = vmatmul.mubr.bf16.vlgmr.msra.gmra.mrb[16].mxu1 %v2430_v21 }
 0x166   :  { %2179 = vmatprep.mubr.bf16.mxu1 %v2431_v24 }
 0x16d   :  { %2180 = vmatmul.mubr.bf16.gmra.mrb[20].mxu1 %v2432_v29 }
 0x16e   :  { %2183 = vmatprep.mubr.bf16.mxu1 %v2433_v31 }
 0x175   :  { %2184 = vmatmul.mubr.bf16.gmra.mrb[24].mxu1 %v2434_v35 }
 0x176   :  { %2187 = vmatprep.mubr.bf16.mxu1 %v2435_v37 }
 0x17a   :  { %v1108_v39 = vpop.permute.xlu0 %1107 }
 0x17d   :  { %2188 = vmatmul.mubr.bf16.gmra.mrb[28].mxu1 %v2436_v38 }
 0x17f   :  { %v1118_v40 = vpop.permute.xlu1 %1117 }
 0x180   :  { %v1113_v41 = vpop.permute.xlu0 %1112 }
 0x183   :  { %v1123_v43 = vpop.permute.xlu1 %1122 }
 0x184   :  { %v1128_v44 = vpop.permute.xlu0 %1127 }
 0x187   :  { %v1133_v45 = vpop.permute.xlu1 %1132 }
 0x188   :  { %v1138_v58 = vpop.permute.xlu0 %1137 }
 0x18b   :  { %v1143_v62 = vpop.permute.xlu1 %1142 }
 0x18c   :  { %v1148_v10 = vpop.permute.xlu0 %1147 }
 0x18f   :  { %v1153_v13 = vpop.permute.xlu1 %1152 }
 0x190   :  { %v1158_v35 = vpop.permute.xlu0 %1157 }
 0x193   :  { %v1163_v38 = vpop.permute.xlu1 %1162 }
 0x238   :  { %v2177_v47 = vpop.f32.mrb[16].mxu1 }
 0x239   :  { %vm1059_vm2 = vcmp.ge.f32.partialorder %v2177_v47, 0.0  ;;  %v1075_v49 = vmul.f32 0.01, %v2177_v47  ;;  %v994_v52 = vpop.f32.mrb[17].mxu1 }
 0x23a   :  { %vm1057_vm3 = vcmp.ge.f32.partialorder %v994_v52, 0.0  ;;  %v1073_v53 = vmul.f32 0.01, %v994_v52  ;;  %v2178_v54 = vpop.f32.mrb[18].mxu1 }
 0x23b   :  { %v1091_v55 = vsel %vm1059_vm2, %v2177_v47, %v1075_v49  ;;  %vm1060_vm4 = vcmp.ge.f32.partialorder %v2178_v54, 0.0  ;;  %v1076_v56 = vmul.f32 0.01, %v2178_v54  ;;  %v997_v57 = vpop.f32.mrb[19].mxu1 }
 0x23c   :  { %v1089_v59 = vsel %vm1057_vm3, %v994_v52, %v1073_v53  ;;  %vm1058_vm5 = vcmp.ge.f32.partialorder %v997_v57, 0.0  ;;  %v1074_v42 = vmul.f32 0.01, %v997_v57  ;;  %v1187_v0 = vmul.f32 %v1118_v40, %v1091_v55 }
 0x23d   :  { %v1092_v63 = vsel %vm1060_vm4, %v2178_v54, %v1076_v56  ;;  %v1185_v3 = vmul.f32 %v1108_v39, %v1089_v59  ;;  %v1168_v56 = vpop.permute.xlu0 %1167 }
 0x23e   :  { %v1188_v1 = vmul.f32 %v1123_v43, %v1092_v63  ;;  %v1090_v2 = vsel %vm1058_vm5, %v997_v57, %v1074_v42  ;;  %v1173_v57 = vpop.permute.xlu1 %1172 }
 0x23f   :  { %v1186_v4 = vmul.f32 %v1113_v41, %v1090_v2 }
 0x240   :  { %v1202_v5 = vpack.c.bf16 %v1188_v1, %v1187_v0  ;;  %v2181_v6 = vpop.f32.mrb[20].mxu1 }
 0x241   :  { %v1201_v7 = vpack.c.bf16 %v1186_v4, %v1185_v3  ;;  %vm1063_vm6 = vcmp.ge.f32.partialorder %v2181_v6, 0.0  ;;  %v1079_v8 = vmul.f32 0.01, %v2181_v6  ;;  %v1010_v9 = vpop.f32.mrb[21].mxu1 }
 0x242   :  { %vm1061_vm7 = vcmp.ge.f32.partialorder %v1010_v9, 0.0  ;;  %v1077_v11 = vmul.f32 0.01, %v1010_v9  ;;  %v2182_v12 = vpop.f32.mrb[22].mxu1 }
 0x243   :  { %v1095_v15 = vsel %vm1063_vm6, %v2181_v6, %v1079_v8  ;;  %vm1064_vm8 = vcmp.ge.f32.partialorder %v2182_v12, 0.0  ;;  %v1080_v16 = vmul.f32 0.01, %v2182_v12  ;;  %v1013_v17 = vpop.f32.mrb[23].mxu1  ;;  %2193 = vmatprep.mubr.msk.bf16.mxu0 %vm462_vm1, %v1201_v7  ;;  %v1178_v8 = vpop.permute.xlu0 %1177 }
 0x244   :  { %v1093_v21 = vsel %vm1061_vm7, %v1010_v9, %v1077_v11  ;;  %vm1062_vm9 = vcmp.ge.f32.partialorder %v1013_v17, 0.0  ;;  %v1078_v23 = vmul.f32 0.01, %v1013_v17  ;;  %2194 = vmatmul.mubr.msk.bf16.vlgmr.msra.gmra.mrb[32].mxu0 %vm462_vm1, %v1202_v5  ;;  %v1191_v26 = vmul.f32 %v1138_v58, %v1095_v15  ;;  %v1183_v9 = vpop.permute.xlu1 %1182 }
 0x245   :  { %v1096_v24 = vsel %vm1064_vm8, %v2182_v12, %v1080_v16  ;;  %2210 = vmatpush3.bf16.msra.mxu0 %v2690_v61  ;;  %v1189_v31 = vmul.f32 %v1128_v44, %v1093_v21 }
 0x246   :  { %v1192_v29 = vmul.f32 %v1143_v62, %v1096_v24  ;;  %v1094_v30 = vsel %vm1062_vm9, %v1013_v17, %v1078_v23  ;;  %2211 = vmatprep.subr.bf16.mxu0 %v2688_v60  ;;  %v1653_v23 = vld [vmem:[%s3085_s8 + $0x40] sm:$0xff]  ;;  %v1654_v24 = vld [vmem:[%s3085_s8 + $0x48] sm:$0xff] }
 0x247   :  { %v1190_v32 = vmul.f32 %v1133_v45, %v1094_v30  ;;  %v1656_v30 = vld [vmem:[%s3085_s8 + $0x58] sm:$0xff] }
 0x248   :  { %v1204_v36 = vpack.c.bf16 %v1192_v29, %v1191_v26  ;;  %v2185_v37 = vpop.f32.mrb[24].mxu1  ;;  %v2965_v26 = vpack.c.bf16 %v1654_v24, %v1653_v23  ;;  %v1655_v29 = vld [vmem:[%s3085_s8 + $0x50] sm:$0xff] }
 0x249   :  { %v1203_v39 = vpack.c.bf16 %v1190_v32, %v1189_v31  ;;  %vm1067_vm10 = vcmp.ge.f32.partialorder %v2185_v37, 0.0  ;;  %v1083_v40 = vmul.f32 0.01, %v2185_v37  ;;  %2212 = vmatpush3.bf16.msra.mxu0 %v2688_v60  ;;  %v1026_v41 = vpop.f32.mrb[25].mxu1  ;;  %v2975_v31 = vpack.c.bf16 %v1656_v30, %v1655_v29  ;;  %v1657_v32 = vld [vmem:[%s3085_s8 + $0x60] sm:$0xff] }
 0x24a   :  { %vm1065_vm11 = vcmp.ge.f32.partialorder %v1026_v41, 0.0  ;;  %v1081_v43 = vmul.f32 0.01, %v1026_v41  ;;  %2213 = vmatprep.subr.bf16.mxu0 %v2720_v25  ;;  %v2186_v61 = vpop.f32.mrb[26].mxu1 }
 0x24b   :  { %v1099_v47 = vsel %vm1067_vm10, %v2185_v37, %v1083_v40  ;;  %vm1068_vm12 = vcmp.ge.f32.partialorder %v2186_v61, 0.0  ;;  %v1084_v49 = vmul.f32 0.01, %v2186_v61  ;;  %v1029_v44 = vpop.f32.mrb[27].mxu1  ;;  %2197 = vmatprep.mubr.msk.bf16.mxu0 %vm462_vm1, %v1203_v39 }
 0x24c   :  { %v1097_v45 = vsel %vm1065_vm11, %v1026_v41, %v1081_v43  ;;  %vm1066_vm13 = vcmp.ge.f32.partialorder %v1029_v44, 0.0  ;;  %v1082_v52 = vmul.f32 0.01, %v1029_v44  ;;  %2198 = vmatmul.mubr.msk.bf16.gmra.mrb[36].mxu0 %vm462_vm1, %v1204_v36  ;;  %v1195_v60 = vmul.f32 %v1158_v35, %v1099_v47  ;;  %v1658_v35 = vld [vmem:[%s3085_s8 + $0x68] sm:$0xff] }
 0x24d   :  { %v1100_v53 = vsel %vm1068_vm12, %v2186_v61, %v1084_v49  ;;  %2214 = vmatpush3.bf16.msra.mxu0 %v2720_v25  ;;  %v1193_v58 = vmul.f32 %v1148_v10, %v1097_v45  ;;  %v2985_v36 = vpack.c.bf16 %v1658_v35, %v1657_v32 }
 0x24e   :  { %v1196_v54 = vmul.f32 %v1163_v38, %v1100_v53  ;;  %v1098_v55 = vsel %vm1066_vm13, %v1029_v44, %v1082_v52  ;;  %2215 = vmatprep.subr.bf16.mxu0 %v2715_v20 }
 0x24f   :  { %v1194_v59 = vmul.f32 %v1153_v13, %v1098_v55 }
 0x250   :  { %v1206_v42 = vpack.c.bf16 %v1196_v54, %v1195_v60  ;;  %v2189_v62 = vpop.f32.mrb[28].mxu1 }
 0x251   :  { %v1205_v63 = vpack.c.bf16 %v1194_v59, %v1193_v58  ;;  %vm1071_vm14 = vcmp.ge.f32.partialorder %v2189_v62, 0.0  ;;  %v1087_v0 = vmul.f32 0.01, %v2189_v62  ;;  %2216 = vmatpush3.bf16.msra.mxu0 %v2715_v20  ;;  %v1042_v1 = vpop.f32.mrb[29].mxu1 }
 0x252   :  { %vm1069_vm15 = vcmp.ge.f32.partialorder %v1042_v1, 0.0  ;;  %v1085_v2 = vmul.f32 0.01, %v1042_v1  ;;  %2217 = vmatprep.subr.bf16.mxu0 %v2745_v48  ;;  %v2190_v25 = vpop.f32.mrb[30].mxu1 }
 0x253   :  { %v1103_v3 = vsel %vm1071_vm14, %v2189_v62, %v1087_v0  ;;  %vm1072_vm0 = vcmp.ge.f32.partialorder %v2190_v25, 0.0  ;;  %v1088_v4 = vmul.f32 0.01, %v2190_v25  ;;  %v1045_v5 = vpop.f32.mrb[31].mxu1  ;;  %2201 = vmatprep.mubr.msk.bf16.mxu0 %vm462_vm1, %v1205_v63 }
 0x254   :  { %v1101_v6 = vsel %vm1069_vm15, %v1042_v1, %v1085_v2  ;;  %vm1070_vm2 = vcmp.ge.f32.partialorder %v1045_v5, 0.0  ;;  %v1086_v7 = vmul.f32 0.01, %v1045_v5  ;;  %2202 = vmatmul.mubr.msk.bf16.gmra.mrb[40].mxu0 %vm462_vm1, %v1206_v42  ;;  %v1199_v10 = vmul.f32 %v1178_v8, %v1103_v3 }
 0x255   :  { %v1104_v20 = vsel %vm1072_vm0, %v2190_v25, %v1088_v4  ;;  %2218 = vmatpush3.bf16.msra.mxu0 %v2745_v48  ;;  %v1197_v13 = vmul.f32 %v1168_v56, %v1101_v6  ;;  %v1646_v48 = vld [vmem:[%s3085_s8 + $0x8] sm:$0xff] }
 0x256   :  { %v1200_v11 = vmul.f32 %v1183_v9, %v1104_v20  ;;  %v1102_v12 = vsel %vm1070_vm2, %v1045_v5, %v1086_v7  ;;  %2219 = vmatprep.subr.bf16.mxu0 %v2743_v46 }
 0x257   :  { %v1198_v15 = vmul.f32 %v1173_v57, %v1102_v12 }
 0x258   :  { %v1208_v16 = vpack.c.bf16 %v1200_v11, %v1199_v10 }
 0x259   :  { %v1207_v17 = vpack.c.bf16 %v1198_v15, %v1197_v13  ;;  %2220 = vmatpush3.bf16.msra.mxu0 %v2743_v46  ;;  %v1489_v46 = vpop.trf.xlu0 }
 0x25a   :  { %2221 = vmatprep.subr.bf16.mxu0 %v2770_v27  ;;  %2257 = vmatprep.mubr.bf16.mxu1 %v1489_v46 }
 0x25b   :  { %2205 = vmatprep.mubr.msk.bf16.mxu0 %vm462_vm1, %v1207_v17 }
 0x25c   :  { %2206 = vmatmul.mubr.msk.bf16.gmra.mrb[44].mxu0 %vm462_vm1, %v1208_v16  ;;  %vm1806_vm1 = vcmask 130048  }
 0x25d   :  { %2222 = vmatpush3.bf16.msra.mxu0 %v2770_v27  ;;  %2225 = vmatprep.mubr.bf16.mxu0 %v2676_v50  ;;  %v1645_v50 = vld [vmem:[%s3085_s8] sm:$0xff] }
 0x25e   :  { %2223 = vmatprep.subr.bf16.mxu0 %v2767_v22  ;;  %v2929_v27 = vpack.c.bf16 %v1646_v48, %v1645_v50 }
 0x261   :  { %2224 = vmatpush3.bf16.msra.mxu0 %v2767_v22  ;;  %v1647_v22 = vld [vmem:[%s3085_s8 + $0x10] sm:$0xff] }
 0x262   :  { %2330 = vmatprep.subr.bf16.mxu0 %v2929_v27 }
 0x264   :  { %2226 = vmatmul.mubr.bf16.vlgmr.msra.gmra.mrb[48].mxu0 %v2826_v34  ;;  %v1648_v34 = vld [vmem:[%s3085_s8 + $0x18] sm:$0xff] }
 0x265   :  { %2229 = vmatprep.mubr.bf16.mxu0 %v2831_v14  ;;  %v2934_v14 = vpack.c.bf16 %v1648_v34, %v1647_v22  ;;  %2332 = vmatpush3.bf16.msra.mxu0 %v2929_v27 }
 0x267   :  { %2334 = vmatprep.subr.bf16.mxu0 %v2934_v14 }
 0x269   :  { %2336 = vmatpush3.bf16.msra.mxu0 %v2934_v14 }
 0x26c   :  { %2230 = vmatmul.mubr.bf16.gmra.mrb[52].mxu0 %v2841_v18  ;;  %v1649_v18 = vld [vmem:[%s3085_s8 + $0x20] sm:$0xff] }
 0x26d   :  { %2233 = vmatprep.mubr.bf16.mxu0 %v2846_v19  ;;  %v1650_v19 = vld [vmem:[%s3085_s8 + $0x28] sm:$0xff] }
 0x274   :  { %2234 = vmatmul.mubr.bf16.gmra.mrb[56].mxu0 %v2859_v51  ;;  %v2945_v51 = vpack.c.bf16 %v1650_v19, %v1649_v18  ;;  %v1490_v18 = vpop.trf.xlu0 }
 0x275   :  { %2237 = vmatprep.mubr.bf16.mxu0 %v2864_v28  ;;  %v1651_v28 = vld [vmem:[%s3085_s8 + $0x30] sm:$0xff] }
 0x276   :  { %2338 = vmatprep.subr.bf16.mxu0 %v2945_v51 }
 0x277   :  { %2340 = vmatpush3.bf16.msra.mxu0 %v2945_v51 }
 0x27c   :  { %2238 = vmatmul.mubr.bf16.gmra.mrb[60].mxu0 %v2877_v33  ;;  %v1652_v33 = vld [vmem:[%s3085_s8 + $0x38] sm:$0xff] }
 0x27d   :  { %v2955_v21 = vpack.c.bf16 %v1652_v33, %v1651_v28 }
 0x27f   :  { %2342 = vmatprep.subr.bf16.mxu0 %v2955_v21 }
 0x280   :  { %2344 = vmatpush3.bf16.msra.mxu0 %v2955_v21 }
 0x281   :  { %2346 = vmatprep.subr.bf16.mxu0 %v2965_v26 }
 0x284   :  { %2348 = vmatpush3.bf16.msra.mxu0 %v2965_v26 }
 0x285   :  { %2350 = vmatprep.subr.bf16.mxu0 %v2975_v31 }
 0x288   :  { %2352 = vmatpush3.bf16.msra.mxu0 %v2975_v31 }
 0x289   :  { %2354 = vmatprep.subr.bf16.mxu0 %v2985_v36 }
 0x28c   :  { %2356 = vmatpush3.bf16.msra.mxu0 %v2985_v36 }
 0x317   :  { %v2195_v37 = vpop.f32.mrb[32].mxu0 }
 0x318   :  { %v1273_v38 = vpop.f32.mrb[33].mxu0 }
 0x319   :  { %v2196_v39 = vpop.f32.mrb[34].mxu0 }
 0x31a   :  { %v1276_v40 = vpop.f32.mrb[35].mxu0 }
 0x31f   :  { %v2199_v41 = vpop.f32.mrb[36].mxu0 }
 0x320   :  { %v1289_v43 = vpop.f32.mrb[37].mxu0 }
 0x321   :  { %v2200_v61 = vpop.f32.mrb[38].mxu0 }
 0x322   :  { %v1292_v47 = vpop.f32.mrb[39].mxu0 }
 0x327   :  { %v2203_v49 = vpop.f32.mrb[40].mxu0 }
 0x328   :  { %v1305_v44 = vpop.f32.mrb[41].mxu0 }
 0x329   :  { %v2204_v45 = vpop.f32.mrb[42].mxu0 }
 0x32a   :  { %v1308_v52 = vpop.f32.mrb[43].mxu0 }
 0x32f   :  { %v2207_v53 = vpop.f32.mrb[44].mxu0 }
 0x330   :  { %v1321_v60 = vpop.f32.mrb[45].mxu0 }
 0x331   :  { %v2208_v54 = vpop.f32.mrb[46].mxu0 }
 0x332   :  { %v1324_v55 = vpop.f32.mrb[47].mxu0 }
 0x337   :  { %v2227_v56 = vpop.f32.mrb[48].mxu0 }
 0x338   :  { %v1443_v57 = vmul.f32 %v2227_v56, %v2195_v37  ;;  %v1378_v58 = vpop.f32.mrb[49].mxu0  ;;  %v1491_v37 = vpop.trf.xlu0 }
 0x339   :  { %v1441_v59 = vmul.f32 %v1378_v58, %v1273_v38  ;;  %v2228_v42 = vpop.f32.mrb[50].mxu0 }
 0x33a   :  { %v1444_v62 = vmul.f32 %v2228_v42, %v2196_v39  ;;  %v1381_v63 = vpop.f32.mrb[51].mxu0 }
 0x33b   :  { %v1442_v0 = vmul.f32 %v1381_v63, %v1276_v40 }
 0x33c   :  { %v1458_v1 = vpack.c.bf16 %v1444_v62, %v1443_v57  ;;  %v1492_v38 = vpop.trf.xlu0 }
 0x33d   :  { %v1457_v2 = vpack.c.bf16 %v1442_v0, %v1441_v59 }
 0x33f   :  { %v2231_v25 = vpop.f32.mrb[52].mxu0  ;;  %2241 = vmatprep.subr.bf16.mxu1 %v1457_v2 }
 0x340   :  { %v1447_v3 = vmul.f32 %v2231_v25, %v2199_v41  ;;  %v1394_v4 = vpop.f32.mrb[53].mxu0  ;;  %2242 = vmatpush3.bf16.msra.mxu1 %v1457_v2  ;;  %v1493_v39 = vpop.trf.xlu0 }
 0x341   :  { %v1445_v5 = vmul.f32 %v1394_v4, %v1289_v43  ;;  %v2232_v6 = vpop.f32.mrb[54].mxu0  ;;  %2243 = vmatprep.subr.bf16.mxu1 %v1458_v1 }
 0x342   :  { %v1448_v7 = vmul.f32 %v2232_v6, %v2200_v61  ;;  %v1397_v8 = vpop.f32.mrb[55].mxu0 }
 0x343   :  { %v1446_v9 = vmul.f32 %v1397_v8, %v1292_v47 }
 0x344   :  { %v1460_v20 = vpack.c.bf16 %v1448_v7, %v1447_v3  ;;  %2244 = vmatpush3.bf16.msra.mxu1 %v1458_v1  ;;  %v1494_v40 = vpop.trf.xlu0 }
 0x345   :  { %v1459_v10 = vpack.c.bf16 %v1446_v9, %v1445_v5 }
 0x347   :  { %v2235_v11 = vpop.f32.mrb[56].mxu0  ;;  %2245 = vmatprep.subr.bf16.mxu1 %v1459_v10 }
 0x348   :  { %v1451_v12 = vmul.f32 %v2235_v11, %v2203_v49  ;;  %v1410_v13 = vpop.f32.mrb[57].mxu0  ;;  %2246 = vmatpush3.bf16.msra.mxu1 %v1459_v10  ;;  %v1495_v41 = vpop.trf.xlu0 }
 0x349   :  { %v1449_v15 = vmul.f32 %v1410_v13, %v1305_v44  ;;  %v2236_v16 = vpop.f32.mrb[58].mxu0  ;;  %2247 = vmatprep.subr.bf16.mxu1 %v1460_v20 }
 0x34a   :  { %v1452_v17 = vmul.f32 %v2236_v16, %v2204_v45  ;;  %v1413_v46 = vpop.f32.mrb[59].mxu0 }
 0x34b   :  { %v1450_v50 = vmul.f32 %v1413_v46, %v1308_v52 }
 0x34c   :  { %v1462_v48 = vpack.c.bf16 %v1452_v17, %v1451_v12  ;;  %2248 = vmatpush3.bf16.msra.mxu1 %v1460_v20 }
 0x34d   :  { %v1461_v22 = vpack.c.bf16 %v1450_v50, %v1449_v15 }
 0x34f   :  { %v2239_v34 = vpop.f32.mrb[60].mxu0  ;;  %2249 = vmatprep.subr.bf16.mxu1 %v1461_v22 }
 0x350   :  { %v1455_v19 = vmul.f32 %v2239_v34, %v2207_v53  ;;  %v1426_v28 = vpop.f32.mrb[61].mxu0  ;;  %2250 = vmatpush3.bf16.msra.mxu1 %v1461_v22 }
 0x351   :  { %v1453_v33 = vmul.f32 %v1426_v28, %v1321_v60  ;;  %v2240_v23 = vpop.f32.mrb[62].mxu0  ;;  %2251 = vmatprep.subr.bf16.mxu1 %v1462_v48 }
 0x352   :  { %v1456_v24 = vmul.f32 %v2240_v23, %v2208_v54  ;;  %v1429_v29 = vpop.f32.mrb[63].mxu0 }
 0x353   :  { %v1454_v30 = vmul.f32 %v1429_v29, %v1324_v55 }
 0x354   :  { %v1464_v32 = vpack.c.bf16 %v1456_v24, %v1455_v19  ;;  %2252 = vmatpush3.bf16.msra.mxu1 %v1462_v48 }
 0x355   :  { %v1463_v35 = vpack.c.bf16 %v1454_v30, %v1453_v33 }
 0x357   :  { %2253 = vmatprep.subr.bf16.mxu1 %v1463_v35 }
 0x358   :  { %2254 = vmatpush3.bf16.msra.mxu1 %v1463_v35 }
 0x359   :  { %2255 = vmatprep.subr.bf16.mxu1 %v1464_v32 }
 0x35c   :  { %2256 = vmatpush3.bf16.msra.mxu1 %v1464_v32 }
 0x35d   :  { %2361 = vmatprep.subr.bf16.mxu1 %v2929_v27 }
 0x35f   :  { %2258 = vmatmul.mubr.bf16.vlgmr.msra.gmra.mrb[32].mxu1 %v1490_v18 }
 0x360   :  { %2261 = vmatprep.mubr.bf16.mxu1 %v1491_v37  ;;  %2369 = vmatpush3.bf16.msra.mxu1 %v2929_v27  ;;  %v1496_v27 = vpop.trf.xlu0 }
 0x361   :  { %2362 = vmatprep.subr.bf16.mxu1 %v2934_v14 }
 0x364   :  { %2370 = vmatpush3.bf16.msra.mxu1 %v2934_v14  ;;  %v1659_v14 = vld [vmem:[%s3085_s8 + $0x70] sm:$0xff] }
 0x365   :  { %2363 = vmatprep.subr.bf16.mxu1 %v2945_v51 }
 0x367   :  { %2262 = vmatmul.mubr.bf16.gmra.mrb[36].mxu1 %v1492_v38 }
 0x368   :  { %2265 = vmatprep.mubr.bf16.mxu1 %v1493_v39  ;;  %2371 = vmatpush3.bf16.msra.mxu1 %v2945_v51  ;;  %v1660_v51 = vld [vmem:[%s3085_s8 + $0x78] sm:$0xff] }
 0x369   :  { %2364 = vmatprep.subr.bf16.mxu1 %v2955_v21 }
 0x36c   :  { %2372 = vmatpush3.bf16.msra.mxu1 %v2955_v21  ;;  %v2357_v21 = vpack.c.bf16 %v1660_v51, %v1659_v14 }
 0x36d   :  { %2365 = vmatprep.subr.bf16.mxu1 %v2965_v26 }
 0x36e   :  { %2358 = vmatprep.subr.bf16.mxu0 %v2357_v21 }
 0x36f   :  { %2266 = vmatmul.mubr.bf16.gmra.mrb[40].mxu1 %v1494_v40  ;;  %2360 = vmatpush3.bf16.msra.mxu0 %v2357_v21 }
 0x370   :  { %2269 = vmatprep.mubr.bf16.mxu1 %v1495_v41  ;;  %2373 = vmatpush3.bf16.msra.mxu1 %v2965_v26 }
 0x371   :  { %2366 = vmatprep.subr.bf16.mxu1 %v2975_v31 }
 0x374   :  { %2374 = vmatpush3.bf16.msra.mxu1 %v2975_v31 }
 0x375   :  { %2367 = vmatprep.subr.bf16.mxu1 %v2985_v36 }
 0x377   :  { %2270 = vmatmul.mubr.bf16.gmra.mrb[44].mxu1 %v1496_v27 }
 0x378   :  { %2375 = vmatpush3.bf16.msra.mxu1 %v2985_v36 }
 0x379   :  { %2368 = vmatprep.subr.bf16.mxu1 %v2357_v21 }
 0x37c   :  { %2376 = vmatpush3.bf16.msra.mxu1 %v2357_v21 }
 0x432   :  { %v2259_v26 = vpop.f32.mrb[32].mxu1 }
 0x433   :  { %v1531_v31 = vpop.f32.mrb[33].mxu1 }
 0x434   :  { %v2260_v43 = vpop.f32.mrb[34].mxu1  ;;  %2305 = vmatprep.mubr.f32.mxu0 %v1531_v31 }
 0x435   :  { %v1534_v61 = vpop.f32.mrb[35].mxu1 }
 0x436   :  { %2306 = vmatmul.mubr.f32.vlgmr.msra.gmra.mrb[64].mxu0 %v1534_v61 }
 0x437   :  { %2308 = vmatprep.mubr.f32.mxu0 %v2259_v26 }
 0x43a   :  { %v2263_v36 = vpop.f32.mrb[36].mxu1  ;;  %2309 = vmatmul.mubr.f32.gmra.mrb[66].mxu0 %v2260_v43 }
 0x43b   :  { %v1547_v47 = vpop.f32.mrb[37].mxu1 }
 0x43c   :  { %v2264_v49 = vpop.f32.mrb[38].mxu1  ;;  %2311 = vmatprep.mubr.f32.mxu0 %v1547_v47 }
 0x43d   :  { %v1550_v44 = vpop.f32.mrb[39].mxu1 }
 0x43e   :  { %2312 = vmatmul.mubr.f32.gmra.mrb[68].mxu0 %v1550_v44 }
 0x43f   :  { %2314 = vmatprep.mubr.f32.mxu0 %v2263_v36 }
 0x442   :  { %v2267_v45 = vpop.f32.mrb[40].mxu1  ;;  %2315 = vmatmul.mubr.f32.gmra.mrb[70].mxu0 %v2264_v49 }
 0x443   :  { %v1563_v52 = vpop.f32.mrb[41].mxu1 }
 0x444   :  { %v2268_v53 = vpop.f32.mrb[42].mxu1  ;;  %2317 = vmatprep.mubr.f32.mxu1 %v1563_v52 }
 0x445   :  { %v1566_v60 = vpop.f32.mrb[43].mxu1 }
 0x446   :  { %2318 = vmatmul.mubr.f32.vlgmr.msra.gmra.mrb[48].mxu1 %v1566_v60 }
 0x447   :  { %2320 = vmatprep.mubr.f32.mxu1 %v2267_v45 }
 0x44a   :  { %v2271_v54 = vpop.f32.mrb[44].mxu1  ;;  %2321 = vmatmul.mubr.f32.gmra.mrb[50].mxu1 %v2268_v53 }
 0x44b   :  { %v1579_v55 = vpop.f32.mrb[45].mxu1 }
 0x44c   :  { %v2272_v56 = vpop.f32.mrb[46].mxu1  ;;  %2323 = vmatprep.mubr.f32.mxu1 %v1579_v55 }
 0x44d   :  { %v1582_v57 = vpop.f32.mrb[47].mxu1 }
 0x44e   :  { %2324 = vmatmul.mubr.f32.gmra.mrb[52].mxu1 %v1582_v57 }
 0x44f   :  { %2326 = vmatprep.mubr.f32.mxu1 %v2271_v54 }
 0x452   :  { %2327 = vmatmul.mubr.f32.gmra.mrb[54].mxu1 %v2272_v56 }
 0x509   :  { %v2307_v58 = vpop.f32.mrb[64].mxu0 }
 0x50a   :  { %1808 = vst.msk [vmem:[%s3086_s12 + $0x8] sm:$0xff] %vm1806_vm1, %v2307_v58  ;;  %v1727_v59 = vpop.f32.mrb[65].mxu0 }
 0x50b   :  { %1807 = vst.msk [vmem:[%s3086_s12] sm:$0xff] %vm1806_vm1, %v1727_v59 }
 0x50d   :  { %v2310_v42 = vpop.f32.mrb[66].mxu0 }
 0x50e   :  { %1810 = vst.msk [vmem:[%s3086_s12 + $0x18] sm:$0xff] %vm1806_vm1, %v2310_v42  ;;  %v1737_v62 = vpop.f32.mrb[67].mxu0 }
 0x50f   :  { %1809 = vst.msk [vmem:[%s3086_s12 + $0x10] sm:$0xff] %vm1806_vm1, %v1737_v62 }
 0x511   :  { %v2313_v63 = vpop.f32.mrb[68].mxu0 }
 0x512   :  { %1812 = vst.msk [vmem:[%s3086_s12 + $0x28] sm:$0xff] %vm1806_vm1, %v2313_v63  ;;  %v1747_v0 = vpop.f32.mrb[69].mxu0 }
 0x513   :  { %1811 = vst.msk [vmem:[%s3086_s12 + $0x20] sm:$0xff] %vm1806_vm1, %v1747_v0 }
 0x515   :  { %v2316_v1 = vpop.f32.mrb[70].mxu0 }
 0x516   :  { %1814 = vst.msk [vmem:[%s3086_s12 + $0x38] sm:$0xff] %vm1806_vm1, %v2316_v1  ;;  %v1757_v2 = vpop.f32.mrb[71].mxu0 }
 0x517   :  { %1813 = vst.msk [vmem:[%s3086_s12 + $0x30] sm:$0xff] %vm1806_vm1, %v1757_v2 }
 0x519   :  { %v2319_v25 = vpop.f32.mrb[48].mxu1 }
 0x51a   :  { %1816 = vst.msk [vmem:[%s3086_s12 + $0x48] sm:$0xff] %vm1806_vm1, %v2319_v25  ;;  %v1767_v3 = vpop.f32.mrb[49].mxu1 }
 0x51b   :  { %1815 = vst.msk [vmem:[%s3086_s12 + $0x40] sm:$0xff] %vm1806_vm1, %v1767_v3 }
 0x51d   :  { %v2322_v4 = vpop.f32.mrb[50].mxu1 }
 0x51e   :  { %1818 = vst.msk [vmem:[%s3086_s12 + $0x58] sm:$0xff] %vm1806_vm1, %v2322_v4  ;;  %v1777_v5 = vpop.f32.mrb[51].mxu1 }
 0x51f   :  { %1817 = vst.msk [vmem:[%s3086_s12 + $0x50] sm:$0xff] %vm1806_vm1, %v1777_v5 }
 0x521   :  { %v2325_v6 = vpop.f32.mrb[52].mxu1 }
 0x522   :  { %1820 = vst.msk [vmem:[%s3086_s12 + $0x68] sm:$0xff] %vm1806_vm1, %v2325_v6  ;;  %v1787_v7 = vpop.f32.mrb[53].mxu1 }
 0x523   :  { %1819 = vst.msk [vmem:[%s3086_s12 + $0x60] sm:$0xff] %vm1806_vm1, %v1787_v7 }
 0x525   :  { %v2328_v8 = vpop.f32.mrb[54].mxu1 }
 0x526   :  { %1822 = vst.msk [vmem:[%s3086_s12 + $0x78] sm:$0xff] %vm1806_vm1, %v2328_v8  ;;  %v1797_v9 = vpop.f32.mrb[55].mxu1 }
 0x527   :  { %1821 = vst.msk [vmem:[%s3086_s12 + $0x70] sm:$0xff] %vm1806_vm1, %v1797_v9 }

// kernel: gat_forward.8
= control target key start
LH: loop header
LB: loop body
LE: loop exit
PB: predicated region body
PF: predicated region fallthrough
CT: control target
= control target key end

     0   :  { %vm1622_vm0 = vcmask 1043456   ;;  %vm462_vm1 = vcmask 64512   ;;  %s4816_s2 = inlined_call_operand.vmem [shape: bf16[128,128], index: 2, kind: input, shape index: {}]   ;;  %s4817_s5 = inlined_call_operand.vmem [shape: bf16[128,8], index: 5, kind: input, shape index: {}]   ;;  %s4818_s0 = inlined_call_operand.vmem [shape: f32[128,128], index: 0, kind: input, shape index: {}]   ;;  %s4819_s4 = inlined_call_operand.vmem [shape: bf16[128,8], index: 4, kind: input, shape index: {}]   ;;  %s4820_s1 = inlined_call_operand.vmem [shape: f32[128,128], index: 1, kind: input, shape index: {}]   ;;  %s4821_s8 = inlined_call_operand.vmem [shape: bf16[8,128], index: 8, kind: input, shape index: {}]   ;;  %s4822_s9 = inlined_call_operand.vmem [shape: bf16[128,128], index: 9, kind: input, shape index: {}]   ;;  %s4823_s10 = inlined_call_operand.vmem [shape: bf16[128,128], index: 10, kind: input, shape index: {}]   ;;  %s4824_s11 = inlined_call_operand.vmem [shape: f32[128,1], index: 11, kind: input, shape index: {}]   ;;  %s4825_s3 = inlined_call_operand.vmem [shape: f32[1,128], index: 3, kind: input, shape index: {}]   ;;  %s4826_s7 = inlined_call_operand.vmem [shape: f32[1,8], index: 7, kind: input, shape index: {}]   ;;  %s4827_s6 = inlined_call_operand.vmem [shape: f32[1,8], index: 6, kind: input, shape index: {}]   ;;  %s4828_s12 = inlined_call_operand.vmem [shape: f32[128,128], index: 12, kind: output, shape index: {}]  }
   0x1   :  { %v3841_v0 = vld [vmem:[%s4816_s2] sm:$0xff]   ;;  %v3852_v2 = vld [vmem:[%s4816_s2 + $0x8] sm:$0xff]   ;;  %v3866_v4 = vld [vmem:[%s4816_s2 + $0x10] sm:$0xff]  }
   0x2   :  { %v3846_v1 = vld [vmem:[%s4817_s5] sm:$0xff]   ;;  %3153 = vmatprep.subr.bf16.mxu1 %v3841_v0  ;;  %v3859_v3 = vld [vmem:[%s4817_s5 + $0x8] sm:$0xff]   ;;  %v3872_v5 = vld [vmem:[%s4817_s5 + $0x10] sm:$0xff]  }
   0x3   :  { %3217 = vmatprep.subr.bf16.mxu0 %v3846_v1  ;;  %3154 = vmatpush3.bf16.msra.mxu1 %v3841_v0  ;;  %v3880_v6 = vld [vmem:[%s4816_s2 + $0x18] sm:$0xff]   ;;  %v3894_v8 = vld [vmem:[%s4816_s2 + $0x20] sm:$0xff]   ;;  %v3908_v10 = vld [vmem:[%s4816_s2 + $0x28] sm:$0xff]  }
   0x4   :  { %3218 = vmatpush3.bf16.msra.mxu0 %v3846_v1  ;;  %3155 = vmatprep.subr.bf16.mxu1 %v3852_v2  ;;  %v3886_v7 = vld [vmem:[%s4817_s5 + $0x18] sm:$0xff]   ;;  %v3900_v9 = vld [vmem:[%s4817_s5 + $0x20] sm:$0xff]   ;;  %v111_v12 = vld [vmem:[%s4818_s0 + $0x8] sm:$0xff] }
   0x5   :  { %3219 = vmatprep.subr.bf16.mxu0 %v3859_v3  ;;  %v110_v11 = vld [vmem:[%s4818_s0] sm:$0xff]  ;;  %v3920_v13 = vld [vmem:[%s4817_s5 + $0x28] sm:$0xff]   ;;  %v3931_v15 = vld [vmem:[%s4816_s2 + $0x30] sm:$0xff]  }
   0x6   :  { %v3922_v14 = vpack.c.bf16 %v111_v12, %v110_v11  ;;  %v3937_v16 = vld [vmem:[%s4817_s5 + $0x30] sm:$0xff]   ;;  %v3946_v17 = vld [vmem:[%s4816_s2 + $0x38] sm:$0xff]   ;;  %v3706_v21 = vld [vmem:[%s4819_s4] sm:$0xff]  }
   0x7   :  { %3156 = vmatpush3.bf16.msra.mxu1 %v3852_v2  ;;  %v3952_v18 = vld [vmem:[%s4817_s5 + $0x38] sm:$0xff]   ;;  %v112_v19 = vld [vmem:[%s4818_s0 + $0x10] sm:$0xff]  ;;  %v114_v22 = vld [vmem:[%s4818_s0 + $0x20] sm:$0xff] }
   0x8   :  { %3220 = vmatpush3.bf16.msra.mxu0 %v3859_v3  ;;  %3157 = vmatprep.subr.bf16.mxu1 %v3866_v4  ;;  %v113_v20 = vld [vmem:[%s4818_s0 + $0x18] sm:$0xff]  ;;  %v115_v23 = vld [vmem:[%s4818_s0 + $0x28] sm:$0xff]  ;;  %v116_v27 = vld [vmem:[%s4818_s0 + $0x30] sm:$0xff] }
   0x9   :  { %3221 = vmatprep.subr.bf16.mxu0 %v3872_v5  ;;  %3169 = vmatprep.mubr.bf16.mxu1 %v3922_v14  ;;  %v3973_v24 = vpack.c.bf16 %v113_v20, %v112_v19  ;;  %v3707_v25 = vld [vmem:[%s4819_s4 + $0x8] sm:$0xff]   ;;  %v3980_v26 = vpack.c.bf16 %v115_v23, %v114_v22  ;;  %v117_v28 = vld [vmem:[%s4818_s0 + $0x38] sm:$0xff]  ;;  %v3708_v29 = vld [vmem:[%s4819_s4 + $0x10] sm:$0xff]  }
   0xa   :  { %3233 = vmatprep.mubr.bf16.mxu0 %v3922_v14  ;;  %v118_v30 = vld [vmem:[%s4818_s0 + $0x40] sm:$0xff]  ;;  %v119_v31 = vld [vmem:[%s4818_s0 + $0x48] sm:$0xff]  ;;  %v4001_v32 = vpack.c.bf16 %v117_v28, %v116_v27  ;;  %v3709_v33 = vld [vmem:[%s4819_s4 + $0x18] sm:$0xff]  }
   0xb   :  { %3158 = vmatpush3.bf16.msra.mxu1 %v3866_v4  ;;  %v4006_v34 = vpack.c.bf16 %v119_v31, %v118_v30  ;;  %v120_v35 = vld [vmem:[%s4818_s0 + $0x50] sm:$0xff]  ;;  %v121_v36 = vld [vmem:[%s4818_s0 + $0x58] sm:$0xff]  ;;  %v3710_v37 = vld [vmem:[%s4819_s4 + $0x20] sm:$0xff]  }
   0xc   :  { %3222 = vmatpush3.bf16.msra.mxu0 %v3872_v5  ;;  %3159 = vmatprep.subr.bf16.mxu1 %v3880_v6  ;;  %v122_v38 = vld [vmem:[%s4818_s0 + $0x60] sm:$0xff]  ;;  %v123_v39 = vld [vmem:[%s4818_s0 + $0x68] sm:$0xff]  ;;  %v4027_v40 = vpack.c.bf16 %v121_v36, %v120_v35  ;;  %v124_v43 = vld [vmem:[%s4818_s0 + $0x70] sm:$0xff] }
   0xd   :  { %3223 = vmatprep.subr.bf16.mxu0 %v3886_v7  ;;  %v3711_v41 = vld [vmem:[%s4819_s4 + $0x28] sm:$0xff]   ;;  %v4032_v42 = vpack.c.bf16 %v123_v39, %v122_v38  ;;  %v125_v44 = vld [vmem:[%s4818_s0 + $0x78] sm:$0xff]  ;;  %v3712_v45 = vld [vmem:[%s4819_s4 + $0x30] sm:$0xff]  }
   0xe   :  { %v4047_v46 = vpack.c.bf16 %v125_v44, %v124_v43  ;;  %v3713_v47 = vld [vmem:[%s4819_s4 + $0x38] sm:$0xff]   ;;  %v639_v48 = vld [vmem:[%s4820_s1] sm:$0xff]  ;;  %v640_v49 = vld [vmem:[%s4820_s1 + $0x8] sm:$0xff] }
   0xf   :  { %3160 = vmatpush3.bf16.msra.mxu1 %v3880_v6  ;;  %v4060_v50 = vpack.c.bf16 %v640_v49, %v639_v48  ;;  %v641_v51 = vld [vmem:[%s4820_s1 + $0x10] sm:$0xff]  ;;  %v642_v52 = vld [vmem:[%s4820_s1 + $0x18] sm:$0xff]  ;;  %v643_v53 = vld [vmem:[%s4820_s1 + $0x20] sm:$0xff] }
  0x10   :  { %3224 = vmatpush3.bf16.msra.mxu0 %v3886_v7  ;;  %3161 = vmatprep.subr.bf16.mxu1 %v3894_v8  ;;  %v644_v54 = vld [vmem:[%s4820_s1 + $0x28] sm:$0xff]  ;;  %v4078_v55 = vpack.c.bf16 %v642_v52, %v641_v51  ;;  %v645_v57 = vld [vmem:[%s4820_s1 + $0x30] sm:$0xff]  ;;  %v646_v58 = vld [vmem:[%s4820_s1 + $0x38] sm:$0xff] }
  0x11   :  { %3225 = vmatprep.subr.bf16.mxu0 %v3900_v9  ;;  %v4082_v56 = vpack.c.bf16 %v644_v54, %v643_v53  ;;  %v647_v59 = vld [vmem:[%s4820_s1 + $0x40] sm:$0xff]  ;;  %v648_v60 = vld [vmem:[%s4820_s1 + $0x48] sm:$0xff]  ;;  %v4102_v61 = vpack.c.bf16 %v646_v58, %v645_v57  ;;  %v649_v63 = vld [vmem:[%s4820_s1 + $0x50] sm:$0xff] }
  0x12   :  { %v659_v62 = vpack.c.bf16 %v648_v60, %v647_v59  ;;  %v653_v12 = vld [vmem:[%s4820_s1 + $0x70] sm:$0xff]  ;;  %v1062_v19 = vld [vmem:[%s4824_s11 + $0x20] sm:$0xff]  ;;  %v1063_v20 = vld [vmem:[%s4824_s11 + $0x28] sm:$0xff] }
  0x13   :  { %3162 = vmatpush3.bf16.msra.mxu1 %v3894_v8  ;;  %v1064_v27 = vld [vmem:[%s4824_s11 + $0x30] sm:$0xff]  ;;  %v1067_v35 = vld [vmem:[%s4824_s11 + $0x48] sm:$0xff]  ;;  %v1070_v48 = vld [vmem:[%s4824_s11 + $0x60] sm:$0xff] }
  0x14   :  { %3226 = vmatpush3.bf16.msra.mxu0 %v3900_v9  ;;  %3163 = vmatprep.subr.bf16.mxu1 %v3908_v10  ;;  %v1080_v31 = vadd.f32 1e-07, %v1064_v27  ;;  %v1083_v39 = vadd.f32 1e-07, %v1067_v35  ;;  %v1072_v52 = vld [vmem:[%s4824_s11 + $0x70] sm:$0xff]  ;;  %v1073_v59 = vld [vmem:[%s4824_s11 + $0x78] sm:$0xff] }
  0x15   :  { %3227 = vmatprep.subr.bf16.mxu0 %v3920_v13  ;;  %v1086_v54 = vadd.f32 1e-07, %v1070_v48  ;;  %v1088_v58 = vadd.f32 1e-07, %v1072_v52 }
  0x16   :  { %v1096_v36 = vmul.f32 %v1080_v31, %v1080_v31 }
  0x17   :  { %3164 = vmatpush3.bf16.msra.mxu1 %v3908_v10 }
  0x18   :  { %3228 = vmatpush3.bf16.msra.mxu0 %v3920_v13  ;;  %3165 = vmatprep.subr.bf16.mxu1 %v3931_v15 }
  0x19   :  { %3229 = vmatprep.subr.bf16.mxu0 %v3937_v16 }
  0x1b   :  { %3166 = vmatpush3.bf16.msra.mxu1 %v3931_v15 }
  0x1c   :  { %3230 = vmatpush3.bf16.msra.mxu0 %v3937_v16  ;;  %3167 = vmatprep.subr.bf16.mxu1 %v3946_v17 }
  0x1d   :  { %3231 = vmatprep.subr.bf16.mxu0 %v3952_v18 }
  0x1f   :  { %3168 = vmatpush3.bf16.msra.mxu1 %v3946_v17 }
  0x20   :  { %3232 = vmatpush3.bf16.msra.mxu0 %v3952_v18  ;;  %3185 = vmatprep.subr.bf16.mxu1 %v3706_v21 }
  0x21   :  { %3281 = vmatprep.subr.bf16.mxu0 %v3706_v21 }
  0x22   :  { %3170 = vmatmul.mubr.bf16.vlgmr.msra.gmra.mrb[0].mxu1 %v3973_v24 }
  0x23   :  { %3234 = vmatmul.mubr.bf16.vlgmr.msra.gmra.mrb[0].mxu0 %v3973_v24  ;;  %3186 = vmatpush3.bf16.msra.mxu1 %v3706_v21 }
  0x24   :  { %3187 = vmatprep.subr.bf16.mxu1 %v3707_v25  ;;  %3173 = vmatprep.mubr.bf16.mxu1 %v3980_v26 }
  0x25   :  { %3237 = vmatprep.mubr.bf16.mxu0 %v3980_v26  ;;  %3282 = vmatpush3.bf16.msra.mxu0 %v3706_v21 }
  0x26   :  { %3283 = vmatprep.subr.bf16.mxu0 %v3707_v25 }
  0x27   :  { %3188 = vmatpush3.bf16.msra.mxu1 %v3707_v25 }
  0x28   :  { %3189 = vmatprep.subr.bf16.mxu1 %v3708_v29 }
  0x29   :  { %3284 = vmatpush3.bf16.msra.mxu0 %v3707_v25  ;;  %v1078_v25 = vadd.f32 1e-07, %v1062_v19 }
  0x2a   :  { %3174 = vmatmul.mubr.bf16.gmra.mrb[4].mxu1 %v4001_v32  ;;  %3285 = vmatprep.subr.bf16.mxu0 %v3708_v29 }
  0x2b   :  { %3238 = vmatmul.mubr.bf16.gmra.mrb[4].mxu0 %v4001_v32  ;;  %3190 = vmatpush3.bf16.msra.mxu1 %v3708_v29  ;;  %v1094_v30 = vmul.f32 %v1078_v25, %v1078_v25 }
  0x2c   :  { %3191 = vmatprep.subr.bf16.mxu1 %v3709_v33  ;;  %3177 = vmatprep.mubr.bf16.mxu1 %v4006_v34 }
  0x2d   :  { %3241 = vmatprep.mubr.bf16.mxu0 %v4006_v34  ;;  %3286 = vmatpush3.bf16.msra.mxu0 %v3708_v29  ;;  %v1065_v29 = vld [vmem:[%s4824_s11 + $0x38] sm:$0xff] }
  0x2e   :  { %3287 = vmatprep.subr.bf16.mxu0 %v3709_v33 }
  0x2f   :  { %3192 = vmatpush3.bf16.msra.mxu1 %v3709_v33 }
  0x30   :  { %3193 = vmatprep.subr.bf16.mxu1 %v3710_v37 }
  0x31   :  { %3288 = vmatpush3.bf16.msra.mxu0 %v3709_v33  ;;  %v1081_v33 = vadd.f32 1e-07, %v1065_v29 }
  0x32   :  { %3178 = vmatmul.mubr.bf16.gmra.mrb[8].mxu1 %v4027_v40  ;;  %3289 = vmatprep.subr.bf16.mxu0 %v3710_v37 }
  0x33   :  { %3242 = vmatmul.mubr.bf16.gmra.mrb[8].mxu0 %v4027_v40  ;;  %3194 = vmatpush3.bf16.msra.mxu1 %v3710_v37  ;;  %v1097_v38 = vmul.f32 %v1081_v33, %v1081_v33 }
  0x34   :  { %3195 = vmatprep.subr.bf16.mxu1 %v3711_v41  ;;  %3181 = vmatprep.mubr.bf16.mxu1 %v4032_v42 }
  0x35   :  { %3245 = vmatprep.mubr.bf16.mxu0 %v4032_v42  ;;  %3290 = vmatpush3.bf16.msra.mxu0 %v3710_v37 }
  0x36   :  { %3291 = vmatprep.subr.bf16.mxu0 %v3711_v41 }
  0x37   :  { %3196 = vmatpush3.bf16.msra.mxu1 %v3711_v41 }
  0x38   :  { %3197 = vmatprep.subr.bf16.mxu1 %v3712_v45 }
  0x39   :  { %3292 = vmatpush3.bf16.msra.mxu0 %v3711_v41  ;;  %v1069_v41 = vld [vmem:[%s4824_s11 + $0x58] sm:$0xff] }
  0x3a   :  { %3182 = vmatmul.mubr.bf16.gmra.mrb[12].mxu1 %v4047_v46  ;;  %3293 = vmatprep.subr.bf16.mxu0 %v3712_v45 }
  0x3b   :  { %3246 = vmatmul.mubr.bf16.gmra.mrb[12].mxu0 %v4047_v46  ;;  %3198 = vmatpush3.bf16.msra.mxu1 %v3712_v45 }
  0x3c   :  { %3199 = vmatprep.subr.bf16.mxu1 %v3713_v47  ;;  %3201 = vmatprep.mubr.bf16.mxu1 %v3922_v14  ;;  %v654_v14 = vld [vmem:[%s4820_s1 + $0x78] sm:$0xff] }
  0x3d   :  { %3294 = vmatpush3.bf16.msra.mxu0 %v3712_v45  ;;  %3297 = vmatprep.mubr.bf16.mxu0 %v4060_v50 }
  0x3e   :  { %3295 = vmatprep.subr.bf16.mxu0 %v3713_v47 }
  0x3f   :  { %3200 = vmatpush3.bf16.msra.mxu1 %v3713_v47 }
  0x40   :  { %3249 = vmatprep.subr.bf16.mxu1 %v3841_v0 }
  0x41   :  { %3296 = vmatpush3.bf16.msra.mxu0 %v3713_v47  ;;  %v1085_v47 = vadd.f32 1e-07, %v1069_v41 }
  0x42   :  { %3202 = vmatmul.mubr.bf16.vlgmr.msra.gmra.mrb[16].mxu1 %v3973_v24 }
  0x43   :  { %3205 = vmatprep.mubr.bf16.mxu1 %v3980_v26  ;;  %3250 = vmatpush3.bf16.msra.mxu1 %v3841_v0  ;;  %v650_v0 = vld [vmem:[%s4820_s1 + $0x58] sm:$0xff]  ;;  %v1079_v26 = vadd.f32 1e-07, %v1063_v20 }
  0x44   :  { %3251 = vmatprep.subr.bf16.mxu1 %v3852_v2  ;;  %3298 = vmatmul.mubr.bf16.vlgmr.msra.gmra.mrb[16].mxu0 %v4078_v55 }
  0x45   :  { %3301 = vmatprep.mubr.bf16.mxu0 %v4082_v56 }
  0x47   :  { %3252 = vmatpush3.bf16.msra.mxu1 %v3852_v2  ;;  %v651_v2 = vld [vmem:[%s4820_s1 + $0x60] sm:$0xff] }
  0x48   :  { %3253 = vmatprep.subr.bf16.mxu1 %v3866_v4 }
  0x4a   :  { %3206 = vmatmul.mubr.bf16.gmra.mrb[20].mxu1 %v4001_v32  ;;  %v1095_v32 = vmul.f32 %v1079_v26, %v1079_v26 }
  0x4b   :  { %3209 = vmatprep.mubr.bf16.mxu1 %v4006_v34  ;;  %3254 = vmatpush3.bf16.msra.mxu1 %v3866_v4  ;;  %v652_v4 = vld [vmem:[%s4820_s1 + $0x68] sm:$0xff]  ;;  %v1066_v34 = vld [vmem:[%s4824_s11 + $0x40] sm:$0xff] }
  0x4c   :  { %3255 = vmatprep.subr.bf16.mxu1 %v3880_v6  ;;  %3302 = vmatmul.mubr.bf16.gmra.mrb[20].mxu0 %v4102_v61  ;;  %v661_v11 = vpack.c.bf16 %v652_v4, %v651_v2  ;;  %v1082_v37 = vadd.f32 1e-07, %v1066_v34  ;;  %v1102_v4 = vmul.f32 %v1086_v54, %v1086_v54 }
  0x4d   :  { %3305 = vmatprep.mubr.bf16.mxu0 %v659_v62 }
  0x4e   :  { %v1098_v43 = vmul.f32 %v1082_v37, %v1082_v37 }
  0x4f   :  { %3256 = vmatpush3.bf16.msra.mxu1 %v3880_v6  ;;  %v660_v6 = vpack.c.bf16 %v650_v0, %v649_v63  ;;  %v4226_v0 = vld [vmem:[%s4826_s7] ss:$0 sm:$0xff] }
  0x50   :  { %3257 = vmatprep.subr.bf16.mxu1 %v3894_v8 }
  0x52   :  { %3210 = vmatmul.mubr.bf16.gmra.mrb[24].mxu1 %v4027_v40  ;;  %v1068_v40 = vld [vmem:[%s4824_s11 + $0x50] sm:$0xff] }
  0x53   :  { %3213 = vmatprep.mubr.bf16.mxu1 %v4032_v42  ;;  %3258 = vmatpush3.bf16.msra.mxu1 %v3894_v8  ;;  %v662_v8 = vpack.c.bf16 %v654_v14, %v653_v12  ;;  %v1084_v44 = vadd.f32 1e-07, %v1068_v40  ;;  %v1089_v14 = vadd.f32 1e-07, %v1073_v59 }
  0x54   :  { %3259 = vmatprep.subr.bf16.mxu1 %v3908_v10  ;;  %3306 = vmatmul.mubr.bf16.gmra.mrb[24].mxu0 %v660_v6 }
  0x55   :  { %3309 = vmatprep.mubr.bf16.mxu0 %v661_v11  ;;  %v1100_v53 = vmul.f32 %v1084_v44, %v1084_v44 }
  0x57   :  { %3260 = vmatpush3.bf16.msra.mxu1 %v3908_v10  ;;  %v1060_v10 = vld [vmem:[%s4824_s11 + $0x10] sm:$0xff] }
  0x58   :  { %3261 = vmatprep.subr.bf16.mxu1 %v3931_v15 }
  0x5a   :  { %3214 = vmatmul.mubr.bf16.gmra.mrb[28].mxu1 %v4047_v46  ;;  %v1099_v46 = vmul.f32 %v1083_v39, %v1083_v39 }
  0x5b   :  { %3262 = vmatpush3.bf16.msra.mxu1 %v3931_v15  ;;  %3265 = vmatprep.mubr.bf16.mxu1 %v4060_v50 }
  0x5c   :  { %3263 = vmatprep.subr.bf16.mxu1 %v3946_v17  ;;  %3310 = vmatmul.mubr.bf16.gmra.mrb[28].mxu0 %v662_v8 }
  0x5f   :  { %3264 = vmatpush3.bf16.msra.mxu1 %v3946_v17 }
  0x60   :  { %3313 = vmatprep.subr.bf16.mxu1 %v3846_v1 }
  0x62   :  { %3266 = vmatmul.mubr.bf16.vlgmr.msra.gmra.mrb[32].mxu1 %v4078_v55 }
  0x63   :  { %3314 = vmatpush3.bf16.msra.mxu1 %v3846_v1  ;;  %3269 = vmatprep.mubr.bf16.mxu1 %v4082_v56  ;;  %v1596_v1 = vld [vmem:[%s4821_s8] sm:$0xf] }
  0x64   :  { %3315 = vmatprep.subr.bf16.mxu1 %v3859_v3 }
  0x67   :  { %3316 = vmatpush3.bf16.msra.mxu1 %v3859_v3  ;;  %v1624_v3 = vsel %vm1622_vm0, %v1596_v1, 0 }
  0x68   :  { %3317 = vmatprep.subr.bf16.mxu1 %v3872_v5 }
  0x6a   :  { %3270 = vmatmul.mubr.bf16.gmra.mrb[36].mxu1 %v4102_v61 }
  0x6b   :  { %3318 = vmatpush3.bf16.msra.mxu1 %v3872_v5  ;;  %3273 = vmatprep.mubr.bf16.mxu1 %v659_v62  ;;  %v3714_v5 = vld [vmem:[%s4822_s9] sm:$0xff]  }
  0x6c   :  { %3319 = vmatprep.subr.bf16.mxu1 %v3886_v7  ;;  %3361 = vmatprep.mubr.bf16.mxu0 %v3714_v5 }
  0x6f   :  { %3320 = vmatpush3.bf16.msra.mxu1 %v3886_v7  ;;  %v3772_v7 = vmov 0  }
  0x70   :  { %3321 = vmatprep.subr.bf16.mxu1 %v3900_v9  ;;  %3688 = vset.pattern.permute.xlu0 %v3772_v7 }
  0x71   :  { %3689 = vset.pattern.permute.xlu1 %v3772_v7 }
  0x72   :  { %3274 = vmatmul.mubr.bf16.gmra.mrb[40].mxu1 %v660_v6 }
  0x73   :  { %3322 = vmatpush3.bf16.msra.mxu1 %v3900_v9  ;;  %3277 = vmatprep.mubr.bf16.mxu1 %v661_v11  ;;  %v1058_v9 = vld [vmem:[%s4824_s11] sm:$0xff] }
  0x74   :  { %3323 = vmatprep.subr.bf16.mxu1 %v3920_v13  ;;  %v1074_v15 = vadd.f32 1e-07, %v1058_v9  ;;  %v1104_v9 = vmul.f32 %v1088_v58, %v1088_v58 }
  0x76   :  { %v1090_v21 = vmul.f32 %v1074_v15, %v1074_v15 }
  0x77   :  { %3324 = vmatpush3.bf16.msra.mxu1 %v3920_v13  ;;  %v1059_v13 = vld [vmem:[%s4824_s11 + $0x8] sm:$0xff] }
  0x78   :  { %3325 = vmatprep.subr.bf16.mxu1 %v3937_v16  ;;  %v1075_v17 = vadd.f32 1e-07, %v1059_v13  ;;  %3730 = vrcp.f32 %v1090_v21 }
  0x7a   :  { %3278 = vmatmul.mubr.bf16.gmra.mrb[44].mxu1 %v662_v8  ;;  %v1091_v23 = vmul.f32 %v1075_v17, %v1075_v17 }
  0x7b   :  { %3326 = vmatpush3.bf16.msra.mxu1 %v3937_v16  ;;  %3329 = vmatprep.mubr.bf16.mxu1 %v4060_v50  ;;  %v1076_v16 = vadd.f32 1e-07, %v1060_v10  ;;  %v1071_v50 = vld [vmem:[%s4824_s11 + $0x68] sm:$0xff] }
  0x7c   :  { %3327 = vmatprep.subr.bf16.mxu1 %v3952_v18 }
  0x7d   :  { %v1092_v22 = vmul.f32 %v1076_v16, %v1076_v16 }
  0x7f   :  { %3328 = vmatpush3.bf16.msra.mxu1 %v3952_v18  ;;  %v1061_v18 = vld [vmem:[%s4824_s11 + $0x18] sm:$0xff]  ;;  %3732 = vrcp.f32 %v1092_v22 }
  0x80   :  { %3685 = vmatprep.subr.msk.bf16.mxu1 %vm1622_vm0, %v1596_v1  ;;  %v1077_v24 = vadd.f32 1e-07, %v1061_v18  ;;  %3734 = vrcp.f32 %v1091_v23 }
  0x82   :  { %3330 = vmatmul.mubr.bf16.vlgmr.msra.gmra.mrb[48].mxu1 %v4078_v55  ;;  %v1093_v28 = vmul.f32 %v1077_v24, %v1077_v24  ;;  %v3731_v42 = vpop.eup %3730  ;;  %v1101_v55 = vmul.f32 %v1085_v47, %v1085_v47  ;;  %v1105_v24 = vmul.f32 %v1089_v14, %v1089_v14 }
  0x83   :  { %3410 = vmatpush3.bf16.msra.mxu1 %v1624_v3  ;;  %3333 = vmatprep.mubr.bf16.mxu1 %v4082_v56  ;;  %v1087_v56 = vadd.f32 1e-07, %v1071_v50 }
  0x84   :  { %3736 = vrcp.f32 %v1093_v28  ;;  %1494 = vperm.xlu0 %3688, %v3731_v42  }
  0x85   :  { %3738 = vrcp.f32 %v1094_v30  ;;  %v1103_v12 = vmul.f32 %v1087_v56, %v1087_v56 }
  0x86   :  { %3740 = vrcp.f32 %v1095_v32 }
  0x87   :  { %3742 = vrcp.f32 %v1096_v36 }
  0x88   :  { %3744 = vrcp.f32 %v1097_v38 }
  0x89   :  { %v3733_v45 = vpop.eup %3732  ;;  %3746 = vrcp.f32 %v1098_v43 }
  0x8a   :  { %3334 = vmatmul.mubr.bf16.gmra.mrb[52].mxu1 %v4102_v61  ;;  %v3735_v49 = vpop.eup %3734  ;;  %1504 = vperm.xlu1 %3689, %v3733_v45   ;;  %3748 = vrcp.f32 %v1099_v46 }
  0x8b   :  { %3337 = vmatprep.mubr.bf16.mxu1 %v659_v62  ;;  %1499 = vperm.xlu0 %3688, %v3735_v49   ;;  %v4221_v62 = vld [vmem:[%s4825_s3] ss:$0 sm:$0xff]  ;;  %3750 = vrcp.f32 %v1100_v53 }
  0x8c   :  { %3752 = vrcp.f32 %v1101_v55 }
  0x8d   :  { %3754 = vrcp.f32 %v1102_v4 }
  0x8e   :  { %v3737_v51 = vpop.eup %3736  ;;  %3756 = vrcp.f32 %v1103_v12 }
  0x8f   :  { %v3739_v57 = vpop.eup %3738  ;;  %1509 = vperm.xlu1 %3689, %v3737_v51   ;;  %3758 = vrcp.f32 %v1104_v9 }
  0x90   :  { %v3741_v60 = vpop.eup %3740  ;;  %1514 = vperm.xlu0 %3688, %v3739_v57   ;;  %3760 = vrcp.f32 %v1105_v24 }
  0x92   :  { %3338 = vmatmul.mubr.bf16.gmra.mrb[56].mxu1 %v660_v6 }
  0x93   :  { %3341 = vmatprep.mubr.bf16.mxu1 %v661_v11  ;;  %1519 = vperm.xlu1 %3689, %v3741_v60  }
  0x9a   :  { %3342 = vmatmul.mubr.bf16.gmra.mrb[60].mxu1 %v662_v8  ;;  %v3743_v8 = vpop.eup %3742 }
  0x9b   :  { %v3745_v10 = vpop.eup %3744  ;;  %1524 = vperm.xlu0 %3688, %v3743_v8  }
  0x9c   :  { %v3747_v25 = vpop.eup %3746  ;;  %1529 = vperm.xlu1 %3689, %v3745_v10  }
  0x9d   :  { %v3749_v27 = vpop.eup %3748 }
  0x9e   :  { %v3751_v33 = vpop.eup %3750 }
  0x9f   :  { %1534 = vperm.xlu0 %3688, %v3747_v25   ;;  %v3753_v38 = vpop.eup %3752 }
  0xa0   :  { %1539 = vperm.xlu1 %3689, %v3749_v27   ;;  %v3755_v49 = vpop.eup %3754 }
  0xa1   :  { %v3757_v51 = vpop.eup %3756 }
  0xa2   :  { %v3759_v59 = vpop.eup %3758 }
  0xa3   :  { %1544 = vperm.xlu0 %3688, %v3751_v33   ;;  %v3761_v4 = vpop.eup %3760 }
  0xa4   :  { %1549 = vperm.xlu1 %3689, %v3753_v38  }
  0xa7   :  { %1554 = vperm.xlu0 %3688, %v3755_v49  }
  0xa8   :  { %1559 = vperm.xlu1 %3689, %v3757_v51  }
  0xab   :  { %1564 = vperm.xlu0 %3688, %v3759_v59  }
  0xac   :  { %1569 = vperm.xlu1 %3689, %v3761_v4  }
  0xf5   :  { %v3171_v61 = vpop.f32.mrb[0].mxu1 }
  0xf6   :  { %v3235_v63 = vpop.f32.mrb[0].mxu0  ;;  %v223_v2 = vpop.f32.mrb[1].mxu1  ;;  %v232_v1 = vadd.f32 %v3171_v61, %v4221_v62 }
  0xf7   :  { %v560_v6 = vpop.f32.mrb[1].mxu0  ;;  %v3172_v11 = vpop.f32.mrb[2].mxu1  ;;  %v569_v13 = vadd.f32 %v3235_v63, %v4226_v0  ;;  %v224_v15 = vadd.f32 %v4221_v62, %v223_v2 }
  0xf8   :  { %v235_v3 = vadd.f32 %v3172_v11, %v4221_v62  ;;  %v3236_v5 = vpop.f32.mrb[2].mxu0  ;;  %v226_v7 = vpop.f32.mrb[3].mxu1  ;;  %v561_v19 = vadd.f32 %v4226_v0, %v560_v6 }
  0xf9   :  { %v572_v16 = vadd.f32 %v3236_v5, %v4226_v0  ;;  %v227_v17 = vadd.f32 %v4221_v62, %v226_v7  ;;  %v563_v18 = vpop.f32.mrb[3].mxu0 }
  0xfa   :  { %v4235_v20 = vpack.c.bf16 %v235_v3, %v232_v1  ;;  %v564_v21 = vadd.f32 %v4226_v0, %v563_v18 }
  0xfb   :  { %v624_v22 = vpack.c.bf16 %v572_v16, %v569_v13  ;;  %v4238_v23 = vpack.c.bf16 %v227_v17, %v224_v15 }
  0xfc   :  { %v623_v26 = vpack.c.bf16 %v564_v21, %v561_v19 }
  0xfd   :  { %632 = vst.msk [vmem:[#allocation4 + $0x8] sm:$0xff] %vm462_vm1, %v624_v22  ;;  %v3175_v28 = vpop.f32.mrb[4].mxu1  ;;  %3427 = vmatprep.subr.bf16.mxu1 %v4238_v23 }
  0xfe   :  { %631 = vst.msk [vmem:[#allocation4] sm:$0xff] %vm462_vm1, %v623_v26  ;;  %v3239_v29 = vpop.f32.mrb[4].mxu0  ;;  %v239_v30 = vpop.f32.mrb[5].mxu1  ;;  %v248_v34 = vadd.f32 %v3175_v28, %v4221_v62 }
  0xff   :  { %v576_v31 = vpop.f32.mrb[5].mxu0  ;;  %v3176_v32 = vpop.f32.mrb[6].mxu1  ;;  %v585_v39 = vadd.f32 %v3239_v29, %v4226_v0  ;;  %v240_v40 = vadd.f32 %v4221_v62, %v239_v30 }
 0x100   :  { %v251_v35 = vadd.f32 %v3176_v32, %v4221_v62  ;;  %v3240_v36 = vpop.f32.mrb[6].mxu0  ;;  %v242_v37 = vpop.f32.mrb[7].mxu1  ;;  %v577_v44 = vadd.f32 %v4226_v0, %v576_v31 }
 0x101   :  { %v588_v41 = vadd.f32 %v3240_v36, %v4226_v0  ;;  %v243_v42 = vadd.f32 %v4221_v62, %v242_v37  ;;  %v579_v43 = vpop.f32.mrb[7].mxu0 }
 0x102   :  { %v4250_v45 = vpack.c.bf16 %v251_v35, %v248_v34  ;;  %v580_v46 = vadd.f32 %v4226_v0, %v579_v43 }
 0x103   :  { %v626_v47 = vpack.c.bf16 %v588_v41, %v585_v39  ;;  %v4253_v48 = vpack.c.bf16 %v243_v42, %v240_v40  ;;  %v4287_v39 = vld [vmem:[%s4827_s6] ss:$0 sm:$0xff] }
 0x104   :  { %v625_v50 = vpack.c.bf16 %v580_v46, %v577_v44  ;;  %v1147_v58 = vld [vmem:[#allocation4 + $0x8] sm:$0xff] }
 0x105   :  { %634 = vst.msk [vmem:[#allocation4 + $0x18] sm:$0xff] %vm462_vm1, %v626_v47  ;;  %v3179_v52 = vpop.f32.mrb[8].mxu1  ;;  %v1146_v53 = vld [vmem:[#allocation4] sm:$0xff] }
 0x106   :  { %633 = vst.msk [vmem:[#allocation4 + $0x10] sm:$0xff] %vm462_vm1, %v625_v50  ;;  %v3243_v54 = vpop.f32.mrb[8].mxu0  ;;  %3345 = vmatprep.subr.bf16.mxu0 %v1146_v53  ;;  %v255_v55 = vpop.f32.mrb[9].mxu1  ;;  %v264_v60 = vadd.f32 %v3179_v52, %v4221_v62 }
 0x107   :  { %v592_v56 = vpop.f32.mrb[9].mxu0  ;;  %3346 = vmatpush3.bf16.msra.mxu0 %v1146_v53  ;;  %v3180_v57 = vpop.f32.mrb[10].mxu1  ;;  %v601_v6 = vadd.f32 %v3243_v54, %v4226_v0  ;;  %v256_v11 = vadd.f32 %v4221_v62, %v255_v55 }
 0x108   :  { %v267_v61 = vadd.f32 %v3180_v57, %v4221_v62  ;;  %v3244_v63 = vpop.f32.mrb[10].mxu0  ;;  %3347 = vmatprep.subr.bf16.mxu0 %v1147_v58  ;;  %v258_v2 = vpop.f32.mrb[11].mxu1  ;;  %v593_v1 = vadd.f32 %v4226_v0, %v592_v56 }
 0x109   :  { %v604_v12 = vadd.f32 %v3244_v63, %v4226_v0  ;;  %v259_v14 = vadd.f32 %v4221_v62, %v258_v2  ;;  %v595_v8 = vpop.f32.mrb[11].mxu0 }
 0x10a   :  { %v4264_v3 = vpack.c.bf16 %v267_v61, %v264_v60  ;;  %v596_v5 = vadd.f32 %v4226_v0, %v595_v8 }
 0x10b   :  { %v628_v7 = vpack.c.bf16 %v604_v12, %v601_v6  ;;  %v4267_v9 = vpack.c.bf16 %v259_v14, %v256_v11  ;;  %3348 = vmatpush3.bf16.msra.mxu0 %v1147_v58 }
 0x10c   :  { %v627_v10 = vpack.c.bf16 %v596_v5, %v593_v1  ;;  %v1149_v21 = vld [vmem:[#allocation4 + $0x18] sm:$0xff] }
 0x10d   :  { %636 = vst.msk [vmem:[#allocation4 + $0x28] sm:$0xff] %vm462_vm1, %v628_v7  ;;  %v3183_v13 = vpop.f32.mrb[12].mxu1  ;;  %v1148_v15 = vld [vmem:[#allocation4 + $0x10] sm:$0xff] }
 0x10e   :  { %635 = vst.msk [vmem:[#allocation4 + $0x20] sm:$0xff] %vm462_vm1, %v627_v10  ;;  %v3247_v16 = vpop.f32.mrb[12].mxu0  ;;  %3349 = vmatprep.subr.bf16.mxu0 %v1148_v15  ;;  %v271_v17 = vpop.f32.mrb[13].mxu1  ;;  %v280_v22 = vadd.f32 %v3183_v13, %v4221_v62 }
 0x10f   :  { %v608_v18 = vpop.f32.mrb[13].mxu0  ;;  %3350 = vmatpush3.bf16.msra.mxu0 %v1148_v15  ;;  %v3184_v19 = vpop.f32.mrb[14].mxu1  ;;  %v617_v27 = vadd.f32 %v3247_v16, %v4226_v0  ;;  %v272_v28 = vadd.f32 %v4221_v62, %v271_v17 }
 0x110   :  { %v283_v24 = vadd.f32 %v3184_v19, %v4221_v62  ;;  %v3248_v25 = vpop.f32.mrb[14].mxu0  ;;  %3351 = vmatprep.subr.bf16.mxu0 %v1149_v21  ;;  %v274_v26 = vpop.f32.mrb[15].mxu1  ;;  %v609_v32 = vadd.f32 %v4226_v0, %v608_v18  ;;  %v4311_v18 = vld [vmem:[%s4822_s9 + $0x8] sm:$0xff]  }
 0x111   :  { %v620_v29 = vadd.f32 %v3248_v25, %v4226_v0  ;;  %v275_v30 = vadd.f32 %v4221_v62, %v274_v26  ;;  %v611_v31 = vpop.f32.mrb[15].mxu0 }
 0x112   :  { %v4278_v33 = vpack.c.bf16 %v283_v24, %v280_v22  ;;  %v612_v34 = vadd.f32 %v4226_v0, %v611_v31  ;;  %v4317_v24 = vld [vmem:[%s4822_s9 + $0x10] sm:$0xff]  }
 0x113   :  { %v630_v35 = vpack.c.bf16 %v620_v29, %v617_v27  ;;  %v4281_v36 = vpack.c.bf16 %v275_v30, %v272_v28  ;;  %3352 = vmatpush3.bf16.msra.mxu0 %v1149_v21 }
 0x114   :  { %v629_v37 = vpack.c.bf16 %v612_v34, %v609_v32  ;;  %v1151_v42 = vld [vmem:[#allocation4 + $0x28] sm:$0xff]  ;;  %v4328_v34 = vld [vmem:[%s4823_s10] sm:$0xff]  }
 0x115   :  { %638 = vst.msk [vmem:[#allocation4 + $0x38] sm:$0xff] %vm462_vm1, %v630_v35  ;;  %v3203_v38 = vpop.f32.mrb[16].mxu1  ;;  %v1150_v40 = vld [vmem:[#allocation4 + $0x20] sm:$0xff]  ;;  %1868 = vxpose.xlu0.c.b16.start [1/8] %v4328_v34, 128 }
 0x116   :  { %637 = vst.msk [vmem:[#allocation4 + $0x30] sm:$0xff] %vm462_vm1, %v629_v37  ;;  %3353 = vmatprep.subr.bf16.mxu0 %v1150_v40  ;;  %v391_v41 = vpop.f32.mrb[17].mxu1  ;;  %v400_v44 = vadd.f32 %v3203_v38, %v4287_v39 }
 0x117   :  { %3354 = vmatpush3.bf16.msra.mxu0 %v1150_v40  ;;  %v3204_v0 = vpop.f32.mrb[18].mxu1  ;;  %v3299_v43 = vpop.f32.mrb[16].mxu0  ;;  %v392_v51 = vadd.f32 %v4287_v39, %v391_v41 }
 0x118   :  { %v403_v46 = vadd.f32 %v3204_v0, %v4287_v39  ;;  %3355 = vmatprep.subr.bf16.mxu0 %v1151_v42  ;;  %v394_v47 = vpop.f32.mrb[19].mxu1  ;;  %v834_v49 = vadd.f32 %v3299_v43, %v4287_v39  ;;  %v825_v50 = vpop.f32.mrb[17].mxu0 }
 0x119   :  { %v395_v52 = vadd.f32 %v4287_v39, %v394_v47  ;;  %v826_v53 = vadd.f32 %v4287_v39, %v825_v50  ;;  %v3300_v54 = vpop.f32.mrb[18].mxu0 }
 0x11a   :  { %v455_v55 = vpack.c.bf16 %v403_v46, %v400_v44  ;;  %v837_v56 = vadd.f32 %v3300_v54, %v4287_v39  ;;  %v828_v57 = vpop.f32.mrb[19].mxu0  ;;  %v4352_v54 = vld [vmem:[%s4823_s10 + $0x8] sm:$0xff]  }
 0x11b   :  { %v454_v58 = vpack.c.bf16 %v395_v52, %v392_v51  ;;  %3356 = vmatpush3.bf16.msra.mxu0 %v1151_v42  ;;  %v829_v59 = vadd.f32 %v4287_v39, %v828_v57  ;;  %1869 = vxpose.xlu0.c.b16.cont [2/8] %v4352_v54, 128 }
 0x11c   :  { %464 = vst.msk [vmem:[#allocation3 + $0x8] sm:$0xff] %vm462_vm1, %v455_v55  ;;  %v889_v60 = vpack.c.bf16 %v837_v56, %v834_v49  ;;  %v1153_v11 = vld [vmem:[#allocation4 + $0x38] sm:$0xff] }
 0x11d   :  { %463 = vst.msk [vmem:[#allocation3] sm:$0xff] %vm462_vm1, %v454_v58  ;;  %v3207_v61 = vpop.f32.mrb[20].mxu1  ;;  %v1152_v63 = vld [vmem:[#allocation4 + $0x30] sm:$0xff]  ;;  %v888_v2 = vpack.c.bf16 %v829_v59, %v826_v53  ;;  %v4341_v49 = vld [vmem:[%s4822_s9 + $0x18] sm:$0xff]   ;;  %v4347_v53 = vld [vmem:[%s4822_s9 + $0x20] sm:$0xff]  }
 0x11e   :  { %3357 = vmatprep.subr.bf16.mxu0 %v1152_v63  ;;  %v407_v4 = vpop.f32.mrb[21].mxu1  ;;  %898 = vst.msk [vmem:[#allocation3 + $0x48] sm:$0xff] %vm462_vm1, %v889_v60  ;;  %v416_v14 = vadd.f32 %v3207_v61, %v4287_v39 }
 0x11f   :  { %3358 = vmatpush3.bf16.msra.mxu0 %v1152_v63  ;;  %v3208_v6 = vpop.f32.mrb[22].mxu1  ;;  %897 = vst.msk [vmem:[#allocation3 + $0x40] sm:$0xff] %vm462_vm1, %v888_v2  ;;  %v3303_v12 = vpop.f32.mrb[20].mxu0  ;;  %v408_v10 = vadd.f32 %v4287_v39, %v407_v4  ;;  %v4364_v2 = vld [vmem:[%s4823_s10 + $0x10] sm:$0xff]  }
 0x120   :  { %v419_v8 = vadd.f32 %v3208_v6, %v4287_v39  ;;  %3359 = vmatprep.subr.bf16.mxu0 %v1153_v11  ;;  %v410_v1 = vpop.f32.mrb[23].mxu1  ;;  %v850_v5 = vadd.f32 %v3303_v12, %v4287_v39  ;;  %v841_v7 = vpop.f32.mrb[21].mxu0  ;;  %1870 = vxpose.xlu0.c.b16.cont [3/8] %v4364_v2, 128 }
 0x121   :  { %v411_v13 = vadd.f32 %v4287_v39, %v410_v1  ;;  %v842_v15 = vadd.f32 %v4287_v39, %v841_v7  ;;  %v3304_v16 = vpop.f32.mrb[22].mxu0 }
 0x122   :  { %v457_v17 = vpack.c.bf16 %v419_v8, %v416_v14  ;;  %v853_v19 = vadd.f32 %v3304_v16, %v4287_v39  ;;  %v844_v21 = vpop.f32.mrb[23].mxu0 }
 0x123   :  { %v456_v22 = vpack.c.bf16 %v411_v13, %v408_v10  ;;  %3360 = vmatpush3.bf16.msra.mxu0 %v1153_v11  ;;  %v845_v25 = vadd.f32 %v4287_v39, %v844_v21  ;;  %v1139_v32 = vld [vmem:[#allocation3 + $0x8] sm:$0xff]  ;;  %v4383_v21 = vld [vmem:[%s4822_s9 + $0x30] sm:$0xff]  }
 0x124   :  { %466 = vst.msk [vmem:[#allocation3 + $0x18] sm:$0xff] %vm462_vm1, %v457_v17  ;;  %v1138_v26 = vld [vmem:[#allocation3] sm:$0xff]  ;;  %v891_v27 = vpack.c.bf16 %v853_v19, %v850_v5 }
 0x125   :  { %465 = vst.msk [vmem:[#allocation3 + $0x10] sm:$0xff] %vm462_vm1, %v456_v22  ;;  %v3211_v28 = vpop.f32.mrb[24].mxu1  ;;  %3377 = vmatprep.subr.bf16.mxu0 %v1138_v26  ;;  %v890_v29 = vpack.c.bf16 %v845_v25, %v842_v15  ;;  %v4377_v15 = vld [vmem:[%s4822_s9 + $0x28] sm:$0xff]   ;;  %v4388_v22 = vld [vmem:[%s4823_s10 + $0x18] sm:$0xff]  }
 0x126   :  { %3362 = vmatmul.mubr.bf16.vlgmr.msra.gmra.mrb[32].mxu0 %v4311_v18  ;;  %v423_v30 = vpop.f32.mrb[25].mxu1  ;;  %900 = vst.msk [vmem:[#allocation3 + $0x58] sm:$0xff] %vm462_vm1, %v891_v27  ;;  %v432_v37 = vadd.f32 %v3211_v28, %v4287_v39  ;;  %1871 = vxpose.xlu0.c.b16.cont [4/8] %v4388_v22, 128 }
 0x127   :  { %3378 = vmatpush3.bf16.msra.mxu0 %v1138_v26  ;;  %v3212_v31 = vpop.f32.mrb[26].mxu1  ;;  %3365 = vmatprep.mubr.bf16.mxu0 %v4317_v24  ;;  %899 = vst.msk [vmem:[#allocation3 + $0x50] sm:$0xff] %vm462_vm1, %v890_v29  ;;  %v3307_v35 = vpop.f32.mrb[24].mxu0  ;;  %v424_v42 = vadd.f32 %v4287_v39, %v423_v30 }
 0x128   :  { %v435_v38 = vadd.f32 %v3212_v31, %v4287_v39  ;;  %3379 = vmatprep.subr.bf16.mxu0 %v1139_v32  ;;  %v426_v40 = vpop.f32.mrb[27].mxu1  ;;  %v866_v41 = vadd.f32 %v3307_v35, %v4287_v39  ;;  %v857_v0 = vpop.f32.mrb[25].mxu0 }
 0x129   :  { %v427_v43 = vadd.f32 %v4287_v39, %v426_v40  ;;  %v858_v44 = vadd.f32 %v4287_v39, %v857_v0  ;;  %v3308_v46 = vpop.f32.mrb[26].mxu0  ;;  %v4411_v0 = vld [vmem:[%s4822_s9 + $0x38] sm:$0xff]  }
 0x12a   :  { %v459_v47 = vpack.c.bf16 %v435_v38, %v432_v37  ;;  %v869_v50 = vadd.f32 %v3308_v46, %v4287_v39  ;;  %v860_v51 = vpop.f32.mrb[27].mxu0 }
 0x12b   :  { %v458_v52 = vpack.c.bf16 %v427_v43, %v424_v42  ;;  %3380 = vmatpush3.bf16.msra.mxu0 %v1139_v32  ;;  %v861_v55 = vadd.f32 %v4287_v39, %v860_v51  ;;  %v1141_v63 = vld [vmem:[#allocation3 + $0x18] sm:$0xff]  ;;  %v4401_v32 = vld [vmem:[%s4823_s10 + $0x20] sm:$0xff]   ;;  %v4418_v43 = vld [vmem:[%s4823_s10 + $0x28] sm:$0xff]  }
 0x12c   :  { %468 = vst.msk [vmem:[#allocation3 + $0x28] sm:$0xff] %vm462_vm1, %v459_v47  ;;  %v1140_v56 = vld [vmem:[#allocation3 + $0x10] sm:$0xff]  ;;  %v893_v57 = vpack.c.bf16 %v869_v50, %v866_v41  ;;  %1872 = vxpose.xlu0.c.b16.cont [5/8] %v4401_v32, 128  ;;  %v4434_v51 = vld [vmem:[%s4823_s10 + $0x38] sm:$0xff]  }
 0x12d   :  { %467 = vst.msk [vmem:[#allocation3 + $0x20] sm:$0xff] %vm462_vm1, %v458_v52  ;;  %v3215_v58 = vpop.f32.mrb[28].mxu1  ;;  %3381 = vmatprep.subr.bf16.mxu0 %v1140_v56  ;;  %v892_v59 = vpack.c.bf16 %v861_v55, %v858_v44  ;;  %v4428_v50 = vld [vmem:[%s4823_s10 + $0x30] sm:$0xff]  }
 0x12e   :  { %3366 = vmatmul.mubr.bf16.gmra.mrb[36].mxu0 %v4341_v49  ;;  %v439_v60 = vpop.f32.mrb[29].mxu1  ;;  %902 = vst.msk [vmem:[#allocation3 + $0x68] sm:$0xff] %vm462_vm1, %v893_v57  ;;  %v448_v6 = vadd.f32 %v3215_v58, %v4287_v39 }
 0x12f   :  { %3382 = vmatpush3.bf16.msra.mxu0 %v1140_v56  ;;  %v3216_v61 = vpop.f32.mrb[30].mxu1  ;;  %3369 = vmatprep.mubr.bf16.mxu0 %v4347_v53  ;;  %901 = vst.msk [vmem:[#allocation3 + $0x60] sm:$0xff] %vm462_vm1, %v892_v59  ;;  %v3311_v4 = vpop.f32.mrb[28].mxu0  ;;  %v440_v1 = vadd.f32 %v4287_v39, %v439_v60 }
 0x130   :  { %v451_v11 = vadd.f32 %v3216_v61, %v4287_v39  ;;  %3383 = vmatprep.subr.bf16.mxu0 %v1141_v63  ;;  %v442_v12 = vpop.f32.mrb[31].mxu1  ;;  %v882_v14 = vadd.f32 %v3311_v4, %v4287_v39  ;;  %v873_v8 = vpop.f32.mrb[29].mxu0  ;;  %1873 = vxpose.xlu0.c.b16.cont [6/8] %v4418_v43, 128 }
 0x131   :  { %v443_v5 = vadd.f32 %v4287_v39, %v442_v12  ;;  %v874_v7 = vadd.f32 %v4287_v39, %v873_v8  ;;  %v3312_v10 = vpop.f32.mrb[30].mxu0 }
 0x132   :  { %v461_v13 = vpack.c.bf16 %v451_v11, %v448_v6  ;;  %v885_v16 = vadd.f32 %v3312_v10, %v4287_v39  ;;  %v876_v17 = vpop.f32.mrb[31].mxu0 }
 0x133   :  { %v460_v19 = vpack.c.bf16 %v443_v5, %v440_v1  ;;  %3384 = vmatpush3.bf16.msra.mxu0 %v1141_v63  ;;  %v877_v25 = vadd.f32 %v4287_v39, %v876_v17  ;;  %v1143_v39 = vld [vmem:[#allocation3 + $0x28] sm:$0xff] }
 0x134   :  { %470 = vst.msk [vmem:[#allocation3 + $0x38] sm:$0xff] %vm462_vm1, %v461_v13  ;;  %v1142_v26 = vld [vmem:[#allocation3 + $0x20] sm:$0xff]  ;;  %v895_v27 = vpack.c.bf16 %v885_v16, %v882_v14  ;;  %1874 = vxpose.xlu0.c.b16.cont [7/8] %v4428_v50, 128 }
 0x135   :  { %469 = vst.msk [vmem:[#allocation3 + $0x30] sm:$0xff] %vm462_vm1, %v460_v19  ;;  %3385 = vmatprep.subr.bf16.mxu0 %v1142_v26  ;;  %v894_v28 = vpack.c.bf16 %v877_v25, %v874_v7  ;;  %v3267_v29 = vpop.f32.mrb[32].mxu1 }
 0x136   :  { %3370 = vmatmul.mubr.bf16.gmra.mrb[40].mxu0 %v4377_v15  ;;  %904 = vst.msk [vmem:[#allocation3 + $0x78] sm:$0xff] %vm462_vm1, %v895_v27  ;;  %v713_v30 = vadd.f32 %v3267_v29, %v4221_v62  ;;  %v704_v31 = vpop.f32.mrb[33].mxu1 }
 0x137   :  { %3386 = vmatpush3.bf16.msra.mxu0 %v1142_v26  ;;  %3373 = vmatprep.mubr.bf16.mxu0 %v4383_v21  ;;  %903 = vst.msk [vmem:[#allocation3 + $0x70] sm:$0xff] %vm462_vm1, %v894_v28  ;;  %v705_v35 = vadd.f32 %v4221_v62, %v704_v31  ;;  %v3268_v37 = vpop.f32.mrb[34].mxu1 }
 0x138   :  { %3387 = vmatprep.subr.bf16.mxu0 %v1143_v39  ;;  %v716_v38 = vadd.f32 %v3268_v37, %v4221_v62  ;;  %v707_v40 = vpop.f32.mrb[35].mxu1  ;;  %1875 = vxpose.xlu0.c.b16.end [8/8] %v4434_v51, 128  ;;  %v2878_v37 = vld [vmem:[%s4826_s7] ss:$0 sm:$0xff] }
 0x139   :  { %v708_v41 = vadd.f32 %v4221_v62, %v707_v40 }
 0x13a   :  { %v4413_v42 = vpack.c.bf16 %v716_v38, %v713_v30 }
 0x13b   :  { %3388 = vmatpush3.bf16.msra.mxu0 %v1143_v39  ;;  %v4420_v44 = vpack.c.bf16 %v708_v41, %v705_v35  ;;  %v1145_v47 = vld [vmem:[#allocation3 + $0x38] sm:$0xff] }
 0x13c   :  { %v1144_v46 = vld [vmem:[#allocation3 + $0x30] sm:$0xff] }
 0x13d   :  { %3389 = vmatprep.subr.bf16.mxu0 %v1144_v46  ;;  %v3271_v52 = vpop.f32.mrb[36].mxu1 }
 0x13e   :  { %3374 = vmatmul.mubr.bf16.gmra.mrb[44].mxu0 %v4411_v0  ;;  %v720_v55 = vpop.f32.mrb[37].mxu1  ;;  %v729_v57 = vadd.f32 %v3271_v52, %v4221_v62 }
 0x13f   :  { %3390 = vmatpush3.bf16.msra.mxu0 %v1144_v46  ;;  %3393 = vmatprep.mubr.bf16.mxu0 %v4328_v34  ;;  %v3272_v56 = vpop.f32.mrb[38].mxu1  ;;  %v721_v59 = vadd.f32 %v4221_v62, %v720_v55 }
 0x140   :  { %3391 = vmatprep.subr.bf16.mxu0 %v1145_v47  ;;  %v723_v58 = vpop.f32.mrb[39].mxu1  ;;  %v732_v60 = vadd.f32 %v3272_v56, %v4221_v62 }
 0x141   :  { %v724_v61 = vadd.f32 %v4221_v62, %v723_v58 }
 0x142   :  { %v4448_v63 = vpack.c.bf16 %v732_v60, %v729_v57 }
 0x143   :  { %3392 = vmatpush3.bf16.msra.mxu0 %v1145_v47  ;;  %v4450_v4 = vpack.c.bf16 %v724_v61, %v721_v59 }
 0x145   :  { %v3275_v6 = vpop.f32.mrb[40].mxu1 }
 0x146   :  { %3394 = vmatmul.mubr.bf16.vlgmr.msra.gmra.mrb[32].mxu0 %v4352_v54  ;;  %v736_v11 = vpop.f32.mrb[41].mxu1  ;;  %v745_v14 = vadd.f32 %v3275_v6, %v4221_v62 }
 0x147   :  { %3397 = vmatprep.mubr.bf16.mxu0 %v4364_v2  ;;  %v3276_v12 = vpop.f32.mrb[42].mxu1  ;;  %v737_v1 = vadd.f32 %v4221_v62, %v736_v11 }
 0x148   :  { %v739_v8 = vpop.f32.mrb[43].mxu1  ;;  %v748_v5 = vadd.f32 %v3276_v12, %v4221_v62 }
 0x149   :  { %v740_v7 = vadd.f32 %v4221_v62, %v739_v8 }
 0x14a   :  { %v4456_v10 = vpack.c.bf16 %v748_v5, %v745_v14 }
 0x14b   :  { %v4458_v13 = vpack.c.bf16 %v740_v7, %v737_v1 }
 0x14d   :  { %v3279_v16 = vpop.f32.mrb[44].mxu1 }
 0x14e   :  { %3398 = vmatmul.mubr.bf16.gmra.mrb[36].mxu0 %v4388_v22  ;;  %v752_v17 = vpop.f32.mrb[45].mxu1  ;;  %v761_v19 = vadd.f32 %v3279_v16, %v4221_v62 }
 0x14f   :  { %3401 = vmatprep.mubr.bf16.mxu0 %v4401_v32  ;;  %v3280_v25 = vpop.f32.mrb[46].mxu1  ;;  %v753_v26 = vadd.f32 %v4221_v62, %v752_v17 }
 0x150   :  { %v755_v27 = vpop.f32.mrb[47].mxu1  ;;  %v764_v28 = vadd.f32 %v3280_v25, %v4221_v62 }
 0x151   :  { %v756_v29 = vadd.f32 %v4221_v62, %v755_v27 }
 0x152   :  { %v4464_v30 = vpack.c.bf16 %v764_v28, %v761_v19 }
 0x153   :  { %v4466_v31 = vpack.c.bf16 %v756_v29, %v753_v26 }
 0x155   :  { %v3331_v39 = vpop.f32.mrb[48].mxu1 }
 0x156   :  { %3402 = vmatmul.mubr.bf16.gmra.mrb[40].mxu0 %v4418_v43  ;;  %v946_v35 = vpop.f32.mrb[49].mxu1  ;;  %v955_v40 = vadd.f32 %v3331_v39, %v2878_v37 }
 0x157   :  { %3405 = vmatprep.mubr.bf16.mxu0 %v4428_v50  ;;  %v3332_v38 = vpop.f32.mrb[50].mxu1  ;;  %v947_v41 = vadd.f32 %v2878_v37, %v946_v35 }
 0x158   :  { %v949_v46 = vpop.f32.mrb[51].mxu1  ;;  %v958_v47 = vadd.f32 %v3332_v38, %v2878_v37 }
 0x159   :  { %v950_v52 = vadd.f32 %v2878_v37, %v949_v46 }
 0x15a   :  { %v1010_v55 = vpack.c.bf16 %v958_v47, %v955_v40 }
 0x15b   :  { %v1009_v56 = vpack.c.bf16 %v950_v52, %v947_v41 }
 0x15c   :  { %1019 = vst.msk [vmem:[#allocation4 + $0x48] sm:$0xff] %vm462_vm1, %v1010_v55  ;;  %v4479_v55 = vpop.permute.xlu0 %1494 }
 0x15d   :  { %v3335_v57 = vpop.f32.mrb[52].mxu1  ;;  %1018 = vst.msk [vmem:[#allocation4 + $0x40] sm:$0xff] %vm462_vm1, %v1009_v56  ;;  %v4481_v56 = vpop.permute.xlu1 %1504 }
 0x15e   :  { %3406 = vmatmul.mubr.bf16.gmra.mrb[44].mxu0 %v4434_v51  ;;  %v971_v62 = vadd.f32 %v3335_v57, %v2878_v37  ;;  %v962_v58 = vpop.f32.mrb[53].mxu1 }
 0x15f   :  { %v963_v59 = vadd.f32 %v2878_v37, %v962_v58  ;;  %v3336_v60 = vpop.f32.mrb[54].mxu1 }
 0x160   :  { %v974_v61 = vadd.f32 %v3336_v60, %v2878_v37  ;;  %v965_v6 = vpop.f32.mrb[55].mxu1  ;;  %v4483_v57 = vpop.permute.xlu0 %1499 }
 0x161   :  { %v966_v11 = vadd.f32 %v2878_v37, %v965_v6 }
 0x162   :  { %v1012_v12 = vpack.c.bf16 %v974_v61, %v971_v62  ;;  %v4485_v62 = vpop.permute.xlu1 %1509 }
 0x163   :  { %v1011_v14 = vpack.c.bf16 %v966_v11, %v963_v59 }
 0x164   :  { %1021 = vst.msk [vmem:[#allocation4 + $0x58] sm:$0xff] %vm462_vm1, %v1012_v12  ;;  %v4487_v58 = vpop.permute.xlu0 %1514 }
 0x165   :  { %1020 = vst.msk [vmem:[#allocation4 + $0x50] sm:$0xff] %vm462_vm1, %v1011_v14  ;;  %v3339_v8 = vpop.f32.mrb[56].mxu1 }
 0x166   :  { %v987_v1 = vadd.f32 %v3339_v8, %v2878_v37  ;;  %v978_v5 = vpop.f32.mrb[57].mxu1  ;;  %v4489_v59 = vpop.permute.xlu1 %1519 }
 0x167   :  { %v979_v7 = vadd.f32 %v2878_v37, %v978_v5  ;;  %v3340_v16 = vpop.f32.mrb[58].mxu1 }
 0x168   :  { %v990_v17 = vadd.f32 %v3340_v16, %v2878_v37  ;;  %v981_v19 = vpop.f32.mrb[59].mxu1 }
 0x169   :  { %v982_v25 = vadd.f32 %v2878_v37, %v981_v19 }
 0x16a   :  { %v1014_v26 = vpack.c.bf16 %v990_v17, %v987_v1  ;;  %v4491_v1 = vpop.permute.xlu0 %1524  ;;  %v4493_v16 = vpop.permute.xlu1 %1529 }
 0x16b   :  { %v1013_v27 = vpack.c.bf16 %v982_v25, %v979_v7 }
 0x16c   :  { %1023 = vst.msk [vmem:[#allocation4 + $0x68] sm:$0xff] %vm462_vm1, %v1014_v26 }
 0x16d   :  { %1022 = vst.msk [vmem:[#allocation4 + $0x60] sm:$0xff] %vm462_vm1, %v1013_v27  ;;  %v3343_v28 = vpop.f32.mrb[60].mxu1 }
 0x16e   :  { %v1003_v29 = vadd.f32 %v3343_v28, %v2878_v37  ;;  %v994_v39 = vpop.f32.mrb[61].mxu1 }
 0x16f   :  { %v995_v35 = vadd.f32 %v2878_v37, %v994_v39  ;;  %v3344_v38 = vpop.f32.mrb[62].mxu1 }
 0x170   :  { %v1006_v40 = vadd.f32 %v3344_v38, %v2878_v37  ;;  %v997_v41 = vpop.f32.mrb[63].mxu1 }
 0x171   :  { %v998_v46 = vadd.f32 %v2878_v37, %v997_v41  ;;  %v4499_v41 = vpop.permute.xlu0 %1534 }
 0x172   :  { %v1016_v47 = vpack.c.bf16 %v1006_v40, %v1003_v29 }
 0x173   :  { %v1015_v52 = vpack.c.bf16 %v998_v46, %v995_v35 }
 0x174   :  { %1025 = vst.msk [vmem:[#allocation4 + $0x78] sm:$0xff] %vm462_vm1, %v1016_v47 }
 0x175   :  { %1024 = vst.msk [vmem:[#allocation4 + $0x70] sm:$0xff] %vm462_vm1, %v1015_v52  ;;  %v4501_v52 = vpop.permute.xlu1 %1539 }
 0x219   :  { %v3395_v60 = vpop.f32.mrb[32].mxu0 }
 0x21a   :  { %vm1446_vm2 = vcmp.ge.f32.partialorder %v3395_v60, 0.0  ;;  %v1462_v37 = vmul.f32 0.01, %v3395_v60  ;;  %v1381_v61 = vpop.f32.mrb[33].mxu0 }
 0x21b   :  { %vm1444_vm3 = vcmp.ge.f32.partialorder %v1381_v61, 0.0  ;;  %v1460_v6 = vmul.f32 0.01, %v1381_v61  ;;  %v3396_v11 = vpop.f32.mrb[34].mxu0 }
 0x21c   :  { %v1478_v12 = vsel %vm1446_vm2, %v3395_v60, %v1462_v37  ;;  %vm1447_vm4 = vcmp.ge.f32.partialorder %v3396_v11, 0.0  ;;  %v1463_v14 = vmul.f32 0.01, %v3396_v11  ;;  %v1384_v8 = vpop.f32.mrb[35].mxu0 }
 0x21d   :  { %v1476_v5 = vsel %vm1444_vm3, %v1381_v61, %v1460_v6  ;;  %vm1445_vm5 = vcmp.ge.f32.partialorder %v1384_v8, 0.0  ;;  %v1461_v7 = vmul.f32 0.01, %v1384_v8  ;;  %v1574_v19 = vmul.f32 %v4481_v56, %v1478_v12 }
 0x21e   :  { %v1479_v17 = vsel %vm1447_vm4, %v3396_v11, %v1463_v14  ;;  %v1572_v27 = vmul.f32 %v4479_v55, %v1476_v5 }
 0x21f   :  { %v1575_v25 = vmul.f32 %v4485_v62, %v1479_v17  ;;  %v1477_v26 = vsel %vm1445_vm5, %v1384_v8, %v1461_v7 }
 0x220   :  { %v1573_v28 = vmul.f32 %v4483_v57, %v1477_v26 }
 0x221   :  { %v1589_v29 = vpack.c.bf16 %v1575_v25, %v1574_v19  ;;  %v3399_v39 = vpop.f32.mrb[36].mxu0  ;;  %v4511_v19 = vpop.permute.xlu0 %1544 }
 0x222   :  { %v1588_v35 = vpack.c.bf16 %v1573_v28, %v1572_v27  ;;  %vm1450_vm6 = vcmp.ge.f32.partialorder %v3399_v39, 0.0  ;;  %v1466_v38 = vmul.f32 0.01, %v3399_v39  ;;  %v1397_v40 = vpop.f32.mrb[37].mxu0  ;;  %v4513_v27 = vpop.permute.xlu1 %1549 }
 0x223   :  { %vm1448_vm7 = vcmp.ge.f32.partialorder %v1397_v40, 0.0  ;;  %v1464_v46 = vmul.f32 0.01, %v1397_v40  ;;  %v3400_v47 = vpop.f32.mrb[38].mxu0 }
 0x224   :  { %v1482_v60 = vsel %vm1450_vm6, %v3399_v39, %v1466_v38  ;;  %vm1451_vm8 = vcmp.ge.f32.partialorder %v3400_v47, 0.0  ;;  %v1467_v37 = vmul.f32 0.01, %v3400_v47  ;;  %v1400_v61 = vpop.f32.mrb[39].mxu0  ;;  %3411 = vmatprep.mubr.msk.bf16.mxu1 %vm462_vm1, %v1588_v35 }
 0x225   :  { %v1480_v6 = vsel %vm1448_vm7, %v1397_v40, %v1464_v46  ;;  %vm1449_vm9 = vcmp.ge.f32.partialorder %v1400_v61, 0.0  ;;  %v1465_v11 = vmul.f32 0.01, %v1400_v61  ;;  %3412 = vmatmul.mubr.msk.bf16.vlgmr.msra.gmra.mrb[64].mxu1 %vm462_vm1, %v1589_v29  ;;  %v1578_v14 = vmul.f32 %v4491_v1, %v1482_v60 }
 0x226   :  { %v1483_v12 = vsel %vm1451_vm8, %v3400_v47, %v1467_v37  ;;  %3428 = vmatpush3.bf16.msra.mxu1 %v4238_v23  ;;  %v1576_v7 = vmul.f32 %v4487_v58, %v1480_v6 }
 0x227   :  { %v1579_v8 = vmul.f32 %v4493_v16, %v1483_v12  ;;  %v1481_v5 = vsel %vm1449_vm9, %v1400_v61, %v1465_v11  ;;  %3429 = vmatprep.subr.bf16.mxu1 %v4235_v20  ;;  %v4523_v11 = vpop.permute.xlu0 %1554  ;;  %v4525_v12 = vpop.permute.xlu1 %1559 }
 0x228   :  { %v1577_v17 = vmul.f32 %v4489_v59, %v1481_v5 }
 0x229   :  { %v1591_v25 = vpack.c.bf16 %v1579_v8, %v1578_v14  ;;  %v3403_v26 = vpop.f32.mrb[40].mxu0 }
 0x22a   :  { %v1590_v28 = vpack.c.bf16 %v1577_v17, %v1576_v7  ;;  %vm1454_vm10 = vcmp.ge.f32.partialorder %v3403_v26, 0.0  ;;  %v1470_v23 = vmul.f32 0.01, %v3403_v26  ;;  %3430 = vmatpush3.bf16.msra.mxu1 %v4235_v20  ;;  %v1413_v29 = vpop.f32.mrb[41].mxu0 }
 0x22b   :  { %vm1452_vm11 = vcmp.ge.f32.partialorder %v1413_v29, 0.0  ;;  %v1468_v39 = vmul.f32 0.01, %v1413_v29  ;;  %3431 = vmatprep.subr.bf16.mxu1 %v4253_v48  ;;  %v3404_v35 = vpop.f32.mrb[42].mxu0 }
 0x22c   :  { %v1486_v38 = vsel %vm1454_vm10, %v3403_v26, %v1470_v23  ;;  %vm1455_vm12 = vcmp.ge.f32.partialorder %v3404_v35, 0.0  ;;  %v1471_v40 = vmul.f32 0.01, %v3404_v35  ;;  %v1416_v46 = vpop.f32.mrb[43].mxu0  ;;  %3415 = vmatprep.mubr.msk.bf16.mxu1 %vm462_vm1, %v1590_v28 }
 0x22d   :  { %v1484_v47 = vsel %vm1452_vm11, %v1413_v29, %v1468_v39  ;;  %vm1453_vm13 = vcmp.ge.f32.partialorder %v1416_v46, 0.0  ;;  %v1469_v60 = vmul.f32 0.01, %v1416_v46  ;;  %3416 = vmatmul.mubr.msk.bf16.gmra.mrb[68].mxu1 %vm462_vm1, %v1591_v25  ;;  %v1582_v20 = vmul.f32 %v4511_v19, %v1486_v38 }
 0x22e   :  { %v1487_v37 = vsel %vm1455_vm12, %v3404_v35, %v1471_v40  ;;  %3432 = vmatpush3.bf16.msra.mxu1 %v4253_v48  ;;  %v1580_v14 = vmul.f32 %v4499_v41, %v1484_v47  ;;  %v4533_v40 = vpop.permute.xlu0 %1564 }
 0x22f   :  { %v1583_v61 = vmul.f32 %v4513_v27, %v1487_v37  ;;  %v1485_v6 = vsel %vm1453_vm13, %v1416_v46, %v1469_v60  ;;  %3433 = vmatprep.subr.bf16.mxu1 %v4250_v45 }
 0x230   :  { %v1581_v8 = vmul.f32 %v4501_v52, %v1485_v6 }
 0x231   :  { %v1593_v5 = vpack.c.bf16 %v1583_v61, %v1582_v20  ;;  %v3407_v7 = vpop.f32.mrb[44].mxu0 }
 0x232   :  { %v1592_v17 = vpack.c.bf16 %v1581_v8, %v1580_v14  ;;  %vm1458_vm14 = vcmp.ge.f32.partialorder %v3407_v7, 0.0  ;;  %v1474_v48 = vmul.f32 0.01, %v3407_v7  ;;  %3434 = vmatpush3.bf16.msra.mxu1 %v4250_v45  ;;  %v1429_v25 = vpop.f32.mrb[45].mxu0  ;;  %v4535_v45 = vpop.permute.xlu1 %1569  ;;  %v2023_v8 = vld [vmem:[#allocation4 + $0x40] sm:$0xff] }
 0x233   :  { %vm1456_vm15 = vcmp.ge.f32.partialorder %v1429_v25, 0.0  ;;  %v1472_v26 = vmul.f32 0.01, %v1429_v25  ;;  %3435 = vmatprep.subr.bf16.mxu1 %v4267_v9  ;;  %v3408_v28 = vpop.f32.mrb[46].mxu0 }
 0x234   :  { %v1490_v23 = vsel %vm1458_vm14, %v3407_v7, %v1474_v48  ;;  %vm1459_vm2 = vcmp.ge.f32.partialorder %v3408_v28, 0.0  ;;  %v1475_v29 = vmul.f32 0.01, %v3408_v28  ;;  %v1432_v39 = vpop.f32.mrb[47].mxu0  ;;  %3419 = vmatprep.mubr.msk.bf16.mxu1 %vm462_vm1, %v1592_v17  ;;  %v2027_v7 = vld [vmem:[#allocation4 + $0x60] sm:$0xff]  ;;  %v2029_v17 = vld [vmem:[#allocation4 + $0x70] sm:$0xff] }
 0x235   :  { %v1488_v35 = vsel %vm1456_vm15, %v1429_v25, %v1472_v26  ;;  %vm1457_vm3 = vcmp.ge.f32.partialorder %v1432_v39, 0.0  ;;  %v1473_v38 = vmul.f32 0.01, %v1432_v39  ;;  %3420 = vmatmul.mubr.msk.bf16.gmra.mrb[72].mxu1 %vm462_vm1, %v1593_v5  ;;  %v1586_v47 = vmul.f32 %v4533_v40, %v1490_v23  ;;  %v2026_v5 = vld [vmem:[#allocation4 + $0x58] sm:$0xff]  ;;  %v2014_v25 = vld [vmem:[#allocation3 + $0x40] sm:$0xff]  ;;  %v2015_v26 = vld [vmem:[#allocation3 + $0x48] sm:$0xff] }
 0x236   :  { %v1491_v46 = vsel %vm1459_vm2, %v3408_v28, %v1475_v29  ;;  %3436 = vmatpush3.bf16.msra.mxu1 %v4267_v9  ;;  %v1584_v20 = vmul.f32 %v4523_v11, %v1488_v35  ;;  %v4551_v9 = vld [vmem:[%s4822_s9] sm:$0xff]   ;;  %v2030_v48 = vld [vmem:[#allocation4 + $0x78] sm:$0xff]  ;;  %v2016_v28 = vld [vmem:[#allocation3 + $0x50] sm:$0xff] }
 0x237   :  { %v1587_v60 = vmul.f32 %v4535_v45, %v1491_v46  ;;  %v1489_v37 = vsel %vm1457_vm3, %v1432_v39, %v1473_v38  ;;  %3437 = vmatprep.subr.bf16.mxu1 %v4264_v3  ;;  %v2017_v23 = vld [vmem:[#allocation3 + $0x58] sm:$0xff]  ;;  %v2018_v29 = vld [vmem:[#allocation3 + $0x60] sm:$0xff] }
 0x238   :  { %v1585_v61 = vmul.f32 %v4525_v12, %v1489_v37 }
 0x239   :  { %v1595_v6 = vpack.c.bf16 %v1587_v60, %v1586_v47 }
 0x23a   :  { %v1594_v14 = vpack.c.bf16 %v1585_v61, %v1584_v20  ;;  %3438 = vmatpush3.bf16.msra.mxu1 %v4264_v3  ;;  %v2024_v3 = vld [vmem:[#allocation4 + $0x48] sm:$0xff] }
 0x23b   :  { %3439 = vmatprep.subr.bf16.mxu1 %v4281_v36 }
 0x23c   :  { %3423 = vmatprep.mubr.msk.bf16.mxu1 %vm462_vm1, %v1594_v14 }
 0x23d   :  { %3424 = vmatmul.mubr.msk.bf16.gmra.mrb[76].mxu1 %vm462_vm1, %v1595_v6 }
 0x23e   :  { %3440 = vmatpush3.bf16.msra.mxu1 %v4281_v36  ;;  %3443 = vmatprep.mubr.bf16.mxu1 %v4551_v9  ;;  %v2025_v36 = vld [vmem:[#allocation4 + $0x50] sm:$0xff] }
 0x23f   :  { %3441 = vmatprep.subr.bf16.mxu1 %v4278_v33 }
 0x242   :  { %3442 = vmatpush3.bf16.msra.mxu1 %v4278_v33  ;;  %v2028_v33 = vld [vmem:[#allocation4 + $0x68] sm:$0xff] }
 0x243   :  { %3491 = vmatprep.subr.bf16.mxu1 %v2023_v8 }
 0x245   :  { %3444 = vmatmul.mubr.bf16.vlgmr.msra.gmra.mrb[80].mxu1 %v4311_v18 }
 0x246   :  { %3492 = vmatpush3.bf16.msra.mxu1 %v2023_v8  ;;  %3447 = vmatprep.mubr.bf16.mxu1 %v4317_v24 }
 0x247   :  { %3493 = vmatprep.subr.bf16.mxu1 %v2024_v3 }
 0x24a   :  { %3494 = vmatpush3.bf16.msra.mxu1 %v2024_v3 }
 0x24b   :  { %3495 = vmatprep.subr.bf16.mxu1 %v2025_v36 }
 0x24d   :  { %3448 = vmatmul.mubr.bf16.gmra.mrb[84].mxu1 %v4341_v49 }
 0x24e   :  { %3496 = vmatpush3.bf16.msra.mxu1 %v2025_v36  ;;  %3451 = vmatprep.mubr.bf16.mxu1 %v4347_v53 }
 0x24f   :  { %3497 = vmatprep.subr.bf16.mxu1 %v2026_v5 }
 0x252   :  { %3498 = vmatpush3.bf16.msra.mxu1 %v2026_v5 }
 0x253   :  { %3499 = vmatprep.subr.bf16.mxu1 %v2027_v7 }
 0x255   :  { %3452 = vmatmul.mubr.bf16.gmra.mrb[88].mxu1 %v4377_v15 }
 0x256   :  { %3500 = vmatpush3.bf16.msra.mxu1 %v2027_v7  ;;  %3455 = vmatprep.mubr.bf16.mxu1 %v4383_v21 }
 0x257   :  { %3501 = vmatprep.subr.bf16.mxu1 %v2028_v33 }
 0x25a   :  { %3502 = vmatpush3.bf16.msra.mxu1 %v2028_v33 }
 0x25b   :  { %3503 = vmatprep.subr.bf16.mxu1 %v2029_v17 }
 0x25d   :  { %3456 = vmatmul.mubr.bf16.gmra.mrb[92].mxu1 %v4411_v0 }
 0x25e   :  { %3504 = vmatpush3.bf16.msra.mxu1 %v2029_v17  ;;  %3507 = vmatprep.mubr.bf16.mxu1 %v4551_v9 }
 0x25f   :  { %3505 = vmatprep.subr.bf16.mxu1 %v2030_v48 }
 0x262   :  { %3506 = vmatpush3.bf16.msra.mxu1 %v2030_v48 }
 0x263   :  { %3523 = vmatprep.subr.bf16.mxu1 %v2014_v25 }
 0x265   :  { %3508 = vmatmul.mubr.bf16.vlgmr.msra.gmra.mrb[96].mxu1 %v4311_v18  ;;  %v2019_v18 = vld [vmem:[#allocation3 + $0x68] sm:$0xff] }
 0x266   :  { %3524 = vmatpush3.bf16.msra.mxu1 %v2014_v25  ;;  %3511 = vmatprep.mubr.bf16.mxu1 %v4317_v24  ;;  %v2020_v24 = vld [vmem:[#allocation3 + $0x70] sm:$0xff] }
 0x267   :  { %3525 = vmatprep.subr.bf16.mxu1 %v2015_v26 }
 0x26a   :  { %3526 = vmatpush3.bf16.msra.mxu1 %v2015_v26 }
 0x26b   :  { %3527 = vmatprep.subr.bf16.mxu1 %v2016_v28 }
 0x26d   :  { %3512 = vmatmul.mubr.bf16.gmra.mrb[100].mxu1 %v4341_v49  ;;  %v2021_v49 = vld [vmem:[#allocation3 + $0x78] sm:$0xff] }
 0x26e   :  { %3528 = vmatpush3.bf16.msra.mxu1 %v2016_v28  ;;  %3515 = vmatprep.mubr.bf16.mxu1 %v4347_v53  ;;  %v4579_v53 = vpop.trf.xlu0 }
 0x26f   :  { %3529 = vmatprep.subr.bf16.mxu1 %v2017_v23  ;;  %3475 = vmatprep.mubr.bf16.mxu0 %v4579_v53 }
 0x272   :  { %3530 = vmatpush3.bf16.msra.mxu1 %v2017_v23 }
 0x273   :  { %3531 = vmatprep.subr.bf16.mxu1 %v2018_v29 }
 0x275   :  { %3516 = vmatmul.mubr.bf16.gmra.mrb[104].mxu1 %v4377_v15 }
 0x276   :  { %3532 = vmatpush3.bf16.msra.mxu1 %v2018_v29  ;;  %3519 = vmatprep.mubr.bf16.mxu1 %v4383_v21 }
 0x277   :  { %3533 = vmatprep.subr.bf16.mxu1 %v2019_v18 }
 0x27a   :  { %3534 = vmatpush3.bf16.msra.mxu1 %v2019_v18 }
 0x27b   :  { %3535 = vmatprep.subr.bf16.mxu1 %v2020_v24 }
 0x27d   :  { %3520 = vmatmul.mubr.bf16.gmra.mrb[108].mxu1 %v4411_v0 }
 0x27e   :  { %3536 = vmatpush3.bf16.msra.mxu1 %v2020_v24  ;;  %3539 = vmatprep.mubr.bf16.mxu1 %v4328_v34 }
 0x27f   :  { %3537 = vmatprep.subr.bf16.mxu1 %v2021_v49 }
 0x282   :  { %3538 = vmatpush3.bf16.msra.mxu1 %v2021_v49 }
 0x285   :  { %3540 = vmatmul.mubr.bf16.vlgmr.msra.gmra.mrb[96].mxu1 %v4352_v54 }
 0x286   :  { %3543 = vmatprep.mubr.bf16.mxu1 %v4364_v2 }
 0x28d   :  { %3544 = vmatmul.mubr.bf16.gmra.mrb[100].mxu1 %v4388_v22 }
 0x28e   :  { %3547 = vmatprep.mubr.bf16.mxu1 %v4401_v32 }
 0x295   :  { %3548 = vmatmul.mubr.bf16.gmra.mrb[104].mxu1 %v4418_v43 }
 0x296   :  { %3551 = vmatprep.mubr.bf16.mxu1 %v4428_v50 }
 0x29d   :  { %3552 = vmatmul.mubr.bf16.gmra.mrb[108].mxu1 %v4434_v51 }
 0x2f8   :  { %v3413_v34 = vpop.f32.mrb[64].mxu1 }
 0x2f9   :  { %v1660_v15 = vpop.f32.mrb[65].mxu1 }
 0x2fa   :  { %v3414_v21 = vpop.f32.mrb[66].mxu1 }
 0x2fb   :  { %v1663_v54 = vpop.f32.mrb[67].mxu1 }
 0x300   :  { %v3417_v0 = vpop.f32.mrb[68].mxu1 }
 0x301   :  { %v1676_v2 = vpop.f32.mrb[69].mxu1 }
 0x302   :  { %v3418_v39 = vpop.f32.mrb[70].mxu1 }
 0x303   :  { %v1679_v22 = vpop.f32.mrb[71].mxu1 }
 0x308   :  { %v3421_v35 = vpop.f32.mrb[72].mxu1 }
 0x309   :  { %v1692_v32 = vpop.f32.mrb[73].mxu1 }
 0x30a   :  { %v3422_v38 = vpop.f32.mrb[74].mxu1 }
 0x30b   :  { %v1695_v43 = vpop.f32.mrb[75].mxu1 }
 0x310   :  { %v3425_v46 = vpop.f32.mrb[76].mxu1 }
 0x311   :  { %v1708_v50 = vpop.f32.mrb[77].mxu1 }
 0x312   :  { %v3426_v47 = vpop.f32.mrb[78].mxu1 }
 0x313   :  { %v1711_v51 = vpop.f32.mrb[79].mxu1 }
 0x318   :  { %v3445_v60 = vpop.f32.mrb[80].mxu1 }
 0x319   :  { %v1830_v37 = vmul.f32 %v3445_v60, %v3413_v34  ;;  %v1765_v20 = vpop.f32.mrb[81].mxu1 }
 0x31a   :  { %v1828_v61 = vmul.f32 %v1765_v20, %v1660_v15  ;;  %v3446_v6 = vpop.f32.mrb[82].mxu1 }
 0x31b   :  { %v1831_v14 = vmul.f32 %v3446_v6, %v3414_v21  ;;  %v1768_v8 = vpop.f32.mrb[83].mxu1 }
 0x31c   :  { %v1829_v3 = vmul.f32 %v1768_v8, %v1663_v54 }
 0x31d   :  { %v1845_v36 = vpack.c.bf16 %v1831_v14, %v1830_v37 }
 0x31e   :  { %v1844_v5 = vpack.c.bf16 %v1829_v3, %v1828_v61 }
 0x320   :  { %v3449_v7 = vpop.f32.mrb[84].mxu1  ;;  %3459 = vmatprep.subr.bf16.mxu0 %v1844_v5 }
 0x321   :  { %v1834_v33 = vmul.f32 %v3449_v7, %v3417_v0  ;;  %v1781_v17 = vpop.f32.mrb[85].mxu1  ;;  %3460 = vmatpush3.bf16.msra.mxu0 %v1844_v5 }
 0x322   :  { %v1832_v48 = vmul.f32 %v1781_v17, %v1676_v2  ;;  %v3450_v25 = vpop.f32.mrb[86].mxu1  ;;  %3461 = vmatprep.subr.bf16.mxu0 %v1845_v36 }
 0x323   :  { %v1835_v26 = vmul.f32 %v3450_v25, %v3418_v39  ;;  %v1784_v28 = vpop.f32.mrb[87].mxu1 }
 0x324   :  { %v1833_v23 = vmul.f32 %v1784_v28, %v1679_v22 }
 0x325   :  { %v1847_v29 = vpack.c.bf16 %v1835_v26, %v1834_v33  ;;  %3462 = vmatpush3.bf16.msra.mxu0 %v1845_v36 }
 0x326   :  { %v1846_v18 = vpack.c.bf16 %v1833_v23, %v1832_v48 }
 0x328   :  { %v3453_v24 = vpop.f32.mrb[88].mxu1  ;;  %3463 = vmatprep.subr.bf16.mxu0 %v1846_v18 }
 0x329   :  { %v1838_v49 = vmul.f32 %v3453_v24, %v3421_v35  ;;  %v1797_v34 = vpop.f32.mrb[89].mxu1  ;;  %3464 = vmatpush3.bf16.msra.mxu0 %v1846_v18  ;;  %v4582_v35 = vpop.trf.xlu0 }
 0x32a   :  { %v1836_v15 = vmul.f32 %v1797_v34, %v1692_v32  ;;  %v3454_v21 = vpop.f32.mrb[90].mxu1  ;;  %3465 = vmatprep.subr.bf16.mxu0 %v1847_v29 }
 0x32b   :  { %v1839_v54 = vmul.f32 %v3454_v21, %v3422_v38  ;;  %v1800_v0 = vpop.f32.mrb[91].mxu1 }
 0x32c   :  { %v1837_v60 = vmul.f32 %v1800_v0, %v1695_v43 }
 0x32d   :  { %v1849_v2 = vpack.c.bf16 %v1839_v54, %v1838_v49  ;;  %3466 = vmatpush3.bf16.msra.mxu0 %v1847_v29  ;;  %v4584_v43 = vpop.trf.xlu0 }
 0x32e   :  { %v1848_v37 = vpack.c.bf16 %v1837_v60, %v1836_v15 }
 0x330   :  { %v3457_v39 = vpop.f32.mrb[92].mxu1  ;;  %3467 = vmatprep.subr.bf16.mxu0 %v1848_v37 }
 0x331   :  { %v1842_v22 = vmul.f32 %v3457_v39, %v3425_v46  ;;  %v1813_v20 = vpop.f32.mrb[93].mxu1  ;;  %3468 = vmatpush3.bf16.msra.mxu0 %v1848_v37  ;;  %v2297_v46 = vld [vmem:[%s4821_s8] sm:$0xf] }
 0x332   :  { %v1840_v61 = vmul.f32 %v1813_v20, %v1708_v50  ;;  %v3458_v6 = vpop.f32.mrb[94].mxu1  ;;  %3469 = vmatprep.subr.bf16.mxu0 %v1849_v2  ;;  %v4589_v50 = vpop.trf.xlu0 }
 0x333   :  { %v1843_v14 = vmul.f32 %v3458_v6, %v3426_v47  ;;  %v1816_v32 = vpop.f32.mrb[95].mxu1  ;;  %v2323_v47 = vsel %vm1622_vm0, %v2297_v46, 0 }
 0x334   :  { %v1841_v8 = vmul.f32 %v1816_v32, %v1711_v51 }
 0x335   :  { %v1851_v3 = vpack.c.bf16 %v1843_v14, %v1842_v22  ;;  %3470 = vmatpush3.bf16.msra.mxu0 %v1849_v2 }
 0x336   :  { %v1850_v38 = vpack.c.bf16 %v1841_v8, %v1840_v61  ;;  %v4596_v51 = vpop.trf.xlu0 }
 0x338   :  { %3471 = vmatprep.subr.bf16.mxu0 %v1850_v38 }
 0x339   :  { %3472 = vmatpush3.bf16.msra.mxu0 %v1850_v38 }
 0x33a   :  { %3473 = vmatprep.subr.bf16.mxu0 %v1851_v3  ;;  %v4599_v36 = vpop.trf.xlu0 }
 0x33d   :  { %3474 = vmatpush3.bf16.msra.mxu0 %v1851_v3 }
 0x33e   :  { %3686 = vmatprep.subr.msk.bf16.mxu0 %vm1622_vm0, %v2297_v46  ;;  %v4602_v5 = vpop.trf.xlu0 }
 0x340   :  { %3476 = vmatmul.mubr.bf16.vlgmr.msra.gmra.mrb[48].mxu0 %v4582_v35 }
 0x341   :  { %3556 = vmatpush3.bf16.msra.mxu0 %v2323_v47  ;;  %3479 = vmatprep.mubr.bf16.mxu0 %v4584_v43 }
 0x342   :  { %3573 = vmatprep.subr.bf16.mxu0 %v4420_v44  ;;  %v4606_v7 = vpop.trf.xlu0 }
 0x348   :  { %3480 = vmatmul.mubr.bf16.gmra.mrb[52].mxu0 %v4589_v50 }
 0x349   :  { %3483 = vmatprep.mubr.bf16.mxu0 %v4596_v51 }
 0x350   :  { %3484 = vmatmul.mubr.bf16.gmra.mrb[56].mxu0 %v4599_v36 }
 0x351   :  { %3487 = vmatprep.mubr.bf16.mxu0 %v4602_v5 }
 0x358   :  { %v3541_v33 = vpop.f32.mrb[96].mxu1  ;;  %3488 = vmatmul.mubr.bf16.gmra.mrb[60].mxu0 %v4606_v7 }
 0x359   :  { %vm2227_vm0 = vcmp.ge.f32.partialorder %v3541_v33, 0.0  ;;  %v2243_v17 = vmul.f32 0.01, %v3541_v33  ;;  %v2162_v48 = vpop.f32.mrb[97].mxu1 }
 0x35a   :  { %vm2225_vm4 = vcmp.ge.f32.partialorder %v2162_v48, 0.0  ;;  %v2241_v25 = vmul.f32 0.01, %v2162_v48  ;;  %v3542_v26 = vpop.f32.mrb[98].mxu1 }
 0x35b   :  { %v2259_v28 = vsel %vm2227_vm0, %v3541_v33, %v2243_v17  ;;  %vm2228_vm5 = vcmp.ge.f32.partialorder %v3542_v26, 0.0  ;;  %v2244_v23 = vmul.f32 0.01, %v3542_v26  ;;  %v2165_v29 = vpop.f32.mrb[99].mxu1 }
 0x35c   :  { %v2257_v18 = vsel %vm2225_vm4, %v2162_v48, %v2241_v25  ;;  %vm2226_vm6 = vcmp.ge.f32.partialorder %v2165_v29, 0.0  ;;  %v2242_v24 = vmul.f32 0.01, %v2165_v29  ;;  %v2275_v34 = vmul.f32 %v2259_v28, %v4481_v56 }
 0x35d   :  { %v2260_v49 = vsel %vm2228_vm5, %v3542_v26, %v2244_v23  ;;  %v2273_v54 = vmul.f32 %v2257_v18, %v4479_v55 }
 0x35e   :  { %v2276_v15 = vmul.f32 %v2260_v49, %v4485_v62  ;;  %v2258_v21 = vsel %vm2226_vm6, %v2165_v29, %v2242_v24 }
 0x35f   :  { %v2274_v0 = vmul.f32 %v2258_v21, %v4483_v57 }
 0x360   :  { %v2290_v60 = vpack.c.bf16 %v2276_v15, %v2275_v34  ;;  %v3545_v2 = vpop.f32.mrb[100].mxu1 }
 0x361   :  { %v2289_v37 = vpack.c.bf16 %v2274_v0, %v2273_v54  ;;  %vm2231_vm7 = vcmp.ge.f32.partialorder %v3545_v2, 0.0  ;;  %v2247_v39 = vmul.f32 0.01, %v3545_v2  ;;  %v2178_v22 = vpop.f32.mrb[101].mxu1 }
 0x362   :  { %vm2229_vm8 = vcmp.ge.f32.partialorder %v2178_v22, 0.0  ;;  %v2245_v20 = vmul.f32 0.01, %v2178_v22  ;;  %v3546_v61 = vpop.f32.mrb[102].mxu1 }
 0x363   :  { %v2263_v6 = vsel %vm2231_vm7, %v3545_v2, %v2247_v39  ;;  %vm2232_vm9 = vcmp.ge.f32.partialorder %v3546_v61, 0.0  ;;  %v2248_v14 = vmul.f32 0.01, %v3546_v61  ;;  %v2181_v56 = vpop.f32.mrb[103].mxu1  ;;  %3557 = vmatprep.mubr.msk.bf16.mxu0 %vm462_vm1, %v2289_v37 }
 0x364   :  { %v2261_v62 = vsel %vm2229_vm8, %v2178_v22, %v2245_v20  ;;  %vm2230_vm10 = vcmp.ge.f32.partialorder %v2181_v56, 0.0  ;;  %v2246_v55 = vmul.f32 0.01, %v2181_v56  ;;  %3558 = vmatmul.mubr.msk.bf16.vlgmr.msra.gmra.mrb[64].mxu0 %vm462_vm1, %v2290_v60  ;;  %v2279_v32 = vmul.f32 %v2263_v6, %v4491_v1 }
 0x365   :  { %v2264_v57 = vsel %vm2232_vm9, %v3546_v61, %v2248_v14  ;;  %3574 = vmatpush3.bf16.msra.mxu0 %v4420_v44  ;;  %v2277_v38 = vmul.f32 %v2261_v62, %v4487_v58 }
 0x366   :  { %v2280_v8 = vmul.f32 %v2264_v57, %v4493_v16  ;;  %v2262_v3 = vsel %vm2230_vm10, %v2181_v56, %v2246_v55  ;;  %3575 = vmatprep.subr.bf16.mxu0 %v4413_v42 }
 0x367   :  { %v2278_v46 = vmul.f32 %v2262_v3, %v4489_v59 }
 0x368   :  { %v2292_v47 = vpack.c.bf16 %v2280_v8, %v2279_v32  ;;  %v3549_v33 = vpop.f32.mrb[104].mxu1 }
 0x369   :  { %v2291_v17 = vpack.c.bf16 %v2278_v46, %v2277_v38  ;;  %vm2235_vm11 = vcmp.ge.f32.partialorder %v3549_v33, 0.0  ;;  %v2251_v48 = vmul.f32 0.01, %v3549_v33  ;;  %3576 = vmatpush3.bf16.msra.mxu0 %v4413_v42  ;;  %v2194_v25 = vpop.f32.mrb[105].mxu1 }
 0x36a   :  { %vm2233_vm12 = vcmp.ge.f32.partialorder %v2194_v25, 0.0  ;;  %v2249_v44 = vmul.f32 0.01, %v2194_v25  ;;  %3577 = vmatprep.subr.bf16.mxu0 %v4450_v4  ;;  %v3550_v1 = vpop.f32.mrb[106].mxu1 }
 0x36b   :  { %v2267_v16 = vsel %vm2235_vm11, %v3549_v33, %v2251_v48  ;;  %vm2236_vm13 = vcmp.ge.f32.partialorder %v3550_v1, 0.0  ;;  %v2252_v26 = vmul.f32 0.01, %v3550_v1  ;;  %v2197_v28 = vpop.f32.mrb[107].mxu1  ;;  %3561 = vmatprep.mubr.msk.bf16.mxu0 %vm462_vm1, %v2291_v17 }
 0x36c   :  { %v2265_v58 = vsel %vm2233_vm12, %v2194_v25, %v2249_v44  ;;  %vm2234_vm14 = vcmp.ge.f32.partialorder %v2197_v28, 0.0  ;;  %v2250_v59 = vmul.f32 0.01, %v2197_v28  ;;  %3562 = vmatmul.mubr.msk.bf16.gmra.mrb[68].mxu0 %vm462_vm1, %v2292_v47  ;;  %v2283_v42 = vmul.f32 %v2267_v16, %v4511_v19 }
 0x36d   :  { %v2268_v23 = vsel %vm2236_vm13, %v3550_v1, %v2252_v26  ;;  %3578 = vmatpush3.bf16.msra.mxu0 %v4450_v4  ;;  %v2281_v24 = vmul.f32 %v2265_v58, %v4499_v41 }
 0x36e   :  { %v2284_v29 = vmul.f32 %v2268_v23, %v4513_v27  ;;  %v2266_v18 = vsel %vm2234_vm14, %v2197_v28, %v2250_v59  ;;  %3579 = vmatprep.subr.bf16.mxu0 %v4448_v63 }
 0x36f   :  { %v2282_v49 = vmul.f32 %v2266_v18, %v4501_v52 }
 0x370   :  { %v2294_v34 = vpack.c.bf16 %v2284_v29, %v2283_v42  ;;  %v3553_v15 = vpop.f32.mrb[108].mxu1 }
 0x371   :  { %v2293_v21 = vpack.c.bf16 %v2282_v49, %v2281_v24  ;;  %vm2239_vm15 = vcmp.ge.f32.partialorder %v3553_v15, 0.0  ;;  %v2255_v54 = vmul.f32 0.01, %v3553_v15  ;;  %3580 = vmatpush3.bf16.msra.mxu0 %v4448_v63  ;;  %v2210_v0 = vpop.f32.mrb[109].mxu1 }
 0x372   :  { %vm2237_vm2 = vcmp.ge.f32.partialorder %v2210_v0, 0.0  ;;  %v2253_v4 = vmul.f32 0.01, %v2210_v0  ;;  %3581 = vmatprep.subr.bf16.mxu0 %v4458_v13  ;;  %v3554_v19 = vpop.f32.mrb[110].mxu1 }
 0x373   :  { %v2271_v27 = vsel %vm2239_vm15, %v3553_v15, %v2255_v54  ;;  %vm2240_vm3 = vcmp.ge.f32.partialorder %v3554_v19, 0.0  ;;  %v2256_v60 = vmul.f32 0.01, %v3554_v19  ;;  %v2213_v2 = vpop.f32.mrb[111].mxu1  ;;  %3565 = vmatprep.mubr.msk.bf16.mxu0 %vm462_vm1, %v2293_v21 }
 0x374   :  { %v2269_v41 = vsel %vm2237_vm2, %v2210_v0, %v2253_v4  ;;  %vm2238_vm0 = vcmp.ge.f32.partialorder %v2213_v2, 0.0  ;;  %v2254_v52 = vmul.f32 0.01, %v2213_v2  ;;  %3566 = vmatmul.mubr.msk.bf16.gmra.mrb[72].mxu0 %vm462_vm1, %v2294_v34  ;;  %v2287_v63 = vmul.f32 %v2271_v27, %v4533_v40  ;;  %v3771_v40 = vld [vmem:[%s4822_s9 + $0x38] sm:$0xff]  }
 0x375   :  { %v2272_v37 = vsel %vm2240_vm3, %v3554_v19, %v2256_v60  ;;  %3582 = vmatpush3.bf16.msra.mxu0 %v4458_v13  ;;  %v2285_v20 = vmul.f32 %v2269_v41, %v4523_v11  ;;  %v3765_v13 = vld [vmem:[%s4822_s9 + $0x8] sm:$0xff]   ;;  %v3768_v11 = vld [vmem:[%s4822_s9 + $0x20] sm:$0xff]  }
 0x376   :  { %v2288_v39 = vmul.f32 %v2272_v37, %v4535_v45  ;;  %v2270_v22 = vsel %vm2238_vm0, %v2213_v2, %v2254_v52  ;;  %3583 = vmatprep.subr.bf16.mxu0 %v4456_v10 }
 0x377   :  { %v2286_v61 = vmul.f32 %v2270_v22, %v4525_v12  ;;  %v3770_v12 = vld [vmem:[%s4822_s9 + $0x30] sm:$0xff]  }
 0x378   :  { %v2296_v6 = vpack.c.bf16 %v2288_v39, %v2287_v63 }
 0x379   :  { %v2295_v14 = vpack.c.bf16 %v2286_v61, %v2285_v20  ;;  %3584 = vmatpush3.bf16.msra.mxu0 %v4456_v10  ;;  %v3766_v10 = vld [vmem:[%s4822_s9 + $0x10] sm:$0xff]  }
 0x37a   :  { %3585 = vmatprep.subr.bf16.mxu0 %v4466_v31 }
 0x37b   :  { %3569 = vmatprep.mubr.msk.bf16.mxu0 %vm462_vm1, %v2295_v14 }
 0x37c   :  { %3570 = vmatmul.mubr.msk.bf16.gmra.mrb[76].mxu0 %vm462_vm1, %v2296_v6 }
 0x37d   :  { %3586 = vmatpush3.bf16.msra.mxu0 %v4466_v31  ;;  %3589 = vmatprep.mubr.bf16.mxu0 %v4551_v9  ;;  %v3767_v31 = vld [vmem:[%s4822_s9 + $0x18] sm:$0xff]  }
 0x37e   :  { %3587 = vmatprep.subr.bf16.mxu0 %v4464_v30 }
 0x381   :  { %3588 = vmatpush3.bf16.msra.mxu0 %v4464_v30  ;;  %v3769_v30 = vld [vmem:[%s4822_s9 + $0x28] sm:$0xff]  }
 0x384   :  { %3590 = vmatmul.mubr.bf16.vlgmr.msra.gmra.mrb[80].mxu0 %v3765_v13 }
 0x385   :  { %3593 = vmatprep.mubr.bf16.mxu0 %v3766_v10 }
 0x38c   :  { %3594 = vmatmul.mubr.bf16.gmra.mrb[84].mxu0 %v3767_v31 }
 0x38d   :  { %3597 = vmatprep.mubr.bf16.mxu0 %v3768_v11 }
 0x394   :  { %3598 = vmatmul.mubr.bf16.gmra.mrb[88].mxu0 %v3769_v30 }
 0x395   :  { %3601 = vmatprep.mubr.bf16.mxu0 %v3770_v12 }
 0x39c   :  { %3602 = vmatmul.mubr.bf16.gmra.mrb[92].mxu0 %v3771_v40 }
 0x39d   :  { %3621 = vmatprep.mubr.bf16.mxu0 %v4579_v53 }
 0x437   :  { %v3559_v45 = vpop.f32.mrb[64].mxu0 }
 0x438   :  { %v2359_v9 = vpop.f32.mrb[65].mxu0 }
 0x439   :  { %v3560_v56 = vpop.f32.mrb[66].mxu0 }
 0x43a   :  { %v2362_v62 = vpop.f32.mrb[67].mxu0 }
 0x43f   :  { %v3563_v55 = vpop.f32.mrb[68].mxu0 }
 0x440   :  { %v2375_v57 = vpop.f32.mrb[69].mxu0 }
 0x441   :  { %v3564_v32 = vpop.f32.mrb[70].mxu0 }
 0x442   :  { %v2378_v8 = vpop.f32.mrb[71].mxu0 }
 0x447   :  { %v3567_v3 = vpop.f32.mrb[72].mxu0 }
 0x448   :  { %v2391_v38 = vpop.f32.mrb[73].mxu0 }
 0x449   :  { %v3568_v46 = vpop.f32.mrb[74].mxu0 }
 0x44a   :  { %v2394_v47 = vpop.f32.mrb[75].mxu0 }
 0x44f   :  { %v3571_v33 = vpop.f32.mrb[76].mxu0 }
 0x450   :  { %v2407_v17 = vpop.f32.mrb[77].mxu0 }
 0x451   :  { %v3572_v48 = vpop.f32.mrb[78].mxu0 }
 0x452   :  { %v2410_v25 = vpop.f32.mrb[79].mxu0 }
 0x457   :  { %v3591_v44 = vpop.f32.mrb[80].mxu0 }
 0x458   :  { %v2530_v1 = vmul.f32 %v3591_v44, %v3559_v45  ;;  %v2465_v16 = vpop.f32.mrb[81].mxu0 }
 0x459   :  { %v2528_v53 = vmul.f32 %v2465_v16, %v2359_v9  ;;  %v3592_v26 = vpop.f32.mrb[82].mxu0 }
 0x45a   :  { %v2531_v28 = vmul.f32 %v3592_v26, %v3560_v56  ;;  %v2468_v58 = vpop.f32.mrb[83].mxu0 }
 0x45b   :  { %v2529_v59 = vmul.f32 %v2468_v58, %v2362_v62 }
 0x45c   :  { %v2545_v23 = vpack.c.bf16 %v2531_v28, %v2530_v1 }
 0x45d   :  { %v2544_v42 = vpack.c.bf16 %v2529_v59, %v2528_v53 }
 0x45f   :  { %v3595_v29 = vpop.f32.mrb[84].mxu0  ;;  %3605 = vmatprep.subr.bf16.mxu0 %v2544_v42 }
 0x460   :  { %v2534_v18 = vmul.f32 %v3595_v29, %v3563_v55  ;;  %v2481_v24 = vpop.f32.mrb[85].mxu0  ;;  %3606 = vmatpush3.bf16.msra.mxu0 %v2544_v42 }
 0x461   :  { %v2532_v49 = vmul.f32 %v2481_v24, %v2375_v57  ;;  %v3596_v34 = vpop.f32.mrb[86].mxu0  ;;  %3607 = vmatprep.subr.bf16.mxu0 %v2545_v23 }
 0x462   :  { %v2535_v15 = vmul.f32 %v3596_v34, %v3564_v32  ;;  %v2484_v21 = vpop.f32.mrb[87].mxu0 }
 0x463   :  { %v2533_v54 = vmul.f32 %v2484_v21, %v2378_v8 }
 0x464   :  { %v2547_v0 = vpack.c.bf16 %v2535_v15, %v2534_v18  ;;  %3608 = vmatpush3.bf16.msra.mxu0 %v2545_v23 }
 0x465   :  { %v2546_v4 = vpack.c.bf16 %v2533_v54, %v2532_v49 }
 0x467   :  { %v3599_v19 = vpop.f32.mrb[88].mxu0  ;;  %3609 = vmatprep.subr.bf16.mxu0 %v2546_v4 }
 0x468   :  { %v2538_v27 = vmul.f32 %v3599_v19, %v3567_v3  ;;  %v2497_v60 = vpop.f32.mrb[89].mxu0  ;;  %3610 = vmatpush3.bf16.msra.mxu0 %v2546_v4 }
 0x469   :  { %v2536_v2 = vmul.f32 %v2497_v60, %v2391_v38  ;;  %v3600_v41 = vpop.f32.mrb[90].mxu0  ;;  %3611 = vmatprep.subr.bf16.mxu0 %v2547_v0 }
 0x46a   :  { %v2539_v52 = vmul.f32 %v3600_v41, %v3568_v46  ;;  %v2500_v37 = vpop.f32.mrb[91].mxu0 }
 0x46b   :  { %v2537_v63 = vmul.f32 %v2500_v37, %v2394_v47 }
 0x46c   :  { %v2549_v39 = vpack.c.bf16 %v2539_v52, %v2538_v27  ;;  %3612 = vmatpush3.bf16.msra.mxu0 %v2547_v0 }
 0x46d   :  { %v2548_v22 = vpack.c.bf16 %v2537_v63, %v2536_v2 }
 0x46f   :  { %v3603_v20 = vpop.f32.mrb[92].mxu0  ;;  %3613 = vmatprep.subr.bf16.mxu0 %v2548_v22 }
 0x470   :  { %v2542_v61 = vmul.f32 %v3603_v20, %v3571_v33  ;;  %v2513_v6 = vpop.f32.mrb[93].mxu0  ;;  %3614 = vmatpush3.bf16.msra.mxu0 %v2548_v22 }
 0x471   :  { %v2540_v14 = vmul.f32 %v2513_v6, %v2407_v17  ;;  %v3604_v13 = vpop.f32.mrb[94].mxu0  ;;  %3615 = vmatprep.subr.bf16.mxu0 %v2549_v39 }
 0x472   :  { %v2543_v10 = vmul.f32 %v3604_v13, %v3572_v48  ;;  %v2516_v31 = vpop.f32.mrb[95].mxu0 }
 0x473   :  { %v2541_v11 = vmul.f32 %v2516_v31, %v2410_v25 }
 0x474   :  { %v2551_v30 = vpack.c.bf16 %v2543_v10, %v2542_v61  ;;  %3616 = vmatpush3.bf16.msra.mxu0 %v2549_v39 }
 0x475   :  { %v2550_v12 = vpack.c.bf16 %v2541_v11, %v2540_v14 }
 0x477   :  { %3617 = vmatprep.subr.bf16.mxu0 %v2550_v12 }
 0x478   :  { %3618 = vmatpush3.bf16.msra.mxu0 %v2550_v12 }
 0x479   :  { %3619 = vmatprep.subr.bf16.mxu0 %v2551_v30 }
 0x47c   :  { %3620 = vmatpush3.bf16.msra.mxu0 %v2551_v30 }
 0x47f   :  { %3622 = vmatmul.mubr.bf16.vlgmr.msra.gmra.mrb[48].mxu0 %v4582_v35 }
 0x480   :  { %3625 = vmatprep.mubr.bf16.mxu0 %v4584_v43 }
 0x487   :  { %3626 = vmatmul.mubr.bf16.gmra.mrb[52].mxu0 %v4589_v50 }
 0x488   :  { %3629 = vmatprep.mubr.bf16.mxu0 %v4596_v51 }
 0x48f   :  { %3630 = vmatmul.mubr.bf16.gmra.mrb[56].mxu0 %v4599_v36 }
 0x490   :  { %3633 = vmatprep.mubr.bf16.mxu0 %v4602_v5 }
 0x497   :  { %3634 = vmatmul.mubr.bf16.gmra.mrb[60].mxu0 %v4606_v7 }
 0x552   :  { %v4678_v40 = vpop.f32.mrb[48].mxu0 }
 0x553   :  { %v4680_v45 = vpop.f32.mrb[49].mxu0  ;;  %v2740_v51 = vmul.f32 %v4678_v40, %v4678_v40 }
 0x554   :  { %v4682_v9 = vpop.f32.mrb[50].mxu0  ;;  %v2738_v35 = vmul.f32 %v4680_v45, %v4680_v45 }
 0x555   :  { %v4684_v56 = vpop.f32.mrb[51].mxu0  ;;  %v2741_v7 = vmul.f32 %v4682_v9, %v4682_v9 }
 0x556   :  { %v2716_v43 = vadd.f32 %v4684_v56, %v4680_v45  ;;  %v2739_v50 = vmul.f32 %v4684_v56, %v4684_v56 }
 0x558   :  { %v2717_v36 = vadd.f32 %v4678_v40, %v2716_v43  ;;  %v2754_v5 = vadd.f32 %v2739_v50, %v2738_v35 }
 0x55a   :  { %v2755_v62 = vadd.f32 %v2754_v5, %v2740_v51  ;;  %v4697_v55 = vpop.f32.mrb[52].mxu0  ;;  %v2718_v57 = vadd.f32 %v4682_v9, %v2717_v36 }
 0x55b   :  { %v4700_v32 = vpop.f32.mrb[53].mxu0  ;;  %v2744_v25 = vmul.f32 %v4697_v55, %v4697_v55 }
 0x55c   :  { %v2719_v8 = vadd.f32 %v2718_v57, %v4700_v32  ;;  %v2742_v3 = vmul.f32 %v4700_v32, %v4700_v32  ;;  %v2756_v38 = vadd.f32 %v2755_v62, %v2741_v7  ;;  %v4705_v46 = vpop.f32.mrb[54].mxu0 }
 0x55d   :  { %v4707_v47 = vpop.f32.mrb[55].mxu0  ;;  %v2745_v16 = vmul.f32 %v4705_v46, %v4705_v46 }
 0x55e   :  { %v2757_v33 = vadd.f32 %v2756_v38, %v2742_v3  ;;  %v2720_v17 = vadd.f32 %v2719_v8, %v4707_v47  ;;  %v2743_v48 = vmul.f32 %v4707_v47, %v4707_v47 }
 0x560   :  { %v2721_v44 = vadd.f32 %v4697_v55, %v2720_v17  ;;  %v2758_v1 = vadd.f32 %v2757_v33, %v2743_v48 }
 0x562   :  { %v2759_v53 = vadd.f32 %v2758_v1, %v2744_v25  ;;  %v4717_v26 = vpop.f32.mrb[56].mxu0  ;;  %v2722_v28 = vadd.f32 %v4705_v46, %v2721_v44 }
 0x563   :  { %v4720_v58 = vpop.f32.mrb[57].mxu0  ;;  %v2748_v15 = vmul.f32 %v4717_v26, %v4717_v26 }
 0x564   :  { %v2723_v59 = vadd.f32 %v2722_v28, %v4720_v58  ;;  %v2746_v23 = vmul.f32 %v4720_v58, %v4720_v58  ;;  %v2760_v42 = vadd.f32 %v2759_v53, %v2745_v16  ;;  %v4725_v29 = vpop.f32.mrb[58].mxu0 }
 0x565   :  { %v4727_v18 = vpop.f32.mrb[59].mxu0  ;;  %v2749_v0 = vmul.f32 %v4725_v29, %v4725_v29 }
 0x566   :  { %v2761_v24 = vadd.f32 %v2760_v42, %v2746_v23  ;;  %v2724_v49 = vadd.f32 %v2723_v59, %v4727_v18  ;;  %v2747_v34 = vmul.f32 %v4727_v18, %v4727_v18 }
 0x568   :  { %v2725_v21 = vadd.f32 %v4717_v26, %v2724_v49  ;;  %v2762_v54 = vadd.f32 %v2761_v24, %v2747_v34 }
 0x56a   :  { %v2763_v4 = vadd.f32 %v2762_v54, %v2748_v15  ;;  %v4737_v19 = vpop.f32.mrb[60].mxu0  ;;  %v2726_v27 = vadd.f32 %v4725_v29, %v2725_v21 }
 0x56b   :  { %v4740_v60 = vpop.f32.mrb[61].mxu0  ;;  %v2752_v61 = vmul.f32 %v4737_v19, %v4737_v19 }
 0x56c   :  { %v2727_v2 = vadd.f32 %v2726_v27, %v4740_v60  ;;  %v2750_v41 = vmul.f32 %v4740_v60, %v4740_v60  ;;  %v2764_v52 = vadd.f32 %v2763_v4, %v2749_v0  ;;  %v4745_v37 = vpop.f32.mrb[62].mxu0 }
 0x56d   :  { %v2653_v63 = vpop.f32.mrb[63].mxu0  ;;  %v2753_v13 = vmul.f32 %v4745_v37, %v4745_v37 }
 0x56e   :  { %v2765_v39 = vadd.f32 %v2764_v52, %v2750_v41  ;;  %v2728_v22 = vadd.f32 %v2727_v2, %v2653_v63  ;;  %v2751_v20 = vmul.f32 %v2653_v63, %v2653_v63 }
 0x570   :  { %v2729_v6 = vadd.f32 %v4737_v19, %v2728_v22  ;;  %v2766_v14 = vadd.f32 %v2765_v39, %v2751_v20 }
 0x572   :  { %v2730_v10 = vadd.f32 %v4745_v37, %v2729_v6  ;;  %v2767_v31 = vadd.f32 %v2766_v14, %v2752_v61 }
 0x574   :  { %v2731_v11 = vrot.slane %v2730_v10, 4  ;;  %v2768_v30 = vadd.f32 %v2767_v31, %v2753_v13 }
 0x576   :  { %v2732_v12 = vadd.f32 %v2731_v11, %v2730_v10  ;;  %v2769_v35 = vrot.slane %v2768_v30, 4 }
 0x578   :  { %v2733_v43 = vrot.slane %v2732_v12, 2  ;;  %v2770_v50 = vadd.f32 %v2769_v35, %v2768_v30 }
 0x57a   :  { %v2734_v51 = vadd.f32 %v2733_v43, %v2732_v12  ;;  %v2771_v36 = vrot.slane %v2770_v50, 2 }
 0x57c   :  { %v2735_v5 = vrot.slane %v2734_v51, 1  ;;  %v2772_v7 = vadd.f32 %v2771_v36, %v2770_v50 }
 0x57e   :  { %v2736_v62 = vadd.f32 %v2735_v5, %v2734_v51  ;;  %v2773_v57 = vrot.slane %v2772_v7, 1 }
 0x580   :  { %v2737_v8 = vmul.f32 0.015625, %v2736_v62  ;;  %v2774_v3 = vadd.f32 %v2773_v57, %v2772_v7 }
 0x582   :  { %v2775_v38 = vmul.f32 0.015625, %v2774_v3  ;;  %v2776_v33 = vmul.f32 %v2737_v8, %v2737_v8  ;;  %v2779_v17 = vsub.f32 %v4680_v45, %v2737_v8  ;;  %v2780_v48 = vsub.f32 %v4684_v56, %v2737_v8 }
 0x583   :  { %v2781_v25 = vsub.f32 %v4678_v40, %v2737_v8  ;;  %v2782_v44 = vsub.f32 %v4682_v9, %v2737_v8  ;;  %v2783_v1 = vsub.f32 %v4700_v32, %v2737_v8  ;;  %v2784_v16 = vsub.f32 %v4707_v47, %v2737_v8 }
 0x584   :  { %v2777_v53 = vsub.f32 %v2775_v38, %v2776_v33  ;;  %v2785_v28 = vsub.f32 %v4697_v55, %v2737_v8  ;;  %v2786_v59 = vsub.f32 %v4705_v46, %v2737_v8  ;;  %v2787_v23 = vsub.f32 %v4720_v58, %v2737_v8 }
 0x585   :  { %v2788_v42 = vsub.f32 %v4727_v18, %v2737_v8  ;;  %v2789_v45 = vsub.f32 %v4717_v26, %v2737_v8  ;;  %v2790_v56 = vsub.f32 %v4725_v29, %v2737_v8  ;;  %v2791_v40 = vsub.f32 %v4740_v60, %v2737_v8 }
 0x586   :  { %v2778_v9 = vmax.f32 %v2777_v53, 0.0  ;;  %v2792_v24 = vsub.f32 %v2653_v63, %v2737_v8  ;;  %v2793_v32 = vsub.f32 %v4737_v19, %v2737_v8  ;;  %v2794_v47 = vsub.f32 %v4745_v37, %v2737_v8 }
 0x588   :  { %v2795_v49 = vadd.f32 1e-05, %v2778_v9 }
 0x58a   :  { %3762 = vrsqrt.f32 %v2795_v49 }
 0x594   :  { %v3763_v55 = vpop.eup %3762 }
 0x595   :  { %v2797_v46 = vmul.f32 %v3763_v55, %v2779_v17  ;;  %v2798_v34 = vmul.f32 %v3763_v55, %v2780_v48  ;;  %v2799_v58 = vmul.f32 %v3763_v55, %v2781_v25  ;;  %v2800_v15 = vmul.f32 %v3763_v55, %v2782_v44 }
 0x596   :  { %v2801_v18 = vmul.f32 %v3763_v55, %v2783_v1  ;;  %v2802_v21 = vmul.f32 %v3763_v55, %v2784_v16  ;;  %v2803_v26 = vmul.f32 %v3763_v55, %v2785_v28  ;;  %v2804_v54 = vmul.f32 %v3763_v55, %v2786_v59 }
 0x597   :  { %v2805_v29 = vmul.f32 %v3763_v55, %v2787_v23  ;;  %v2806_v0 = vmul.f32 %v3763_v55, %v2788_v42  ;;  %v2807_v4 = vmul.f32 %v3763_v55, %v2789_v45  ;;  %v2808_v27 = vmul.f32 %v3763_v55, %v2790_v56 }
 0x598   :  { %v2809_v60 = vmul.f32 %v3763_v55, %v2791_v40  ;;  %v2810_v2 = vmul.f32 %v3763_v55, %v2792_v24  ;;  %v2811_v19 = vmul.f32 %v3763_v55, %v2793_v32  ;;  %v2812_v41 = vmul.f32 %v3763_v55, %v2794_v47 }
 0x599   :  { %v2813_v52 = vmax.f32 %v2797_v46, 0.0  ;;  %v2814_v37 = vmax.f32 %v2798_v34, 0.0  ;;  %v2815_v63 = vmax.f32 %v2799_v58, 0.0  ;;  %v2816_v39 = vmax.f32 %v2800_v15, 0.0 }
 0x59a   :  { %v2817_v22 = vmax.f32 %v2801_v18, 0.0  ;;  %v2818_v20 = vmax.f32 %v2802_v21, 0.0  ;;  %v2819_v61 = vmax.f32 %v2803_v26, 0.0  ;;  %v2820_v6 = vmax.f32 %v2804_v54, 0.0 }
 0x59b   :  { %v2821_v14 = vmax.f32 %v2805_v29, 0.0  ;;  %v2822_v13 = vmax.f32 %v2806_v0, 0.0  ;;  %v2823_v10 = vmax.f32 %v2807_v4, 0.0  ;;  %v2824_v31 = vmax.f32 %v2808_v27, 0.0  ;;  %2829 = vst [vmem:[%s4828_s12] sm:$0xff] %v2813_v52  ;;  %2830 = vst [vmem:[%s4828_s12 + $0x8] sm:$0xff] %v2814_v37 }
 0x59c   :  { %2831 = vst [vmem:[%s4828_s12 + $0x10] sm:$0xff] %v2815_v63  ;;  %2832 = vst [vmem:[%s4828_s12 + $0x18] sm:$0xff] %v2816_v39  ;;  %v2825_v11 = vmax.f32 %v2809_v60, 0.0  ;;  %v2826_v30 = vmax.f32 %v2810_v2, 0.0  ;;  %v2827_v12 = vmax.f32 %v2811_v19, 0.0  ;;  %v2828_v35 = vmax.f32 %v2812_v41, 0.0 }
 0x59d   :  { %2833 = vst [vmem:[%s4828_s12 + $0x20] sm:$0xff] %v2817_v22  ;;  %2834 = vst [vmem:[%s4828_s12 + $0x28] sm:$0xff] %v2818_v20 }
 0x59e   :  { %2835 = vst [vmem:[%s4828_s12 + $0x30] sm:$0xff] %v2819_v61  ;;  %2836 = vst [vmem:[%s4828_s12 + $0x38] sm:$0xff] %v2820_v6 }
 0x59f   :  { %2837 = vst [vmem:[%s4828_s12 + $0x40] sm:$0xff] %v2821_v14  ;;  %2838 = vst [vmem:[%s4828_s12 + $0x48] sm:$0xff] %v2822_v13 }
 0x5a0   :  { %2839 = vst [vmem:[%s4828_s12 + $0x50] sm:$0xff] %v2823_v10  ;;  %2840 = vst [vmem:[%s4828_s12 + $0x58] sm:$0xff] %v2824_v31 }
 0x5a1   :  { %2841 = vst [vmem:[%s4828_s12 + $0x60] sm:$0xff] %v2825_v11  ;;  %2842 = vst [vmem:[%s4828_s12 + $0x68] sm:$0xff] %v2826_v30 }
 0x5a2   :  { %2843 = vst [vmem:[%s4828_s12 + $0x70] sm:$0xff] %v2827_v12  ;;  %2844 = vst [vmem:[%s4828_s12 + $0x78] sm:$0xff] %v2828_v35 }

// kernel: gat_forward.11
= control target key start
LH: loop header
LB: loop body
LE: loop exit
PB: predicated region body
PF: predicated region fallthrough
CT: control target
= control target key end

     0   :  { %vm41_vm0 = vcmask 125952   ;;  %v683_v0 = vmov 0.0|0.0   ;;  %vm684_vm1 = vmmov 0   ;;  %v685_v3 = vmov 0.0   ;;  %s852_s1 = inlined_call_operand.vmem [shape: f32[16,32], index: 1, kind: input, shape index: {}]   ;;  %s853_s0 = inlined_call_operand.vmem [shape: f32[4,16], index: 0, kind: input, shape index: {}]   ;;  %s854_s3 = inlined_call_operand.vmem [shape: f32[32,32], index: 3, kind: input, shape index: {}]   ;;  %s855_s2 = inlined_call_operand.vmem [shape: f32[1,32], index: 2, kind: input, shape index: {}]   ;;  %s856_s5 = inlined_call_operand.vmem [shape: f32[32,32], index: 5, kind: input, shape index: {}]   ;;  %s857_s4 = inlined_call_operand.vmem [shape: f32[1,32], index: 4, kind: input, shape index: {}]   ;;  %s858_s7 = inlined_call_operand.vmem [shape: f32[32,32], index: 7, kind: input, shape index: {}]   ;;  %s859_s9 = inlined_call_operand.vmem [shape: f32[32,1], index: 9, kind: input, shape index: {}]   ;;  %s860_s6 = inlined_call_operand.vmem [shape: f32[1,32], index: 6, kind: input, shape index: {}]   ;;  %s861_s10 = inlined_call_operand.<no memory space> [shape: f32[1,1], index: 10, kind: input, shape index: {}]   ;;  %s862_s8 = inlined_call_operand.vmem [shape: f32[1,32], index: 8, kind: input, shape index: {}]   ;;  %s863_s11 = inlined_call_operand.vmem [shape: f32[4,1], index: 11, kind: output, shape index: {}]  }
   0x1   :  { %645 = vmatprep.subr.bf16.mxu0 %v683_v0  ;;  %v65_v1 = vld [vmem:[%s852_s1] sm:$0xff]  ;;  %v66_v2 = vld [vmem:[%s852_s1 + $0x8] sm:$0xff]  ;;  %598 = vmatprep.mubr.msk.f32.mxu0 %vm684_vm1, %v685_v3  ;;  %vm74_vm2 = vcmask 130048   ;;  %v173_v31 = vld [vmem:[%s854_s3 + $0x10] sm:$0xff]  ;;  %vm148_vm3 = vcmask 257024   ;;  %vm182_vm4 = vcmask 261120  }
   0x2   :  { %v40_v4 = vld [vmem:[%s853_s0] sm:$0xf]  ;;  %v646_v5 = vpack.c.bf16 %v66_v2, %v65_v1  ;;  %648 = vmatprep.subr.bf16.mxu1 %v683_v0  ;;  %609 = vmatprep.mubr.msk.f32.mxu1 %vm684_vm1, %v685_v3  ;;  %v172_v29 = vld [vmem:[%s854_s3 + $0x8] sm:$0xff]  ;;  %v174_v32 = vld [vmem:[%s854_s3 + $0x18] sm:$0xff]  ;;  %vm555_vm5 = vcmask 3072  }
   0x3   :  { %v42_v6 = vsel %vm41_vm0, %v40_v4, 0.0  ;;  %v171_v28 = vld [vmem:[%s854_s3] sm:$0xff]  ;;  %v652_v33 = vpack.c.bf16 %v174_v32, %v173_v31  ;;  %v280_v61 = vld [vmem:[%s856_s5 + $0x8] sm:$0xff]  ;;  %v281_v63 = vld [vmem:[%s856_s5 + $0x10] sm:$0xff] }
   0x4   :  { %v43_v7 = vrot.slane %v42_v6, 4  ;;  %647 = vmatpush3.bf16.msra.mxu0 %v646_v5  ;;  %v649_v30 = vpack.c.bf16 %v172_v29, %v171_v28  ;;  %v561_v34 = vld [vmem:[%s855_s2] ss:$0 sm:$0xff]  ;;  %v282_v1 = vld [vmem:[%s856_s5 + $0x18] sm:$0xff]  ;;  %v387_v32 = vld [vmem:[%s858_s7 + $0x8] sm:$0xff] }
   0x5   :  { %654 = vmatprep.subr.bf16.mxu0 %v683_v0  ;;  %v279_v60 = vld [vmem:[%s856_s5] sm:$0xff]  ;;  %v658_v2 = vpack.c.bf16 %v282_v1, %v281_v63 }
   0x6   :  { %v44_v8 = vadd.f32 %v43_v7, %v42_v6  ;;  %650 = vmatpush3.bf16.msra.mxu1 %v649_v30  ;;  %v655_v62 = vpack.c.bf16 %v280_v61, %v279_v60  ;;  %v386_v31 = vld [vmem:[%s858_s7] sm:$0xff] }
   0x7   :  { %651 = vmatprep.subr.bf16.mxu1 %v683_v0 }
   0x8   :  { %v45_v9 = vrot.slane %v44_v8, 2 }
   0xa   :  { %v46_v10 = vadd.f32 %v45_v9, %v44_v8  ;;  %653 = vmatpush3.bf16.msra.mxu1 %v652_v33  ;;  %v661_v33 = vpack.c.bf16 %v387_v32, %v386_v31 }
   0xb   :  { %660 = vmatprep.subr.bf16.mxu1 %v683_v0 }
   0xc   :  { %v47_v11 = vrot.slane %v46_v10, 1 }
   0xe   :  { %v48_v12 = vadd.f32 %v47_v11, %v46_v10 }
  0x10   :  { %v50_v13 = vmul.f32 0.25, %v48_v12 }
  0x12   :  { %v51_v14 = vsub.f32 %v40_v4, %v50_v13  ;;  %v563_v4 = vld [vmem:[%s857_s4] ss:$0 sm:$0xff] }
  0x14   :  { %v52_v15 = vmul.f32 %v51_v14, %v51_v14 }
  0x16   :  { %v53_v16 = vsel %vm41_vm0, %v52_v15, 0.0 }
  0x17   :  { %v54_v17 = vrot.slane %v53_v16, 4 }
  0x19   :  { %v55_v18 = vadd.f32 %v54_v17, %v53_v16 }
  0x1b   :  { %v56_v19 = vrot.slane %v55_v18, 2 }
  0x1d   :  { %v57_v20 = vadd.f32 %v56_v19, %v55_v18 }
  0x1f   :  { %v58_v21 = vrot.slane %v57_v20, 1 }
  0x21   :  { %v59_v22 = vadd.f32 %v58_v21, %v57_v20 }
  0x23   :  { %v60_v23 = vmul.f32 0.25, %v59_v22 }
  0x25   :  { %v61_v24 = vadd.f32 1e-05, %v60_v23 }
  0x27   :  { %675 = vrsqrt.f32 %v61_v24 }
  0x31   :  { %v676_v25 = vpop.eup %675 }
  0x32   :  { %v63_v26 = vmul.f32 %v676_v25, %v51_v14 }
  0x34   :  { %v64_v27 = vmax.f32 %v63_v26, 0.0 }
  0x36   :  { %599 = vmatmul.mubr.msk.f32.vlgmr.msra.gmra.mrb[0].mxu0 %vm74_vm2, %v64_v27 }
  0x37   :  { %620 = vmatprep.mubr.msk.f32.mxu0 %vm684_vm1, %v685_v3  ;;  %656 = vmatpush3.bf16.msra.mxu0 %v655_v62 }
  0x38   :  { %657 = vmatprep.subr.bf16.mxu0 %v683_v0 }
  0x3b   :  { %659 = vmatpush3.bf16.msra.mxu0 %v658_v2  ;;  %v473_v2 = vld [vmem:[%s859_s9 + $0x10] sm:$0xff] }
  0x3c   :  { %666 = vmatprep.subr.bf16.mxu0 %v683_v0 }
 0x109   :  { %v144_v35 = vpop.f32.mrb[0].mxu0 }
 0x10a   :  { %v145_v36 = vadd.f32 %v561_v34, %v144_v35  ;;  %v600_v37 = vpop.f32.mrb[1].mxu0  ;;  %v388_v34 = vld [vmem:[%s858_s7 + $0x10] sm:$0xff] }
 0x10b   :  { %v472_v37 = vld [vmem:[%s859_s9 + $0x8] sm:$0xff] }
 0x10c   :  { %v149_v38 = vsel %vm148_vm3, %v145_v36, 0.0 }
 0x10d   :  { %v150_v39 = vrot.slane %v149_v38, 4 }
 0x10f   :  { %v151_v40 = vadd.f32 %v150_v39, %v149_v38  ;;  %v565_v39 = vld [vmem:[%s860_s6] ss:$0 sm:$0xff] }
 0x111   :  { %v152_v41 = vrot.slane %v151_v40, 2 }
 0x113   :  { %v153_v42 = vadd.f32 %v152_v41, %v151_v40 }
 0x115   :  { %v154_v43 = vrot.slane %v153_v42, 1 }
 0x117   :  { %v155_v44 = vadd.f32 %v154_v43, %v153_v42 }
 0x119   :  { %v156_v45 = vmul.f32 0.25, %v155_v44 }
 0x11b   :  { %v157_v46 = vsub.f32 %v145_v36, %v156_v45 }
 0x11d   :  { %v158_v47 = vmul.f32 %v157_v46, %v157_v46 }
 0x11f   :  { %v159_v48 = vsel %vm148_vm3, %v158_v47, 0.0 }
 0x120   :  { %v160_v49 = vrot.slane %v159_v48, 4 }
 0x122   :  { %v161_v50 = vadd.f32 %v160_v49, %v159_v48 }
 0x124   :  { %v162_v51 = vrot.slane %v161_v50, 2 }
 0x126   :  { %v163_v52 = vadd.f32 %v162_v51, %v161_v50 }
 0x128   :  { %v164_v53 = vrot.slane %v163_v52, 1 }
 0x12a   :  { %v165_v54 = vadd.f32 %v164_v53, %v163_v52 }
 0x12c   :  { %v166_v55 = vmul.f32 0.25, %v165_v54 }
 0x12e   :  { %v167_v56 = vadd.f32 1e-05, %v166_v55 }
 0x130   :  { %677 = vrsqrt.f32 %v167_v56 }
 0x13a   :  { %v678_v57 = vpop.eup %677 }
 0x13b   :  { %v169_v58 = vmul.f32 %v678_v57, %v157_v46 }
 0x13d   :  { %v170_v59 = vmax.f32 %v169_v58, 0.0 }
 0x13f   :  { %610 = vmatmul.mubr.msk.f32.vlgmr.msra.gmra.mrb[0].mxu1 %vm182_vm4, %v170_v59 }
 0x140   :  { %631 = vmatprep.mubr.msk.f32.mxu1 %vm684_vm1, %v685_v3  ;;  %662 = vmatpush3.bf16.msra.mxu1 %v661_v33 }
 0x141   :  { %663 = vmatprep.subr.bf16.mxu1 %v683_v0 }
 0x212   :  { %v252_v5 = vpop.f32.mrb[0].mxu1 }
 0x213   :  { %v253_v6 = vadd.f32 %v563_v4, %v252_v5  ;;  %v611_v7 = vpop.f32.mrb[1].mxu1  ;;  %v474_v4 = vld [vmem:[%s859_s9 + $0x18] sm:$0xff] }
 0x214   :  { %v670_v5 = vpack.c.bf16 %v474_v4, %v473_v2  ;;  %v567_v7 = vld [vmem:[%s862_s8] ss:$0 sm:$0xff] }
 0x215   :  { %v256_v8 = vadd.f32 %v253_v6, %v145_v36  ;;  %v471_v36 = vld [vmem:[%s859_s9] sm:$0xff]  ;;  %v16_v6 = vstv %s861_s10 }
 0x216   :  { %v667_v38 = vpack.c.bf16 %v472_v37, %v471_v36  ;;  %17 = vst [vmem:[#allocation2] sm:$0x1] %v16_v6 }
 0x217   :  { %v257_v9 = vsel %vm148_vm3, %v256_v8, 0.0 }
 0x218   :  { %v258_v10 = vrot.slane %v257_v9, 4 }
 0x21a   :  { %v259_v11 = vadd.f32 %v258_v10, %v257_v9 }
 0x21c   :  { %v260_v12 = vrot.slane %v259_v11, 2 }
 0x21e   :  { %v261_v13 = vadd.f32 %v260_v12, %v259_v11  ;;  %v569_v12 = vld [vmem:[#allocation2] ss:$0 sm:$0xff] }
 0x220   :  { %v262_v14 = vrot.slane %v261_v13, 1 }
 0x222   :  { %v263_v15 = vadd.f32 %v262_v14, %v261_v13 }
 0x224   :  { %v264_v16 = vmul.f32 0.25, %v263_v15 }
 0x226   :  { %v265_v17 = vsub.f32 %v256_v8, %v264_v16 }
 0x228   :  { %v266_v18 = vmul.f32 %v265_v17, %v265_v17 }
 0x22a   :  { %v267_v19 = vsel %vm148_vm3, %v266_v18, 0.0 }
 0x22b   :  { %v268_v20 = vrot.slane %v267_v19, 4 }
 0x22d   :  { %v269_v21 = vadd.f32 %v268_v20, %v267_v19 }
 0x22f   :  { %v270_v22 = vrot.slane %v269_v21, 2 }
 0x231   :  { %v271_v23 = vadd.f32 %v270_v22, %v269_v21 }
 0x233   :  { %v272_v24 = vrot.slane %v271_v23, 1 }
 0x235   :  { %v273_v25 = vadd.f32 %v272_v24, %v271_v23 }
 0x237   :  { %v274_v26 = vmul.f32 0.25, %v273_v25 }
 0x239   :  { %v275_v27 = vadd.f32 1e-05, %v274_v26 }
 0x23b   :  { %679 = vrsqrt.f32 %v275_v27 }
 0x245   :  { %v680_v28 = vpop.eup %679 }
 0x246   :  { %v277_v29 = vmul.f32 %v680_v28, %v265_v17 }
 0x248   :  { %v278_v30 = vmax.f32 %v277_v29, 0.0 }
 0x24a   :  { %621 = vmatmul.mubr.msk.f32.vlgmr.msra.gmra.mrb[2].mxu0 %vm182_vm4, %v278_v30 }
 0x24b   :  { %642 = vmatprep.mubr.msk.f32.mxu0 %vm684_vm1, %v685_v3  ;;  %v389_v3 = vld [vmem:[%s858_s7 + $0x18] sm:$0xff]  ;;  %668 = vmatpush3.bf16.msra.mxu0 %v667_v38 }
 0x24c   :  { %v664_v35 = vpack.c.bf16 %v389_v3, %v388_v34  ;;  %669 = vmatprep.subr.bf16.mxu0 %v683_v0 }
 0x24e   :  { %665 = vmatpush3.bf16.msra.mxu1 %v664_v35 }
 0x24f   :  { %671 = vmatpush3.bf16.msra.mxu0 %v670_v5 }
 0x31d   :  { %v359_v40 = vpop.f32.mrb[2].mxu0 }
 0x31e   :  { %v360_v41 = vadd.f32 %v565_v39, %v359_v40  ;;  %v622_v42 = vpop.f32.mrb[3].mxu0 }
 0x320   :  { %v363_v43 = vadd.f32 %v360_v41, %v256_v8 }
 0x322   :  { %v364_v44 = vsel %vm148_vm3, %v363_v43, 0.0 }
 0x323   :  { %v365_v45 = vrot.slane %v364_v44, 4 }
 0x325   :  { %v366_v46 = vadd.f32 %v365_v45, %v364_v44 }
 0x327   :  { %v367_v47 = vrot.slane %v366_v46, 2 }
 0x329   :  { %v368_v48 = vadd.f32 %v367_v47, %v366_v46 }
 0x32b   :  { %v369_v49 = vrot.slane %v368_v48, 1 }
 0x32d   :  { %v370_v50 = vadd.f32 %v369_v49, %v368_v48 }
 0x32f   :  { %v371_v51 = vmul.f32 0.25, %v370_v50 }
 0x331   :  { %v372_v52 = vsub.f32 %v363_v43, %v371_v51 }
 0x333   :  { %v373_v53 = vmul.f32 %v372_v52, %v372_v52 }
 0x335   :  { %v374_v0 = vsel %vm148_vm3, %v373_v53, 0.0 }
 0x336   :  { %v375_v54 = vrot.slane %v374_v0, 4 }
 0x338   :  { %v376_v55 = vadd.f32 %v375_v54, %v374_v0 }
 0x33a   :  { %v377_v56 = vrot.slane %v376_v55, 2 }
 0x33c   :  { %v378_v57 = vadd.f32 %v377_v56, %v376_v55 }
 0x33e   :  { %v379_v58 = vrot.slane %v378_v57, 1 }
 0x340   :  { %v380_v59 = vadd.f32 %v379_v58, %v378_v57 }
 0x342   :  { %v381_v60 = vmul.f32 0.25, %v380_v59 }
 0x344   :  { %v382_v61 = vadd.f32 1e-05, %v381_v60 }
 0x346   :  { %681 = vrsqrt.f32 %v382_v61 }
 0x350   :  { %v682_v62 = vpop.eup %681 }
 0x351   :  { %v384_v63 = vmul.f32 %v682_v62, %v372_v52 }
 0x353   :  { %v385_v1 = vmax.f32 %v384_v63, 0.0 }
 0x355   :  { %632 = vmatmul.mubr.msk.f32.vlgmr.msra.gmra.mrb[2].mxu1 %vm182_vm4, %v385_v1 }
 0x428   :  { %v466_v8 = vpop.f32.mrb[2].mxu1 }
 0x429   :  { %v467_v9 = vadd.f32 %v567_v7, %v466_v8  ;;  %v633_v10 = vpop.f32.mrb[3].mxu1 }
 0x42b   :  { %v470_v11 = vadd.f32 %v467_v9, %v363_v43 }
 0x42d   :  { %643 = vmatmul.mubr.msk.f32.vlgmr.msra.gmra.mrb[4].mxu0 %vm182_vm4, %v470_v11 }
 0x500   :  { %v551_v13 = vpop.f32.mrb[4].mxu0 }
 0x501   :  { %v552_v14 = vadd.f32 %v569_v12, %v551_v13  ;;  %v644_v15 = vpop.f32.mrb[5].mxu0 }
 0x503   :  { %556 = vst.msk [vmem:[%s863_s11] sm:$0xf] %vm555_vm5, %v552_v14 }

</bundles_post_ra>
